<compile_context>
chip_gen: v7x
topology: tpu7x:2x2x1
jax: 0.10.0
libtpu: 0.0.40
codegen_flags: <defaults>
</compile_context>

<pallas_src>
import functools

import jax
import jax.numpy as jnp
from jax.experimental import pallas as pl
from jax.experimental.pallas import tpu as pltpu

# ----- bert-base-uncased config (classifier is Linear(768, num_labels=3)) -----
VOCAB_SIZE = 30522
HIDDEN = 768
NUM_LAYERS = 12
NUM_HEADS = 12
HEAD_DIM = HIDDEN // NUM_HEADS          # 64
PAIR_DIM = 2 * HEAD_DIM                 # 128 -> lane-aligned head-pair tile
NUM_PAIRS = NUM_HEADS // 2              # 6
INTERMEDIATE = 3072
MAX_POS = 512
TYPE_VOCAB = 2
NUM_LABELS = 3
CLS_PAD = 128                           # lane-dense padded classifier width
LN_EPS = 1e-12

_VMEM_LIMIT = 40 * 1024 * 1024          # safe on v7x (64 MiB/TC); plenty for these blocks
_VMEM_SPEC = pl.BlockSpec(memory_space=pltpu.MemorySpace.VMEM)


def _cparams(dims=None):
    return pltpu.CompilerParams(dimension_semantics=dims, vmem_limit_bytes=_VMEM_LIMIT)


def _pick_tile(dim, candidates):
    """Largest candidate that evenly divides `dim`, else the full dim (always legal)."""
    for c in candidates:
        if dim >= c and dim % c == 0:
            return c
    return dim


def _gelu(x):
    # TODO(synk): HF BERT uses exact erf-based GELU; tanh approximation kept for guaranteed
    # Mosaic (EUP) lowering.
    return 0.5 * x * (1.0 + jnp.tanh(0.7978845608028654 * (x + 0.044715 * x * x * x)))


def _ln(x, g, b):
    mu = jnp.mean(x, axis=-1, keepdims=True)
    xc = x - mu
    var = jnp.mean(xc * xc, axis=-1, keepdims=True)
    return xc * jax.lax.rsqrt(var + LN_EPS) * g + b


# --------------------------------------------------------------------------------------
# Pallas kernels
# --------------------------------------------------------------------------------------
def _dense_kernel(x_ref, w_ref, b_ref, o_ref):
    """y = x @ w + b. x:(tm,K) bf16, w:(K,N) bf16, b:(1,N) f32 -> bf16 store."""
    y = jnp.dot(x_ref[...], w_ref[...], preferred_element_type=jnp.float32) + b_ref[...]
    o_ref[...] = y.astype(o_ref.dtype)


def _layernorm_kernel(x_ref, g_ref, b_ref, o_ref):
    """Row-wise LayerNorm over the last (768) axis; f32 math, bf16 store."""
    o_ref[...] = _ln(x_ref[...].astype(jnp.float32), g_ref[...], b_ref[...]).astype(o_ref.dtype)


def _attn_wo_ln_kernel(q_ref, k_ref, v_ref, m_ref, wo_ref, bo_ref, r_ref, g_ref, b_ref,
                       o_ref, acc_ref, *, scale):
    """One (batch, head-pair) grid step, fused with the output projection + residual + LN1.

    q/k/v_ref: (1,S,128) lane-aligned head-pair slices of the fused QKV slab (bf16).
    wo_ref: (128,768) slice of Wo for this head pair.  acc_ref: (S,768) f32 accumulator
    across the head-pair ("arbitrary") axis; on the last pair: o = LN(acc + bo + residual).
    """
    hp = pl.program_id(1)

    @pl.when(hp == 0)
    def _():
        acc_ref[...] = jnp.zeros_like(acc_ref)

    m = m_ref[0]                                   # (1, S) additive mask, broadcast over rows
    qp, kp, vp = q_ref[0], k_ref[0], v_ref[0]      # (S, 128) bf16
    ctx = []
    for h in range(2):                             # two heads per 128-lane pair
        lo = h * HEAD_DIM
        q = qp[:, lo:lo + HEAD_DIM]
        k = kp[:, lo:lo + HEAD_DIM]
        v = vp[:, lo:lo + HEAD_DIM]
        s = jax.lax.dot_general(q, k, (((1,), (1,)), ((), ())),
                                preferred_element_type=jnp.float32) * scale + m        # (S, S)
        s = s - jnp.max(s, axis=-1, keepdims=True)
        p = jnp.exp(s)
        p = p * pl.reciprocal(jnp.sum(p, axis=-1, keepdims=True), approx=True)
        ctx.append(jnp.dot(p.astype(jnp.bfloat16), v, preferred_element_type=jnp.float32))
    ctx_pair = jnp.concatenate(ctx, axis=-1).astype(jnp.bfloat16)                       # (S, 128)
    acc_ref[...] += jnp.dot(ctx_pair, wo_ref[...], preferred_element_type=jnp.float32)  # (S, 768)

    @pl.when(hp == NUM_PAIRS - 1)
    def _():
        x = acc_ref[...] + bo_ref[...] + r_ref[0].astype(jnp.float32)
        o_ref[0] = _ln(x, g_ref[...], b_ref[...]).astype(o_ref.dtype)


def _ffn_ln_kernel(x_ref, w1_ref, b1_ref, w2_ref, b2_ref, g_ref, b_ref, o_ref, acc_ref):
    """Fused FF1 + GELU + FF2 + residual + LN2; the 3072-wide intermediate never leaves VMEM.

    Grid step (i, k): partial = gelu(x @ W1[:,k-tile] + b1[k-tile]) @ W2[k-tile,:], accumulated
    into a (tm,768) f32 scratch; on the last k: o = LN(acc + b2 + x).
    """
    k = pl.program_id(1)

    @pl.when(k == 0)
    def _():
        acc_ref[...] = jnp.zeros_like(acc_ref)

    x = x_ref[...]                                                      # (tm, 768) bf16, resident
    t = _gelu(jnp.dot(x, w1_ref[...], preferred_element_type=jnp.float32) + b1_ref[...])
    acc_ref[...] += jnp.dot(t.astype(jnp.bfloat16), w2_ref[...],
                            preferred_element_type=jnp.float32)

    @pl.when(k == pl.num_programs(1) - 1)
    def _():
        y = acc_ref[...] + b2_ref[...] + x.astype(jnp.float32)
        o_ref[...] = _ln(y, g_ref[...], b_ref[...]).astype(o_ref.dtype)


def _pool_cls_kernel(x_ref, pw_ref, pb_ref, cw_ref, cb_ref, o_ref):
    """Fused pooler (tanh(x@Wp+bp)) + classifier (padded to lane-dense N=128)."""
    pooled = jnp.tanh(jnp.dot(x_ref[...], pw_ref[...],
                              preferred_element_type=jnp.float32) + pb_ref[...])
    o_ref[...] = jnp.dot(pooled.astype(jnp.bfloat16), cw_ref[...],
                         preferred_element_type=jnp.float32) + cb_ref[...]


# --------------------------------------------------------------------------------------
# Thin wrappers around pallas_call
# --------------------------------------------------------------------------------------
def dense(x, w, b):
    """x:(M,K) bf16, w:(K,N) bf16 (whole weight kept VMEM-resident), b:(N,) f32 -> (M,N) bf16."""
    M, K = x.shape
    N = w.shape[1]
    tm = _pick_tile(M, (512, 256, 128, 64, 32, 16, 8))
    return pl.pallas_call(
        _dense_kernel,
        grid=(M // tm,),
        out_shape=jax.ShapeDtypeStruct((M, N), jnp.bfloat16),
        in_specs=[
            pl.BlockSpec((tm, K), lambda i: (i, 0)),
            pl.BlockSpec((K, N), lambda i: (0, 0)),     # constant block -> no weight re-streaming
            pl.BlockSpec((1, N), lambda i: (0, 0)),
        ],
        out_specs=pl.BlockSpec((tm, N), lambda i: (i, 0)),
        compiler_params=_cparams(("parallel",)),
    )(x, w, b.reshape(1, N))


def layer_norm(x, g, b):
    M, N = x.shape
    tm = _pick_tile(M, (1024, 512, 256, 128, 64, 32, 16, 8))
    return pl.pallas_call(
        _layernorm_kernel,
        grid=(M // tm,),
        out_shape=jax.ShapeDtypeStruct((M, N), jnp.bfloat16),
        in_specs=[
            pl.BlockSpec((tm, N), lambda i: (i, 0)),
            pl.BlockSpec((1, N), lambda i: (0, 0)),
            pl.BlockSpec((1, N), lambda i: (0, 0)),
        ],
        out_specs=pl.BlockSpec((tm, N), lambda i: (i, 0)),
        compiler_params=_cparams(("parallel",)),
    )(x, g.reshape(1, N), b.reshape(1, N))


def attention_block(qkv, add_mask, resid, wo, bo, g, b):
    """qkv:(B,S,2304) bf16 fused [Q|K|V], add_mask:(B,1,S) f32, resid:(B,S,768) bf16.

    Returns LN(attn(qkv) @ Wo + bo + resid) as (B,S,768) bf16.  Grid (B, head-pairs).
    """
    B, S, _ = qkv.shape
    scale = 1.0 / (HEAD_DIM ** 0.5)
    return pl.pallas_call(
        functools.partial(_attn_wo_ln_kernel, scale=scale),
        grid=(B, NUM_PAIRS),
        out_shape=jax.ShapeDtypeStruct((B, S, HIDDEN), jnp.bfloat16),
        in_specs=[
            pl.BlockSpec((1, S, PAIR_DIM), lambda bi, hp: (bi, 0, hp)),                  # Q pair
            pl.BlockSpec((1, S, PAIR_DIM), lambda bi, hp: (bi, 0, NUM_PAIRS + hp)),      # K pair
            pl.BlockSpec((1, S, PAIR_DIM), lambda bi, hp: (bi, 0, 2 * NUM_PAIRS + hp)),  # V pair
            pl.BlockSpec((1, 1, S), lambda bi, hp: (bi, 0, 0)),                          # mask
            pl.BlockSpec((PAIR_DIM, HIDDEN), lambda bi, hp: (hp, 0)),                    # Wo slice
            pl.BlockSpec((1, HIDDEN), lambda bi, hp: (0, 0)),                            # bo
            pl.BlockSpec((1, S, HIDDEN), lambda bi, hp: (bi, 0, 0)),                     # residual
            pl.BlockSpec((1, HIDDEN), lambda bi, hp: (0, 0)),                            # ln gamma
            pl.BlockSpec((1, HIDDEN), lambda bi, hp: (0, 0)),                            # ln beta
        ],
        out_specs=pl.BlockSpec((1, S, HIDDEN), lambda bi, hp: (bi, 0, 0)),
        scratch_shapes=[pltpu.VMEM((S, HIDDEN), jnp.float32)],
        compiler_params=_cparams(("parallel", "arbitrary")),
    )(qkv, qkv, qkv, add_mask, wo, bo.reshape(1, HIDDEN), resid,
      g.reshape(1, HIDDEN), b.reshape(1, HIDDEN))


def ffn_block(x, w1, b1, w2, b2, g, b):
    """x:(M,768) bf16 -> LN(x + gelu(x@W1+b1)@W2 + b2) as (M,768) bf16."""
    M = x.shape[0]
    tm = _pick_tile(M, (512, 256, 128, 64, 32, 16, 8))
    tk = _pick_tile(INTERMEDIATE, (768, 512, 384, 256, 128))
    return pl.pallas_call(
        _ffn_ln_kernel,
        grid=(M // tm, INTERMEDIATE // tk),
        out_shape=jax.ShapeDtypeStruct((M, HIDDEN), jnp.bfloat16),
        in_specs=[
            pl.BlockSpec((tm, HIDDEN), lambda i, k: (i, 0)),
            pl.BlockSpec((HIDDEN, tk), lambda i, k: (0, k)),
            pl.BlockSpec((1, tk), lambda i, k: (0, k)),
            pl.BlockSpec((tk, HIDDEN), lambda i, k: (k, 0)),
            pl.BlockSpec((1, HIDDEN), lambda i, k: (0, 0)),
            pl.BlockSpec((1, HIDDEN), lambda i, k: (0, 0)),
            pl.BlockSpec((1, HIDDEN), lambda i, k: (0, 0)),
        ],
        out_specs=pl.BlockSpec((tm, HIDDEN), lambda i, k: (i, 0)),
        scratch_shapes=[pltpu.VMEM((tm, HIDDEN), jnp.float32)],
        compiler_params=_cparams(("parallel", "arbitrary")),
    )(x, w1, b1.reshape(1, INTERMEDIATE), w2, b2.reshape(1, HIDDEN),
      g.reshape(1, HIDDEN), b.reshape(1, HIDDEN))


def pooler_classifier(x, pw, pb, cw_pad, cb_pad):
    """x:(B,768) bf16 -> padded logits (B, CLS_PAD) f32; caller slices to NUM_LABELS."""
    B = x.shape[0]
    return pl.pallas_call(
        _pool_cls_kernel,
        out_shape=jax.ShapeDtypeStruct((B, CLS_PAD), jnp.float32),
        in_specs=[_VMEM_SPEC] * 5,
        out_specs=_VMEM_SPEC,
        compiler_params=_cparams(),
    )(x, pw, pb.reshape(1, HIDDEN), cw_pad, cb_pad.reshape(1, CLS_PAD))


# --------------------------------------------------------------------------------------
# Model forward (== MathClassifier.forward, eval mode)
# --------------------------------------------------------------------------------------
def math_classifier_forward(params, input_ids, attention_mask):
    B, S = input_ids.shape

    # ---- embeddings (gathers are JAX glue; LayerNorm is a Pallas kernel) ----
    # TODO(synk): token_type_ids assumed all-zero (matches the reference call signature).
    x = (params["word_emb"][input_ids]
         + params["pos_emb"][:S][None, :, :]
         + params["type_emb"][0][None, None, :])                 # (B, S, 768) f32
    h = layer_norm(x.reshape(B * S, HIDDEN), params["emb_ln_g"], params["emb_ln_b"])  # bf16

    # ---- extended additive attention mask ----
    add_mask = ((1.0 - attention_mask.astype(jnp.float32)) * (-1e9)).reshape(B, 1, S)

    def encoder_layer(h, lw):
        qkv = dense(h, lw["w_qkv"], lw["b_qkv"])                          # (B*S, 2304) bf16
        h = attention_block(qkv.reshape(B, S, 3 * HIDDEN), add_mask,
                            h.reshape(B, S, HIDDEN),
                            lw["wo"], lw["bo"], lw["ln1_g"], lw["ln1_b"]
                            ).reshape(B * S, HIDDEN)                      # attn+Wo+resid+LN1
        h = ffn_block(h, lw["w_ff1"], lw["b_ff1"], lw["w_ff2"], lw["b_ff2"],
                      lw["ln2_g"], lw["ln2_b"])                           # FF1+GELU+FF2+resid+LN2
        return h, None

    h, _ = jax.lax.scan(encoder_layer, h, params["layers"])

    # ---- pooler + dropout(identity in eval) + classifier, fused; classifier padded to 128 ----
    cls_tok = h.reshape(B, S, HIDDEN)[:, 0, :]
    logits_pad = pooler_classifier(cls_tok, params["pool_w"], params["pool_b"],
                                   params["cls_w_pad"], params["cls_b_pad"])
    return logits_pad[:, :NUM_LABELS]


# --------------------------------------------------------------------------------------
# Deterministic synthetic parameters (BERT init: N(0, 0.02) weights, zero bias, unit LN).
# Matmul weights are stored bf16 (MXU-native); biases / LN params / embeddings stay f32.
# --------------------------------------------------------------------------------------
def init_params(key):
    ks = jax.random.split(key, 11)
    nrm = lambda k, shp: 0.02 * jax.random.normal(k, shp, jnp.float32)
    nrm_bf = lambda k, shp: nrm(k, shp).astype(jnp.bfloat16)
    L, H, I = NUM_LAYERS, HIDDEN, INTERMEDIATE
    zeros = lambda shp: jnp.zeros(shp, jnp.float32)
    ones = lambda shp: jnp.ones(shp, jnp.float32)

    # fused QKV weight (Wq | Wk | Wv along the output axis) and bias
    w_qkv = jnp.concatenate([nrm_bf(k, (L, H, H)) for k in jax.random.split(ks[3], 3)], axis=-1)

    # classifier padded to a lane-dense 128-wide output (extra columns zero -> sliced off)
    cls_w = nrm(ks[10], (H, NUM_LABELS))
    cls_w_pad = jnp.zeros((H, CLS_PAD), jnp.float32).at[:, :NUM_LABELS].set(cls_w).astype(jnp.bfloat16)

    return {
        "word_emb": nrm(ks[0], (VOCAB_SIZE, H)),
        "pos_emb": nrm(ks[1], (MAX_POS, H)),
        "type_emb": nrm(ks[2], (TYPE_VOCAB, H)),
        "emb_ln_g": ones((H,)), "emb_ln_b": zeros((H,)),
        "layers": {
            "w_qkv": w_qkv, "b_qkv": zeros((L, 3 * H)),
            "wo": nrm_bf(ks[6], (L, H, H)), "bo": zeros((L, H)),
            "ln1_g": ones((L, H)), "ln1_b": zeros((L, H)),
            "w_ff1": nrm_bf(ks[7], (L, H, I)), "b_ff1": zeros((L, I)),
            "w_ff2": nrm_bf(ks[8], (L, I, H)), "b_ff2": zeros((L, H)),
            "ln2_g": ones((L, H)), "ln2_b": zeros((L, H)),
        },
        "pool_w": nrm_bf(ks[9], (H, H)), "pool_b": zeros((H,)),
        "cls_w_pad": cls_w_pad, "cls_b_pad": zeros((CLS_PAD,)),
    }


if __name__ == "__main__":
    key = jax.random.PRNGKey(0)
    pkey, ikey = jax.random.split(key, 2)
    params = init_params(pkey)

    B, S = 2, 8
    input_ids = jax.random.randint(ikey, (B, S), 0, VOCAB_SIZE, dtype=jnp.int32)
    attention_mask = jnp.array([[1, 1, 1, 1, 1, 1, 1, 1],
                                [1, 1, 1, 1, 1, 1, 0, 0]], dtype=jnp.int32)

    logits = jax.jit(math_classifier_forward)(params, input_ids, attention_mask)
    logits = jax.block_until_ready(logits)

    assert logits.shape == (B, NUM_LABELS)
    assert logits.dtype == jnp.float32
    assert bool(jnp.all(jnp.isfinite(logits)))
    print("KERNEL_OK")
</pallas_src>

<mosaic_0001>
module attributes {stable_mosaic.version = 11 : i64} {
  func.func @_layernorm_kernel(%arg0: i32, %arg1: memref<16x768xf32, #tpu.memory_space<vmem>>, %arg2: memref<1x768xf32, #tpu.memory_space<vmem>>, %arg3: memref<1x768xf32, #tpu.memory_space<vmem>>, %arg4: memref<16x768xbf16, #tpu.memory_space<vmem>>) attributes {dimension_semantics = [#tpu.dimension_semantics<parallel>], iteration_bounds = array<i64: 1>, scalar_prefetch = 0 : i64, scratch_operands = 0 : i64, tpu.core_type = #tpu.core_type<tc>, window_params = [{transform_indices = @transform_0, window_bounds = array<i64: 16, 768>}, {pipeline_mode = #tpu.pipeline_mode<synchronous>, transform_indices = @transform_1, window_bounds = array<i64: 1, 768>}, {pipeline_mode = #tpu.pipeline_mode<synchronous>, transform_indices = @transform_2, window_bounds = array<i64: 1, 768>}, {transform_indices = @transform_3, window_bounds = array<i64: 16, 768>}]} {
    %c0 = arith.constant 0 : index
    %c0_0 = arith.constant 0 : index
    %0 = vector.load %arg1[%c0, %c0_0] : memref<16x768xf32, #tpu.memory_space<vmem>>, vector<16x768xf32>
    %c0_1 = arith.constant 0 : index
    %c0_2 = arith.constant 0 : index
    %1 = vector.load %arg2[%c0_1, %c0_2] : memref<1x768xf32, #tpu.memory_space<vmem>>, vector<1x768xf32>
    %c0_3 = arith.constant 0 : index
    %c0_4 = arith.constant 0 : index
    %2 = vector.load %arg3[%c0_3, %c0_4] : memref<1x768xf32, #tpu.memory_space<vmem>>, vector<1x768xf32>
    %cst = arith.constant dense<0.000000e+00> : vector<16xf32>
    %3 = vector.multi_reduction <add>, %0, %cst [1] : vector<16x768xf32> to vector<16xf32>
    %4 = vector.shape_cast %3 : vector<16xf32> to vector<16x1xf32>
    %cst_5 = arith.constant 7.680000e+02 : f32
    %5 = vector.broadcast %cst_5 : f32 to vector<16x1xf32>
    %6 = arith.divf %4, %5 : vector<16x1xf32>
    %7 = vector.broadcast %6 : vector<16x1xf32> to vector<16x768xf32>
    %8 = arith.subf %0, %7 : vector<16x768xf32>
    %9 = arith.mulf %8, %8 : vector<16x768xf32>
    %cst_6 = arith.constant dense<0.000000e+00> : vector<16xf32>
    %10 = vector.multi_reduction <add>, %9, %cst_6 [1] : vector<16x768xf32> to vector<16xf32>
    %11 = vector.shape_cast %10 : vector<16xf32> to vector<16x1xf32>
    %cst_7 = arith.constant 7.680000e+02 : f32
    %12 = vector.broadcast %cst_7 : f32 to vector<16x1xf32>
    %13 = arith.divf %11, %12 : vector<16x1xf32>
    %cst_8 = arith.constant 9.99999996E-13 : f32
    %14 = vector.broadcast %cst_8 : f32 to vector<16x1xf32>
    %15 = arith.addf %13, %14 : vector<16x1xf32>
    %16 = math.rsqrt %15 : vector<16x1xf32>
    %17 = vector.broadcast %16 : vector<16x1xf32> to vector<16x768xf32>
    %18 = arith.mulf %8, %17 : vector<16x768xf32>
    %19 = vector.broadcast %1 : vector<1x768xf32> to vector<16x768xf32>
    %20 = arith.mulf %18, %19 : vector<16x768xf32>
    %21 = vector.broadcast %2 : vector<1x768xf32> to vector<16x768xf32>
    %22 = arith.addf %20, %21 : vector<16x768xf32>
    %23 = arith.truncf %22 : vector<16x768xf32> to vector<16x768xbf16>
    %c0_9 = arith.constant 0 : index
    %c0_10 = arith.constant 0 : index
    %24 = vector.load %arg4[%c0_9, %c0_10] : memref<16x768xbf16, #tpu.memory_space<vmem>>, vector<16x768xbf16>
    tpu.vector_store %arg4[%c0_9, %c0_10], %23 {strides = array<i32>} : memref<16x768xbf16, #tpu.memory_space<vmem>>, vector<16x768xbf16>,
    return
  }
  func.func @transform_0(%arg0: i32) -> (i32, i32) {
    %c0_i32 = arith.constant 0 : i32
    %c0_i32_0 = arith.constant 0 : i32
    return %arg0, %c0_i32 : i32, i32
  }
  func.func @transform_1(%arg0: i32) -> (i32, i32) {
    %c0_i32 = arith.constant 0 : i32
    %c0_i32_0 = arith.constant 0 : i32
    %c0_i32_1 = arith.constant 0 : i32
    return %c0_i32, %c0_i32_0 : i32, i32
  }
  func.func @transform_2(%arg0: i32) -> (i32, i32) {
    %c0_i32 = arith.constant 0 : i32
    %c0_i32_0 = arith.constant 0 : i32
    %c0_i32_1 = arith.constant 0 : i32
    return %c0_i32, %c0_i32_0 : i32, i32
  }
  func.func @transform_3(%arg0: i32) -> (i32, i32) {
    %c0_i32 = arith.constant 0 : i32
    %c0_i32_0 = arith.constant 0 : i32
    return %arg0, %c0_i32 : i32, i32
  }
}

module attributes {stable_mosaic.version = 11 : i64} {
  func.func @_dense_kernel(%arg0: i32, %arg1: memref<16x768xbf16, #tpu.memory_space<vmem>>, %arg2: memref<768x2304xbf16, #tpu.memory_space<vmem>>, %arg3: memref<1x2304xf32, #tpu.memory_space<vmem>>, %arg4: memref<16x2304xbf16, #tpu.memory_space<vmem>>) attributes {dimension_semantics = [#tpu.dimension_semantics<parallel>], iteration_bounds = array<i64: 1>, scalar_prefetch = 0 : i64, scratch_operands = 0 : i64, tpu.core_type = #tpu.core_type<tc>, window_params = [{transform_indices = @transform_0, window_bounds = array<i64: 16, 768>}, {pipeline_mode = #tpu.pipeline_mode<synchronous>, transform_indices = @transform_1, window_bounds = array<i64: 768, 2304>}, {pipeline_mode = #tpu.pipeline_mode<synchronous>, transform_indices = @transform_2, window_bounds = array<i64: 1, 2304>}, {transform_indices = @transform_3, window_bounds = array<i64: 16, 2304>}]} {
    %c0 = arith.constant 0 : index
    %c0_0 = arith.constant 0 : index
    %0 = vector.load %arg1[%c0, %c0_0] : memref<16x768xbf16, #tpu.memory_space<vmem>>, vector<16x768xbf16>
    %c0_1 = arith.constant 0 : index
    %c0_2 = arith.constant 0 : index
    %1 = vector.load %arg2[%c0_1, %c0_2] : memref<768x2304xbf16, #tpu.memory_space<vmem>>, vector<768x2304xbf16>
    %cst = arith.constant dense<0.000000e+00> : vector<16x2304xf32>
    %2 = tpu.matmul %0, %1, %cst {dimension_numbers = #tpu.dot_dimension_numbers<[1], [0], [0], [1], [0, 0, 1, 1], [], []>} : vector<16x768xbf16>, vector<768x2304xbf16>, vector<16x2304xf32> -> vector<16x2304xf32>
    %c0_3 = arith.constant 0 : index
    %c0_4 = arith.constant 0 : index
    %3 = vector.load %arg3[%c0_3, %c0_4] : memref<1x2304xf32, #tpu.memory_space<vmem>>, vector<1x2304xf32>
    %4 = vector.broadcast %3 : vector<1x2304xf32> to vector<16x2304xf32>
    %5 = arith.addf %2, %4 : vector<16x2304xf32>
    %6 = arith.truncf %5 : vector<16x2304xf32> to vector<16x2304xbf16>
    %c0_5 = arith.constant 0 : index
    %c0_6 = arith.constant 0 : index
    %7 = vector.load %arg4[%c0_5, %c0_6] : memref<16x2304xbf16, #tpu.memory_space<vmem>>, vector<16x2304xbf16>
    tpu.vector_store %arg4[%c0_5, %c0_6], %6 {strides = array<i32>} : memref<16x2304xbf16, #tpu.memory_space<vmem>>, vector<16x2304xbf16>,
    return
  }
  func.func @transform_0(%arg0: i32) -> (i32, i32) {
    %c0_i32 = arith.constant 0 : i32
    %c0_i32_0 = arith.constant 0 : i32
    return %arg0, %c0_i32 : i32, i32
  }
  func.func @transform_1(%arg0: i32) -> (i32, i32) {
    %c0_i32 = arith.constant 0 : i32
    %c0_i32_0 = arith.constant 0 : i32
    %c0_i32_1 = arith.constant 0 : i32
    return %c0_i32, %c0_i32_0 : i32, i32
  }
  func.func @transform_2(%arg0: i32) -> (i32, i32) {
    %c0_i32 = arith.constant 0 : i32
    %c0_i32_0 = arith.constant 0 : i32
    %c0_i32_1 = arith.constant 0 : i32
    return %c0_i32, %c0_i32_0 : i32, i32
  }
  func.func @transform_3(%arg0: i32) -> (i32, i32) {
    %c0_i32 = arith.constant 0 : i32
    %c0_i32_0 = arith.constant 0 : i32
    return %arg0, %c0_i32 : i32, i32
  }
}

module attributes {stable_mosaic.version = 11 : i64} {
  func.func @_attn_wo_ln_kernel(%arg0: i32, %arg1: i32, %arg2: memref<1x8x128xbf16, #tpu.memory_space<vmem>>, %arg3: memref<1x8x128xbf16, #tpu.memory_space<vmem>>, %arg4: memref<1x8x128xbf16, #tpu.memory_space<vmem>>, %arg5: memref<1x1x8xf32, #tpu.memory_space<vmem>>, %arg6: memref<128x768xbf16, #tpu.memory_space<vmem>>, %arg7: memref<1x768xf32, #tpu.memory_space<vmem>>, %arg8: memref<1x8x768xbf16, #tpu.memory_space<vmem>>, %arg9: memref<1x768xf32, #tpu.memory_space<vmem>>, %arg10: memref<1x768xf32, #tpu.memory_space<vmem>>, %arg11: memref<1x8x768xbf16, #tpu.memory_space<vmem>>, %arg12: memref<8x768xf32, #tpu.memory_space<vmem>>) attributes {dimension_semantics = [#tpu.dimension_semantics<parallel>, #tpu.dimension_semantics<arbitrary>], iteration_bounds = array<i64: 2, 6>, scalar_prefetch = 0 : i64, scratch_operands = 1 : i64, tpu.core_type = #tpu.core_type<tc>, window_params = [{transform_indices = @transform_0, window_bounds = array<i64: 1, 8, 128>}, {transform_indices = @transform_1, window_bounds = array<i64: 1, 8, 128>}, {transform_indices = @transform_2, window_bounds = array<i64: 1, 8, 128>}, {transform_indices = @transform_3, window_bounds = array<i64: 1, 1, 8>}, {transform_indices = @transform_4, window_bounds = array<i64: 128, 768>}, {pipeline_mode = #tpu.pipeline_mode<synchronous>, transform_indices = @transform_5, window_bounds = array<i64: 1, 768>}, {transform_indices = @transform_6, window_bounds = array<i64: 1, 8, 768>}, {pipeline_mode = #tpu.pipeline_mode<synchronous>, transform_indices = @transform_7, window_bounds = array<i64: 1, 768>}, {pipeline_mode = #tpu.pipeline_mode<synchronous>, transform_indices = @transform_8, window_bounds = array<i64: 1, 768>}, {transform_indices = @transform_9, window_bounds = array<i64: 1, 8, 768>}]} {
    %c0_i32 = arith.constant 0 : i32
    %0 = arith.cmpi eq, %arg1, %c0_i32 : i32
    %1 = arith.extui %0 : i1 to i32
    %c0_i32_0 = arith.constant 0 : i32
    %2 = arith.cmpi ne, %1, %c0_i32_0 : i32
    scf.if %2 {
      %cst_29 = arith.constant 0.000000e+00 : f32
      %61 = vector.broadcast %cst_29 : f32 to vector<8x768xf32>
      %c0_30 = arith.constant 0 : index
      %c0_31 = arith.constant 0 : index
      %62 = vector.load %arg12[%c0_30, %c0_31] : memref<8x768xf32, #tpu.memory_space<vmem>>, vector<8x768xf32>
      tpu.vector_store %arg12[%c0_30, %c0_31], %61 {strides = array<i32>} : memref<8x768xf32, #tpu.memory_space<vmem>>, vector<8x768xf32>,
    } else {
    }
    %c0 = arith.constant 0 : index
    %c0_1 = arith.constant 0 : index
    %c0_2 = arith.constant 0 : index
    %3 = vector.load %arg5[%c0, %c0_1, %c0_2] : memref<1x1x8xf32, #tpu.memory_space<vmem>>, vector<1x1x8xf32>
    %4 = vector.shape_cast %3 : vector<1x1x8xf32> to vector<1x8xf32>
    %c0_3 = arith.constant 0 : index
    %c0_4 = arith.constant 0 : index
    %c0_5 = arith.constant 0 : index
    %5 = vector.load %arg2[%c0_3, %c0_4, %c0_5] : memref<1x8x128xbf16, #tpu.memory_space<vmem>>, vector<1x8x128xbf16>
    %6 = vector.shape_cast %5 : vector<1x8x128xbf16> to vector<8x128xbf16>
    %c0_6 = arith.constant 0 : index
    %c0_7 = arith.constant 0 : index
    %c0_8 = arith.constant 0 : index
    %7 = vector.load %arg3[%c0_6, %c0_7, %c0_8] : memref<1x8x128xbf16, #tpu.memory_space<vmem>>, vector<1x8x128xbf16>
    %8 = vector.shape_cast %7 : vector<1x8x128xbf16> to vector<8x128xbf16>
    %c0_9 = arith.constant 0 : index
    %c0_10 = arith.constant 0 : index
    %c0_11 = arith.constant 0 : index
    %9 = vector.load %arg4[%c0_9, %c0_10, %c0_11] : memref<1x8x128xbf16, #tpu.memory_space<vmem>>, vector<1x8x128xbf16>
    %10 = vector.shape_cast %9 : vector<1x8x128xbf16> to vector<8x128xbf16>
    %11 = vector.extract_strided_slice %6 {offsets = [0, 0], sizes = [8, 64], strides = [1, 1]} : vector<8x128xbf16> to vector<8x64xbf16>
    %12 = vector.extract_strided_slice %8 {offsets = [0, 0], sizes = [8, 64], strides = [1, 1]} : vector<8x128xbf16> to vector<8x64xbf16>
    %13 = vector.extract_strided_slice %10 {offsets = [0, 0], sizes = [8, 64], strides = [1, 1]} : vector<8x128xbf16> to vector<8x64xbf16>
    %cst = arith.constant dense<0.000000e+00> : vector<8x8xf32>
    %14 = tpu.matmul %11, %12, %cst {dimension_numbers = #tpu.dot_dimension_numbers<[1], [1], [0], [0], [0, 0, 1, 0], [], []>} : vector<8x64xbf16>, vector<8x64xbf16>, vector<8x8xf32> -> vector<8x8xf32>
    %cst_12 = arith.constant 1.250000e-01 : f32
    %15 = vector.broadcast %cst_12 : f32 to vector<8x8xf32>
    %16 = arith.mulf %14, %15 : vector<8x8xf32>
    %17 = vector.broadcast %4 : vector<1x8xf32> to vector<8x8xf32>
    %18 = arith.addf %16, %17 : vector<8x8xf32>
    %cst_13 = arith.constant dense<0xFF800000> : vector<8xf32>
    %19 = vector.multi_reduction <maximumf>, %18, %cst_13 [1] : vector<8x8xf32> to vector<8xf32>
    %20 = vector.shape_cast %19 : vector<8xf32> to vector<8x1xf32>
    %21 = vector.broadcast %20 : vector<8x1xf32> to vector<8x8xf32>
    %22 = arith.subf %18, %21 : vector<8x8xf32>
    %23 = math.exp %22 : vector<8x8xf32>
    %cst_14 = arith.constant dense<0.000000e+00> : vector<8xf32>
    %24 = vector.multi_reduction <add>, %23, %cst_14 [1] : vector<8x8xf32> to vector<8xf32>
    %25 = vector.shape_cast %24 : vector<8xf32> to vector<8x1xf32>
    %26 = tpu.reciprocal %25 {approx = true} : vector<8x1xf32> -> vector<8x1xf32>
    %27 = vector.broadcast %26 : vector<8x1xf32> to vector<8x8xf32>
    %28 = arith.mulf %23, %27 : vector<8x8xf32>
    %29 = arith.truncf %28 : vector<8x8xf32> to vector<8x8xbf16>
    %cst_15 = arith.constant dense<0.000000e+00> : vector<8x64xf32>
    %30 = tpu.matmul %29, %13, %cst_15 {dimension_numbers = #tpu.dot_dimension_numbers<[1], [0], [0], [1], [0, 0, 1, 1], [], []>} : vector<8x8xbf16>, vector<8x64xbf16>, vector<8x64xf32> -> vector<8x64xf32>
    %31 = vector.extract_strided_slice %6 {offsets = [0, 64], sizes = [8, 64], strides = [1, 1]} : vector<8x128xbf16> to vector<8x64xbf16>
    %32 = vector.extract_strided_slice %8 {offsets = [0, 64], sizes = [8, 64], strides = [1, 1]} : vector<8x128xbf16> to vector<8x64xbf16>
    %33 = vector.extract_strided_slice %10 {offsets = [0, 64], sizes = [8, 64], strides = [1, 1]} : vector<8x128xbf16> to vector<8x64xbf16>
    %cst_16 = arith.constant dense<0.000000e+00> : vector<8x8xf32>
    %34 = tpu.matmul %31, %32, %cst_16 {dimension_numbers = #tpu.dot_dimension_numbers<[1], [1], [0], [0], [0, 0, 1, 0], [], []>} : vector<8x64xbf16>, vector<8x64xbf16>, vector<8x8xf32> -> vector<8x8xf32>
    %cst_17 = arith.constant 1.250000e-01 : f32
    %35 = vector.broadcast %cst_17 : f32 to vector<8x8xf32>
    %36 = arith.mulf %34, %35 : vector<8x8xf32>
    %37 = vector.broadcast %4 : vector<1x8xf32> to vector<8x8xf32>
    %38 = arith.addf %36, %37 : vector<8x8xf32>
    %cst_18 = arith.constant dense<0xFF800000> : vector<8xf32>
    %39 = vector.multi_reduction <maximumf>, %38, %cst_18 [1] : vector<8x8xf32> to vector<8xf32>
    %40 = vector.shape_cast %39 : vector<8xf32> to vector<8x1xf32>
    %41 = vector.broadcast %40 : vector<8x1xf32> to vector<8x8xf32>
    %42 = arith.subf %38, %41 : vector<8x8xf32>
    %43 = math.exp %42 : vector<8x8xf32>
    %cst_19 = arith.constant dense<0.000000e+00> : vector<8xf32>
    %44 = vector.multi_reduction <add>, %43, %cst_19 [1] : vector<8x8xf32> to vector<8xf32>
    %45 = vector.shape_cast %44 : vector<8xf32> to vector<8x1xf32>
    %46 = tpu.reciprocal %45 {approx = true} : vector<8x1xf32> -> vector<8x1xf32>
    %47 = vector.broadcast %46 : vector<8x1xf32> to vector<8x8xf32>
    %48 = arith.mulf %43, %47 : vector<8x8xf32>
    %49 = arith.truncf %48 : vector<8x8xf32> to vector<8x8xbf16>
    %cst_20 = arith.constant dense<0.000000e+00> : vector<8x64xf32>
    %50 = tpu.matmul %49, %33, %cst_20 {dimension_numbers = #tpu.dot_dimension_numbers<[1], [0], [0], [1], [0, 0, 1, 1], [], []>} : vector<8x8xbf16>, vector<8x64xbf16>, vector<8x64xf32> -> vector<8x64xf32>
    %51 = tpu.concatenate %30, %50 in 1 : vector<8x64xf32>, vector<8x64xf32> -> vector<8x128xf32>
    %52 = arith.truncf %51 : vector<8x128xf32> to vector<8x128xbf16>
    %c0_21 = arith.constant 0 : index
    %c0_22 = arith.constant 0 : index
    %53 = vector.load %arg12[%c0_21, %c0_22] : memref<8x768xf32, #tpu.memory_space<vmem>>, vector<8x768xf32>
    %c0_23 = arith.constant 0 : index
    %c0_24 = arith.constant 0 : index
    %54 = vector.load %arg6[%c0_23, %c0_24] : memref<128x768xbf16, #tpu.memory_space<vmem>>, vector<128x768xbf16>
    %cst_25 = arith.constant dense<0.000000e+00> : vector<8x768xf32>
    %55 = tpu.matmul %52, %54, %cst_25 {dimension_numbers = #tpu.dot_dimension_numbers<[1], [0], [0], [1], [0, 0, 1, 1], [], []>} : vector<8x128xbf16>, vector<128x768xbf16>, vector<8x768xf32> -> vector<8x768xf32>
    %56 = arith.addf %53, %55 : vector<8x768xf32>
    %c0_26 = arith.constant 0 : index
    %c0_27 = arith.constant 0 : index
    %57 = vector.load %arg12[%c0_26, %c0_27] : memref<8x768xf32, #tpu.memory_space<vmem>>, vector<8x768xf32>
    tpu.vector_store %arg12[%c0_26, %c0_27], %56 {strides = array<i32>} : memref<8x768xf32, #tpu.memory_space<vmem>>, vector<8x768xf32>,
    %c5_i32 = arith.constant 5 : i32
    %58 = arith.cmpi eq, %arg1, %c5_i32 : i32
    %59 = arith.extui %58 : i1 to i32
    %c0_i32_28 = arith.constant 0 : i32
    %60 = arith.cmpi ne, %59, %c0_i32_28 : i32
    scf.if %60 {
      %c0_29 = arith.constant 0 : index
      %c0_30 = arith.constant 0 : index
      %61 = vector.load %arg12[%c0_29, %c0_30] : memref<8x768xf32, #tpu.memory_space<vmem>>, vector<8x768xf32>
      %c0_31 = arith.constant 0 : index
      %c0_32 = arith.constant 0 : index
      %62 = vector.load %arg7[%c0_31, %c0_32] : memref<1x768xf32, #tpu.memory_space<vmem>>, vector<1x768xf32>
      %63 = vector.broadcast %62 : vector<1x768xf32> to vector<8x768xf32>
      %64 = arith.addf %61, %63 : vector<8x768xf32>
      %c0_33 = arith.constant 0 : index
      %c0_34 = arith.constant 0 : index
      %c0_35 = arith.constant 0 : index
      %65 = vector.load %arg8[%c0_33, %c0_34, %c0_35] : memref<1x8x768xbf16, #tpu.memory_space<vmem>>, vector<1x8x768xbf16>
      %66 = vector.shape_cast %65 : vector<1x8x768xbf16> to vector<8x768xbf16>
      %67 = arith.extf %66 : vector<8x768xbf16> to vector<8x768xf32>
      %68 = arith.addf %64, %67 : vector<8x768xf32>
      %c0_36 = arith.constant 0 : index
      %c0_37 = arith.constant 0 : index
      %69 = vector.load %arg9[%c0_36, %c0_37] : memref<1x768xf32, #tpu.memory_space<vmem>>, vector<1x768xf32>
      %c0_38 = arith.constant 0 : index
      %c0_39 = arith.constant 0 : index
      %70 = vector.load %arg10[%c0_38, %c0_39] : memref<1x768xf32, #tpu.memory_space<vmem>>, vector<1x768xf32>
      %cst_40 = arith.constant dense<0.000000e+00> : vector<8xf32>
      %71 = vector.multi_reduction <add>, %68, %cst_40 [1] : vector<8x768xf32> to vector<8xf32>
      %72 = vector.shape_cast %71 : vector<8xf32> to vector<8x1xf32>
      %cst_41 = arith.constant 7.680000e+02 : f32
      %73 = vector.broadcast %cst_41 : f32 to vector<8x1xf32>
      %74 = arith.divf %72, %73 : vector<8x1xf32>
      %75 = vector.broadcast %74 : vector<8x1xf32> to vector<8x768xf32>
      %76 = arith.subf %68, %75 : vector<8x768xf32>
      %77 = arith.mulf %76, %76 : vector<8x768xf32>
      %cst_42 = arith.constant dense<0.000000e+00> : vector<8xf32>
      %78 = vector.multi_reduction <add>, %77, %cst_42 [1] : vector<8x768xf32> to vector<8xf32>
      %79 = vector.shape_cast %78 : vector<8xf32> to vector<8x1xf32>
      %cst_43 = arith.constant 7.680000e+02 : f32
      %80 = vector.broadcast %cst_43 : f32 to vector<8x1xf32>
      %81 = arith.divf %79, %80 : vector<8x1xf32>
      %cst_44 = arith.constant 9.99999996E-13 : f32
      %82 = vector.broadcast %cst_44 : f32 to vector<8x1xf32>
      %83 = arith.addf %81, %82 : vector<8x1xf32>
      %84 = math.rsqrt %83 : vector<8x1xf32>
      %85 = vector.broadcast %84 : vector<8x1xf32> to vector<8x768xf32>
      %86 = arith.mulf %76, %85 : vector<8x768xf32>
      %87 = vector.broadcast %69 : vector<1x768xf32> to vector<8x768xf32>
      %88 = arith.mulf %86, %87 : vector<8x768xf32>
      %89 = vector.broadcast %70 : vector<1x768xf32> to vector<8x768xf32>
      %90 = arith.addf %88, %89 : vector<8x768xf32>
      %91 = arith.truncf %90 : vector<8x768xf32> to vector<8x768xbf16>
      %c0_45 = arith.constant 0 : index
      %c0_46 = arith.constant 0 : index
      %c0_47 = arith.constant 0 : index
      %92 = vector.load %arg11[%c0_45, %c0_46, %c0_47] : memref<1x8x768xbf16, #tpu.memory_space<vmem>>, vector<1x8x768xbf16>
      %93 = vector.shape_cast %92 : vector<1x8x768xbf16> to vector<8x768xbf16>
      %94 = vector.shape_cast %91 : vector<8x768xbf16> to vector<1x8x768xbf16>
      tpu.vector_store %arg11[%c0_45, %c0_46, %c0_47], %94 {strides = array<i32>} : memref<1x8x768xbf16, #tpu.memory_space<vmem>>, vector<1x8x768xbf16>,
    } else {
    }
    return
  }
  func.func @transform_0(%arg0: i32, %arg1: i32) -> (i32, i32, i32) {
    %c0_i32 = arith.constant 0 : i32
    %c0_i32_0 = arith.constant 0 : i32
    return %arg0, %c0_i32, %arg1 : i32, i32, i32
  }
  func.func @transform_1(%arg0: i32, %arg1: i32) -> (i32, i32, i32) {
    %c6_i32 = arith.constant 6 : i32
    %0 = arith.addi %c6_i32, %arg1 : i32
    %c0_i32 = arith.constant 0 : i32
    %c0_i32_0 = arith.constant 0 : i32
    return %arg0, %c0_i32, %0 : i32, i32, i32
  }
  func.func @transform_2(%arg0: i32, %arg1: i32) -> (i32, i32, i32) {
    %c12_i32 = arith.constant 12 : i32
    %0 = arith.addi %c12_i32, %arg1 : i32
    %c0_i32 = arith.constant 0 : i32
    %c0_i32_0 = arith.constant 0 : i32
    return %arg0, %c0_i32, %0 : i32, i32, i32
  }
  func.func @transform_3(%arg0: i32, %arg1: i32) -> (i32, i32, i32) {
    %c0_i32 = arith.constant 0 : i32
    %c0_i32_0 = arith.constant 0 : i32
    %c0_i32_1 = arith.constant 0 : i32
    return %arg0, %c0_i32, %c0_i32_0 : i32, i32, i32
  }
  func.func @transform_4(%arg0: i32, %arg1: i32) -> (i32, i32) {
    %c0_i32 = arith.constant 0 : i32
    %c0_i32_0 = arith.constant 0 : i32
    return %arg1, %c0_i32 : i32, i32
  }
  func.func @transform_5(%arg0: i32, %arg1: i32) -> (i32, i32) {
    %c0_i32 = arith.constant 0 : i32
    %c0_i32_0 = arith.constant 0 : i32
    %c0_i32_1 = arith.constant 0 : i32
    return %c0_i32, %c0_i32_0 : i32, i32
  }
  func.func @transform_6(%arg0: i32, %arg1: i32) -> (i32, i32, i32) {
    %c0_i32 = arith.constant 0 : i32
    %c0_i32_0 = arith.constant 0 : i32
    %c0_i32_1 = arith.constant 0 : i32
    return %arg0, %c0_i32, %c0_i32_0 : i32, i32, i32
  }
  func.func @transform_7(%arg0: i32, %arg1: i32) -> (i32, i32) {
    %c0_i32 = arith.constant 0 : i32
    %c0_i32_0 = arith.constant 0 : i32
    %c0_i32_1 = arith.constant 0 : i32
    return %c0_i32, %c0_i32_0 : i32, i32
  }
  func.func @transform_8(%arg0: i32, %arg1: i32) -> (i32, i32) {
    %c0_i32 = arith.constant 0 : i32
    %c0_i32_0 = arith.constant 0 : i32
    %c0_i32_1 = arith.constant 0 : i32
    return %c0_i32, %c0_i32_0 : i32, i32
  }
  func.func @transform_9(%arg0: i32, %arg1: i32) -> (i32, i32, i32) {
    %c0_i32 = arith.constant 0 : i32
    %c0_i32_0 = arith.constant 0 : i32
    %c0_i32_1 = arith.constant 0 : i32
    return %arg0, %c0_i32, %c0_i32_0 : i32, i32, i32
  }
}

module attributes {stable_mosaic.version = 11 : i64} {
  func.func @_ffn_ln_kernel(%arg0: i32, %arg1: i32, %arg2: memref<16x768xbf16, #tpu.memory_space<vmem>>, %arg3: memref<768x768xbf16, #tpu.memory_space<vmem>>, %arg4: memref<1x768xf32, #tpu.memory_space<vmem>>, %arg5: memref<768x768xbf16, #tpu.memory_space<vmem>>, %arg6: memref<1x768xf32, #tpu.memory_space<vmem>>, %arg7: memref<1x768xf32, #tpu.memory_space<vmem>>, %arg8: memref<1x768xf32, #tpu.memory_space<vmem>>, %arg9: memref<16x768xbf16, #tpu.memory_space<vmem>>, %arg10: memref<16x768xf32, #tpu.memory_space<vmem>>) attributes {dimension_semantics = [#tpu.dimension_semantics<parallel>, #tpu.dimension_semantics<arbitrary>], iteration_bounds = array<i64: 1, 4>, scalar_prefetch = 0 : i64, scratch_operands = 1 : i64, tpu.core_type = #tpu.core_type<tc>, window_params = [{transform_indices = @transform_0, window_bounds = array<i64: 16, 768>}, {transform_indices = @transform_1, window_bounds = array<i64: 768, 768>}, {transform_indices = @transform_2, window_bounds = array<i64: 1, 768>}, {transform_indices = @transform_3, window_bounds = array<i64: 768, 768>}, {pipeline_mode = #tpu.pipeline_mode<synchronous>, transform_indices = @transform_4, window_bounds = array<i64: 1, 768>}, {pipeline_mode = #tpu.pipeline_mode<synchronous>, transform_indices = @transform_5, window_bounds = array<i64: 1, 768>}, {pipeline_mode = #tpu.pipeline_mode<synchronous>, transform_indices = @transform_6, window_bounds = array<i64: 1, 768>}, {transform_indices = @transform_7, window_bounds = array<i64: 16, 768>}]} {
    %c0_i32 = arith.constant 0 : i32
    %0 = arith.cmpi eq, %arg1, %c0_i32 : i32
    %1 = arith.extui %0 : i1 to i32
    %c0_i32_0 = arith.constant 0 : i32
    %2 = arith.cmpi ne, %1, %c0_i32_0 : i32
    scf.if %2 {
      %cst_18 = arith.constant 0.000000e+00 : f32
      %31 = vector.broadcast %cst_18 : f32 to vector<16x768xf32>
      %c0_19 = arith.constant 0 : index
      %c0_20 = arith.constant 0 : index
      %32 = vector.load %arg10[%c0_19, %c0_20] : memref<16x768xf32, #tpu.memory_space<vmem>>, vector<16x768xf32>
      tpu.vector_store %arg10[%c0_19, %c0_20], %31 {strides = array<i32>} : memref<16x768xf32, #tpu.memory_space<vmem>>, vector<16x768xf32>,
    } else {
    }
    %c0 = arith.constant 0 : index
    %c0_1 = arith.constant 0 : index
    %3 = vector.load %arg2[%c0, %c0_1] : memref<16x768xbf16, #tpu.memory_space<vmem>>, vector<16x768xbf16>
    %c0_2 = arith.constant 0 : index
    %c0_3 = arith.constant 0 : index
    %4 = vector.load %arg3[%c0_2, %c0_3] : memref<768x768xbf16, #tpu.memory_space<vmem>>, vector<768x768xbf16>
    %cst = arith.constant dense<0.000000e+00> : vector<16x768xf32>
    %5 = tpu.matmul %3, %4, %cst {dimension_numbers = #tpu.dot_dimension_numbers<[1], [0], [0], [1], [0, 0, 1, 1], [], []>} : vector<16x768xbf16>, vector<768x768xbf16>, vector<16x768xf32> -> vector<16x768xf32>
    %c0_4 = arith.constant 0 : index
    %c0_5 = arith.constant 0 : index
    %6 = vector.load %arg4[%c0_4, %c0_5] : memref<1x768xf32, #tpu.memory_space<vmem>>, vector<1x768xf32>
    %7 = vector.broadcast %6 : vector<1x768xf32> to vector<16x768xf32>
    %8 = arith.addf %5, %7 : vector<16x768xf32>
    %cst_6 = arith.constant 5.000000e-01 : f32
    %9 = vector.broadcast %cst_6 : f32 to vector<16x768xf32>
    %10 = arith.mulf %9, %8 : vector<16x768xf32>
    %cst_7 = arith.constant 4.471500e-02 : f32
    %11 = vector.broadcast %cst_7 : f32 to vector<16x768xf32>
    %12 = arith.mulf %11, %8 : vector<16x768xf32>
    %13 = arith.mulf %12, %8 : vector<16x768xf32>
    %14 = arith.mulf %13, %8 : vector<16x768xf32>
    %15 = arith.addf %8, %14 : vector<16x768xf32>
    %cst_8 = arith.constant 0.797884583 : f32
    %16 = vector.broadcast %cst_8 : f32 to vector<16x768xf32>
    %17 = arith.mulf %16, %15 : vector<16x768xf32>
    %18 = math.tanh %17 : vector<16x768xf32>
    %cst_9 = arith.constant 1.000000e+00 : f32
    %19 = vector.broadcast %cst_9 : f32 to vector<16x768xf32>
    %20 = arith.addf %19, %18 : vector<16x768xf32>
    %21 = arith.mulf %10, %20 : vector<16x768xf32>
    %c0_10 = arith.constant 0 : index
    %c0_11 = arith.constant 0 : index
    %22 = vector.load %arg10[%c0_10, %c0_11] : memref<16x768xf32, #tpu.memory_space<vmem>>, vector<16x768xf32>
    %23 = arith.truncf %21 : vector<16x768xf32> to vector<16x768xbf16>
    %c0_12 = arith.constant 0 : index
    %c0_13 = arith.constant 0 : index
    %24 = vector.load %arg5[%c0_12, %c0_13] : memref<768x768xbf16, #tpu.memory_space<vmem>>, vector<768x768xbf16>
    %cst_14 = arith.constant dense<0.000000e+00> : vector<16x768xf32>
    %25 = tpu.matmul %23, %24, %cst_14 {dimension_numbers = #tpu.dot_dimension_numbers<[1], [0], [0], [1], [0, 0, 1, 1], [], []>} : vector<16x768xbf16>, vector<768x768xbf16>, vector<16x768xf32> -> vector<16x768xf32>
    %26 = arith.addf %22, %25 : vector<16x768xf32>
    %c0_15 = arith.constant 0 : index
    %c0_16 = arith.constant 0 : index
    %27 = vector.load %arg10[%c0_15, %c0_16] : memref<16x768xf32, #tpu.memory_space<vmem>>, vector<16x768xf32>
    tpu.vector_store %arg10[%c0_15, %c0_16], %26 {strides = array<i32>} : memref<16x768xf32, #tpu.memory_space<vmem>>, vector<16x768xf32>,
    %c3_i32 = arith.constant 3 : i32
    %28 = arith.cmpi eq, %arg1, %c3_i32 : i32
    %29 = arith.extui %28 : i1 to i32
    %c0_i32_17 = arith.constant 0 : i32
    %30 = arith.cmpi ne, %29, %c0_i32_17 : i32
    scf.if %30 {
      %c0_18 = arith.constant 0 : index
      %c0_19 = arith.constant 0 : index
      %31 = vector.load %arg10[%c0_18, %c0_19] : memref<16x768xf32, #tpu.memory_space<vmem>>, vector<16x768xf32>
      %c0_20 = arith.constant 0 : index
      %c0_21 = arith.constant 0 : index
      %32 = vector.load %arg6[%c0_20, %c0_21] : memref<1x768xf32, #tpu.memory_space<vmem>>, vector<1x768xf32>
      %33 = vector.broadcast %32 : vector<1x768xf32> to vector<16x768xf32>
      %34 = arith.addf %31, %33 : vector<16x768xf32>
      %35 = arith.extf %3 : vector<16x768xbf16> to vector<16x768xf32>
      %36 = arith.addf %34, %35 : vector<16x768xf32>
      %c0_22 = arith.constant 0 : index
      %c0_23 = arith.constant 0 : index
      %37 = vector.load %arg7[%c0_22, %c0_23] : memref<1x768xf32, #tpu.memory_space<vmem>>, vector<1x768xf32>
      %c0_24 = arith.constant 0 : index
      %c0_25 = arith.constant 0 : index
      %38 = vector.load %arg8[%c0_24, %c0_25] : memref<1x768xf32, #tpu.memory_space<vmem>>, vector<1x768xf32>
      %cst_26 = arith.constant dense<0.000000e+00> : vector<16xf32>
      %39 = vector.multi_reduction <add>, %36, %cst_26 [1] : vector<16x768xf32> to vector<16xf32>
      %40 = vector.shape_cast %39 : vector<16xf32> to vector<16x1xf32>
      %cst_27 = arith.constant 7.680000e+02 : f32
      %41 = vector.broadcast %cst_27 : f32 to vector<16x1xf32>
      %42 = arith.divf %40, %41 : vector<16x1xf32>
      %43 = vector.broadcast %42 : vector<16x1xf32> to vector<16x768xf32>
      %44 = arith.subf %36, %43 : vector<16x768xf32>
      %45 = arith.mulf %44, %44 : vector<16x768xf32>
      %cst_28 = arith.constant dense<0.000000e+00> : vector<16xf32>
      %46 = vector.multi_reduction <add>, %45, %cst_28 [1] : vector<16x768xf32> to vector<16xf32>
      %47 = vector.shape_cast %46 : vector<16xf32> to vector<16x1xf32>
      %cst_29 = arith.constant 7.680000e+02 : f32
      %48 = vector.broadcast %cst_29 : f32 to vector<16x1xf32>
      %49 = arith.divf %47, %48 : vector<16x1xf32>
      %cst_30 = arith.constant 9.99999996E-13 : f32
      %50 = vector.broadcast %cst_30 : f32 to vector<16x1xf32>
      %51 = arith.addf %49, %50 : vector<16x1xf32>
      %52 = math.rsqrt %51 : vector<16x1xf32>
      %53 = vector.broadcast %52 : vector<16x1xf32> to vector<16x768xf32>
      %54 = arith.mulf %44, %53 : vector<16x768xf32>
      %55 = vector.broadcast %37 : vector<1x768xf32> to vector<16x768xf32>
      %56 = arith.mulf %54, %55 : vector<16x768xf32>
      %57 = vector.broadcast %38 : vector<1x768xf32> to vector<16x768xf32>
      %58 = arith.addf %56, %57 : vector<16x768xf32>
      %59 = arith.truncf %58 : vector<16x768xf32> to vector<16x768xbf16>
      %c0_31 = arith.constant 0 : index
      %c0_32 = arith.constant 0 : index
      %60 = vector.load %arg9[%c0_31, %c0_32] : memref<16x768xbf16, #tpu.memory_space<vmem>>, vector<16x768xbf16>
      tpu.vector_store %arg9[%c0_31, %c0_32], %59 {strides = array<i32>} : memref<16x768xbf16, #tpu.memory_space<vmem>>, vector<16x768xbf16>,
    } else {
    }
    return
  }
  func.func @transform_0(%arg0: i32, %arg1: i32) -> (i32, i32) {
    %c0_i32 = arith.constant 0 : i32
    %c0_i32_0 = arith.constant 0 : i32
    return %arg0, %c0_i32 : i32, i32
  }
  func.func @transform_1(%arg0: i32, %arg1: i32) -> (i32, i32) {
    %c0_i32 = arith.constant 0 : i32
    %c0_i32_0 = arith.constant 0 : i32
    return %c0_i32, %arg1 : i32, i32
  }
  func.func @transform_2(%arg0: i32, %arg1: i32) -> (i32, i32) {
    %c0_i32 = arith.constant 0 : i32
    %c0_i32_0 = arith.constant 0 : i32
    return %c0_i32, %arg1 : i32, i32
  }
  func.func @transform_3(%arg0: i32, %arg1: i32) -> (i32, i32) {
    %c0_i32 = arith.constant 0 : i32
    %c0_i32_0 = arith.constant 0 : i32
    return %arg1, %c0_i32 : i32, i32
  }
  func.func @transform_4(%arg0: i32, %arg1: i32) -> (i32, i32) {
    %c0_i32 = arith.constant 0 : i32
    %c0_i32_0 = arith.constant 0 : i32
    %c0_i32_1 = arith.constant 0 : i32
    return %c0_i32, %c0_i32_0 : i32, i32
  }
  func.func @transform_5(%arg0: i32, %arg1: i32) -> (i32, i32) {
    %c0_i32 = arith.constant 0 : i32
    %c0_i32_0 = arith.constant 0 : i32
    %c0_i32_1 = arith.constant 0 : i32
    return %c0_i32, %c0_i32_0 : i32, i32
  }
  func.func @transform_6(%arg0: i32, %arg1: i32) -> (i32, i32) {
    %c0_i32 = arith.constant 0 : i32
    %c0_i32_0 = arith.constant 0 : i32
    %c0_i32_1 = arith.constant 0 : i32
    return %c0_i32, %c0_i32_0 : i32, i32
  }
  func.func @transform_7(%arg0: i32, %arg1: i32) -> (i32, i32) {
    %c0_i32 = arith.constant 0 : i32
    %c0_i32_0 = arith.constant 0 : i32
    return %arg0, %c0_i32 : i32, i32
  }
}

module attributes {stable_mosaic.version = 11 : i64} {
  func.func @_pool_cls_kernel(%arg0: memref<2x768xbf16, #tpu.memory_space<vmem>>, %arg1: memref<768x768xbf16, #tpu.memory_space<vmem>>, %arg2: memref<1x768xf32, #tpu.memory_space<vmem>>, %arg3: memref<768x128xbf16, #tpu.memory_space<vmem>>, %arg4: memref<1x128xf32, #tpu.memory_space<vmem>>, %arg5: memref<2x128xf32, #tpu.memory_space<vmem>>) attributes {dimension_semantics = [], scalar_prefetch = 0 : i64, scratch_operands = 0 : i64, tpu.core_type = #tpu.core_type<tc>} {
    %c0 = arith.constant 0 : index
    %c0_0 = arith.constant 0 : index
    %0 = vector.load %arg0[%c0, %c0_0] : memref<2x768xbf16, #tpu.memory_space<vmem>>, vector<2x768xbf16>
    %c0_1 = arith.constant 0 : index
    %c0_2 = arith.constant 0 : index
    %1 = vector.load %arg1[%c0_1, %c0_2] : memref<768x768xbf16, #tpu.memory_space<vmem>>, vector<768x768xbf16>
    %cst = arith.constant dense<0.000000e+00> : vector<2x768xf32>
    %2 = tpu.matmul %0, %1, %cst {dimension_numbers = #tpu.dot_dimension_numbers<[1], [0], [0], [1], [0, 0, 1, 1], [], []>} : vector<2x768xbf16>, vector<768x768xbf16>, vector<2x768xf32> -> vector<2x768xf32>
    %c0_3 = arith.constant 0 : index
    %c0_4 = arith.constant 0 : index
    %3 = vector.load %arg2[%c0_3, %c0_4] : memref<1x768xf32, #tpu.memory_space<vmem>>, vector<1x768xf32>
    %4 = vector.broadcast %3 : vector<1x768xf32> to vector<2x768xf32>
    %5 = arith.addf %2, %4 : vector<2x768xf32>
    %6 = math.tanh %5 : vector<2x768xf32>
    %7 = arith.truncf %6 : vector<2x768xf32> to vector<2x768xbf16>
    %c0_5 = arith.constant 0 : index
    %c0_6 = arith.constant 0 : index
    %8 = vector.load %arg3[%c0_5, %c0_6] : memref<768x128xbf16, #tpu.memory_space<vmem>>, vector<768x128xbf16>
    %cst_7 = arith.constant dense<0.000000e+00> : vector<2x128xf32>
    %9 = tpu.matmul %7, %8, %cst_7 {dimension_numbers = #tpu.dot_dimension_numbers<[1], [0], [0], [1], [0, 0, 1, 1], [], []>} : vector<2x768xbf16>, vector<768x128xbf16>, vector<2x128xf32> -> vector<2x128xf32>
    %c0_8 = arith.constant 0 : index
    %c0_9 = arith.constant 0 : index
    %10 = vector.load %arg4[%c0_8, %c0_9] : memref<1x128xf32, #tpu.memory_space<vmem>>, vector<1x128xf32>
    %11 = vector.broadcast %10 : vector<1x128xf32> to vector<2x128xf32>
    %12 = arith.addf %9, %11 : vector<2x128xf32>
    %c0_10 = arith.constant 0 : index
    %c0_11 = arith.constant 0 : index
    %13 = vector.load %arg5[%c0_10, %c0_11] : memref<2x128xf32, #tpu.memory_space<vmem>>, vector<2x128xf32>
    tpu.vector_store %arg5[%c0_10, %c0_11], %12 {strides = array<i32>} : memref<2x128xf32, #tpu.memory_space<vmem>>, vector<2x128xf32>,
    return
  }
}

</mosaic_0001>

<bundles_post_ra>
// kernel: math_classifier_forward.2
= control target key start
LH: loop header
LB: loop body
LE: loop exit
PB: predicated region body
PF: predicated region fallthrough
CT: control target
= control target key end

     0   :  { %v102_v61 = vlaneseq  ;;  %s384_s0 = inlined_call_operand.vmem [shape: f32[16,768], index: 0, kind: input, shape index: {}]   ;;  %s385_s1 = inlined_call_operand.vmem [shape: f32[1,768], index: 1, kind: input, shape index: {}]   ;;  %s386_s2 = inlined_call_operand.vmem [shape: f32[1,768], index: 2, kind: input, shape index: {}]   ;;  %s387_s3 = inlined_call_operand.vmem [shape: bf16[16,768], index: 3, kind: output, shape index: {}]  }
   0x1   :  { %v14_v0 = vld [vmem:[%s384_s0] sm:$0xff]  ;;  %v15_v1 = vld [vmem:[%s384_s0 + $0x8] sm:$0xff]  ;;  %v16_v2 = vld [vmem:[%s384_s0 + $0x10] sm:$0xff] }
   0x2   :  { %v17_v3 = vld [vmem:[%s384_s0 + $0x18] sm:$0xff]  ;;  %v28_v4 = vadd.f32 %v15_v1, %v14_v0  ;;  %v20_v5 = vld [vmem:[%s384_s0 + $0x30] sm:$0xff]  ;;  %v22_v7 = vld [vmem:[%s384_s0 + $0x40] sm:$0xff] }
   0x3   :  { %v21_v6 = vld [vmem:[%s384_s0 + $0x38] sm:$0xff]  ;;  %v18_v10 = vld [vmem:[%s384_s0 + $0x20] sm:$0xff]  ;;  %v23_v11 = vld [vmem:[%s384_s0 + $0x48] sm:$0xff] }
   0x4   :  { %v29_v8 = vadd.f32 %v28_v4, %v16_v2  ;;  %v35_v9 = vadd.f32 %v21_v6, %v20_v5  ;;  %v19_v14 = vld [vmem:[%s384_s0 + $0x28] sm:$0xff]  ;;  %v24_v15 = vld [vmem:[%s384_s0 + $0x50] sm:$0xff]  ;;  %v25_v18 = vld [vmem:[%s384_s0 + $0x58] sm:$0xff] }
   0x6   :  { %v30_v12 = vadd.f32 %v29_v8, %v17_v3  ;;  %v36_v13 = vadd.f32 %v35_v9, %v22_v7 }
   0x8   :  { %v31_v16 = vadd.f32 %v30_v12, %v18_v10  ;;  %v37_v17 = vadd.f32 %v36_v13, %v23_v11 }
   0xa   :  { %v32_v19 = vadd.f32 %v31_v16, %v19_v14  ;;  %v38_v20 = vadd.f32 %v37_v17, %v24_v15 }
   0xc   :  { %33 = vadd.xlane.f32.xlu0 %v32_v19  ;;  %v39_v21 = vadd.f32 %v38_v20, %v25_v18 }
  0x10   :  { %40 = vadd.xlane.f32.xlu0 %v39_v21 }
  0x99   :  { %v34_v22 = vpop.xlane.xlu0 %33 }
  0x9a   :  { %v43_v23 = vmul.f32 0.0013020834, %v34_v22 }
  0x9c   :  { %v305_v24 = vsub.f32 %v14_v0, %v43_v23  ;;  %v307_v25 = vsub.f32 %v15_v1, %v43_v23  ;;  %v309_v26 = vsub.f32 %v16_v2, %v43_v23  ;;  %v311_v28 = vsub.f32 %v17_v3, %v43_v23 }
  0x9d   :  { %v41_v27 = vpop.xlane.xlu0 %40  ;;  %v317_v32 = vsub.f32 %v18_v10, %v43_v23  ;;  %v50_v38 = vsub.f32 %v19_v14, %v43_v23  ;;  %v103_v1 = vshrl.u32 %v102_v61, 7 }
  0x9e   :  { %v44_v29 = vmul.f32 0.0013020834, %v41_v27  ;;  %v57_v30 = vmul.f32 %v305_v24, %v305_v24  ;;  %v58_v31 = vmul.f32 %v307_v25, %v307_v25  ;;  %v59_v33 = vmul.f32 %v309_v26, %v309_v26 }
  0x9f   :  { %v60_v39 = vmul.f32 %v311_v28, %v311_v28  ;;  %v61_v44 = vmul.f32 %v317_v32, %v317_v32  ;;  %v62_v49 = vmul.f32 %v50_v38, %v50_v38  ;;  %v104_v4 = vsub.s32 0, %v103_v1 }
  0xa0   :  { %v69_v34 = vadd.f32 %v58_v31, %v57_v30  ;;  %v321_v35 = vsub.f32 %v20_v5, %v44_v29  ;;  %v323_v36 = vsub.f32 %v21_v6, %v44_v29  ;;  %v325_v37 = vsub.f32 %v22_v7, %v44_v29  ;;  %v26_v6 = vld [vmem:[%s385_s1] sm:$0x3f] }
  0xa1   :  { %v329_v41 = vsub.f32 %v23_v11, %v44_v29  ;;  %v337_v46 = vsub.f32 %v24_v15, %v44_v29  ;;  %v341_v51 = vsub.f32 %v25_v18, %v44_v29  ;;  %v108_v5 = vsub.s32 1, %v103_v1  ;;  %v27_v11 = vld [vmem:[%s386_s2] sm:$0x3f] }
  0xa2   :  { %v70_v40 = vadd.f32 %v69_v34, %v59_v33  ;;  %v63_v42 = vmul.f32 %v321_v35, %v321_v35  ;;  %v64_v43 = vmul.f32 %v323_v36, %v323_v36  ;;  %v65_v47 = vmul.f32 %v325_v37, %v325_v37 }
  0xa3   :  { %v66_v52 = vmul.f32 %v329_v41, %v329_v41  ;;  %v67_v55 = vmul.f32 %v337_v46, %v337_v46  ;;  %v68_v57 = vmul.f32 %v341_v51, %v341_v51  ;;  %v112_v7 = vsub.s32 2, %v103_v1 }
  0xa4   :  { %v71_v45 = vadd.f32 %v70_v40, %v60_v39  ;;  %v76_v48 = vadd.f32 %v64_v43, %v63_v42  ;;  %v116_v8 = vsub.s32 3, %v103_v1  ;;  %v120_v9 = vsub.s32 4, %v103_v1 }
  0xa5   :  { %v124_v10 = vsub.s32 5, %v103_v1  ;;  %v105_v12 = vrot.slane %v26_v6, %v104_v4  ;;  %v109_v13 = vrot.slane %v26_v6, %v108_v5  ;;  %v113_v14 = vrot.slane %v26_v6, %v112_v7 }
  0xa6   :  { %v72_v50 = vadd.f32 %v71_v45, %v61_v44  ;;  %v77_v53 = vadd.f32 %v76_v48, %v65_v47  ;;  %v117_v15 = vrot.slane %v26_v6, %v116_v8  ;;  %v121_v16 = vrot.slane %v26_v6, %v120_v9 }
  0xa7   :  { %v125_v17 = vrot.slane %v26_v6, %v124_v10  ;;  %v148_v19 = vrot.slane %v27_v11, %v104_v4  ;;  %v152_v20 = vrot.slane %v27_v11, %v108_v5  ;;  %v156_v21 = vrot.slane %v27_v11, %v112_v7 }
  0xa8   :  { %v73_v54 = vadd.f32 %v72_v50, %v62_v49  ;;  %v78_v56 = vadd.f32 %v77_v53, %v66_v52  ;;  %v160_v22 = vrot.slane %v27_v11, %v116_v8  ;;  %v164_v31 = vrot.slane %v27_v11, %v120_v9 }
  0xa9   :  { %v168_v33 = vrot.slane %v27_v11, %v124_v10 }
  0xaa   :  { %74 = vadd.xlane.f32.xlu1 %v73_v54  ;;  %v79_v58 = vadd.f32 %v78_v56, %v67_v55 }
  0xac   :  { %v80_v59 = vadd.f32 %v79_v58, %v68_v57 }
  0xae   :  { %81 = vadd.xlane.f32.xlu1 %v80_v59 }
 0x137   :  { %v75_v60 = vpop.xlane.xlu1 %74 }
 0x138   :  { %v83_v62 = vmul.f32 0.0013020834, %v75_v60 }
 0x13a   :  { %v85_v63 = vadd.f32 1e-12, %v83_v62 }
 0x13b   :  { %v82_v0 = vpop.xlane.xlu1 %81 }
 0x13c   :  { %245 = vrsqrt.f32 %v85_v63  ;;  %v84_v2 = vmul.f32 0.0013020834, %v82_v0 }
 0x13e   :  { %v86_v3 = vadd.f32 1e-12, %v84_v2 }
 0x140   :  { %247 = vrsqrt.f32 %v86_v3 }
 0x146   :  { %v246_v18 = vpop.eup %245 }
 0x147   :  { %v89_v23 = vmul.f32 %v246_v18, %v305_v24  ;;  %v90_v27 = vmul.f32 %v246_v18, %v307_v25  ;;  %v91_v29 = vmul.f32 %v246_v18, %v309_v26  ;;  %v92_v30 = vmul.f32 %v246_v18, %v311_v28 }
 0x148   :  { %v93_v34 = vmul.f32 %v246_v18, %v317_v32  ;;  %v94_v39 = vmul.f32 %v246_v18, %v50_v38 }
 0x149   :  { %v132_v40 = vmul.f32 %v105_v12, %v89_v23  ;;  %v133_v42 = vmul.f32 %v109_v13, %v90_v27  ;;  %v134_v43 = vmul.f32 %v113_v14, %v91_v29  ;;  %v135_v44 = vmul.f32 %v117_v15, %v92_v30 }
 0x14a   :  { %v248_v45 = vpop.eup %247  ;;  %v136_v47 = vmul.f32 %v121_v16, %v93_v34  ;;  %v137_v48 = vmul.f32 %v125_v17, %v94_v39 }
 0x14b   :  { %v175_v49 = vadd.f32 %v148_v19, %v132_v40  ;;  %v176_v24 = vadd.f32 %v152_v20, %v133_v42  ;;  %v177_v50 = vadd.f32 %v156_v21, %v134_v43  ;;  %v178_v25 = vadd.f32 %v160_v22, %v135_v44 }
 0x14c   :  { %v179_v52 = vadd.f32 %v164_v31, %v136_v47  ;;  %v180_v26 = vadd.f32 %v168_v33, %v137_v48  ;;  %v95_v28 = vmul.f32 %v248_v45, %v321_v35  ;;  %v96_v53 = vmul.f32 %v248_v45, %v323_v36 }
 0x14d   :  { %v239_v54 = vpack.c.bf16 %v176_v24, %v175_v49  ;;  %v240_v32 = vpack.c.bf16 %v178_v25, %v177_v50  ;;  %v97_v38 = vmul.f32 %v248_v45, %v325_v37  ;;  %v98_v55 = vmul.f32 %v248_v45, %v329_v41 }
 0x14e   :  { %v241_v56 = vpack.c.bf16 %v180_v26, %v179_v52  ;;  %v99_v57 = vmul.f32 %v248_v45, %v337_v46  ;;  %v100_v58 = vmul.f32 %v248_v45, %v341_v51  ;;  %v138_v59 = vmul.f32 %v105_v12, %v95_v28 }
 0x14f   :  { %223 = vst [vmem:[%s387_s3] sm:$0xff] %v239_v54  ;;  %224 = vst [vmem:[%s387_s3 + $0x8] sm:$0xff] %v240_v32  ;;  %v139_v35 = vmul.f32 %v109_v13, %v96_v53  ;;  %v140_v36 = vmul.f32 %v113_v14, %v97_v38  ;;  %v141_v60 = vmul.f32 %v117_v15, %v98_v55 }
 0x150   :  { %225 = vst [vmem:[%s387_s3 + $0x10] sm:$0xff] %v241_v56  ;;  %v142_v37 = vmul.f32 %v121_v16, %v99_v57  ;;  %v143_v41 = vmul.f32 %v125_v17, %v100_v58  ;;  %v181_v46 = vadd.f32 %v148_v19, %v138_v59 }
 0x151   :  { %v182_v51 = vadd.f32 %v152_v20, %v139_v35  ;;  %v183_v61 = vadd.f32 %v156_v21, %v140_v36  ;;  %v184_v62 = vadd.f32 %v160_v22, %v141_v60 }
 0x152   :  { %v185_v63 = vadd.f32 %v164_v31, %v142_v37  ;;  %v186_v0 = vadd.f32 %v168_v33, %v143_v41 }
 0x153   :  { %v242_v1 = vpack.c.bf16 %v182_v51, %v181_v46  ;;  %v243_v2 = vpack.c.bf16 %v184_v62, %v183_v61 }
 0x154   :  { %v244_v3 = vpack.c.bf16 %v186_v0, %v185_v63 }
 0x155   :  { %226 = vst [vmem:[%s387_s3 + $0x18] sm:$0xff] %v242_v1  ;;  %227 = vst [vmem:[%s387_s3 + $0x20] sm:$0xff] %v243_v2 }
 0x156   :  { %228 = vst [vmem:[%s387_s3 + $0x28] sm:$0xff] %v244_v3 }

// kernel: closed_call.11
= control target key start
LH: loop header
LB: loop body
LE: loop exit
PB: predicated region body
PF: predicated region fallthrough
CT: control target
= control target key end

     0   :  { %s1859_s30 = smov 0   ;;  %s1861_s10 = smov 0   ;;  %s2083_s0 = inlined_call_operand.vmem [shape: bf16[2,8,2304], index: 0, kind: input, shape index: {}, may-alias: {0,1,2}]   ;;  %s2084_s1 = inlined_call_operand.vmem [shape: bf16[2,8,2304], index: 1, kind: input, shape index: {}, may-alias: {0,1,2}]   ;;  %s2085_s2 = inlined_call_operand.vmem [shape: bf16[2,8,2304], index: 2, kind: input, shape index: {}, may-alias: {0,1,2}]   ;;  %s2086_s3 = inlined_call_operand.vmem [shape: f32[2,1,8], index: 3, kind: input, shape index: {}]   ;;  %s2087_s4 = inlined_call_operand.vmem [shape: bf16[768,768], index: 4, kind: input, shape index: {}]   ;;  %s2088_s5 = inlined_call_operand.vmem [shape: f32[1,768], index: 5, kind: input, shape index: {}]   ;;  %s2089_s6 = inlined_call_operand.vmem [shape: bf16[2,8,768], index: 6, kind: input, shape index: {}]   ;;  %s2090_s7 = inlined_call_operand.vmem [shape: f32[1,768], index: 7, kind: input, shape index: {}]   ;;  %s2091_s8 = inlined_call_operand.vmem [shape: f32[1,768], index: 8, kind: input, shape index: {}]   ;;  %s2092_s9 = inlined_call_operand.vmem [shape: bf16[2,8,768], index: 9, kind: output, shape index: {}]  }
   0x1   :  { %2096 = sst [smem:[#allocation8_spill]] %s2090_s7  ;;  %s1863_s11 = smov 0  }
   0x2   :  { %2097 = sst [smem:[#allocation9_spill]] %s2091_s8  ;;  %s1865_s12 = smov 0  }
   0x3   :  { %s1867_s13 = smov 0  }
   0x4 LB: > { %2098 = sst [smem:[#allocation3_spill]] %s1794_s11  ;;  %s28_s14 = sadd.s32 1, %s1794_s11  ;;  %s1802_s13 = sphi %s1867_s13, %s19_s13   ;;  %s1798_s12 = sphi %s1865_s12, %s2111_s12   ;;  %s1794_s11 = sphi %s1863_s11, %s2110_s11   ;;  %s1790_s10 = sphi %s1861_s10, %s2109_s10   ;;  %s1786_s30 = sphi %s1859_s30, %s2108_s30  }
   0x5   : > { %2099 = sst [smem:[#allocation4_spill]] %s1798_s12  ;;  %s31_s15 = sadd.s32 1, %s1798_s12 }
   0x6   : > { %2100 = sst [smem:[#allocation5_spill]] %s1802_s13  ;;  %p29_p0 = scmp.ge.s32.totalorder %s28_s14, 6 }
   0x7   : > { %p1525_p1 = scmp.ge.s32.totalorder %s1802_s13, 1  ;;  %p372_p2 = scmp.lt.s32.totalorder %s1802_s13, 13 }
   0x8   : > { %s2113_s14 = smov (%p29_p0, %s28_s14), 0  ;;  %s2115_s15 = smov (!%p29_p0, %s31_s15), %s1798_s12 }
   0x9   : > { %2101 = sst [smem:[#allocation6_spill]] %s2113_s14  ;;  %p373_p3 = pnand %p1525_p1, %p372_p2 }
   0xa   : > { %p33_p4 = scmp.ge.s32.totalorder %s2115_s15, 2  ;;  %p443_p5 = scmp.lt.s32.totalorder (!%p373_p3), %s1790_s10, 1 }
   0xb   : > { %376 = sbr.rel (%p373_p3) target bundleno = 2033 (0x7f1), region = 56  ;;  %p445_p6 = scmp.lt.s32.totalorder (!%p373_p3), %s1786_s30, 17 }
   0xc   : > { %s2117_s15 = smov (%p33_p4, %s2115_s15), 0  ;;  %s451_s16 = sadd.s32 (!%p373_p3), 6, %s1786_s30 }
   0xd   : > { %2102 = sst [smem:[#allocation7_spill]] %s2117_s15  ;;  %s461_s17 = sadd.s32 (!%p373_p3), 12, %s1786_s30 }
   0xe   : > { %p454_p7 = scmp.lt.s32.totalorder (!%p373_p3), %s451_s16, 17  ;;  %p464_p8 = scmp.lt.s32.totalorder (!%p373_p3), %s461_s17, 17 }
   0xf   : > { %s1529_s24 = sshll.u32 (!%p373_p3), %s1786_s30, 4  ;;  %p1533_p10 = scmp.ne.s32.totalorder (!%p373_p3), %s1786_s30, 0 }
  0x10   : > { %p475_p9 = scmp.lt.s32.totalorder (!%p373_p3), %s1529_s24, 95 }
  0x12   : > { %s2119_s10 = smov (!%p443_p5, %s1790_s10), 1  ;;  %s2121_s16 = smov (!%p454_p7, %s451_s16), 17 }
  0x13   : > { %s446_s18 = scalar_select %p445_p6, %s1786_s30, 17 }
  0x14   : > { %s1631_s19 = smul.u32 18, %s2119_s10  ;;  %s2123_s17 = smov (!%p464_p8, %s461_s17), 17  ;;  %v1804_v0 = vmov (!%p1533_p10), 0.0  }
  0x15   : > { %s1633_s29 = smul.u32 24, %s2119_s10  ;;  %s2125_s24 = smov (!%p475_p9, %s1529_s24), 95  ;;  %496 = vst [vmem:[#allocation2] sm:$0xff] (!%p1533_p10), %v1804_v0  ;;  %497 = vst [vmem:[#allocation2 + $0x8] sm:$0xff] (!%p1533_p10), %v1804_v0 }
  0x16   : > { %s448_s23 = sadd.s32 %s1631_s19, %s446_s18  ;;  %s457_s15 = sadd.s32 %s1631_s19, %s2121_s16  ;;  %498 = vst [vmem:[#allocation2 + $0x10] sm:$0xff] (!%p1533_p10), %v1804_v0  ;;  %499 = vst [vmem:[#allocation2 + $0x18] sm:$0xff] (!%p1533_p10), %v1804_v0 }
  0x17   : > { %s1903_s25 = sshll.u32 %s448_s23, 2  ;;  %s1913_s11 = scalar_lea.vmem %s2089_s6, %s1633_s29  ;;  %500 = vst [vmem:[#allocation2 + $0x20] sm:$0xff] (!%p1533_p10), %v1804_v0  ;;  %501 = vst [vmem:[#allocation2 + $0x28] sm:$0xff] (!%p1533_p10), %v1804_v0 }
  0x18   : > { %s1527_s20 = sshll.u32 %s457_s15, 2  ;;  %s467_s18 = sadd.s32 %s1631_s19, %s2123_s17 }
  0x19   : > { %s459_s22 = scalar_lea.vmem %s2084_s1, %s1527_s20  ;;  %s1918_s13 = sshll.u32 %s467_s18, 2 }
  0x1a   : > { %s469_s28 = scalar_lea.vmem %s2085_s2, %s1918_s13  ;;  %s1927_s7 = scalar_lea.vmem %s2092_s9, %s1633_s29 }
  0x1b   : > { %s1632_s12 = smul.u32 24, %s2125_s24 }
  0x1c   : > { %495 = sbr.rel (%p1533_p10) target bundleno = 35 (0x23), region = 60 }
  0x1d   : > { %s1932_s17 = scalar_lea.vmem %s2087_s4, %s1632_s12 }
  0x23 PF: > { %v504_v1 = vld [vmem:[%s459_s22] sm:$0xf]  ;;  %vm506_vm0 = vcmask 523264   ;;  %v1805_v2 = vmov 0.0   ;;  %vm1806_vm1 = vmmov 0   ;;  %s2103_s24 = scalar_lea.vmem %s2083_s0, %s1903_s25  ;;  %s2104_s20 = scalar_lea.vmem %s2086_s3, %s2119_s10  ;;  %vm561_vm2 = vcmask 64512  }
  0x24   : > { %1607 = vmatprep.subr.bf16.mxu0 %v1805_v2  ;;  %v511_v3 = vsel %vm506_vm0, %v504_v1, 0  ;;  %1609 = vmatprep.mubr.msk.bf16.mxu0 %vm1806_vm1, %v1805_v2  ;;  %v503_v4 = vld [vmem:[%s2103_s24] sm:$0xf]  ;;  %v1538_v13 = vcombine.low %v504_v1, %v504_v1  ;;  %s1807_s25 = smov 64   ;;  %vm577_vm3 = vcmask 1043456   ;;  %p1590_p11 = scmp.ne.s32.totalorder %s1786_s30, 5 }
  0x25   : > { %1608 = vmatpush3.bf16.xpose.msra.mxu0 %v511_v3  ;;  %v1535_v6 = vld [vmem:[%s2104_s20] ss:$0 sm:$0xff]  ;;  %v1537_v14 = vcombine.low %v503_v4, %v503_v4  ;;  %v1682_v52 = vld [vmem:[%s1932_s17 + $0x4] ss:$24 sps:$4 sm:$0xff]   ;;  %v1688_v56 = vld [vmem:[%s1932_s17 + $0x34] ss:$24 sps:$4 sm:$0xff]  }
  0x26   : > { %1613 = vmatprep.subr.bf16.mxu0 %v1805_v2  ;;  %629 = vrot.lane.b32.xlu1 %v1538_v13, %s1807_s25  ;;  %v505_v20 = vld [vmem:[%s469_s28] sm:$0xf]  ;;  %v1687_v55 = vld [vmem:[%s1932_s17 + $0xc] ss:$24 sps:$4 sm:$0xff]   ;;  %v1693_v57 = vld [vmem:[%s1932_s17 + $0x3c] ss:$24 sps:$4 sm:$0xff]  }
  0x27   : > { %v579_v21 = vsel %vm577_vm3, %v505_v20, 0  ;;  %v1540_v40 = vcombine.low %v505_v20, %v505_v20  ;;  %v1684_v53 = vld [vmem:[%s1932_s17] ss:$24 sps:$4 sm:$0xff]   ;;  %1042 = vmatprep.subr.bf16.mxu1 %v1682_v52  ;;  %v1690_v58 = vld [vmem:[%s1932_s17 + $0x30] ss:$24 sps:$4 sm:$0xff]   ;;  %s2105_s21 = sld [smem:[#allocation8_spill]] (!%p1590_p11) }
  0x28   : > { %v1685_v54 = vld [vmem:[%s1932_s17 + $0x8] ss:$24 sps:$4 sm:$0xff]   ;;  %1043 = vmatpush1.bf16.msra.mxu1 %v1684_v53  ;;  %v1691_v59 = vld [vmem:[%s1932_s17 + $0x38] ss:$24 sps:$4 sm:$0xff]   ;;  %v1694_v60 = vld [vmem:[%s1932_s17 + $0x64] ss:$24 sps:$4 sm:$0xff]  }
  0x29   : > { %1044 = vmatprep.subr.bf16.mxu1 %v1688_v56  ;;  %v1699_v61 = vld [vmem:[%s1932_s17 + $0x6c] ss:$24 sps:$4 sm:$0xff]   ;;  %v1696_v62 = vld [vmem:[%s1932_s17 + $0x60] ss:$24 sps:$4 sm:$0xff]   ;;  %v1705_v1 = vld [vmem:[%s1932_s17 + $0x9c] ss:$24 sps:$4 sm:$0xff]  }
  0x2a   : > { %624 = vrot.lane.b32.xlu1 %v1537_v14, %s1807_s25  ;;  %v1697_v63 = vld [vmem:[%s1932_s17 + $0x68] ss:$24 sps:$4 sm:$0xff]   ;;  %v1700_v0 = vld [vmem:[%s1932_s17 + $0x94] ss:$24 sps:$4 sm:$0xff]   ;;  %v1703_v3 = vld [vmem:[%s1932_s17 + $0x98] ss:$24 sps:$4 sm:$0xff]  }
  0x2b   : > { %v1723_v13 = vld [vmem:[%s1932_s17 + $0x12c] ss:$24 sps:$4 sm:$0xff]   ;;  %v1720_v14 = vld [vmem:[%s1932_s17 + $0x120] ss:$24 sps:$4 sm:$0xff]   ;;  %s2106_s27 = sld [smem:[#allocation9_spill]] (!%p1590_p11) }
  0x2c   : > { %1610 = vmatmul.mubr.msk.bf16.vlgmr.msra.gmra.mrb[0].mxu0 %vm506_vm0, %v503_v4  ;;  %1045 = vmatpush1.bf16.msra.mxu1 %v1690_v58  ;;  %v1706_v4 = vld [vmem:[%s1932_s17 + $0xc4] ss:$24 sps:$4 sm:$0xff]   ;;  %v1732_v20 = vld [vmem:[%s1932_s17 + $0x14] ss:$24 sps:$4 sm:$0xff]  }
  0x2d   : > { %1615 = vmatprep.mubr.msk.bf16.mxu0 %vm1806_vm1, %v1805_v2  ;;  %1614 = vmatpush3.bf16.msra.mxu0 %v579_v21  ;;  %v1808_v21 = vmov 0  }
  0x2e   : > { %1619 = vmatprep.subr.bf16.mxu0 %v1805_v2  ;;  %1046 = vmatprep.subr.bf16.mxu1 %v1694_v60  ;;  %v752_v60 = vld [vmem:[#allocation2 + $0x20] sm:$0xff] }
  0x2f   : > { %1074 = vmatprep.mubr.bf16.mxu1 %v1808_v21 }
  0x30   : > { %1047 = vmatpush1.bf16.msra.mxu1 %v1696_v62 }
  0x31   : > { %1048 = vmatprep.subr.bf16.mxu1 %v1700_v0 }
  0x98   : > { %v630_v24 = vpop.permute.xlu1 %629 }
  0x99   : > { %v635_v26 = vsel %vm506_vm0, %v630_v24, 0 }
  0x9c   : > { %v625_v28 = vpop.permute.xlu1 %624 }
  0xff   : > { %v547_v5 = vpop.f32.mrb[0].mxu0 }
 0x100   : > { %v553_v7 = vmul.f32 0.125, %v547_v5  ;;  %v1611_v8 = vpop.f32.mrb[1].mxu0  ;;  %v1711_v5 = vld [vmem:[%s1932_s17 + $0xcc] ss:$24 sps:$4 sm:$0xff]  }
 0x101   : > { %v550_v9 = vpop.f32.mrb[2].mxu0  ;;  %v1712_v8 = vld [vmem:[%s1932_s17 + $0xf4] ss:$24 sps:$4 sm:$0xff]  }
 0x102   : > { %v1612_v10 = vpop.f32.mrb[3].mxu0  ;;  %v560_v11 = vadd.f32 %v1535_v6, %v553_v7  ;;  %v1709_v7 = vld [vmem:[%s1932_s17 + $0xc8] ss:$24 sps:$4 sm:$0xff]   ;;  %v1717_v9 = vld [vmem:[%s1932_s17 + $0xfc] ss:$24 sps:$4 sm:$0xff]  }
 0x103   : > { %v1714_v10 = vld [vmem:[%s1932_s17 + $0xf0] ss:$24 sps:$4 sm:$0xff]  }
 0x104   : > { %v562_v12 = vsel %vm561_vm2, %v560_v11, -inf }
 0x105   : > { %563 = vmax.xlane.f32.xlu0 %v562_v12  ;;  %v1718_v12 = vld [vmem:[%s1932_s17 + $0x124] ss:$24 sps:$4 sm:$0xff]  }
 0x192   : > { %v564_v15 = vpop.xlane.xlu0 %563 }
 0x193   : > { %v565_v16 = vsub.f32 %v560_v11, %v564_v15  ;;  %v1715_v11 = vld [vmem:[%s1932_s17 + $0xf8] ss:$24 sps:$4 sm:$0xff]   ;;  %v1721_v15 = vld [vmem:[%s1932_s17 + $0x128] ss:$24 sps:$4 sm:$0xff]  }
 0x195   : > { %v566_v17 = vmul.f32 1.442695, %v565_v16  ;;  %v1724_v16 = vld [vmem:[%s1932_s17 + $0x154] ss:$24 sps:$4 sm:$0xff]  }
 0x197   : > { %1754 = vpow2.f32 %v566_v17  ;;  %v1729_v17 = vld [vmem:[%s1932_s17 + $0x15c] ss:$24 sps:$4 sm:$0xff]  }
 0x1a1   : > { %v1755_v18 = vpop.eup %1754 }
 0x1a2   : > { %v568_v19 = vsel %vm561_vm2, %v1755_v18, 0.0 }
 0x1a3   : > { %569 = vadd.xlane.f32.xlu0 %v568_v19  ;;  %v1727_v19 = vld [vmem:[%s1932_s17 + $0x158] ss:$24 sps:$4 sm:$0xff]  }
 0x230   : > { %v570_v22 = vpop.xlane.xlu0 %569 }
 0x231   : > { %1756 = vrcp.f32 %v570_v22 }
 0x23b   : > { %v1757_v23 = vpop.eup %1756 }
 0x23c   : > { %v572_v25 = vmul.f32 %v1757_v23, %v1755_v18  ;;  %v1726_v18 = vld [vmem:[%s1932_s17 + $0x150] ss:$24 sps:$4 sm:$0xff]  }
 0x23e   : > { %v573_v27 = vpack.c.bf16 %v572_v25, %v572_v25 }
 0x240   : > { %1616 = vmatmul.mubr.msk.bf16.vlgmr.msra.gmra.mrb[4].mxu0 %vm561_vm2, %v573_v27 }
 0x241   : > { %1620 = vmatpush3.bf16.xpose.msra.mxu0 %v635_v26  ;;  %1621 = vmatprep.mubr.msk.bf16.mxu0 %vm1806_vm1, %v1805_v2 }
 0x242   : > { %1625 = vmatprep.subr.bf16.mxu0 %v1805_v2 }
 0x248   : > { %1622 = vmatmul.mubr.msk.bf16.vlgmr.msra.gmra.mrb[8].mxu0 %vm506_vm0, %v625_v28  ;;  %v1730_v28 = vld [vmem:[%s1932_s17 + $0x10] ss:$24 sps:$4 sm:$0xff]  }
 0x249   : > { %1627 = vmatprep.mubr.msk.bf16.mxu0 %vm1806_vm1, %v1805_v2  ;;  %v1702_v2 = vld [vmem:[%s1932_s17 + $0x90] ss:$24 sps:$4 sm:$0xff]  }
 0x24a   : > { %1049 = vmatpush1.bf16.msra.mxu1 %v1702_v2 }
 0x24b   : > { %1050 = vmatprep.subr.bf16.mxu1 %v1706_v4  ;;  %v1189_v4 = vlaneseq (!%p1590_p11) }
 0x313   : > { %v1964_v29 = vpop.f32.mrb[4].mxu0 }
 0x314   : > { %v1617_v30 = vpop.f32.mrb[5].mxu0 }
 0x315   : > { %v618_v31 = vpop.f32.mrb[6].mxu0 }
 0x316   : > { %v1618_v32 = vpop.f32.mrb[7].mxu0  ;;  %v1735_v31 = vld [vmem:[%s1932_s17 + $0x44] ss:$24 sps:$4 sm:$0xff]  }
 0x317   : > { %v1733_v32 = vld [vmem:[%s1932_s17 + $0x40] ss:$24 sps:$4 sm:$0xff]  }
 0x31b   : > { %v671_v33 = vpop.f32.mrb[8].mxu0 }
 0x31c   : > { %v677_v34 = vmul.f32 0.125, %v671_v33  ;;  %v1623_v35 = vpop.f32.mrb[9].mxu0  ;;  %v1738_v33 = vld [vmem:[%s1932_s17 + $0x74] ss:$24 sps:$4 sm:$0xff]  }
 0x31d   : > { %v674_v36 = vpop.f32.mrb[10].mxu0  ;;  %v1739_v35 = vld [vmem:[%s1932_s17 + $0xa0] ss:$24 sps:$4 sm:$0xff]  }
 0x31e   : > { %v1624_v37 = vpop.f32.mrb[11].mxu0  ;;  %v678_v38 = vadd.f32 %v1535_v6, %v677_v34  ;;  %v1708_v6 = vld [vmem:[%s1932_s17 + $0xc0] ss:$24 sps:$4 sm:$0xff]   ;;  %v1736_v34 = vld [vmem:[%s1932_s17 + $0x70] ss:$24 sps:$4 sm:$0xff]  }
 0x31f   : > { %1051 = vmatpush1.bf16.msra.mxu1 %v1708_v6  ;;  %v1744_v36 = vld [vmem:[%s1932_s17 + $0xd4] ss:$24 sps:$4 sm:$0xff]   ;;  %v1742_v37 = vld [vmem:[%s1932_s17 + $0xd0] ss:$24 sps:$4 sm:$0xff]   ;;  %v1225_v6 = vld [vmem:[%s1913_s11] sm:$0xff] (!%p1590_p11) }
 0x320   : > { %v679_v39 = vsel %vm561_vm2, %v678_v38, -inf  ;;  %1052 = vmatprep.subr.bf16.mxu1 %v1712_v8  ;;  %v1187_v8 = vld [vmem:[%s2088_s5] sm:$0x3f] (!%p1590_p11) }
 0x321   : > { %680 = vmax.xlane.f32.xlu0 %v679_v39  ;;  %v1745_v39 = vld [vmem:[%s1932_s17 + $0x100] ss:$24 sps:$4 sm:$0xff]  }
 0x323   : > { %1053 = vmatpush1.bf16.msra.mxu1 %v1714_v10 }
 0x324   : > { %1054 = vmatprep.subr.bf16.mxu1 %v1718_v12 }
 0x327   : > { %1055 = vmatpush1.bf16.msra.mxu1 %v1720_v14 }
 0x328   : > { %1056 = vmatprep.subr.bf16.mxu1 %v1724_v16 }
 0x32b   : > { %1057 = vmatpush1.bf16.msra.mxu1 %v1726_v18 }
 0x32c   : > { %1124 = vmatprep.subr.bf16.mxu1 %v1732_v20  ;;  %v1229_v20 = vunpack.c.h.bf16 (!%p1590_p11), %v1225_v6 }
 0x337   : > { %694 = vrot.lane.b32.xlu0 %v1540_v40, %s1807_s25  ;;  %v1750_v40 = vld [vmem:[%s1932_s17 + $0x134] ss:$24 sps:$4 sm:$0xff]  }
 0x3ae   : > { %v681_v41 = vpop.xlane.xlu0 %680 }
 0x3af   : > { %v682_v42 = vsub.f32 %v678_v38, %v681_v41  ;;  %v1747_v38 = vld [vmem:[%s1932_s17 + $0x104] ss:$24 sps:$4 sm:$0xff]   ;;  %v1748_v41 = vld [vmem:[%s1932_s17 + $0x130] ss:$24 sps:$4 sm:$0xff]  }
 0x3b1   : > { %v683_v43 = vmul.f32 1.442695, %v682_v42  ;;  %v1753_v42 = vld [vmem:[%s1932_s17 + $0x164] ss:$24 sps:$4 sm:$0xff]  }
 0x3b2   : > { %v695_v46 = vpop.permute.xlu0 %694 }
 0x3b3   : > { %1758 = vpow2.f32 %v683_v43  ;;  %v700_v47 = vsel %vm577_vm3, %v695_v46, 0  ;;  %v1751_v43 = vld [vmem:[%s1932_s17 + $0x160] ss:$24 sps:$4 sm:$0xff]   ;;  %v749_v46 = vld [vmem:[#allocation2 + $0x8] sm:$0xff] }
 0x3b4   : > { %1626 = vmatpush3.bf16.msra.mxu0 %v700_v47  ;;  %v751_v47 = vld [vmem:[#allocation2 + $0x18] sm:$0xff] }
 0x3b5   : > { %1083 = vmatprep.subr.bf16.mxu0 %v1687_v55 }
 0x3bd   : > { %v1759_v44 = vpop.eup %1758 }
 0x3be   : > { %v685_v45 = vsel %vm561_vm2, %v1759_v44, 0.0 }
 0x3bf   : > { %686 = vadd.xlane.f32.xlu1 %v685_v45  ;;  %v750_v45 = vld [vmem:[#allocation2 + $0x10] sm:$0xff] }
 0x44c   : > { %v687_v48 = vpop.xlane.xlu1 %686 }
 0x44d   : > { %1760 = vrcp.f32 %v687_v48 }
 0x457   : > { %v1761_v49 = vpop.eup %1760 }
 0x458   : > { %v689_v50 = vmul.f32 %v1761_v49, %v1759_v44  ;;  %v748_v44 = vld [vmem:[#allocation2] sm:$0xff] }
 0x45a   : > { %v690_v51 = vpack.c.bf16 %v689_v50, %v689_v50 }
 0x45c   : > { %1628 = vmatmul.mubr.msk.bf16.vlgmr.msra.gmra.mrb[12].mxu0 %vm561_vm2, %v690_v51 }
 0x45d   : > { %1084 = vmatpush1.bf16.msra.mxu0 %v1685_v54  ;;  %1115 = vmatprep.mubr.bf16.mxu0 %v1808_v21 }
 0x45e   : > { %1085 = vmatprep.subr.bf16.mxu0 %v1693_v57 }
 0x461   : > { %1086 = vmatpush1.bf16.msra.mxu0 %v1691_v59 }
 0x462   : > { %1087 = vmatprep.subr.bf16.mxu0 %v1699_v61  ;;  %v753_v61 = vld [vmem:[#allocation2 + $0x28] sm:$0xff] }
 0x465   : > { %1088 = vmatpush1.bf16.msra.mxu0 %v1697_v63 }
 0x466   : > { %1089 = vmatprep.subr.bf16.mxu0 %v1705_v1 }
 0x469   : > { %1090 = vmatpush1.bf16.msra.mxu0 %v1703_v3 }
 0x46a   : > { %1091 = vmatprep.subr.bf16.mxu0 %v1711_v5  ;;  %v1190_v5 = vshrl.u32 (!%p1590_p11), %v1189_v4, 7 }
 0x46c   : > { %v2030_v12 = vsub.s32 (!%p1590_p11), 1, %v1190_v5  ;;  %v2034_v14 = vsub.s32 (!%p1590_p11), 3, %v1190_v5  ;;  %v2036_v18 = vsub.s32 (!%p1590_p11), 4, %v1190_v5 }
 0x46d   : > { %1092 = vmatpush1.bf16.msra.mxu0 %v1709_v7  ;;  %v1226_v7 = vld [vmem:[%s1913_s11 + $0x8] sm:$0xff] (!%p1590_p11) }
 0x46e   : > { %1093 = vmatprep.subr.bf16.mxu0 %v1717_v9  ;;  %v1228_v9 = vunpack.c.l.bf16 (!%p1590_p11), %v1225_v6 }
 0x471   : > { %1094 = vmatpush1.bf16.msra.mxu0 %v1715_v11  ;;  %v2028_v11 = vsub.s32 (!%p1590_p11), 0, %v1190_v5 }
 0x472   : > { %1095 = vmatprep.subr.bf16.mxu0 %v1723_v13  ;;  %v2032_v13 = vsub.s32 (!%p1590_p11), 2, %v1190_v5 }
 0x475   : > { %1096 = vmatpush1.bf16.msra.mxu0 %v1721_v15 }
 0x476   : > { %1097 = vmatprep.subr.bf16.mxu0 %v1729_v17 }
 0x479   : > { %1098 = vmatpush1.bf16.msra.mxu0 %v1727_v19  ;;  %v2038_v19 = vsub.s32 (!%p1590_p11), 5, %v1190_v5 }
 0x52f   : > { %v736_v22 = vpop.f32.mrb[12].mxu0 }
 0x530   : > { %743 = vrot.lane.b32.xlu0 %v736_v22, %s1807_s25  ;;  %v1629_v23 = vpop.f32.mrb[13].mxu0  ;;  %v1192_v22 = vrot.slane (!%p1590_p11), %v1187_v8, %v2028_v11 }
 0x531   : > { %v739_v24 = vpop.f32.mrb[14].mxu0  ;;  %v1196_v23 = vrot.slane (!%p1590_p11), %v1187_v8, %v2030_v12 }
 0x532   : > { %v1630_v25 = vpop.f32.mrb[15].mxu0  ;;  %v1200_v24 = vrot.slane (!%p1590_p11), %v1187_v8, %v2032_v13 }
 0x533   : > { %v1204_v25 = vrot.slane (!%p1590_p11), %v1187_v8, %v2034_v14 }
 0x5a2   : > { %v744_v26 = vpop.permute.xlu0 %743 }
 0x5a3   : > { %v746_v27 = vsel %vm506_vm0, %v1964_v29, %v744_v26  ;;  %v1741_v29 = vld [vmem:[%s1932_s17 + $0xa4] ss:$24 sps:$4 sm:$0xff]   ;;  %v1227_v26 = vld [vmem:[%s1913_s11 + $0x10] sm:$0xff] (!%p1590_p11) }
 0x5a4   : > { %v747_v30 = vpack.c.bf16 %v746_v27, %v746_v27 }
 0x5a6   : > { %1075 = vmatmul.mubr.bf16.vlgmr.msra.gmra.mrb[0].mxu1 %v747_v30  ;;  %1116 = vmatmul.mubr.bf16.vlgmr.msra.gmra.mrb[16].mxu0 %v747_v30 }
 0x5a7   : > { %1125 = vmatpush1.bf16.msra.mxu1 %v1730_v28  ;;  %1156 = vmatprep.mubr.bf16.mxu1 %v1808_v21  ;;  %v1230_v21 = vunpack.c.l.bf16 (!%p1590_p11), %v1226_v7  ;;  %v1208_v28 = vrot.slane (!%p1590_p11), %v1187_v8, %v2036_v18 }
 0x5a8   : > { %1126 = vmatprep.subr.bf16.mxu1 %v1735_v31  ;;  %v1231_v31 = vunpack.c.h.bf16 (!%p1590_p11), %v1226_v7 }
 0x5ab   : > { %1127 = vmatpush1.bf16.msra.mxu1 %v1733_v32 }
 0x5ac   : > { %1128 = vmatprep.subr.bf16.mxu1 %v1738_v33 }
 0x5af   : > { %1129 = vmatpush1.bf16.msra.mxu1 %v1736_v34 }
 0x5b0   : > { %1130 = vmatprep.subr.bf16.mxu1 %v1741_v29 }
 0x5b3   : > { %1131 = vmatpush1.bf16.msra.mxu1 %v1739_v35 }
 0x5b4   : > { %1132 = vmatprep.subr.bf16.mxu1 %v1744_v36  ;;  %v1232_v36 = vunpack.c.l.bf16 (!%p1590_p11), %v1227_v26 }
 0x5b7   : > { %1133 = vmatpush1.bf16.msra.mxu1 %v1742_v37 }
 0x5b8   : > { %1134 = vmatprep.subr.bf16.mxu1 %v1747_v38 }
 0x5bb   : > { %1135 = vmatpush1.bf16.msra.mxu1 %v1745_v39 }
 0x5bc   : > { %1136 = vmatprep.subr.bf16.mxu1 %v1750_v40 }
 0x5bf   : > { %1137 = vmatpush1.bf16.msra.mxu1 %v1748_v41 }
 0x5c0   : > { %1138 = vmatprep.subr.bf16.mxu1 %v1753_v42  ;;  %v1233_v42 = vunpack.c.h.bf16 (!%p1590_p11), %v1227_v26 }
 0x5c3   : > { %1139 = vmatpush1.bf16.msra.mxu1 %v1751_v43 }
 0x5c6   : > { %1157 = vmatmul.mubr.bf16.vlgmr.msra.gmra.mrb[4].mxu1 %v747_v30  ;;  %v1212_v30 = vrot.slane (!%p1590_p11), %v1187_v8, %v2038_v19 }
 0x679   : > { %v1076_v48 = vpop.f32.mrb[0].mxu1  ;;  %v1117_v49 = vpop.f32.mrb[16].mxu0 }
 0x67a   : > { %v1165_v50 = vadd.f32 %v1076_v48, %v748_v44  ;;  %v1167_v51 = vadd.f32 %v1117_v49, %v750_v45  ;;  %v1078_v52 = vpop.f32.mrb[1].mxu1  ;;  %v1119_v53 = vpop.f32.mrb[17].mxu0 }
 0x67b   : > { %v1166_v54 = vadd.f32 %v1078_v52, %v749_v46  ;;  %v1168_v55 = vadd.f32 %v1119_v53, %v751_v47  ;;  %v1080_v56 = vpop.f32.mrb[2].mxu1  ;;  %v1121_v57 = vpop.f32.mrb[18].mxu0 }
 0x67c   : > { %1171 = vst [vmem:[#allocation2] sm:$0xff] %v1165_v50  ;;  %1173 = vst [vmem:[#allocation2 + $0x10] sm:$0xff] %v1167_v51  ;;  %v1081_v58 = vpop.f32.mrb[3].mxu1  ;;  %v1122_v59 = vpop.f32.mrb[19].mxu0 }
 0x67d   : > { %1172 = vst [vmem:[#allocation2 + $0x8] sm:$0xff] %v1166_v54  ;;  %1174 = vst [vmem:[#allocation2 + $0x18] sm:$0xff] %v1168_v55 }
 0x683   : > { %v1181_v10 = vld [vmem:[#allocation2] sm:$0xff] (!%p1590_p11)  ;;  %v1183_v16 = vld [vmem:[#allocation2 + $0x10] sm:$0xff] (!%p1590_p11) }
 0x684   : > { %v1182_v15 = vld [vmem:[#allocation2 + $0x8] sm:$0xff] (!%p1590_p11)  ;;  %v1184_v17 = vld [vmem:[#allocation2 + $0x18] sm:$0xff] (!%p1590_p11)  ;;  %v1219_v32 = vadd.f32 (!%p1590_p11), %v1192_v22, %v1181_v10  ;;  %v1221_v34 = vadd.f32 (!%p1590_p11), %v1200_v24, %v1183_v16  ;;  %v1241_v10 = vld [vmem:[%s2106_s27] sm:$0x3f] (!%p1590_p11) }
 0x685   : > { %v1220_v33 = vadd.f32 (!%p1590_p11), %v1196_v23, %v1182_v15  ;;  %v1222_v29 = vadd.f32 (!%p1590_p11), %v1204_v25, %v1184_v17  ;;  %v1320_v24 = vrot.slane (!%p1590_p11), %v1241_v10, %v2028_v11  ;;  %v1324_v25 = vrot.slane (!%p1590_p11), %v1241_v10, %v2030_v12 }
 0x686   : > { %v1234_v38 = vadd.f32 (!%p1590_p11), %v1228_v9, %v1219_v32  ;;  %v1236_v40 = vadd.f32 (!%p1590_p11), %v1230_v21, %v1221_v34  ;;  %v1240_v9 = vld [vmem:[%s2105_s21] sm:$0x3f] (!%p1590_p11)  ;;  %v1328_v26 = vrot.slane (!%p1590_p11), %v1241_v10, %v2032_v13  ;;  %v1340_v34 = vrot.slane (!%p1590_p11), %v1241_v10, %v2038_v19 }
 0x687   : > { %v1235_v39 = vadd.f32 (!%p1590_p11), %v1229_v20, %v1220_v33  ;;  %v1237_v43 = vadd.f32 (!%p1590_p11), %v1231_v31, %v1222_v29  ;;  %v1283_v15 = vrot.slane (!%p1590_p11), %v1240_v9, %v2028_v11  ;;  %v1287_v16 = vrot.slane (!%p1590_p11), %v1240_v9, %v2030_v12 }
 0x688   : > { %v1291_v17 = vrot.slane (!%p1590_p11), %v1240_v9, %v2032_v13  ;;  %v1295_v20 = vrot.slane (!%p1590_p11), %v1240_v9, %v2034_v14  ;;  %v1299_v21 = vrot.slane (!%p1590_p11), %v1240_v9, %v2036_v18  ;;  %v1303_v22 = vrot.slane (!%p1590_p11), %v1240_v9, %v2038_v19 }
 0x689   : > { %v1242_v44 = vadd.f32 (!%p1590_p11), %v1235_v39, %v1234_v38  ;;  %v1336_v33 = vrot.slane (!%p1590_p11), %v1241_v10, %v2036_v18 }
 0x68b   : > { %v1243_v46 = vadd.f32 (!%p1590_p11), %v1242_v44, %v1236_v40 }
 0x68d   : > { %v1244_v48 = vadd.f32 (!%p1590_p11), %v1243_v46, %v1237_v43 }
 0x697   : > { %1180 = sbr.rel (%p1590_p11) target bundleno = 2033 (0x7f1), region = 64 }
 0x699   : > { %v1158_v62 = vpop.f32.mrb[4].mxu1 }
 0x69a   : > { %v1169_v63 = vadd.f32 %v1158_v62, %v752_v60  ;;  %v1160_v0 = vpop.f32.mrb[5].mxu1 }
 0x69b   : > { %v1170_v1 = vadd.f32 %v1160_v0, %v753_v61  ;;  %v1162_v2 = vpop.f32.mrb[6].mxu1 }
 0x69c   : > { %1175 = vst [vmem:[#allocation2 + $0x20] sm:$0xff] %v1169_v63  ;;  %v1163_v3 = vpop.f32.mrb[7].mxu1 }
 0x69d   : > { %1176 = vst [vmem:[#allocation2 + $0x28] sm:$0xff] %v1170_v1 }
 0x6a3   : > { %v1185_v27 = vld [vmem:[#allocation2 + $0x20] sm:$0xff] }
 0x6a4   : > { %v1186_v35 = vld [vmem:[#allocation2 + $0x28] sm:$0xff]  ;;  %v1223_v37 = vadd.f32 %v1208_v28, %v1185_v27  ;;  %v1332_v27 = vrot.slane %v1241_v10, %v2034_v14 }
 0x6a5   : > { %v1224_v41 = vadd.f32 %v1212_v30, %v1186_v35 }
 0x6a6   : > { %v1238_v45 = vadd.f32 %v1232_v36, %v1223_v37 }
 0x6a7   : > { %v1239_v47 = vadd.f32 %v1233_v42, %v1224_v41 }
 0x6a8   : > { %v1245_v49 = vadd.f32 %v1244_v48, %v1238_v45 }
 0x6aa   : > { %v1246_v50 = vadd.f32 %v1245_v49, %v1239_v47 }
 0x6ac   : > { %1247 = vadd.xlane.f32.xlu0 %v1246_v50 }
 0x739   : > { %v1248_v51 = vpop.xlane.xlu0 %1247 }
 0x73a   : > { %v1250_v52 = vmul.f32 0.0013020834, %v1248_v51 }
 0x73c   : > { %v1251_v53 = vsub.f32 %v1234_v38, %v1250_v52  ;;  %v1252_v54 = vsub.f32 %v1235_v39, %v1250_v52  ;;  %v1253_v55 = vsub.f32 %v1236_v40, %v1250_v52  ;;  %v1254_v56 = vsub.f32 %v1237_v43, %v1250_v52 }
 0x73d   : > { %v1255_v59 = vsub.f32 %v1238_v45, %v1250_v52  ;;  %v1256_v62 = vsub.f32 %v1239_v47, %v1250_v52 }
 0x73e   : > { %v1257_v57 = vmul.f32 %v1251_v53, %v1251_v53  ;;  %v1258_v58 = vmul.f32 %v1252_v54, %v1252_v54  ;;  %v1259_v60 = vmul.f32 %v1253_v55, %v1253_v55  ;;  %v1260_v63 = vmul.f32 %v1254_v56, %v1254_v56 }
 0x73f   : > { %v1261_v1 = vmul.f32 %v1255_v59, %v1255_v59  ;;  %v1262_v3 = vmul.f32 %v1256_v62, %v1256_v62 }
 0x740   : > { %v1263_v61 = vadd.f32 %v1258_v58, %v1257_v57 }
 0x742   : > { %v1264_v0 = vadd.f32 %v1263_v61, %v1259_v60 }
 0x744   : > { %v1265_v2 = vadd.f32 %v1264_v0, %v1260_v63 }
 0x746   : > { %v1266_v4 = vadd.f32 %v1265_v2, %v1261_v1 }
 0x748   : > { %v1267_v5 = vadd.f32 %v1266_v4, %v1262_v3 }
 0x74a   : > { %1268 = vadd.xlane.f32.xlu0 %v1267_v5 }
 0x7d7   : > { %v1269_v6 = vpop.xlane.xlu0 %1268 }
 0x7d8   : > { %v1270_v7 = vmul.f32 0.0013020834, %v1269_v6 }
 0x7da   : > { %v1271_v8 = vadd.f32 1e-12, %v1270_v7 }
 0x7dc   : > { %1762 = vrsqrt.f32 %v1271_v8 }
 0x7e6   : > { %v1763_v23 = vpop.eup %1762 }
 0x7e7   : > { %v1273_v28 = vmul.f32 %v1763_v23, %v1251_v53  ;;  %v1274_v30 = vmul.f32 %v1763_v23, %v1252_v54  ;;  %v1275_v31 = vmul.f32 %v1763_v23, %v1253_v55  ;;  %v1276_v32 = vmul.f32 %v1763_v23, %v1254_v56 }
 0x7e8   : > { %v1277_v29 = vmul.f32 %v1763_v23, %v1255_v59  ;;  %v1278_v35 = vmul.f32 %v1763_v23, %v1256_v62 }
 0x7e9   : > { %v1310_v36 = vmul.f32 %v1283_v15, %v1273_v28  ;;  %v1311_v11 = vmul.f32 %v1287_v16, %v1274_v30  ;;  %v1312_v12 = vmul.f32 %v1291_v17, %v1275_v31  ;;  %v1313_v37 = vmul.f32 %v1295_v20, %v1276_v32 }
 0x7ea   : > { %v1314_v13 = vmul.f32 %v1299_v21, %v1277_v29  ;;  %v1315_v38 = vmul.f32 %v1303_v22, %v1278_v35 }
 0x7eb   : > { %v1347_v14 = vadd.f32 %v1320_v24, %v1310_v36  ;;  %v1348_v39 = vadd.f32 %v1324_v25, %v1311_v11  ;;  %v1349_v40 = vadd.f32 %v1328_v26, %v1312_v12  ;;  %v1350_v41 = vadd.f32 %v1332_v27, %v1313_v37 }
 0x7ec   : > { %v1351_v42 = vadd.f32 %v1336_v33, %v1314_v13  ;;  %v1352_v43 = vadd.f32 %v1340_v34, %v1315_v38 }
 0x7ed   : > { %v1596_v18 = vpack.c.bf16 %v1348_v39, %v1347_v14  ;;  %v1597_v44 = vpack.c.bf16 %v1350_v41, %v1349_v40 }
 0x7ee   : > { %v1598_v19 = vpack.c.bf16 %v1352_v43, %v1351_v42 }
 0x7ef   : > { %1377 = vst [vmem:[%s1927_s7] sm:$0xff] %v1596_v18  ;;  %1378 = vst [vmem:[%s1927_s7 + $0x8] sm:$0xff] %v1597_v44 }
 0x7f0   : > { %1379 = vst [vmem:[%s1927_s7 + $0x10] sm:$0xff] %v1598_v19 }
 0x7f1 PF: > { %s2107_s16 = sld [smem:[#allocation5_spill]]  ;;  %s2108_s30 = sld [smem:[#allocation3_spill]] }
 0x7f2   : > { %s2109_s10 = sld [smem:[#allocation4_spill]]  ;;  %s2110_s11 = sld [smem:[#allocation6_spill]] }
 0x7f3   : > { %s2111_s12 = sld [smem:[#allocation7_spill]] }
 0x7f7   : > { %s19_s13 = sadd.s32 1, %s2107_s16  }
 0x7f8   : > { %p16_p12 = scmp.ge.s32.totalorder %s19_s13, 14  }
 0x7fa   :  { %18 = sbr.rel (!%p16_p12) target bundleno = 4 (0x4), region = 109 }

// kernel: closed_call.10
= control target key start
LH: loop header
LB: loop body
LE: loop exit
PB: predicated region body
PF: predicated region fallthrough
CT: control target
= control target key end

     0   :  { %s11879_s1 = inlined_call_operand.vmem [shape: bf16[768,2304], index: 1, kind: input, shape index: {}]   ;;  %s11880_s0 = inlined_call_operand.vmem [shape: bf16[16,768], index: 0, kind: input, shape index: {}]   ;;  %s11881_s2 = inlined_call_operand.vmem [shape: f32[1,2304], index: 2, kind: input, shape index: {}]   ;;  %s11882_s3 = inlined_call_operand.vmem [shape: bf16[16,2304], index: 3, kind: output, shape index: {}]  }
   0x1   :  { %v7635_v0 = vld [vmem:[%s11879_s1 + $0x4] ss:$72 sps:$4 sm:$0xff]   ;;  %v7639_v2 = vld [vmem:[%s11879_s1] ss:$72 sps:$4 sm:$0xff]   ;;  %v7641_v4 = vld [vmem:[%s11879_s1 + $0x94] ss:$72 sps:$4 sm:$0xff]  }
   0x2   :  { %v7637_v1 = vld [vmem:[%s11879_s1 + $0x904] ss:$72 sps:$4 sm:$0xff]   ;;  %5330 = vmatprep.subr.bf16.mxu1 %v7635_v0  ;;  %v7640_v3 = vld [vmem:[%s11879_s1 + $0x900] ss:$72 sps:$4 sm:$0xff]   ;;  %v7643_v5 = vld [vmem:[%s11879_s1 + $0x994] ss:$72 sps:$4 sm:$0xff]  }
   0x3   :  { %5373 = vmatprep.subr.bf16.mxu0 %v7637_v1  ;;  %5331 = vmatpush1.bf16.msra.mxu1 %v7639_v2  ;;  %v7645_v6 = vld [vmem:[%s11879_s1 + $0x90] ss:$72 sps:$4 sm:$0xff]   ;;  %v7647_v8 = vld [vmem:[%s11879_s1 + $0x124] ss:$72 sps:$4 sm:$0xff]   ;;  %v7651_v10 = vld [vmem:[%s11879_s1 + $0x120] ss:$72 sps:$4 sm:$0xff]  }
   0x4   :  { %5374 = vmatpush1.bf16.msra.mxu0 %v7640_v3  ;;  %5332 = vmatprep.subr.bf16.mxu1 %v7641_v4  ;;  %v7646_v7 = vld [vmem:[%s11879_s1 + $0x990] ss:$72 sps:$4 sm:$0xff]   ;;  %v7649_v9 = vld [vmem:[%s11879_s1 + $0xa24] ss:$72 sps:$4 sm:$0xff]   ;;  %v7652_v11 = vld [vmem:[%s11879_s1 + $0xa20] ss:$72 sps:$4 sm:$0xff]  }
   0x5   :  { %5375 = vmatprep.subr.bf16.mxu0 %v7643_v5  ;;  %v7653_v12 = vld [vmem:[%s11879_s1 + $0x1b4] ss:$72 sps:$4 sm:$0xff]   ;;  %v7657_v14 = vld [vmem:[%s11879_s1 + $0x1b0] ss:$72 sps:$4 sm:$0xff]   ;;  %v7659_v16 = vld [vmem:[%s11879_s1 + $0x244] ss:$72 sps:$4 sm:$0xff]  }
   0x6   :  { %v7655_v13 = vld [vmem:[%s11879_s1 + $0xab4] ss:$72 sps:$4 sm:$0xff]   ;;  %v7658_v15 = vld [vmem:[%s11879_s1 + $0xab0] ss:$72 sps:$4 sm:$0xff]   ;;  %v7661_v17 = vld [vmem:[%s11879_s1 + $0xb44] ss:$72 sps:$4 sm:$0xff]  }
   0x7   :  { %5333 = vmatpush1.bf16.msra.mxu1 %v7645_v6  ;;  %v7663_v18 = vld [vmem:[%s11879_s1 + $0x240] ss:$72 sps:$4 sm:$0xff]   ;;  %v7665_v20 = vld [vmem:[%s11879_s1 + $0x2d4] ss:$72 sps:$4 sm:$0xff]   ;;  %v7669_v22 = vld [vmem:[%s11879_s1 + $0x2d0] ss:$72 sps:$4 sm:$0xff]  }
   0x8   :  { %5376 = vmatpush1.bf16.msra.mxu0 %v7646_v7  ;;  %5334 = vmatprep.subr.bf16.mxu1 %v7647_v8  ;;  %v7664_v19 = vld [vmem:[%s11879_s1 + $0xb40] ss:$72 sps:$4 sm:$0xff]   ;;  %v7667_v21 = vld [vmem:[%s11879_s1 + $0xbd4] ss:$72 sps:$4 sm:$0xff]   ;;  %v7670_v23 = vld [vmem:[%s11879_s1 + $0xbd0] ss:$72 sps:$4 sm:$0xff]  }
   0x9   :  { %5377 = vmatprep.subr.bf16.mxu0 %v7649_v9  ;;  %v7671_v24 = vld [vmem:[%s11879_s1 + $0x364] ss:$72 sps:$4 sm:$0xff]   ;;  %v7675_v26 = vld [vmem:[%s11879_s1 + $0x360] ss:$72 sps:$4 sm:$0xff]   ;;  %v7677_v28 = vld [vmem:[%s11879_s1 + $0x3f4] ss:$72 sps:$4 sm:$0xff]  }
   0xa   :  { %v7673_v25 = vld [vmem:[%s11879_s1 + $0xc64] ss:$72 sps:$4 sm:$0xff]   ;;  %v7676_v27 = vld [vmem:[%s11879_s1 + $0xc60] ss:$72 sps:$4 sm:$0xff]   ;;  %v7679_v29 = vld [vmem:[%s11879_s1 + $0xcf4] ss:$72 sps:$4 sm:$0xff]  }
   0xb   :  { %5335 = vmatpush1.bf16.msra.mxu1 %v7651_v10  ;;  %v7681_v30 = vld [vmem:[%s11879_s1 + $0x3f0] ss:$72 sps:$4 sm:$0xff]   ;;  %v7683_v32 = vld [vmem:[%s11879_s1 + $0x484] ss:$72 sps:$4 sm:$0xff]   ;;  %v7687_v34 = vld [vmem:[%s11879_s1 + $0x480] ss:$72 sps:$4 sm:$0xff]  }
   0xc   :  { %5378 = vmatpush1.bf16.msra.mxu0 %v7652_v11  ;;  %5336 = vmatprep.subr.bf16.mxu1 %v7653_v12  ;;  %v7682_v31 = vld [vmem:[%s11879_s1 + $0xcf0] ss:$72 sps:$4 sm:$0xff]   ;;  %v7685_v33 = vld [vmem:[%s11879_s1 + $0xd84] ss:$72 sps:$4 sm:$0xff]   ;;  %v7688_v35 = vld [vmem:[%s11879_s1 + $0xd80] ss:$72 sps:$4 sm:$0xff]  }
   0xd   :  { %5379 = vmatprep.subr.bf16.mxu0 %v7655_v13  ;;  %v7689_v36 = vld [vmem:[%s11879_s1 + $0x514] ss:$72 sps:$4 sm:$0xff]   ;;  %v7693_v38 = vld [vmem:[%s11879_s1 + $0x510] ss:$72 sps:$4 sm:$0xff]   ;;  %v7695_v40 = vld [vmem:[%s11879_s1 + $0x5a4] ss:$72 sps:$4 sm:$0xff]  }
   0xe   :  { %v7691_v37 = vld [vmem:[%s11879_s1 + $0xe14] ss:$72 sps:$4 sm:$0xff]   ;;  %v7694_v39 = vld [vmem:[%s11879_s1 + $0xe10] ss:$72 sps:$4 sm:$0xff]   ;;  %v7697_v41 = vld [vmem:[%s11879_s1 + $0xea4] ss:$72 sps:$4 sm:$0xff]  }
   0xf   :  { %5337 = vmatpush1.bf16.msra.mxu1 %v7657_v14  ;;  %v7699_v42 = vld [vmem:[%s11879_s1 + $0x5a0] ss:$72 sps:$4 sm:$0xff]   ;;  %v7701_v44 = vld [vmem:[%s11879_s1 + $0x634] ss:$72 sps:$4 sm:$0xff]   ;;  %v7705_v46 = vld [vmem:[%s11879_s1 + $0x630] ss:$72 sps:$4 sm:$0xff]  }
  0x10   :  { %5380 = vmatpush1.bf16.msra.mxu0 %v7658_v15  ;;  %5338 = vmatprep.subr.bf16.mxu1 %v7659_v16  ;;  %v7700_v43 = vld [vmem:[%s11879_s1 + $0xea0] ss:$72 sps:$4 sm:$0xff]   ;;  %v7703_v45 = vld [vmem:[%s11879_s1 + $0xf34] ss:$72 sps:$4 sm:$0xff]   ;;  %v7706_v47 = vld [vmem:[%s11879_s1 + $0xf30] ss:$72 sps:$4 sm:$0xff]  }
  0x11   :  { %5381 = vmatprep.subr.bf16.mxu0 %v7661_v17  ;;  %v9128_v48 = vld [vmem:[%s11880_s0 + $0x4] ss:$24 sps:$4 sm:$0xff]   ;;  %v7711_v52 = vld [vmem:[%s11879_s1 + $0x6c0] ss:$72 sps:$4 sm:$0xff]   ;;  %v7717_v56 = vld [vmem:[%s11879_s1 + $0x750] ss:$72 sps:$4 sm:$0xff]  }
  0x12   :  { %v9133_v49 = vld [vmem:[%s11880_s0 + $0xc] ss:$24 sps:$4 sm:$0xff]   ;;  %5362 = vmatprep.mubr.bf16.mxu1 %v9128_v48  ;;  %v7712_v53 = vld [vmem:[%s11879_s1 + $0xfc0] ss:$72 sps:$4 sm:$0xff]   ;;  %v7713_v54 = vld [vmem:[%s11879_s1 + $0x754] ss:$72 sps:$4 sm:$0xff]  }
  0x13   :  { %5339 = vmatpush1.bf16.msra.mxu1 %v7663_v18  ;;  %v7707_v50 = vld [vmem:[%s11879_s1 + $0x6c4] ss:$72 sps:$4 sm:$0xff]   ;;  %5405 = vmatprep.mubr.bf16.mxu0 %v9133_v49  ;;  %v7715_v55 = vld [vmem:[%s11879_s1 + $0x1054] ss:$72 sps:$4 sm:$0xff]   ;;  %v7718_v57 = vld [vmem:[%s11879_s1 + $0x1050] ss:$72 sps:$4 sm:$0xff]  }
  0x14   :  { %5382 = vmatpush1.bf16.msra.mxu0 %v7664_v19  ;;  %5340 = vmatprep.subr.bf16.mxu1 %v7665_v20  ;;  %v7709_v51 = vld [vmem:[%s11879_s1 + $0xfc4] ss:$72 sps:$4 sm:$0xff]   ;;  %v7723_v60 = vld [vmem:[%s11879_s1 + $0x7e0] ss:$72 sps:$4 sm:$0xff]   ;;  %v7725_v62 = vld [vmem:[%s11879_s1 + $0x874] ss:$72 sps:$4 sm:$0xff]  }
  0x15   :  { %5383 = vmatprep.subr.bf16.mxu0 %v7667_v21  ;;  %v7719_v58 = vld [vmem:[%s11879_s1 + $0x7e4] ss:$72 sps:$4 sm:$0xff]   ;;  %v7724_v61 = vld [vmem:[%s11879_s1 + $0x10e0] ss:$72 sps:$4 sm:$0xff]   ;;  %v7727_v63 = vld [vmem:[%s11879_s1 + $0x1174] ss:$72 sps:$4 sm:$0xff]  }
  0x16   :  { %v7721_v59 = vld [vmem:[%s11879_s1 + $0x10e4] ss:$72 sps:$4 sm:$0xff]   ;;  %v7729_v0 = vld [vmem:[%s11879_s1 + $0x870] ss:$72 sps:$4 sm:$0xff]   ;;  %v7735_v4 = vld [vmem:[%s11879_s1 + $0x1200] ss:$72 sps:$4 sm:$0xff]  }
  0x17   :  { %5341 = vmatpush1.bf16.msra.mxu1 %v7669_v22  ;;  %v7730_v1 = vld [vmem:[%s11879_s1 + $0x1170] ss:$72 sps:$4 sm:$0xff]   ;;  %v7737_v2 = vld [vmem:[%s11879_s1 + $0x1204] ss:$72 sps:$4 sm:$0xff]   ;;  %v9205_v7 = vld [vmem:[%s11880_s0 + $0x8] ss:$24 sps:$4 sm:$0xff]  }
  0x18   :  { %5384 = vmatpush1.bf16.msra.mxu0 %v7670_v23  ;;  %5342 = vmatprep.subr.bf16.mxu1 %v7671_v24  ;;  %v7740_v3 = vld [vmem:[%s11879_s1 + $0xc] ss:$72 sps:$4 sm:$0xff]   ;;  %v7738_v5 = vld [vmem:[%s11879_s1 + $0x8] ss:$72 sps:$4 sm:$0xff]   ;;  %v9200_v6 = vld [vmem:[%s11880_s0] ss:$24 sps:$4 sm:$0xff]  }
  0x19   :  { %5385 = vmatprep.subr.bf16.mxu0 %v7673_v25  ;;  %v7745_v8 = vld [vmem:[%s11879_s1 + $0x1294] ss:$72 sps:$4 sm:$0xff]   ;;  %v7743_v10 = vld [vmem:[%s11879_s1 + $0x1290] ss:$72 sps:$4 sm:$0xff]   ;;  %v7751_v12 = vld [vmem:[%s11879_s1 + $0x1324] ss:$72 sps:$4 sm:$0xff]  }
  0x1a   :  { %v7748_v9 = vld [vmem:[%s11879_s1 + $0x9c] ss:$72 sps:$4 sm:$0xff]   ;;  %v7746_v11 = vld [vmem:[%s11879_s1 + $0x98] ss:$72 sps:$4 sm:$0xff]   ;;  %v7754_v13 = vld [vmem:[%s11879_s1 + $0x12c] ss:$72 sps:$4 sm:$0xff]  }
  0x1b   :  { %5343 = vmatpush1.bf16.msra.mxu1 %v7675_v26  ;;  %v7749_v14 = vld [vmem:[%s11879_s1 + $0x1320] ss:$72 sps:$4 sm:$0xff]   ;;  %v7757_v16 = vld [vmem:[%s11879_s1 + $0x13b4] ss:$72 sps:$4 sm:$0xff]   ;;  %v7755_v18 = vld [vmem:[%s11879_s1 + $0x13b0] ss:$72 sps:$4 sm:$0xff]  }
  0x1c   :  { %5386 = vmatpush1.bf16.msra.mxu0 %v7676_v27  ;;  %5344 = vmatprep.subr.bf16.mxu1 %v7677_v28  ;;  %v7752_v15 = vld [vmem:[%s11879_s1 + $0x128] ss:$72 sps:$4 sm:$0xff]   ;;  %v7760_v17 = vld [vmem:[%s11879_s1 + $0x1bc] ss:$72 sps:$4 sm:$0xff]   ;;  %v7758_v19 = vld [vmem:[%s11879_s1 + $0x1b8] ss:$72 sps:$4 sm:$0xff]  }
  0x1d   :  { %5387 = vmatprep.subr.bf16.mxu0 %v7679_v29  ;;  %v7763_v20 = vld [vmem:[%s11879_s1 + $0x1444] ss:$72 sps:$4 sm:$0xff]   ;;  %v7761_v22 = vld [vmem:[%s11879_s1 + $0x1440] ss:$72 sps:$4 sm:$0xff]   ;;  %v7769_v24 = vld [vmem:[%s11879_s1 + $0x14d4] ss:$72 sps:$4 sm:$0xff]  }
  0x1e   :  { %v7766_v21 = vld [vmem:[%s11879_s1 + $0x24c] ss:$72 sps:$4 sm:$0xff]   ;;  %v7764_v23 = vld [vmem:[%s11879_s1 + $0x248] ss:$72 sps:$4 sm:$0xff]   ;;  %v7772_v25 = vld [vmem:[%s11879_s1 + $0x2dc] ss:$72 sps:$4 sm:$0xff]  }
  0x1f   :  { %5345 = vmatpush1.bf16.msra.mxu1 %v7681_v30  ;;  %v7767_v26 = vld [vmem:[%s11879_s1 + $0x14d0] ss:$72 sps:$4 sm:$0xff]   ;;  %v7775_v28 = vld [vmem:[%s11879_s1 + $0x1564] ss:$72 sps:$4 sm:$0xff]   ;;  %v7773_v30 = vld [vmem:[%s11879_s1 + $0x1560] ss:$72 sps:$4 sm:$0xff]  }
  0x20   :  { %5388 = vmatpush1.bf16.msra.mxu0 %v7682_v31  ;;  %5346 = vmatprep.subr.bf16.mxu1 %v7683_v32  ;;  %v7770_v27 = vld [vmem:[%s11879_s1 + $0x2d8] ss:$72 sps:$4 sm:$0xff]   ;;  %v7778_v29 = vld [vmem:[%s11879_s1 + $0x36c] ss:$72 sps:$4 sm:$0xff]   ;;  %v7776_v31 = vld [vmem:[%s11879_s1 + $0x368] ss:$72 sps:$4 sm:$0xff]  }
  0x21   :  { %5389 = vmatprep.subr.bf16.mxu0 %v7685_v33  ;;  %v7781_v32 = vld [vmem:[%s11879_s1 + $0x15f4] ss:$72 sps:$4 sm:$0xff]  }
  0x22   :  { %v9288_v33 = vld [vmem:[%s11880_s0 + $0x14] ss:$24 sps:$4 sm:$0xff]  }
  0x23   :  { %5347 = vmatpush1.bf16.msra.mxu1 %v7687_v34  ;;  %v7784_v34 = vld [vmem:[%s11879_s1 + $0x3fc] ss:$72 sps:$4 sm:$0xff]  }
  0x24   :  { %5390 = vmatpush1.bf16.msra.mxu0 %v7688_v35  ;;  %5348 = vmatprep.subr.bf16.mxu1 %v7689_v36  ;;  %v7779_v35 = vld [vmem:[%s11879_s1 + $0x15f0] ss:$72 sps:$4 sm:$0xff]  }
  0x25   :  { %5391 = vmatprep.subr.bf16.mxu0 %v7691_v37  ;;  %v7782_v36 = vld [vmem:[%s11879_s1 + $0x3f8] ss:$72 sps:$4 sm:$0xff]   ;;  %v7787_v37 = vld [vmem:[%s11879_s1 + $0x1684] ss:$72 sps:$4 sm:$0xff]  }
  0x27   :  { %5349 = vmatpush1.bf16.msra.mxu1 %v7693_v38  ;;  %v7790_v38 = vld [vmem:[%s11879_s1 + $0x48c] ss:$72 sps:$4 sm:$0xff]  }
  0x28   :  { %5392 = vmatpush1.bf16.msra.mxu0 %v7694_v39  ;;  %5350 = vmatprep.subr.bf16.mxu1 %v7695_v40  ;;  %v7785_v39 = vld [vmem:[%s11879_s1 + $0x1680] ss:$72 sps:$4 sm:$0xff]  }
  0x29   :  { %5393 = vmatprep.subr.bf16.mxu0 %v7697_v41  ;;  %v7788_v40 = vld [vmem:[%s11879_s1 + $0x488] ss:$72 sps:$4 sm:$0xff]   ;;  %v7793_v41 = vld [vmem:[%s11879_s1 + $0x1714] ss:$72 sps:$4 sm:$0xff]  }
  0x2b   :  { %5351 = vmatpush1.bf16.msra.mxu1 %v7699_v42  ;;  %v7796_v42 = vld [vmem:[%s11879_s1 + $0x51c] ss:$72 sps:$4 sm:$0xff]  }
  0x2c   :  { %5394 = vmatpush1.bf16.msra.mxu0 %v7700_v43  ;;  %5352 = vmatprep.subr.bf16.mxu1 %v7701_v44  ;;  %v7791_v43 = vld [vmem:[%s11879_s1 + $0x1710] ss:$72 sps:$4 sm:$0xff]  }
  0x2d   :  { %5395 = vmatprep.subr.bf16.mxu0 %v7703_v45  ;;  %v7794_v44 = vld [vmem:[%s11879_s1 + $0x518] ss:$72 sps:$4 sm:$0xff]   ;;  %v7799_v45 = vld [vmem:[%s11879_s1 + $0x17a4] ss:$72 sps:$4 sm:$0xff]  }
  0x2f   :  { %5353 = vmatpush1.bf16.msra.mxu1 %v7705_v46  ;;  %v7802_v46 = vld [vmem:[%s11879_s1 + $0x5ac] ss:$72 sps:$4 sm:$0xff]  }
  0x30   :  { %5396 = vmatpush1.bf16.msra.mxu0 %v7706_v47  ;;  %5354 = vmatprep.subr.bf16.mxu1 %v7707_v50  ;;  %v7797_v47 = vld [vmem:[%s11879_s1 + $0x17a0] ss:$72 sps:$4 sm:$0xff]  }
  0x31   :  { %5397 = vmatprep.subr.bf16.mxu0 %v7709_v51  ;;  %v7800_v50 = vld [vmem:[%s11879_s1 + $0x5a8] ss:$72 sps:$4 sm:$0xff]   ;;  %v7805_v51 = vld [vmem:[%s11879_s1 + $0x1834] ss:$72 sps:$4 sm:$0xff]  }
  0x33   :  { %5355 = vmatpush1.bf16.msra.mxu1 %v7711_v52  ;;  %v7808_v52 = vld [vmem:[%s11879_s1 + $0x63c] ss:$72 sps:$4 sm:$0xff]  }
  0x34   :  { %5398 = vmatpush1.bf16.msra.mxu0 %v7712_v53  ;;  %5356 = vmatprep.subr.bf16.mxu1 %v7713_v54  ;;  %v7803_v53 = vld [vmem:[%s11879_s1 + $0x1830] ss:$72 sps:$4 sm:$0xff]  }
  0x35   :  { %5399 = vmatprep.subr.bf16.mxu0 %v7715_v55  ;;  %v7806_v54 = vld [vmem:[%s11879_s1 + $0x638] ss:$72 sps:$4 sm:$0xff]   ;;  %v7811_v55 = vld [vmem:[%s11879_s1 + $0x18c4] ss:$72 sps:$4 sm:$0xff]  }
  0x37   :  { %5357 = vmatpush1.bf16.msra.mxu1 %v7717_v56  ;;  %v7814_v56 = vld [vmem:[%s11879_s1 + $0x6cc] ss:$72 sps:$4 sm:$0xff]  }
  0x38   :  { %5400 = vmatpush1.bf16.msra.mxu0 %v7718_v57  ;;  %5358 = vmatprep.subr.bf16.mxu1 %v7719_v58  ;;  %v7809_v57 = vld [vmem:[%s11879_s1 + $0x18c0] ss:$72 sps:$4 sm:$0xff]  }
  0x39   :  { %5401 = vmatprep.subr.bf16.mxu0 %v7721_v59  ;;  %v7812_v58 = vld [vmem:[%s11879_s1 + $0x6c8] ss:$72 sps:$4 sm:$0xff]   ;;  %v7817_v59 = vld [vmem:[%s11879_s1 + $0x1954] ss:$72 sps:$4 sm:$0xff]  }
  0x3b   :  { %5359 = vmatpush1.bf16.msra.mxu1 %v7723_v60  ;;  %v7820_v60 = vld [vmem:[%s11879_s1 + $0x75c] ss:$72 sps:$4 sm:$0xff]  }
  0x3c   :  { %5402 = vmatpush1.bf16.msra.mxu0 %v7724_v61  ;;  %5360 = vmatprep.subr.bf16.mxu1 %v7725_v62  ;;  %v7815_v61 = vld [vmem:[%s11879_s1 + $0x1950] ss:$72 sps:$4 sm:$0xff]  }
  0x3d   :  { %5403 = vmatprep.subr.bf16.mxu0 %v7727_v63  ;;  %v7818_v62 = vld [vmem:[%s11879_s1 + $0x758] ss:$72 sps:$4 sm:$0xff]   ;;  %v7823_v63 = vld [vmem:[%s11879_s1 + $0x19e4] ss:$72 sps:$4 sm:$0xff]  }
  0x3f   :  { %5361 = vmatpush1.bf16.msra.mxu1 %v7729_v0  ;;  %v7826_v0 = vld [vmem:[%s11879_s1 + $0x7ec] ss:$72 sps:$4 sm:$0xff]  }
  0x40   :  { %5404 = vmatpush1.bf16.msra.mxu0 %v7730_v1  ;;  %5459 = vmatprep.subr.bf16.mxu1 %v7740_v3  ;;  %v7821_v1 = vld [vmem:[%s11879_s1 + $0x19e0] ss:$72 sps:$4 sm:$0xff]   ;;  %v7829_v3 = vld [vmem:[%s11879_s1 + $0x1a74] ss:$72 sps:$4 sm:$0xff]  }
  0x41   :  { %5416 = vmatprep.subr.bf16.mxu0 %v7737_v2  ;;  %v7824_v2 = vld [vmem:[%s11879_s1 + $0x7e8] ss:$72 sps:$4 sm:$0xff]  }
  0x42   :  { %5363 = vmatmul.mubr.bf16.vlgmr.msra.gmra.mrb[0].mxu1 %v9200_v6 }
  0x43   :  { %5406 = vmatmul.mubr.bf16.vlgmr.msra.gmra.mrb[0].mxu0 %v9205_v7  ;;  %5460 = vmatpush1.bf16.msra.mxu1 %v7738_v5  ;;  %v7827_v5 = vld [vmem:[%s11879_s1 + $0x1a70] ss:$72 sps:$4 sm:$0xff]  }
  0x44   :  { %5417 = vmatpush1.bf16.msra.mxu0 %v7735_v4  ;;  %5461 = vmatprep.subr.bf16.mxu1 %v7748_v9  ;;  %v7832_v4 = vld [vmem:[%s11879_s1 + $0x87c] ss:$72 sps:$4 sm:$0xff]   ;;  %v7838_v9 = vld [vmem:[%s11879_s1 + $0x90c] ss:$72 sps:$4 sm:$0xff]  }
  0x45   :  { %5418 = vmatprep.subr.bf16.mxu0 %v7745_v8  ;;  %5491 = vmatprep.mubr.bf16.mxu1 %v9128_v48  ;;  %v7830_v8 = vld [vmem:[%s11879_s1 + $0x878] ss:$72 sps:$4 sm:$0xff]  }
  0x46   :  { %5448 = vmatprep.mubr.bf16.mxu0 %v9288_v33 }
  0x47   :  { %5462 = vmatpush1.bf16.msra.mxu1 %v7746_v11  ;;  %v9405_v11 = vld [vmem:[%s11880_s0 + $0x10] ss:$24 sps:$4 sm:$0xff]  }
  0x48   :  { %5419 = vmatpush1.bf16.msra.mxu0 %v7743_v10  ;;  %5463 = vmatprep.subr.bf16.mxu1 %v7754_v13  ;;  %v7841_v10 = vld [vmem:[%s11879_s1 + $0x14] ss:$72 sps:$4 sm:$0xff]   ;;  %v7839_v13 = vld [vmem:[%s11879_s1 + $0x10] ss:$72 sps:$4 sm:$0xff]  }
  0x49   :  { %5420 = vmatprep.subr.bf16.mxu0 %v7751_v12  ;;  %v7836_v12 = vld [vmem:[%s11879_s1 + $0x908] ss:$72 sps:$4 sm:$0xff]  }
  0x4b   :  { %5464 = vmatpush1.bf16.msra.mxu1 %v7752_v15  ;;  %v7847_v15 = vld [vmem:[%s11879_s1 + $0xa4] ss:$72 sps:$4 sm:$0xff]  }
  0x4c   :  { %5421 = vmatpush1.bf16.msra.mxu0 %v7749_v14  ;;  %5465 = vmatprep.subr.bf16.mxu1 %v7760_v17  ;;  %v7844_v14 = vld [vmem:[%s11879_s1 + $0x99c] ss:$72 sps:$4 sm:$0xff]   ;;  %v7845_v17 = vld [vmem:[%s11879_s1 + $0xa0] ss:$72 sps:$4 sm:$0xff]  }
  0x4d   :  { %5422 = vmatprep.subr.bf16.mxu0 %v7757_v16  ;;  %v7842_v16 = vld [vmem:[%s11879_s1 + $0x998] ss:$72 sps:$4 sm:$0xff]  }
  0x4f   :  { %5466 = vmatpush1.bf16.msra.mxu1 %v7758_v19  ;;  %v7853_v19 = vld [vmem:[%s11879_s1 + $0x134] ss:$72 sps:$4 sm:$0xff]  }
  0x50   :  { %5423 = vmatpush1.bf16.msra.mxu0 %v7755_v18  ;;  %5467 = vmatprep.subr.bf16.mxu1 %v7766_v21  ;;  %v7850_v18 = vld [vmem:[%s11879_s1 + $0xa2c] ss:$72 sps:$4 sm:$0xff]   ;;  %v7851_v21 = vld [vmem:[%s11879_s1 + $0x130] ss:$72 sps:$4 sm:$0xff]  }
  0x51   :  { %5424 = vmatprep.subr.bf16.mxu0 %v7763_v20  ;;  %v7848_v20 = vld [vmem:[%s11879_s1 + $0xa28] ss:$72 sps:$4 sm:$0xff]  }
  0x53   :  { %5468 = vmatpush1.bf16.msra.mxu1 %v7764_v23  ;;  %v7857_v23 = vld [vmem:[%s11879_s1 + $0x1c0] ss:$72 sps:$4 sm:$0xff]  }
  0x54   :  { %5425 = vmatpush1.bf16.msra.mxu0 %v7761_v22  ;;  %5469 = vmatprep.subr.bf16.mxu1 %v7772_v25  ;;  %v7856_v22 = vld [vmem:[%s11879_s1 + $0xabc] ss:$72 sps:$4 sm:$0xff]  }
  0x55   :  { %5426 = vmatprep.subr.bf16.mxu0 %v7769_v24  ;;  %v7862_v24 = vld [vmem:[%s11879_s1 + $0xb4c] ss:$72 sps:$4 sm:$0xff]  }
  0x56   :  { %v7865_v25 = vld [vmem:[%s11879_s1 + $0x254] ss:$72 sps:$4 sm:$0xff]  }
  0x57   :  { %5470 = vmatpush1.bf16.msra.mxu1 %v7770_v27  ;;  %v7863_v27 = vld [vmem:[%s11879_s1 + $0x250] ss:$72 sps:$4 sm:$0xff]  }
  0x58   :  { %5427 = vmatpush1.bf16.msra.mxu0 %v7767_v26  ;;  %5471 = vmatprep.subr.bf16.mxu1 %v7778_v29  ;;  %v7860_v26 = vld [vmem:[%s11879_s1 + $0xb48] ss:$72 sps:$4 sm:$0xff]   ;;  %v7871_v29 = vld [vmem:[%s11879_s1 + $0x2e4] ss:$72 sps:$4 sm:$0xff]  }
  0x59   :  { %5428 = vmatprep.subr.bf16.mxu0 %v7775_v28  ;;  %v7868_v28 = vld [vmem:[%s11879_s1 + $0xbdc] ss:$72 sps:$4 sm:$0xff]  }
  0x5b   :  { %5472 = vmatpush1.bf16.msra.mxu1 %v7776_v31  ;;  %v7869_v31 = vld [vmem:[%s11879_s1 + $0x2e0] ss:$72 sps:$4 sm:$0xff]  }
  0x5c   :  { %5429 = vmatpush1.bf16.msra.mxu0 %v7773_v30  ;;  %5473 = vmatprep.subr.bf16.mxu1 %v7784_v34  ;;  %v7866_v30 = vld [vmem:[%s11879_s1 + $0xbd8] ss:$72 sps:$4 sm:$0xff]   ;;  %v7877_v34 = vld [vmem:[%s11879_s1 + $0x374] ss:$72 sps:$4 sm:$0xff]  }
  0x5d   :  { %5430 = vmatprep.subr.bf16.mxu0 %v7781_v32  ;;  %v7874_v32 = vld [vmem:[%s11879_s1 + $0xc6c] ss:$72 sps:$4 sm:$0xff]  }
  0x5f   :  { %5474 = vmatpush1.bf16.msra.mxu1 %v7782_v36  ;;  %v7875_v36 = vld [vmem:[%s11879_s1 + $0x370] ss:$72 sps:$4 sm:$0xff]  }
  0x60   :  { %5431 = vmatpush1.bf16.msra.mxu0 %v7779_v35  ;;  %5475 = vmatprep.subr.bf16.mxu1 %v7790_v38  ;;  %v7872_v35 = vld [vmem:[%s11879_s1 + $0xc68] ss:$72 sps:$4 sm:$0xff]   ;;  %v7883_v38 = vld [vmem:[%s11879_s1 + $0x404] ss:$72 sps:$4 sm:$0xff]  }
  0x61   :  { %5432 = vmatprep.subr.bf16.mxu0 %v7787_v37  ;;  %v7880_v37 = vld [vmem:[%s11879_s1 + $0xcfc] ss:$72 sps:$4 sm:$0xff]  }
  0x63   :  { %5476 = vmatpush1.bf16.msra.mxu1 %v7788_v40  ;;  %v7881_v40 = vld [vmem:[%s11879_s1 + $0x400] ss:$72 sps:$4 sm:$0xff]  }
  0x64   :  { %5433 = vmatpush1.bf16.msra.mxu0 %v7785_v39  ;;  %5477 = vmatprep.subr.bf16.mxu1 %v7796_v42  ;;  %v7878_v39 = vld [vmem:[%s11879_s1 + $0xcf8] ss:$72 sps:$4 sm:$0xff]   ;;  %v7889_v42 = vld [vmem:[%s11879_s1 + $0x494] ss:$72 sps:$4 sm:$0xff]  }
  0x65   :  { %5434 = vmatprep.subr.bf16.mxu0 %v7793_v41  ;;  %v7886_v41 = vld [vmem:[%s11879_s1 + $0xd8c] ss:$72 sps:$4 sm:$0xff]  }
  0x67   :  { %5478 = vmatpush1.bf16.msra.mxu1 %v7794_v44  ;;  %v7887_v44 = vld [vmem:[%s11879_s1 + $0x490] ss:$72 sps:$4 sm:$0xff]  }
  0x68   :  { %5435 = vmatpush1.bf16.msra.mxu0 %v7791_v43  ;;  %5479 = vmatprep.subr.bf16.mxu1 %v7802_v46  ;;  %v7884_v43 = vld [vmem:[%s11879_s1 + $0xd88] ss:$72 sps:$4 sm:$0xff]   ;;  %v7895_v46 = vld [vmem:[%s11879_s1 + $0x524] ss:$72 sps:$4 sm:$0xff]  }
  0x69   :  { %5436 = vmatprep.subr.bf16.mxu0 %v7799_v45  ;;  %v7892_v45 = vld [vmem:[%s11879_s1 + $0xe1c] ss:$72 sps:$4 sm:$0xff]  }
  0x6b   :  { %5480 = vmatpush1.bf16.msra.mxu1 %v7800_v50  ;;  %v7893_v50 = vld [vmem:[%s11879_s1 + $0x520] ss:$72 sps:$4 sm:$0xff]  }
  0x6c   :  { %5437 = vmatpush1.bf16.msra.mxu0 %v7797_v47  ;;  %5481 = vmatprep.subr.bf16.mxu1 %v7808_v52  ;;  %v7890_v47 = vld [vmem:[%s11879_s1 + $0xe18] ss:$72 sps:$4 sm:$0xff]   ;;  %v7901_v52 = vld [vmem:[%s11879_s1 + $0x5b4] ss:$72 sps:$4 sm:$0xff]  }
  0x6d   :  { %5438 = vmatprep.subr.bf16.mxu0 %v7805_v51  ;;  %v7898_v51 = vld [vmem:[%s11879_s1 + $0xeac] ss:$72 sps:$4 sm:$0xff]  }
  0x6f   :  { %5482 = vmatpush1.bf16.msra.mxu1 %v7806_v54  ;;  %v7899_v54 = vld [vmem:[%s11879_s1 + $0x5b0] ss:$72 sps:$4 sm:$0xff]  }
  0x70   :  { %5439 = vmatpush1.bf16.msra.mxu0 %v7803_v53  ;;  %5483 = vmatprep.subr.bf16.mxu1 %v7814_v56  ;;  %v7896_v53 = vld [vmem:[%s11879_s1 + $0xea8] ss:$72 sps:$4 sm:$0xff]   ;;  %v7907_v56 = vld [vmem:[%s11879_s1 + $0x644] ss:$72 sps:$4 sm:$0xff]  }
  0x71   :  { %5440 = vmatprep.subr.bf16.mxu0 %v7811_v55  ;;  %v7904_v55 = vld [vmem:[%s11879_s1 + $0xf3c] ss:$72 sps:$4 sm:$0xff]  }
  0x73   :  { %5484 = vmatpush1.bf16.msra.mxu1 %v7812_v58  ;;  %v7905_v58 = vld [vmem:[%s11879_s1 + $0x640] ss:$72 sps:$4 sm:$0xff]  }
  0x74   :  { %5441 = vmatpush1.bf16.msra.mxu0 %v7809_v57  ;;  %5485 = vmatprep.subr.bf16.mxu1 %v7820_v60  ;;  %v7902_v57 = vld [vmem:[%s11879_s1 + $0xf38] ss:$72 sps:$4 sm:$0xff]   ;;  %v7913_v60 = vld [vmem:[%s11879_s1 + $0x6d4] ss:$72 sps:$4 sm:$0xff]  }
  0x75   :  { %5442 = vmatprep.subr.bf16.mxu0 %v7817_v59  ;;  %v7910_v59 = vld [vmem:[%s11879_s1 + $0xfcc] ss:$72 sps:$4 sm:$0xff]  }
  0x77   :  { %5486 = vmatpush1.bf16.msra.mxu1 %v7818_v62  ;;  %v7911_v62 = vld [vmem:[%s11879_s1 + $0x6d0] ss:$72 sps:$4 sm:$0xff]  }
  0x78   :  { %5443 = vmatpush1.bf16.msra.mxu0 %v7815_v61  ;;  %5487 = vmatprep.subr.bf16.mxu1 %v7826_v0  ;;  %v7908_v61 = vld [vmem:[%s11879_s1 + $0xfc8] ss:$72 sps:$4 sm:$0xff]   ;;  %v7919_v0 = vld [vmem:[%s11879_s1 + $0x764] ss:$72 sps:$4 sm:$0xff]  }
  0x79   :  { %5444 = vmatprep.subr.bf16.mxu0 %v7823_v63  ;;  %v7916_v63 = vld [vmem:[%s11879_s1 + $0x105c] ss:$72 sps:$4 sm:$0xff]  }
  0x7b   :  { %5488 = vmatpush1.bf16.msra.mxu1 %v7824_v2  ;;  %v7917_v2 = vld [vmem:[%s11879_s1 + $0x760] ss:$72 sps:$4 sm:$0xff]  }
  0x7c   :  { %5445 = vmatpush1.bf16.msra.mxu0 %v7821_v1  ;;  %5489 = vmatprep.subr.bf16.mxu1 %v7832_v4  ;;  %v7914_v1 = vld [vmem:[%s11879_s1 + $0x1058] ss:$72 sps:$4 sm:$0xff]   ;;  %v7925_v4 = vld [vmem:[%s11879_s1 + $0x7f4] ss:$72 sps:$4 sm:$0xff]  }
  0x7d   :  { %5446 = vmatprep.subr.bf16.mxu0 %v7829_v3  ;;  %v7922_v3 = vld [vmem:[%s11879_s1 + $0x10ec] ss:$72 sps:$4 sm:$0xff]  }
  0x7f   :  { %5490 = vmatpush1.bf16.msra.mxu1 %v7830_v8  ;;  %v7923_v8 = vld [vmem:[%s11879_s1 + $0x7f0] ss:$72 sps:$4 sm:$0xff]  }
  0x80   :  { %5447 = vmatpush1.bf16.msra.mxu0 %v7827_v5  ;;  %5502 = vmatprep.subr.bf16.mxu1 %v7838_v9  ;;  %v7920_v5 = vld [vmem:[%s11879_s1 + $0x10e8] ss:$72 sps:$4 sm:$0xff]   ;;  %v7928_v9 = vld [vmem:[%s11879_s1 + $0x117c] ss:$72 sps:$4 sm:$0xff]  }
  0x81   :  { %5588 = vmatprep.subr.bf16.mxu0 %v7841_v10  ;;  %v7931_v10 = vld [vmem:[%s11879_s1 + $0x884] ss:$72 sps:$4 sm:$0xff]  }
  0x82   :  { %5492 = vmatmul.mubr.bf16.vlgmr.msra.gmra.mrb[4].mxu1 %v9200_v6 }
  0x83   :  { %5449 = vmatmul.mubr.bf16.vlgmr.msra.gmra.mrb[0].mxu0 %v9405_v11  ;;  %5503 = vmatpush1.bf16.msra.mxu1 %v7836_v12  ;;  %v7926_v12 = vld [vmem:[%s11879_s1 + $0x1178] ss:$72 sps:$4 sm:$0xff]  }
  0x84   :  { %5589 = vmatpush1.bf16.msra.mxu0 %v7839_v13  ;;  %5504 = vmatprep.subr.bf16.mxu1 %v7844_v14  ;;  %v7929_v13 = vld [vmem:[%s11879_s1 + $0x880] ss:$72 sps:$4 sm:$0xff]   ;;  %v7934_v14 = vld [vmem:[%s11879_s1 + $0x120c] ss:$72 sps:$4 sm:$0xff]  }
  0x85   :  { %5590 = vmatprep.subr.bf16.mxu0 %v7847_v15  ;;  %5534 = vmatprep.mubr.bf16.mxu1 %v9133_v49  ;;  %v7854_v49 = vld [vmem:[%s11879_s1 + $0xab8] ss:$72 sps:$4 sm:$0xff]   ;;  %v7937_v15 = vld [vmem:[%s11879_s1 + $0x914] ss:$72 sps:$4 sm:$0xff]  }
  0x86   :  { %5620 = vmatprep.mubr.bf16.mxu0 %v9128_v48  ;;  %v7859_v48 = vld [vmem:[%s11879_s1 + $0x1c4] ss:$72 sps:$4 sm:$0xff]  }
  0x87   :  { %5505 = vmatpush1.bf16.msra.mxu1 %v7842_v16  ;;  %v7932_v16 = vld [vmem:[%s11879_s1 + $0x1208] ss:$72 sps:$4 sm:$0xff]  }
  0x88   :  { %5591 = vmatpush1.bf16.msra.mxu0 %v7845_v17  ;;  %5506 = vmatprep.subr.bf16.mxu1 %v7850_v18  ;;  %v7935_v17 = vld [vmem:[%s11879_s1 + $0x910] ss:$72 sps:$4 sm:$0xff]   ;;  %v7940_v18 = vld [vmem:[%s11879_s1 + $0x129c] ss:$72 sps:$4 sm:$0xff]  }
  0x89   :  { %5592 = vmatprep.subr.bf16.mxu0 %v7853_v19  ;;  %v7943_v19 = vld [vmem:[%s11879_s1 + $0x9a4] ss:$72 sps:$4 sm:$0xff]  }
  0x8b   :  { %5507 = vmatpush1.bf16.msra.mxu1 %v7848_v20  ;;  %v7938_v20 = vld [vmem:[%s11879_s1 + $0x1298] ss:$72 sps:$4 sm:$0xff]  }
  0x8c   :  { %5593 = vmatpush1.bf16.msra.mxu0 %v7851_v21  ;;  %5508 = vmatprep.subr.bf16.mxu1 %v7856_v22  ;;  %v7941_v21 = vld [vmem:[%s11879_s1 + $0x9a0] ss:$72 sps:$4 sm:$0xff]   ;;  %v7946_v22 = vld [vmem:[%s11879_s1 + $0x132c] ss:$72 sps:$4 sm:$0xff]  }
  0x8d   :  { %5594 = vmatprep.subr.bf16.mxu0 %v7859_v48  ;;  %v7944_v48 = vld [vmem:[%s11879_s1 + $0x1328] ss:$72 sps:$4 sm:$0xff]  }
  0x8f   :  { %5509 = vmatpush1.bf16.msra.mxu1 %v7854_v49  ;;  %v7947_v49 = vld [vmem:[%s11879_s1 + $0xa30] ss:$72 sps:$4 sm:$0xff]  }
  0x90   :  { %5595 = vmatpush1.bf16.msra.mxu0 %v7857_v23  ;;  %5510 = vmatprep.subr.bf16.mxu1 %v7862_v24  ;;  %v7955_v23 = vld [vmem:[%s11879_s1 + $0xac4] ss:$72 sps:$4 sm:$0xff]   ;;  %v7950_v24 = vld [vmem:[%s11879_s1 + $0x13b8] ss:$72 sps:$4 sm:$0xff]  }
  0x91   :  { %5596 = vmatprep.subr.bf16.mxu0 %v7865_v25  ;;  %v7953_v25 = vld [vmem:[%s11879_s1 + $0xac0] ss:$72 sps:$4 sm:$0xff]  }
  0x93   :  { %5511 = vmatpush1.bf16.msra.mxu1 %v7860_v26  ;;  %v7958_v26 = vld [vmem:[%s11879_s1 + $0x144c] ss:$72 sps:$4 sm:$0xff]  }
  0x94   :  { %5597 = vmatpush1.bf16.msra.mxu0 %v7863_v27  ;;  %5512 = vmatprep.subr.bf16.mxu1 %v7868_v28  ;;  %v7961_v27 = vld [vmem:[%s11879_s1 + $0xb54] ss:$72 sps:$4 sm:$0xff]   ;;  %v7956_v28 = vld [vmem:[%s11879_s1 + $0x1448] ss:$72 sps:$4 sm:$0xff]  }
  0x95   :  { %5598 = vmatprep.subr.bf16.mxu0 %v7871_v29  ;;  %v7959_v29 = vld [vmem:[%s11879_s1 + $0xb50] ss:$72 sps:$4 sm:$0xff]  }
  0x97   :  { %5513 = vmatpush1.bf16.msra.mxu1 %v7866_v30  ;;  %v7964_v30 = vld [vmem:[%s11879_s1 + $0x14dc] ss:$72 sps:$4 sm:$0xff]  }
  0x98   :  { %5599 = vmatpush1.bf16.msra.mxu0 %v7869_v31  ;;  %5514 = vmatprep.subr.bf16.mxu1 %v7874_v32  ;;  %v7967_v31 = vld [vmem:[%s11879_s1 + $0xbe4] ss:$72 sps:$4 sm:$0xff]   ;;  %v7962_v32 = vld [vmem:[%s11879_s1 + $0x14d8] ss:$72 sps:$4 sm:$0xff]  }
  0x99   :  { %5600 = vmatprep.subr.bf16.mxu0 %v7877_v34  ;;  %v7965_v34 = vld [vmem:[%s11879_s1 + $0xbe0] ss:$72 sps:$4 sm:$0xff]  }
  0x9b   :  { %5515 = vmatpush1.bf16.msra.mxu1 %v7872_v35  ;;  %v7970_v35 = vld [vmem:[%s11879_s1 + $0x156c] ss:$72 sps:$4 sm:$0xff]  }
  0x9c   :  { %5601 = vmatpush1.bf16.msra.mxu0 %v7875_v36  ;;  %5516 = vmatprep.subr.bf16.mxu1 %v7880_v37  ;;  %v7973_v36 = vld [vmem:[%s11879_s1 + $0xc74] ss:$72 sps:$4 sm:$0xff]   ;;  %v7968_v37 = vld [vmem:[%s11879_s1 + $0x1568] ss:$72 sps:$4 sm:$0xff]  }
  0x9d   :  { %5602 = vmatprep.subr.bf16.mxu0 %v7883_v38  ;;  %v7971_v38 = vld [vmem:[%s11879_s1 + $0xc70] ss:$72 sps:$4 sm:$0xff]  }
  0x9f   :  { %5517 = vmatpush1.bf16.msra.mxu1 %v7878_v39  ;;  %v7976_v39 = vld [vmem:[%s11879_s1 + $0x15fc] ss:$72 sps:$4 sm:$0xff]  }
  0xa0   :  { %5603 = vmatpush1.bf16.msra.mxu0 %v7881_v40  ;;  %5518 = vmatprep.subr.bf16.mxu1 %v7886_v41  ;;  %v7979_v40 = vld [vmem:[%s11879_s1 + $0xd04] ss:$72 sps:$4 sm:$0xff]   ;;  %v7974_v41 = vld [vmem:[%s11879_s1 + $0x15f8] ss:$72 sps:$4 sm:$0xff]  }
  0xa1   :  { %5604 = vmatprep.subr.bf16.mxu0 %v7889_v42  ;;  %v7977_v42 = vld [vmem:[%s11879_s1 + $0xd00] ss:$72 sps:$4 sm:$0xff]  }
  0xa3   :  { %5519 = vmatpush1.bf16.msra.mxu1 %v7884_v43  ;;  %v7982_v43 = vld [vmem:[%s11879_s1 + $0x168c] ss:$72 sps:$4 sm:$0xff]  }
  0xa4   :  { %5605 = vmatpush1.bf16.msra.mxu0 %v7887_v44  ;;  %5520 = vmatprep.subr.bf16.mxu1 %v7892_v45  ;;  %v7985_v44 = vld [vmem:[%s11879_s1 + $0xd94] ss:$72 sps:$4 sm:$0xff]   ;;  %v7980_v45 = vld [vmem:[%s11879_s1 + $0x1688] ss:$72 sps:$4 sm:$0xff]  }
  0xa5   :  { %5606 = vmatprep.subr.bf16.mxu0 %v7895_v46  ;;  %v7983_v46 = vld [vmem:[%s11879_s1 + $0xd90] ss:$72 sps:$4 sm:$0xff]  }
  0xa7   :  { %5521 = vmatpush1.bf16.msra.mxu1 %v7890_v47  ;;  %v7988_v47 = vld [vmem:[%s11879_s1 + $0x171c] ss:$72 sps:$4 sm:$0xff]  }
  0xa8   :  { %5607 = vmatpush1.bf16.msra.mxu0 %v7893_v50  ;;  %5522 = vmatprep.subr.bf16.mxu1 %v7898_v51  ;;  %v7991_v50 = vld [vmem:[%s11879_s1 + $0xe24] ss:$72 sps:$4 sm:$0xff]   ;;  %v7986_v51 = vld [vmem:[%s11879_s1 + $0x1718] ss:$72 sps:$4 sm:$0xff]  }
  0xa9   :  { %5608 = vmatprep.subr.bf16.mxu0 %v7901_v52  ;;  %v7989_v52 = vld [vmem:[%s11879_s1 + $0xe20] ss:$72 sps:$4 sm:$0xff]  }
  0xab   :  { %5523 = vmatpush1.bf16.msra.mxu1 %v7896_v53  ;;  %v7994_v53 = vld [vmem:[%s11879_s1 + $0x17ac] ss:$72 sps:$4 sm:$0xff]  }
  0xac   :  { %5609 = vmatpush1.bf16.msra.mxu0 %v7899_v54  ;;  %5524 = vmatprep.subr.bf16.mxu1 %v7904_v55  ;;  %v7997_v54 = vld [vmem:[%s11879_s1 + $0xeb4] ss:$72 sps:$4 sm:$0xff]   ;;  %v7992_v55 = vld [vmem:[%s11879_s1 + $0x17a8] ss:$72 sps:$4 sm:$0xff]  }
  0xad   :  { %5610 = vmatprep.subr.bf16.mxu0 %v7907_v56  ;;  %v7995_v56 = vld [vmem:[%s11879_s1 + $0xeb0] ss:$72 sps:$4 sm:$0xff]  }
  0xaf   :  { %5525 = vmatpush1.bf16.msra.mxu1 %v7902_v57  ;;  %v8000_v57 = vld [vmem:[%s11879_s1 + $0x183c] ss:$72 sps:$4 sm:$0xff]  }
  0xb0   :  { %5611 = vmatpush1.bf16.msra.mxu0 %v7905_v58  ;;  %5526 = vmatprep.subr.bf16.mxu1 %v7910_v59  ;;  %v8003_v58 = vld [vmem:[%s11879_s1 + $0xf44] ss:$72 sps:$4 sm:$0xff]   ;;  %v7998_v59 = vld [vmem:[%s11879_s1 + $0x1838] ss:$72 sps:$4 sm:$0xff]  }
  0xb1   :  { %5612 = vmatprep.subr.bf16.mxu0 %v7913_v60  ;;  %v8001_v60 = vld [vmem:[%s11879_s1 + $0xf40] ss:$72 sps:$4 sm:$0xff]  }
  0xb3   :  { %5527 = vmatpush1.bf16.msra.mxu1 %v7908_v61  ;;  %v8006_v61 = vld [vmem:[%s11879_s1 + $0x18cc] ss:$72 sps:$4 sm:$0xff]  }
  0xb4   :  { %5613 = vmatpush1.bf16.msra.mxu0 %v7911_v62  ;;  %5528 = vmatprep.subr.bf16.mxu1 %v7916_v63  ;;  %v8009_v62 = vld [vmem:[%s11879_s1 + $0xfd4] ss:$72 sps:$4 sm:$0xff]   ;;  %v8004_v63 = vld [vmem:[%s11879_s1 + $0x18c8] ss:$72 sps:$4 sm:$0xff]  }
  0xb5   :  { %5614 = vmatprep.subr.bf16.mxu0 %v7919_v0  ;;  %v8007_v0 = vld [vmem:[%s11879_s1 + $0xfd0] ss:$72 sps:$4 sm:$0xff]  }
  0xb7   :  { %5529 = vmatpush1.bf16.msra.mxu1 %v7914_v1  ;;  %v8012_v1 = vld [vmem:[%s11879_s1 + $0x195c] ss:$72 sps:$4 sm:$0xff]  }
  0xb8   :  { %5615 = vmatpush1.bf16.msra.mxu0 %v7917_v2  ;;  %5530 = vmatprep.subr.bf16.mxu1 %v7922_v3  ;;  %v8015_v2 = vld [vmem:[%s11879_s1 + $0x1064] ss:$72 sps:$4 sm:$0xff]   ;;  %v8010_v3 = vld [vmem:[%s11879_s1 + $0x1958] ss:$72 sps:$4 sm:$0xff]  }
  0xb9   :  { %5616 = vmatprep.subr.bf16.mxu0 %v7925_v4  ;;  %v8013_v4 = vld [vmem:[%s11879_s1 + $0x1060] ss:$72 sps:$4 sm:$0xff]  }
  0xbb   :  { %5531 = vmatpush1.bf16.msra.mxu1 %v7920_v5  ;;  %v8018_v5 = vld [vmem:[%s11879_s1 + $0x19ec] ss:$72 sps:$4 sm:$0xff]  }
  0xbc   :  { %5617 = vmatpush1.bf16.msra.mxu0 %v7923_v8  ;;  %5532 = vmatprep.subr.bf16.mxu1 %v7928_v9  ;;  %v8021_v8 = vld [vmem:[%s11879_s1 + $0x10f4] ss:$72 sps:$4 sm:$0xff]   ;;  %v8016_v9 = vld [vmem:[%s11879_s1 + $0x19e8] ss:$72 sps:$4 sm:$0xff]  }
  0xbd   :  { %5618 = vmatprep.subr.bf16.mxu0 %v7931_v10  ;;  %v8019_v10 = vld [vmem:[%s11879_s1 + $0x10f0] ss:$72 sps:$4 sm:$0xff]  }
  0xbf   :  { %5533 = vmatpush1.bf16.msra.mxu1 %v7926_v12  ;;  %v8024_v12 = vld [vmem:[%s11879_s1 + $0x1a7c] ss:$72 sps:$4 sm:$0xff]  }
  0xc0   :  { %5619 = vmatpush1.bf16.msra.mxu0 %v7929_v13  ;;  %5545 = vmatprep.subr.bf16.mxu1 %v7934_v14  ;;  %v8027_v13 = vld [vmem:[%s11879_s1 + $0x1184] ss:$72 sps:$4 sm:$0xff]   ;;  %v8022_v14 = vld [vmem:[%s11879_s1 + $0x1a78] ss:$72 sps:$4 sm:$0xff]  }
  0xc1   :  { %5631 = vmatprep.subr.bf16.mxu0 %v7937_v15  ;;  %v8025_v15 = vld [vmem:[%s11879_s1 + $0x1180] ss:$72 sps:$4 sm:$0xff]  }
  0xc2   :  { %5535 = vmatmul.mubr.bf16.vlgmr.msra.gmra.mrb[4].mxu1 %v9205_v7  ;;  %v9633_v7 = vld [vmem:[%s11880_s0 + $0xc] ss:$24 sps:$4 sm:$0xff]  }
  0xc3   :  { %5621 = vmatmul.mubr.bf16.vlgmr.msra.gmra.mrb[4].mxu0 %v9200_v6  ;;  %5546 = vmatpush1.bf16.msra.mxu1 %v7932_v16  ;;  %v7949_v6 = vld [vmem:[%s11879_s1 + $0xa34] ss:$72 sps:$4 sm:$0xff]  }
  0xc4   :  { %5632 = vmatpush1.bf16.msra.mxu0 %v7935_v17  ;;  %5547 = vmatprep.subr.bf16.mxu1 %v7940_v18  ;;  %v8030_v16 = vld [vmem:[%s11879_s1 + $0x1214] ss:$72 sps:$4 sm:$0xff]   ;;  %v8028_v18 = vld [vmem:[%s11879_s1 + $0x1210] ss:$72 sps:$4 sm:$0xff]  }
  0xc5   :  { %5633 = vmatprep.subr.bf16.mxu0 %v7943_v19  ;;  %5577 = vmatprep.mubr.bf16.mxu1 %v9288_v33  ;;  %v7952_v33 = vld [vmem:[%s11879_s1 + $0x13bc] ss:$72 sps:$4 sm:$0xff]   ;;  %v8031_v19 = vld [vmem:[%s11879_s1 + $0x18] ss:$72 sps:$4 sm:$0xff]  }
  0xc6   :  { %5663 = vmatprep.mubr.bf16.mxu0 %v9633_v7  ;;  %v8033_v17 = vld [vmem:[%s11879_s1 + $0x1c] ss:$72 sps:$4 sm:$0xff]  }
  0xc7   :  { %5548 = vmatpush1.bf16.msra.mxu1 %v7938_v20  ;;  %v8036_v20 = vld [vmem:[%s11879_s1 + $0x12a4] ss:$72 sps:$4 sm:$0xff]  }
  0xc8   :  { %5634 = vmatpush1.bf16.msra.mxu0 %v7941_v21  ;;  %5549 = vmatprep.subr.bf16.mxu1 %v7946_v22  ;;  %v8039_v21 = vld [vmem:[%s11879_s1 + $0xac] ss:$72 sps:$4 sm:$0xff]   ;;  %v8941_v22 = vld [vmem:[%s11880_s0 + $0x8] ss:$24 sps:$4 sm:$0xff]  }
  0xc9   :  { %5635 = vmatprep.subr.bf16.mxu0 %v7949_v6  ;;  %v8034_v6 = vld [vmem:[%s11879_s1 + $0x12a0] ss:$72 sps:$4 sm:$0xff]  }
  0xcb   :  { %5550 = vmatpush1.bf16.msra.mxu1 %v7944_v48  ;;  %v8037_v48 = vld [vmem:[%s11879_s1 + $0xa8] ss:$72 sps:$4 sm:$0xff]  }
  0xcc   :  { %5636 = vmatpush1.bf16.msra.mxu0 %v7947_v49  ;;  %5551 = vmatprep.subr.bf16.mxu1 %v7952_v33  ;;  %v8045_v49 = vld [vmem:[%s11879_s1 + $0x13c] ss:$72 sps:$4 sm:$0xff]   ;;  %v8942_v33 = vld [vmem:[%s11880_s0 + $0x14] ss:$24 sps:$4 sm:$0xff]  }
  0xcd   :  { %5637 = vmatprep.subr.bf16.mxu0 %v7955_v23  ;;  %v9838_v23 = vld [vmem:[%s11880_s0 + $0x4] ss:$24 sps:$4 sm:$0xff]  }
  0xcf   :  { %5552 = vmatpush1.bf16.msra.mxu1 %v7950_v24  ;;  %v8040_v24 = vld [vmem:[%s11879_s1 + $0x1330] ss:$72 sps:$4 sm:$0xff]  }
  0xd0   :  { %5638 = vmatpush1.bf16.msra.mxu0 %v7953_v25  ;;  %5553 = vmatprep.subr.bf16.mxu1 %v7958_v26  ;;  %v8043_v25 = vld [vmem:[%s11879_s1 + $0x138] ss:$72 sps:$4 sm:$0xff]   ;;  %v8048_v26 = vld [vmem:[%s11879_s1 + $0x13c4] ss:$72 sps:$4 sm:$0xff]  }
  0xd1   :  { %5639 = vmatprep.subr.bf16.mxu0 %v7961_v27  ;;  %v8051_v27 = vld [vmem:[%s11879_s1 + $0x1cc] ss:$72 sps:$4 sm:$0xff]  }
  0xd3   :  { %5554 = vmatpush1.bf16.msra.mxu1 %v7956_v28  ;;  %v8046_v28 = vld [vmem:[%s11879_s1 + $0x13c0] ss:$72 sps:$4 sm:$0xff]  }
  0xd4   :  { %5640 = vmatpush1.bf16.msra.mxu0 %v7959_v29  ;;  %5555 = vmatprep.subr.bf16.mxu1 %v7964_v30  ;;  %v8049_v29 = vld [vmem:[%s11879_s1 + $0x1c8] ss:$72 sps:$4 sm:$0xff]   ;;  %v8054_v30 = vld [vmem:[%s11879_s1 + $0x1454] ss:$72 sps:$4 sm:$0xff]  }
  0xd5   :  { %5641 = vmatprep.subr.bf16.mxu0 %v7967_v31  ;;  %v8057_v31 = vld [vmem:[%s11879_s1 + $0x25c] ss:$72 sps:$4 sm:$0xff]  }
  0xd7   :  { %5556 = vmatpush1.bf16.msra.mxu1 %v7962_v32  ;;  %v8052_v32 = vld [vmem:[%s11879_s1 + $0x1450] ss:$72 sps:$4 sm:$0xff]  }
  0xd8   :  { %5642 = vmatpush1.bf16.msra.mxu0 %v7965_v34  ;;  %5557 = vmatprep.subr.bf16.mxu1 %v7970_v35  ;;  %v8055_v34 = vld [vmem:[%s11879_s1 + $0x258] ss:$72 sps:$4 sm:$0xff]   ;;  %v8060_v35 = vld [vmem:[%s11879_s1 + $0x14e4] ss:$72 sps:$4 sm:$0xff]  }
  0xd9   :  { %5643 = vmatprep.subr.bf16.mxu0 %v7973_v36  ;;  %v8063_v36 = vld [vmem:[%s11879_s1 + $0x2ec] ss:$72 sps:$4 sm:$0xff]  }
  0xdb   :  { %5558 = vmatpush1.bf16.msra.mxu1 %v7968_v37  ;;  %v8058_v37 = vld [vmem:[%s11879_s1 + $0x14e0] ss:$72 sps:$4 sm:$0xff]  }
  0xdc   :  { %5644 = vmatpush1.bf16.msra.mxu0 %v7971_v38  ;;  %5559 = vmatprep.subr.bf16.mxu1 %v7976_v39  ;;  %v8061_v38 = vld [vmem:[%s11879_s1 + $0x2e8] ss:$72 sps:$4 sm:$0xff]   ;;  %v8066_v39 = vld [vmem:[%s11879_s1 + $0x1574] ss:$72 sps:$4 sm:$0xff]  }
  0xdd   :  { %5645 = vmatprep.subr.bf16.mxu0 %v7979_v40  ;;  %v8069_v40 = vld [vmem:[%s11879_s1 + $0x37c] ss:$72 sps:$4 sm:$0xff]  }
  0xdf   :  { %5560 = vmatpush1.bf16.msra.mxu1 %v7974_v41 }
  0xe0   :  { %5646 = vmatpush1.bf16.msra.mxu0 %v7977_v42  ;;  %5561 = vmatprep.subr.bf16.mxu1 %v7982_v43  ;;  %v8064_v43 = vld [vmem:[%s11879_s1 + $0x1570] ss:$72 sps:$4 sm:$0xff]  }
  0xe1   :  { %5647 = vmatprep.subr.bf16.mxu0 %v7985_v44  ;;  %v8067_v44 = vld [vmem:[%s11879_s1 + $0x378] ss:$72 sps:$4 sm:$0xff]  }
  0xe3   :  { %5562 = vmatpush1.bf16.msra.mxu1 %v7980_v45 }
  0xe4   :  { %5648 = vmatpush1.bf16.msra.mxu0 %v7983_v46  ;;  %5563 = vmatprep.subr.bf16.mxu1 %v7988_v47  ;;  %v8072_v46 = vld [vmem:[%s11879_s1 + $0x1604] ss:$72 sps:$4 sm:$0xff]  }
  0xe5   :  { %5649 = vmatprep.subr.bf16.mxu0 %v7991_v50  ;;  %v8075_v47 = vld [vmem:[%s11879_s1 + $0x40c] ss:$72 sps:$4 sm:$0xff]  }
  0xe7   :  { %5564 = vmatpush1.bf16.msra.mxu1 %v7986_v51  ;;  %v8070_v51 = vld [vmem:[%s11879_s1 + $0x1600] ss:$72 sps:$4 sm:$0xff]  }
  0xe8   :  { %5650 = vmatpush1.bf16.msra.mxu0 %v7989_v52  ;;  %5565 = vmatprep.subr.bf16.mxu1 %v7994_v53  ;;  %v8073_v52 = vld [vmem:[%s11879_s1 + $0x408] ss:$72 sps:$4 sm:$0xff]   ;;  %v8078_v53 = vld [vmem:[%s11879_s1 + $0x1694] ss:$72 sps:$4 sm:$0xff]  }
  0xe9   :  { %5651 = vmatprep.subr.bf16.mxu0 %v7997_v54  ;;  %v8081_v54 = vld [vmem:[%s11879_s1 + $0x49c] ss:$72 sps:$4 sm:$0xff]  }
  0xeb   :  { %5566 = vmatpush1.bf16.msra.mxu1 %v7992_v55  ;;  %v8076_v55 = vld [vmem:[%s11879_s1 + $0x1690] ss:$72 sps:$4 sm:$0xff]  }
  0xec   :  { %5652 = vmatpush1.bf16.msra.mxu0 %v7995_v56  ;;  %5567 = vmatprep.subr.bf16.mxu1 %v8000_v57  ;;  %v8079_v56 = vld [vmem:[%s11879_s1 + $0x498] ss:$72 sps:$4 sm:$0xff]   ;;  %v8084_v57 = vld [vmem:[%s11879_s1 + $0x1724] ss:$72 sps:$4 sm:$0xff]  }
  0xed   :  { %5653 = vmatprep.subr.bf16.mxu0 %v8003_v58  ;;  %v8087_v58 = vld [vmem:[%s11879_s1 + $0x52c] ss:$72 sps:$4 sm:$0xff]  }
  0xef   :  { %5568 = vmatpush1.bf16.msra.mxu1 %v7998_v59  ;;  %v8082_v59 = vld [vmem:[%s11879_s1 + $0x1720] ss:$72 sps:$4 sm:$0xff]  }
  0xf0   :  { %5654 = vmatpush1.bf16.msra.mxu0 %v8001_v60  ;;  %5569 = vmatprep.subr.bf16.mxu1 %v8006_v61  ;;  %v8085_v60 = vld [vmem:[%s11879_s1 + $0x528] ss:$72 sps:$4 sm:$0xff]   ;;  %v8090_v61 = vld [vmem:[%s11879_s1 + $0x17b4] ss:$72 sps:$4 sm:$0xff]  }
  0xf1   :  { %5655 = vmatprep.subr.bf16.mxu0 %v8009_v62  ;;  %v8093_v62 = vld [vmem:[%s11879_s1 + $0x5bc] ss:$72 sps:$4 sm:$0xff]  }
  0xf3   :  { %5570 = vmatpush1.bf16.msra.mxu1 %v8004_v63  ;;  %v8088_v63 = vld [vmem:[%s11879_s1 + $0x17b0] ss:$72 sps:$4 sm:$0xff]  }
  0xf4   :  { %5656 = vmatpush1.bf16.msra.mxu0 %v8007_v0  ;;  %5571 = vmatprep.subr.bf16.mxu1 %v8012_v1  ;;  %v8091_v0 = vld [vmem:[%s11879_s1 + $0x5b8] ss:$72 sps:$4 sm:$0xff]   ;;  %v8096_v1 = vld [vmem:[%s11879_s1 + $0x1844] ss:$72 sps:$4 sm:$0xff]  }
  0xf5   :  { %5657 = vmatprep.subr.bf16.mxu0 %v8015_v2  ;;  %v8099_v2 = vld [vmem:[%s11879_s1 + $0x64c] ss:$72 sps:$4 sm:$0xff]  }
  0xf7   :  { %5572 = vmatpush1.bf16.msra.mxu1 %v8010_v3  ;;  %v8094_v3 = vld [vmem:[%s11879_s1 + $0x1840] ss:$72 sps:$4 sm:$0xff]  }
  0xf8   :  { %5658 = vmatpush1.bf16.msra.mxu0 %v8013_v4  ;;  %5573 = vmatprep.subr.bf16.mxu1 %v8018_v5  ;;  %v8097_v4 = vld [vmem:[%s11879_s1 + $0x648] ss:$72 sps:$4 sm:$0xff]   ;;  %v8102_v5 = vld [vmem:[%s11879_s1 + $0x18d4] ss:$72 sps:$4 sm:$0xff]  }
  0xf9   :  { %5659 = vmatprep.subr.bf16.mxu0 %v8021_v8  ;;  %v8105_v8 = vld [vmem:[%s11879_s1 + $0x6dc] ss:$72 sps:$4 sm:$0xff]  }
  0xfb   :  { %5574 = vmatpush1.bf16.msra.mxu1 %v8016_v9  ;;  %v8100_v9 = vld [vmem:[%s11879_s1 + $0x18d0] ss:$72 sps:$4 sm:$0xff]  }
  0xfc   :  { %5660 = vmatpush1.bf16.msra.mxu0 %v8019_v10  ;;  %5575 = vmatprep.subr.bf16.mxu1 %v8024_v12  ;;  %v8103_v10 = vld [vmem:[%s11879_s1 + $0x6d8] ss:$72 sps:$4 sm:$0xff]   ;;  %v8108_v12 = vld [vmem:[%s11879_s1 + $0x1964] ss:$72 sps:$4 sm:$0xff]  }
  0xfd   :  { %5661 = vmatprep.subr.bf16.mxu0 %v8027_v13  ;;  %v8111_v13 = vld [vmem:[%s11879_s1 + $0x76c] ss:$72 sps:$4 sm:$0xff]  }
  0xff   :  { %5576 = vmatpush1.bf16.msra.mxu1 %v8022_v14  ;;  %v8106_v14 = vld [vmem:[%s11879_s1 + $0x1960] ss:$72 sps:$4 sm:$0xff]  }
 0x100   :  { %5662 = vmatpush1.bf16.msra.mxu0 %v8025_v15  ;;  %5717 = vmatprep.subr.bf16.mxu1 %v8033_v17  ;;  %v8109_v15 = vld [vmem:[%s11879_s1 + $0x768] ss:$72 sps:$4 sm:$0xff]   ;;  %v8117_v17 = vld [vmem:[%s11879_s1 + $0x7fc] ss:$72 sps:$4 sm:$0xff]  }
 0x101   :  { %5674 = vmatprep.subr.bf16.mxu0 %v8030_v16  ;;  %v8114_v16 = vld [vmem:[%s11879_s1 + $0x19f4] ss:$72 sps:$4 sm:$0xff]  }
 0x102   :  { %5578 = vmatmul.mubr.bf16.vlgmr.msra.gmra.mrb[4].mxu1 %v9405_v11  ;;  %v8042_v11 = vld [vmem:[%s11879_s1 + $0x1334] ss:$72 sps:$4 sm:$0xff]  }
 0x103   :  { %5664 = vmatmul.mubr.bf16.vlgmr.msra.gmra.mrb[4].mxu0 %v8941_v22  ;;  %5718 = vmatpush1.bf16.msra.mxu1 %v8031_v19  ;;  %v8115_v19 = vld [vmem:[%s11879_s1 + $0x7f8] ss:$72 sps:$4 sm:$0xff]  }
 0x104   :  { %5675 = vmatpush1.bf16.msra.mxu0 %v8028_v18  ;;  %5719 = vmatprep.subr.bf16.mxu1 %v8039_v21  ;;  %v8112_v18 = vld [vmem:[%s11879_s1 + $0x19f0] ss:$72 sps:$4 sm:$0xff]   ;;  %v8123_v21 = vld [vmem:[%s11879_s1 + $0x88c] ss:$72 sps:$4 sm:$0xff]   ;;  %v8118_v22 = vld [vmem:[%s11879_s1 + $0x1a80] ss:$72 sps:$4 sm:$0xff]  }
 0x105   :  { %5676 = vmatprep.subr.bf16.mxu0 %v8036_v20  ;;  %5706 = vmatprep.mubr.bf16.mxu0 %v8942_v33  ;;  %v8120_v20 = vld [vmem:[%s11879_s1 + $0x1a84] ss:$72 sps:$4 sm:$0xff]   ;;  %v8127_v33 = vld [vmem:[%s11879_s1 + $0x20] ss:$72 sps:$4 sm:$0xff]  }
 0x106   :  { %5749 = vmatprep.mubr.bf16.mxu1 %v9838_v23 }
 0x107   :  { %5720 = vmatpush1.bf16.msra.mxu1 %v8037_v48  ;;  %v8126_v48 = vld [vmem:[%s11879_s1 + $0x91c] ss:$72 sps:$4 sm:$0xff]  }
 0x108   :  { %5677 = vmatpush1.bf16.msra.mxu0 %v8034_v6  ;;  %5721 = vmatprep.subr.bf16.mxu1 %v8045_v49  ;;  %v8121_v6 = vld [vmem:[%s11879_s1 + $0x888] ss:$72 sps:$4 sm:$0xff]   ;;  %v8124_v49 = vld [vmem:[%s11879_s1 + $0x918] ss:$72 sps:$4 sm:$0xff]  }
 0x109   :  { %5678 = vmatprep.subr.bf16.mxu0 %v8042_v11  ;;  %v8129_v11 = vld [vmem:[%s11879_s1 + $0x24] ss:$72 sps:$4 sm:$0xff]  }
 0x10b   :  { %5722 = vmatpush1.bf16.msra.mxu1 %v8043_v25  ;;  %v8135_v25 = vld [vmem:[%s11879_s1 + $0xb4] ss:$72 sps:$4 sm:$0xff]  }
 0x10c   :  { %5679 = vmatpush1.bf16.msra.mxu0 %v8040_v24  ;;  %5723 = vmatprep.subr.bf16.mxu1 %v8051_v27  ;;  %v8132_v24 = vld [vmem:[%s11879_s1 + $0x9ac] ss:$72 sps:$4 sm:$0xff]   ;;  %v10035_v27 = vld [vmem:[%s11880_s0] ss:$24 sps:$4 sm:$0xff]  }
 0x10d   :  { %5680 = vmatprep.subr.bf16.mxu0 %v8048_v26  ;;  %v8944_v26 = vld [vmem:[%s11880_s0 + $0x10] ss:$24 sps:$4 sm:$0xff]  }
 0x10f   :  { %5724 = vmatpush1.bf16.msra.mxu1 %v8049_v29  ;;  %v8130_v29 = vld [vmem:[%s11879_s1 + $0x9a8] ss:$72 sps:$4 sm:$0xff]  }
 0x110   :  { %5681 = vmatpush1.bf16.msra.mxu0 %v8046_v28  ;;  %5725 = vmatprep.subr.bf16.mxu1 %v8057_v31  ;;  %v890_v28 = vlaneseq  ;;  %v8138_v31 = vld [vmem:[%s11879_s1 + $0xa3c] ss:$72 sps:$4 sm:$0xff]  }
 0x111   :  { %5682 = vmatprep.subr.bf16.mxu0 %v8054_v30  ;;  %v8133_v30 = vld [vmem:[%s11879_s1 + $0xb0] ss:$72 sps:$4 sm:$0xff]  }
 0x113   :  { %5726 = vmatpush1.bf16.msra.mxu1 %v8055_v34  ;;  %v10052_v34 = vshrl.u32 %v890_v28, 7  ;;  %v8198_v28 = vld [vmem:[%s11879_s1 + $0xfdc] ss:$72 sps:$4 sm:$0xff]  }
 0x114   :  { %5683 = vmatpush1.bf16.msra.mxu0 %v8052_v32  ;;  %5727 = vmatprep.subr.bf16.mxu1 %v8063_v36  ;;  %v8141_v32 = vld [vmem:[%s11879_s1 + $0x144] ss:$72 sps:$4 sm:$0xff]   ;;  %v8139_v36 = vld [vmem:[%s11879_s1 + $0x140] ss:$72 sps:$4 sm:$0xff]  }
 0x115   :  { %5684 = vmatprep.subr.bf16.mxu0 %v8060_v35  ;;  %v9889_v41 = vpop.f32.mrb[0].mxu1  ;;  %v8136_v35 = vld [vmem:[%s11879_s1 + $0xa38] ss:$72 sps:$4 sm:$0xff]  }
 0x116   :  { %v9891_v42 = vpop.f32.mrb[1].mxu1 }
 0x117   :  { %5728 = vmatpush1.bf16.msra.mxu1 %v8061_v38  ;;  %v9899_v45 = vpop.f32.mrb[2].mxu1  ;;  %v10070_v38 = vsub.s32 0, %v10052_v34 }
 0x118   :  { %5685 = vmatpush1.bf16.msra.mxu0 %v8058_v37  ;;  %5729 = vmatprep.subr.bf16.mxu1 %v8069_v40  ;;  %v9907_v50 = vpop.f32.mrb[3].mxu1  ;;  %v8142_v37 = vld [vmem:[%s11879_s1 + $0xac8] ss:$72 sps:$4 sm:$0xff]   ;;  %v884_v40 = vld [vmem:[%s11881_s2] sm:$0xff] }
 0x119   :  { %5686 = vmatprep.subr.bf16.mxu0 %v8066_v39  ;;  %v8145_v39 = vld [vmem:[%s11879_s1 + $0x1d0] ss:$72 sps:$4 sm:$0xff]  }
 0x11b   :  { %5730 = vmatpush1.bf16.msra.mxu1 %v8067_v44  ;;  %v8150_v44 = vld [vmem:[%s11879_s1 + $0xb5c] ss:$72 sps:$4 sm:$0xff]  }
 0x11c   :  { %5687 = vmatpush1.bf16.msra.mxu0 %v8064_v43  ;;  %5731 = vmatprep.subr.bf16.mxu1 %v8075_v47  ;;  %v10079_v43 = vsub.s32 1, %v10052_v34  ;;  %v893_v47 = vrot.slane %v884_v40, %v10070_v38 }
 0x11d   :  { %5688 = vmatprep.subr.bf16.mxu0 %v8072_v46  ;;  %v8153_v46 = vld [vmem:[%s11879_s1 + $0x264] ss:$72 sps:$4 sm:$0xff]  }
 0x11f   :  { %5732 = vmatpush1.bf16.msra.mxu1 %v8073_v52  ;;  %v8151_v52 = vld [vmem:[%s11879_s1 + $0x260] ss:$72 sps:$4 sm:$0xff]  }
 0x120   :  { %5689 = vmatpush1.bf16.msra.mxu0 %v8070_v51  ;;  %5733 = vmatprep.subr.bf16.mxu1 %v8081_v54  ;;  %v8148_v51 = vld [vmem:[%s11879_s1 + $0xb58] ss:$72 sps:$4 sm:$0xff]   ;;  %v8156_v54 = vld [vmem:[%s11879_s1 + $0xbec] ss:$72 sps:$4 sm:$0xff]  }
 0x121   :  { %5690 = vmatprep.subr.bf16.mxu0 %v8078_v53  ;;  %v897_v53 = vrot.slane %v884_v40, %v10079_v43  ;;  %v8211_v40 = vld [vmem:[%s11879_s1 + $0x800] ss:$72 sps:$4 sm:$0xff]  }
 0x123   :  { %5734 = vmatpush1.bf16.msra.mxu1 %v8079_v56  ;;  %v8154_v56 = vld [vmem:[%s11879_s1 + $0xbe8] ss:$72 sps:$4 sm:$0xff]  }
 0x124   :  { %5691 = vmatpush1.bf16.msra.mxu0 %v8076_v55  ;;  %5735 = vmatprep.subr.bf16.mxu1 %v8087_v58  ;;  %v8159_v55 = vld [vmem:[%s11879_s1 + $0x2f4] ss:$72 sps:$4 sm:$0xff]   ;;  %v5365_v58 = vadd.f32 %v9889_v41, %v893_v47  ;;  %v8160_v41 = vld [vmem:[%s11879_s1 + $0xc78] ss:$72 sps:$4 sm:$0xff]  }
 0x125   :  { %5692 = vmatprep.subr.bf16.mxu0 %v8084_v57  ;;  %v8157_v57 = vld [vmem:[%s11879_s1 + $0x2f0] ss:$72 sps:$4 sm:$0xff]  }
 0x127   :  { %5736 = vmatpush1.bf16.msra.mxu1 %v8085_v60  ;;  %v5369_v60 = vadd.f32 %v9899_v45, %v893_v47  ;;  %v8214_v47 = vld [vmem:[%s11879_s1 + $0x1188] ss:$72 sps:$4 sm:$0xff]  }
 0x128   :  { %5693 = vmatpush1.bf16.msra.mxu0 %v8082_v59  ;;  %5737 = vmatprep.subr.bf16.mxu1 %v8093_v62  ;;  %v5367_v59 = vadd.f32 %v9891_v42, %v897_v53  ;;  %v8165_v62 = vld [vmem:[%s11879_s1 + $0x384] ss:$72 sps:$4 sm:$0xff]   ;;  %v8163_v42 = vld [vmem:[%s11879_s1 + $0x380] ss:$72 sps:$4 sm:$0xff]  }
 0x129   :  { %5694 = vmatprep.subr.bf16.mxu0 %v8090_v61  ;;  %v8162_v61 = vld [vmem:[%s11879_s1 + $0xc7c] ss:$72 sps:$4 sm:$0xff]  }
 0x12b   :  { %5738 = vmatpush1.bf16.msra.mxu1 %v8091_v0  ;;  %v5371_v0 = vadd.f32 %v9907_v50, %v897_v53  ;;  %v8168_v50 = vld [vmem:[%s11879_s1 + $0xd0c] ss:$72 sps:$4 sm:$0xff]  }
 0x12c   :  { %5695 = vmatpush1.bf16.msra.mxu0 %v8088_v63  ;;  %5739 = vmatprep.subr.bf16.mxu1 %v8099_v2  ;;  %v8225_v53 = vld [vmem:[%s11879_s1 + $0x924] ss:$72 sps:$4 sm:$0xff]  }
 0x12d   :  { %5696 = vmatprep.subr.bf16.mxu0 %v8096_v1 }
 0x12f   :  { %5740 = vmatpush1.bf16.msra.mxu1 %v8097_v4 }
 0x130   :  { %5697 = vmatpush1.bf16.msra.mxu0 %v8094_v3  ;;  %5741 = vmatprep.subr.bf16.mxu1 %v8105_v8  ;;  %v8171_v8 = vld [vmem:[%s11879_s1 + $0x414] ss:$72 sps:$4 sm:$0xff]  }
 0x131   :  { %5698 = vmatprep.subr.bf16.mxu0 %v8102_v5 }
 0x133   :  { %5742 = vmatpush1.bf16.msra.mxu1 %v8103_v10 }
 0x134   :  { %5699 = vmatpush1.bf16.msra.mxu0 %v8100_v9  ;;  %5743 = vmatprep.subr.bf16.mxu1 %v8111_v13  ;;  %v8169_v13 = vld [vmem:[%s11879_s1 + $0x410] ss:$72 sps:$4 sm:$0xff]  }
 0x135   :  { %5700 = vmatprep.subr.bf16.mxu0 %v8108_v12  ;;  %v8166_v12 = vld [vmem:[%s11879_s1 + $0xd08] ss:$72 sps:$4 sm:$0xff]  }
 0x137   :  { %5744 = vmatpush1.bf16.msra.mxu1 %v8109_v15  ;;  %v8174_v15 = vld [vmem:[%s11879_s1 + $0xd9c] ss:$72 sps:$4 sm:$0xff]  }
 0x138   :  { %5701 = vmatpush1.bf16.msra.mxu0 %v8106_v14  ;;  %5745 = vmatprep.subr.bf16.mxu1 %v8117_v17  ;;  %v8172_v17 = vld [vmem:[%s11879_s1 + $0xd98] ss:$72 sps:$4 sm:$0xff]  }
 0x139   :  { %5702 = vmatprep.subr.bf16.mxu0 %v8114_v16  ;;  %v8177_v16 = vld [vmem:[%s11879_s1 + $0x4a4] ss:$72 sps:$4 sm:$0xff]  }
 0x13b   :  { %5746 = vmatpush1.bf16.msra.mxu1 %v8115_v19  ;;  %v8180_v19 = vld [vmem:[%s11879_s1 + $0xe2c] ss:$72 sps:$4 sm:$0xff]  }
 0x13c   :  { %5703 = vmatpush1.bf16.msra.mxu0 %v8112_v18  ;;  %5747 = vmatprep.subr.bf16.mxu1 %v8123_v21  ;;  %v8175_v18 = vld [vmem:[%s11879_s1 + $0x4a0] ss:$72 sps:$4 sm:$0xff]  }
 0x13d   :  { %5704 = vmatprep.subr.bf16.mxu0 %v8120_v20  ;;  %v8183_v20 = vld [vmem:[%s11879_s1 + $0x534] ss:$72 sps:$4 sm:$0xff]   ;;  %v8178_v21 = vld [vmem:[%s11879_s1 + $0xe28] ss:$72 sps:$4 sm:$0xff]  }
 0x13f   :  { %5748 = vmatpush1.bf16.msra.mxu1 %v8121_v6  ;;  %v8186_v6 = vld [vmem:[%s11879_s1 + $0xebc] ss:$72 sps:$4 sm:$0xff]  }
 0x140   :  { %5705 = vmatpush1.bf16.msra.mxu0 %v8118_v22  ;;  %5760 = vmatprep.subr.bf16.mxu1 %v8126_v48  ;;  %v8181_v22 = vld [vmem:[%s11879_s1 + $0x530] ss:$72 sps:$4 sm:$0xff]   ;;  %v8189_v48 = vld [vmem:[%s11879_s1 + $0x5c4] ss:$72 sps:$4 sm:$0xff]  }
 0x141   :  { %5846 = vmatprep.subr.bf16.mxu0 %v8129_v11  ;;  %v8184_v11 = vld [vmem:[%s11879_s1 + $0xeb8] ss:$72 sps:$4 sm:$0xff]  }
 0x142   :  { %5750 = vmatmul.mubr.bf16.vlgmr.msra.gmra.mrb[8].mxu1 %v10035_v27 }
 0x143   :  { %5707 = vmatmul.mubr.bf16.vlgmr.msra.gmra.mrb[4].mxu0 %v8944_v26  ;;  %5761 = vmatpush1.bf16.msra.mxu1 %v8124_v49  ;;  %v8187_v49 = vld [vmem:[%s11879_s1 + $0x5c0] ss:$72 sps:$4 sm:$0xff]   ;;  %v8193_v26 = vld [vmem:[%s11879_s1 + $0x650] ss:$72 sps:$4 sm:$0xff]  }
 0x144   :  { %5847 = vmatpush1.bf16.msra.mxu0 %v8127_v33  ;;  %5762 = vmatprep.subr.bf16.mxu1 %v8132_v24  ;;  %v8192_v33 = vld [vmem:[%s11879_s1 + $0xf4c] ss:$72 sps:$4 sm:$0xff]  }
 0x145   :  { %5848 = vmatprep.subr.bf16.mxu0 %v8135_v25  ;;  %5792 = vmatprep.mubr.bf16.mxu1 %v9633_v7  ;;  %v8144_v7 = vld [vmem:[%s11879_s1 + $0xacc] ss:$72 sps:$4 sm:$0xff]   ;;  %v8190_v25 = vld [vmem:[%s11879_s1 + $0xf48] ss:$72 sps:$4 sm:$0xff]  }
 0x146   :  { %5878 = vmatprep.mubr.bf16.mxu0 %v9838_v23  ;;  %v8147_v23 = vld [vmem:[%s11879_s1 + $0x1d4] ss:$72 sps:$4 sm:$0xff]  }
 0x147   :  { %5763 = vmatpush1.bf16.msra.mxu1 %v8130_v29  ;;  %v8195_v24 = vld [vmem:[%s11879_s1 + $0x654] ss:$72 sps:$4 sm:$0xff]   ;;  %v8201_v29 = vld [vmem:[%s11879_s1 + $0x6e4] ss:$72 sps:$4 sm:$0xff]  }
 0x148   :  { %5849 = vmatpush1.bf16.msra.mxu0 %v8133_v30  ;;  %5764 = vmatprep.subr.bf16.mxu1 %v8138_v31  ;;  %v8196_v30 = vld [vmem:[%s11879_s1 + $0xfd8] ss:$72 sps:$4 sm:$0xff]  }
 0x149   :  { %5850 = vmatprep.subr.bf16.mxu0 %v8141_v32  ;;  %v8199_v31 = vld [vmem:[%s11879_s1 + $0x6e0] ss:$72 sps:$4 sm:$0xff]   ;;  %v8204_v32 = vld [vmem:[%s11879_s1 + $0x106c] ss:$72 sps:$4 sm:$0xff]  }
 0x14b   :  { %5765 = vmatpush1.bf16.msra.mxu1 %v8136_v35  ;;  %v8207_v35 = vld [vmem:[%s11879_s1 + $0x774] ss:$72 sps:$4 sm:$0xff]  }
 0x14c   :  { %5851 = vmatpush1.bf16.msra.mxu0 %v8139_v36  ;;  %5766 = vmatprep.subr.bf16.mxu1 %v8144_v7  ;;  %v8202_v36 = vld [vmem:[%s11879_s1 + $0x1068] ss:$72 sps:$4 sm:$0xff]  }
 0x14d   :  { %5852 = vmatprep.subr.bf16.mxu0 %v8147_v23  ;;  %v8205_v7 = vld [vmem:[%s11879_s1 + $0x770] ss:$72 sps:$4 sm:$0xff]   ;;  %v8210_v23 = vld [vmem:[%s11879_s1 + $0x10fc] ss:$72 sps:$4 sm:$0xff]  }
 0x14f   :  { %5767 = vmatpush1.bf16.msra.mxu1 %v8142_v37  ;;  %v8213_v37 = vld [vmem:[%s11879_s1 + $0x804] ss:$72 sps:$4 sm:$0xff]  }
 0x150   :  { %5853 = vmatpush1.bf16.msra.mxu0 %v8145_v39  ;;  %5768 = vmatprep.subr.bf16.mxu1 %v8150_v44  ;;  %v8208_v39 = vld [vmem:[%s11879_s1 + $0x10f8] ss:$72 sps:$4 sm:$0xff]   ;;  %v8216_v44 = vld [vmem:[%s11879_s1 + $0x118c] ss:$72 sps:$4 sm:$0xff]  }
 0x151   :  { %5854 = vmatprep.subr.bf16.mxu0 %v8153_v46  ;;  %v8219_v46 = vld [vmem:[%s11879_s1 + $0x894] ss:$72 sps:$4 sm:$0xff]  }
 0x153   :  { %5769 = vmatpush1.bf16.msra.mxu1 %v8148_v51  ;;  %v8217_v51 = vld [vmem:[%s11879_s1 + $0x890] ss:$72 sps:$4 sm:$0xff]  }
 0x154   :  { %5855 = vmatpush1.bf16.msra.mxu0 %v8151_v52  ;;  %5770 = vmatprep.subr.bf16.mxu1 %v8156_v54  ;;  %v8222_v52 = vld [vmem:[%s11879_s1 + $0x121c] ss:$72 sps:$4 sm:$0xff]   ;;  %v8220_v54 = vld [vmem:[%s11879_s1 + $0x1218] ss:$72 sps:$4 sm:$0xff]  }
 0x155   :  { %5856 = vmatprep.subr.bf16.mxu0 %v8159_v55  ;;  %v8223_v55 = vld [vmem:[%s11879_s1 + $0x920] ss:$72 sps:$4 sm:$0xff]  }
 0x156   :  { %v5450_v63 = vpop.f32.mrb[0].mxu0 }
 0x157   :  { %v7528_v45 = vadd.f32 %v5450_v63, %v5365_v58  ;;  %v5452_v1 = vpop.f32.mrb[1].mxu0  ;;  %5771 = vmatpush1.bf16.msra.mxu1 %v8154_v56  ;;  %v8228_v56 = vld [vmem:[%s11879_s1 + $0x12ac] ss:$72 sps:$4 sm:$0xff]   ;;  %v10258_v58 = vld [vmem:[%s11880_s0 + $0x8] ss:$24 sps:$4 sm:$0xff]  }
 0x158   :  { %v7530_v2 = vadd.f32 %v5452_v1, %v5367_v59  ;;  %v5454_v3 = vpop.f32.mrb[2].mxu0  ;;  %5857 = vmatpush1.bf16.msra.mxu0 %v8157_v57  ;;  %5772 = vmatprep.subr.bf16.mxu1 %v8162_v61  ;;  %v8231_v57 = vld [vmem:[%s11879_s1 + $0x9b4] ss:$72 sps:$4 sm:$0xff]   ;;  %v8226_v59 = vld [vmem:[%s11879_s1 + $0x12a8] ss:$72 sps:$4 sm:$0xff]  }
 0x159   :  { %v7532_v4 = vadd.f32 %v5454_v3, %v5369_v60  ;;  %v5456_v5 = vpop.f32.mrb[3].mxu0  ;;  %5858 = vmatprep.subr.bf16.mxu0 %v8165_v62  ;;  %v8229_v60 = vld [vmem:[%s11879_s1 + $0x9b0] ss:$72 sps:$4 sm:$0xff]   ;;  %v8234_v61 = vld [vmem:[%s11879_s1 + $0x133c] ss:$72 sps:$4 sm:$0xff]  }
 0x15a   :  { %v7509_v9 = vpack.c.bf16 %v7530_v2, %v7528_v45  ;;  %v7534_v10 = vadd.f32 %v5456_v5, %v5371_v0  ;;  %v10277_v62 = vld [vmem:[%s11880_s0 + $0x14] ss:$24 sps:$4 sm:$0xff]   ;;  %v8232_v0 = vld [vmem:[%s11879_s1 + $0x1338] ss:$72 sps:$4 sm:$0xff]   ;;  %v8238_v1 = vld [vmem:[%s11879_s1 + $0x13c8] ss:$72 sps:$4 sm:$0xff]  }
 0x15b   :  { %5773 = vmatpush1.bf16.msra.mxu1 %v8160_v41  ;;  %v10283_v63 = vld [vmem:[%s11880_s0 + $0xc] ss:$24 sps:$4 sm:$0xff]   ;;  %v8235_v41 = vld [vmem:[%s11879_s1 + $0xa40] ss:$72 sps:$4 sm:$0xff]   ;;  %v8243_v45 = vld [vmem:[%s11879_s1 + $0xad4] ss:$72 sps:$4 sm:$0xff]  }
 0x15c   :  { %6599 = vst [vmem:[%s11882_s3] sm:$0xff] %v7509_v9  ;;  %v7518_v14 = vpack.c.bf16 %v7534_v10, %v7532_v4  ;;  %5859 = vmatpush1.bf16.msra.mxu0 %v8163_v42  ;;  %5774 = vmatprep.subr.bf16.mxu1 %v8168_v50  ;;  %v8240_v42 = vld [vmem:[%s11879_s1 + $0x13cc] ss:$72 sps:$4 sm:$0xff]   ;;  %v8241_v2 = vld [vmem:[%s11879_s1 + $0xad0] ss:$72 sps:$4 sm:$0xff]   ;;  %v8246_v3 = vld [vmem:[%s11879_s1 + $0x145c] ss:$72 sps:$4 sm:$0xff]  }
 0x15d   :  { %5860 = vmatprep.subr.bf16.mxu0 %v8171_v8  ;;  %v8249_v4 = vld [vmem:[%s11879_s1 + $0xb64] ss:$72 sps:$4 sm:$0xff]   ;;  %v8244_v5 = vld [vmem:[%s11879_s1 + $0x1458] ss:$72 sps:$4 sm:$0xff]   ;;  %v8255_v9 = vld [vmem:[%s11879_s1 + $0xbf4] ss:$72 sps:$4 sm:$0xff]  }
 0x15e   :  { %6608 = vst [vmem:[%s11882_s3 + $0x48] sm:$0xff] %v7518_v14  ;;  %v8247_v50 = vld [vmem:[%s11879_s1 + $0xb60] ss:$72 sps:$4 sm:$0xff]   ;;  %v8252_v8 = vld [vmem:[%s11879_s1 + $0x14ec] ss:$72 sps:$4 sm:$0xff]  }
 0x15f   :  { %5775 = vmatpush1.bf16.msra.mxu1 %v8166_v12  ;;  %v8250_v10 = vld [vmem:[%s11879_s1 + $0x14e8] ss:$72 sps:$4 sm:$0xff]   ;;  %v8261_v14 = vld [vmem:[%s11879_s1 + $0xc84] ss:$72 sps:$4 sm:$0xff]  }
 0x160   :  { %5861 = vmatpush1.bf16.msra.mxu0 %v8169_v13  ;;  %5776 = vmatprep.subr.bf16.mxu1 %v8174_v15  ;;  %v8253_v12 = vld [vmem:[%s11879_s1 + $0xbf0] ss:$72 sps:$4 sm:$0xff]   ;;  %v8258_v13 = vld [vmem:[%s11879_s1 + $0x157c] ss:$72 sps:$4 sm:$0xff]  }
 0x161   :  { %5862 = vmatprep.subr.bf16.mxu0 %v8177_v16  ;;  %v8256_v15 = vld [vmem:[%s11879_s1 + $0x1578] ss:$72 sps:$4 sm:$0xff]  }
 0x162   :  { %v8259_v16 = vld [vmem:[%s11879_s1 + $0xc80] ss:$72 sps:$4 sm:$0xff]  }
 0x163   :  { %5777 = vmatpush1.bf16.msra.mxu1 %v8172_v17  ;;  %v8264_v17 = vld [vmem:[%s11879_s1 + $0x160c] ss:$72 sps:$4 sm:$0xff]  }
 0x164   :  { %5863 = vmatpush1.bf16.msra.mxu0 %v8175_v18  ;;  %5778 = vmatprep.subr.bf16.mxu1 %v8180_v19  ;;  %v8267_v18 = vld [vmem:[%s11879_s1 + $0xd14] ss:$72 sps:$4 sm:$0xff]   ;;  %v8262_v19 = vld [vmem:[%s11879_s1 + $0x1608] ss:$72 sps:$4 sm:$0xff]  }
 0x165   :  { %5864 = vmatprep.subr.bf16.mxu0 %v8183_v20  ;;  %v8265_v20 = vld [vmem:[%s11879_s1 + $0xd10] ss:$72 sps:$4 sm:$0xff]  }
 0x167   :  { %5779 = vmatpush1.bf16.msra.mxu1 %v8178_v21  ;;  %v8270_v21 = vld [vmem:[%s11879_s1 + $0x169c] ss:$72 sps:$4 sm:$0xff]  }
 0x168   :  { %5865 = vmatpush1.bf16.msra.mxu0 %v8181_v22  ;;  %5780 = vmatprep.subr.bf16.mxu1 %v8186_v6  ;;  %v8273_v22 = vld [vmem:[%s11879_s1 + $0xda4] ss:$72 sps:$4 sm:$0xff]   ;;  %v8268_v6 = vld [vmem:[%s11879_s1 + $0x1698] ss:$72 sps:$4 sm:$0xff]  }
 0x169   :  { %5866 = vmatprep.subr.bf16.mxu0 %v8189_v48  ;;  %v8271_v48 = vld [vmem:[%s11879_s1 + $0xda0] ss:$72 sps:$4 sm:$0xff]  }
 0x16b   :  { %5781 = vmatpush1.bf16.msra.mxu1 %v8184_v11  ;;  %v8276_v11 = vld [vmem:[%s11879_s1 + $0x172c] ss:$72 sps:$4 sm:$0xff]  }
 0x16c   :  { %5867 = vmatpush1.bf16.msra.mxu0 %v8187_v49  ;;  %5782 = vmatprep.subr.bf16.mxu1 %v8192_v33  ;;  %v8279_v49 = vld [vmem:[%s11879_s1 + $0xe34] ss:$72 sps:$4 sm:$0xff]   ;;  %v8274_v33 = vld [vmem:[%s11879_s1 + $0x1728] ss:$72 sps:$4 sm:$0xff]  }
 0x16d   :  { %5868 = vmatprep.subr.bf16.mxu0 %v8195_v24  ;;  %v8277_v24 = vld [vmem:[%s11879_s1 + $0xe30] ss:$72 sps:$4 sm:$0xff]  }
 0x16f   :  { %5783 = vmatpush1.bf16.msra.mxu1 %v8190_v25  ;;  %v8282_v25 = vld [vmem:[%s11879_s1 + $0x17bc] ss:$72 sps:$4 sm:$0xff]  }
 0x170   :  { %5869 = vmatpush1.bf16.msra.mxu0 %v8193_v26  ;;  %5784 = vmatprep.subr.bf16.mxu1 %v8198_v28  ;;  %v8285_v26 = vld [vmem:[%s11879_s1 + $0xec4] ss:$72 sps:$4 sm:$0xff]   ;;  %v8280_v28 = vld [vmem:[%s11879_s1 + $0x17b8] ss:$72 sps:$4 sm:$0xff]  }
 0x171   :  { %5870 = vmatprep.subr.bf16.mxu0 %v8201_v29  ;;  %v8283_v29 = vld [vmem:[%s11879_s1 + $0xec0] ss:$72 sps:$4 sm:$0xff]  }
 0x173   :  { %5785 = vmatpush1.bf16.msra.mxu1 %v8196_v30  ;;  %v8288_v30 = vld [vmem:[%s11879_s1 + $0x184c] ss:$72 sps:$4 sm:$0xff]  }
 0x174   :  { %5871 = vmatpush1.bf16.msra.mxu0 %v8199_v31  ;;  %5786 = vmatprep.subr.bf16.mxu1 %v8204_v32  ;;  %v8291_v31 = vld [vmem:[%s11879_s1 + $0xf54] ss:$72 sps:$4 sm:$0xff]   ;;  %v8286_v32 = vld [vmem:[%s11879_s1 + $0x1848] ss:$72 sps:$4 sm:$0xff]  }
 0x175   :  { %5872 = vmatprep.subr.bf16.mxu0 %v8207_v35  ;;  %v8289_v35 = vld [vmem:[%s11879_s1 + $0xf50] ss:$72 sps:$4 sm:$0xff]  }
 0x177   :  { %5787 = vmatpush1.bf16.msra.mxu1 %v8202_v36  ;;  %v8294_v36 = vld [vmem:[%s11879_s1 + $0x18dc] ss:$72 sps:$4 sm:$0xff]  }
 0x178   :  { %5873 = vmatpush1.bf16.msra.mxu0 %v8205_v7  ;;  %5788 = vmatprep.subr.bf16.mxu1 %v8210_v23  ;;  %v8297_v7 = vld [vmem:[%s11879_s1 + $0xfe4] ss:$72 sps:$4 sm:$0xff]   ;;  %v8292_v23 = vld [vmem:[%s11879_s1 + $0x18d8] ss:$72 sps:$4 sm:$0xff]  }
 0x179   :  { %5874 = vmatprep.subr.bf16.mxu0 %v8213_v37  ;;  %v8295_v37 = vld [vmem:[%s11879_s1 + $0xfe0] ss:$72 sps:$4 sm:$0xff]  }
 0x17b   :  { %5789 = vmatpush1.bf16.msra.mxu1 %v8208_v39  ;;  %v8300_v39 = vld [vmem:[%s11879_s1 + $0x196c] ss:$72 sps:$4 sm:$0xff]  }
 0x17c   :  { %5875 = vmatpush1.bf16.msra.mxu0 %v8211_v40  ;;  %5790 = vmatprep.subr.bf16.mxu1 %v8216_v44  ;;  %v8303_v40 = vld [vmem:[%s11879_s1 + $0x1074] ss:$72 sps:$4 sm:$0xff]   ;;  %v8298_v44 = vld [vmem:[%s11879_s1 + $0x1968] ss:$72 sps:$4 sm:$0xff]  }
 0x17d   :  { %5876 = vmatprep.subr.bf16.mxu0 %v8219_v46  ;;  %v8301_v46 = vld [vmem:[%s11879_s1 + $0x1070] ss:$72 sps:$4 sm:$0xff]  }
 0x17f   :  { %5791 = vmatpush1.bf16.msra.mxu1 %v8214_v47  ;;  %v8306_v47 = vld [vmem:[%s11879_s1 + $0x19fc] ss:$72 sps:$4 sm:$0xff]  }
 0x180   :  { %5877 = vmatpush1.bf16.msra.mxu0 %v8217_v51  ;;  %5803 = vmatprep.subr.bf16.mxu1 %v8222_v52  ;;  %v8309_v51 = vld [vmem:[%s11879_s1 + $0x1104] ss:$72 sps:$4 sm:$0xff]   ;;  %v8304_v52 = vld [vmem:[%s11879_s1 + $0x19f8] ss:$72 sps:$4 sm:$0xff]  }
 0x181   :  { %5889 = vmatprep.subr.bf16.mxu0 %v8225_v53  ;;  %v8307_v53 = vld [vmem:[%s11879_s1 + $0x1100] ss:$72 sps:$4 sm:$0xff]  }
 0x182   :  { %5793 = vmatmul.mubr.bf16.vlgmr.msra.gmra.mrb[8].mxu1 %v10258_v58 }
 0x183   :  { %5879 = vmatmul.mubr.bf16.vlgmr.msra.gmra.mrb[8].mxu0 %v10035_v27  ;;  %5804 = vmatpush1.bf16.msra.mxu1 %v8220_v54  ;;  %v8237_v27 = vld [vmem:[%s11879_s1 + $0xa44] ss:$72 sps:$4 sm:$0xff]  }
 0x184   :  { %5890 = vmatpush1.bf16.msra.mxu0 %v8223_v55  ;;  %5805 = vmatprep.subr.bf16.mxu1 %v8228_v56  ;;  %v8312_v54 = vld [vmem:[%s11879_s1 + $0x1a8c] ss:$72 sps:$4 sm:$0xff]   ;;  %v8310_v56 = vld [vmem:[%s11879_s1 + $0x1a88] ss:$72 sps:$4 sm:$0xff]  }
 0x185   :  { %5891 = vmatprep.subr.bf16.mxu0 %v8231_v57  ;;  %5835 = vmatprep.mubr.bf16.mxu1 %v10277_v62  ;;  %v8315_v55 = vld [vmem:[%s11879_s1 + $0x1194] ss:$72 sps:$4 sm:$0xff]   ;;  %v8313_v57 = vld [vmem:[%s11879_s1 + $0x1190] ss:$72 sps:$4 sm:$0xff]  }
 0x186   :  { %5921 = vmatprep.mubr.bf16.mxu0 %v10283_v63 }
 0x187   :  { %5806 = vmatpush1.bf16.msra.mxu1 %v8226_v59  ;;  %v8318_v59 = vld [vmem:[%s11879_s1 + $0x1224] ss:$72 sps:$4 sm:$0xff]  }
 0x188   :  { %5892 = vmatpush1.bf16.msra.mxu0 %v8229_v60  ;;  %5807 = vmatprep.subr.bf16.mxu1 %v8234_v61  ;;  %v8321_v60 = vld [vmem:[%s11879_s1 + $0x2c] ss:$72 sps:$4 sm:$0xff]   ;;  %v8316_v61 = vld [vmem:[%s11879_s1 + $0x1220] ss:$72 sps:$4 sm:$0xff]  }
 0x189   :  { %5893 = vmatprep.subr.bf16.mxu0 %v8237_v27  ;;  %v8319_v27 = vld [vmem:[%s11879_s1 + $0x28] ss:$72 sps:$4 sm:$0xff]  }
 0x18b   :  { %5808 = vmatpush1.bf16.msra.mxu1 %v8232_v0  ;;  %v8324_v0 = vld [vmem:[%s11879_s1 + $0x12b4] ss:$72 sps:$4 sm:$0xff]  }
 0x18c   :  { %5894 = vmatpush1.bf16.msra.mxu0 %v8235_v41  ;;  %5809 = vmatprep.subr.bf16.mxu1 %v8240_v42  ;;  %v8327_v41 = vld [vmem:[%s11879_s1 + $0xbc] ss:$72 sps:$4 sm:$0xff]   ;;  %v10469_v42 = vld [vmem:[%s11880_s0 + $0x10] ss:$24 sps:$4 sm:$0xff]  }
 0x18d   :  { %5895 = vmatprep.subr.bf16.mxu0 %v8243_v45  ;;  %v8322_v45 = vld [vmem:[%s11879_s1 + $0x12b0] ss:$72 sps:$4 sm:$0xff]  }
 0x18f   :  { %5810 = vmatpush1.bf16.msra.mxu1 %v8238_v1  ;;  %v8325_v1 = vld [vmem:[%s11879_s1 + $0xb8] ss:$72 sps:$4 sm:$0xff]  }
 0x190   :  { %5896 = vmatpush1.bf16.msra.mxu0 %v8241_v2  ;;  %5811 = vmatprep.subr.bf16.mxu1 %v8246_v3  ;;  %v8330_v2 = vld [vmem:[%s11879_s1 + $0x1344] ss:$72 sps:$4 sm:$0xff]  }
 0x191   :  { %5897 = vmatprep.subr.bf16.mxu0 %v8249_v4  ;;  %v10489_v3 = vld [vmem:[%s11880_s0 + $0x4] ss:$24 sps:$4 sm:$0xff]   ;;  %v8328_v4 = vld [vmem:[%s11879_s1 + $0x1340] ss:$72 sps:$4 sm:$0xff]  }
 0x193   :  { %5812 = vmatpush1.bf16.msra.mxu1 %v8244_v5  ;;  %v8331_v5 = vld [vmem:[%s11879_s1 + $0x148] ss:$72 sps:$4 sm:$0xff]  }
 0x194   :  { %5898 = vmatpush1.bf16.msra.mxu0 %v8247_v50  ;;  %5813 = vmatprep.subr.bf16.mxu1 %v8252_v8  ;;  %v8339_v50 = vld [vmem:[%s11879_s1 + $0x1dc] ss:$72 sps:$4 sm:$0xff]   ;;  %v8334_v8 = vld [vmem:[%s11879_s1 + $0x13d0] ss:$72 sps:$4 sm:$0xff]  }
 0x195   :  { %5899 = vmatprep.subr.bf16.mxu0 %v8255_v9  ;;  %v8337_v9 = vld [vmem:[%s11879_s1 + $0x1d8] ss:$72 sps:$4 sm:$0xff]  }
 0x197   :  { %5814 = vmatpush1.bf16.msra.mxu1 %v8250_v10  ;;  %v8342_v10 = vld [vmem:[%s11879_s1 + $0x1464] ss:$72 sps:$4 sm:$0xff]  }
 0x198   :  { %5900 = vmatpush1.bf16.msra.mxu0 %v8253_v12  ;;  %5815 = vmatprep.subr.bf16.mxu1 %v8258_v13  ;;  %v8345_v12 = vld [vmem:[%s11879_s1 + $0x26c] ss:$72 sps:$4 sm:$0xff]   ;;  %v900_v13 = vsub.s32 2, %v10052_v34 }
 0x199   :  { %5901 = vmatprep.subr.bf16.mxu0 %v8261_v14  ;;  %v8340_v14 = vld [vmem:[%s11879_s1 + $0x1460] ss:$72 sps:$4 sm:$0xff]  }
 0x19b   :  { %5816 = vmatpush1.bf16.msra.mxu1 %v8256_v15  ;;  %v8343_v15 = vld [vmem:[%s11879_s1 + $0x268] ss:$72 sps:$4 sm:$0xff]  }
 0x19c   :  { %5902 = vmatpush1.bf16.msra.mxu0 %v8259_v16  ;;  %5817 = vmatprep.subr.bf16.mxu1 %v8264_v17  ;;  %v904_v16 = vsub.s32 3, %v10052_v34  ;;  %v8348_v17 = vld [vmem:[%s11879_s1 + $0x14f4] ss:$72 sps:$4 sm:$0xff]  }
 0x19d   :  { %5903 = vmatprep.subr.bf16.mxu0 %v8267_v18  ;;  %v8351_v18 = vld [vmem:[%s11879_s1 + $0x2fc] ss:$72 sps:$4 sm:$0xff]  }
 0x19f   :  { %5818 = vmatpush1.bf16.msra.mxu1 %v8262_v19  ;;  %v10533_v19 = vld [vmem:[%s11881_s2] sm:$0xff] }
 0x1a0   :  { %5904 = vmatpush1.bf16.msra.mxu0 %v8265_v20  ;;  %5819 = vmatprep.subr.bf16.mxu1 %v8270_v21  ;;  %v901_v20 = vrot.slane %v10533_v19, %v900_v13  ;;  %v905_v21 = vrot.slane %v10533_v19, %v904_v16 }
 0x1a1   :  { %5905 = vmatprep.subr.bf16.mxu0 %v8273_v22  ;;  %v8346_v22 = vld [vmem:[%s11879_s1 + $0x14f0] ss:$72 sps:$4 sm:$0xff]  }
 0x1a3   :  { %5820 = vmatpush1.bf16.msra.mxu1 %v8268_v6  ;;  %v8349_v6 = vld [vmem:[%s11879_s1 + $0x2f8] ss:$72 sps:$4 sm:$0xff]  }
 0x1a4   :  { %5906 = vmatpush1.bf16.msra.mxu0 %v8271_v48  ;;  %5821 = vmatprep.subr.bf16.mxu1 %v8276_v11  ;;  %v8354_v48 = vld [vmem:[%s11879_s1 + $0x1584] ss:$72 sps:$4 sm:$0xff]  }
 0x1a5   :  { %5907 = vmatprep.subr.bf16.mxu0 %v8279_v49  ;;  %v8357_v11 = vld [vmem:[%s11879_s1 + $0x38c] ss:$72 sps:$4 sm:$0xff]  }
 0x1a7   :  { %5822 = vmatpush1.bf16.msra.mxu1 %v8274_v33 }
 0x1a8   :  { %5908 = vmatpush1.bf16.msra.mxu0 %v8277_v24  ;;  %5823 = vmatprep.subr.bf16.mxu1 %v8282_v25 }
 0x1a9   :  { %5909 = vmatprep.subr.bf16.mxu0 %v8285_v26 }
 0x1ab   :  { %5824 = vmatpush1.bf16.msra.mxu1 %v8280_v28  ;;  %v8352_v28 = vld [vmem:[%s11879_s1 + $0x1580] ss:$72 sps:$4 sm:$0xff]  }
 0x1ac   :  { %5910 = vmatpush1.bf16.msra.mxu0 %v8283_v29  ;;  %5825 = vmatprep.subr.bf16.mxu1 %v8288_v30  ;;  %v8355_v29 = vld [vmem:[%s11879_s1 + $0x388] ss:$72 sps:$4 sm:$0xff]  }
 0x1ad   :  { %5911 = vmatprep.subr.bf16.mxu0 %v8291_v31 }
 0x1af   :  { %5826 = vmatpush1.bf16.msra.mxu1 %v8286_v32  ;;  %v8360_v32 = vld [vmem:[%s11879_s1 + $0x1614] ss:$72 sps:$4 sm:$0xff]  }
 0x1b0   :  { %5912 = vmatpush1.bf16.msra.mxu0 %v8289_v35  ;;  %5827 = vmatprep.subr.bf16.mxu1 %v8294_v36  ;;  %v8363_v35 = vld [vmem:[%s11879_s1 + $0x41c] ss:$72 sps:$4 sm:$0xff]  }
 0x1b1   :  { %5913 = vmatprep.subr.bf16.mxu0 %v8297_v7 }
 0x1b3   :  { %5828 = vmatpush1.bf16.msra.mxu1 %v8292_v23 }
 0x1b4   :  { %5914 = vmatpush1.bf16.msra.mxu0 %v8295_v37  ;;  %5829 = vmatprep.subr.bf16.mxu1 %v8300_v39  ;;  %v8358_v37 = vld [vmem:[%s11879_s1 + $0x1610] ss:$72 sps:$4 sm:$0xff]  }
 0x1b5   :  { %5915 = vmatprep.subr.bf16.mxu0 %v8303_v40  ;;  %v8361_v39 = vld [vmem:[%s11879_s1 + $0x418] ss:$72 sps:$4 sm:$0xff]   ;;  %v8366_v40 = vld [vmem:[%s11879_s1 + $0x16a4] ss:$72 sps:$4 sm:$0xff]  }
 0x1b7   :  { %5830 = vmatpush1.bf16.msra.mxu1 %v8298_v44  ;;  %v8369_v44 = vld [vmem:[%s11879_s1 + $0x4ac] ss:$72 sps:$4 sm:$0xff]  }
 0x1b8   :  { %5916 = vmatpush1.bf16.msra.mxu0 %v8301_v46  ;;  %5831 = vmatprep.subr.bf16.mxu1 %v8306_v47  ;;  %v8364_v46 = vld [vmem:[%s11879_s1 + $0x16a0] ss:$72 sps:$4 sm:$0xff]  }
 0x1b9   :  { %5917 = vmatprep.subr.bf16.mxu0 %v8309_v51  ;;  %v8367_v47 = vld [vmem:[%s11879_s1 + $0x4a8] ss:$72 sps:$4 sm:$0xff]   ;;  %v8372_v51 = vld [vmem:[%s11879_s1 + $0x1734] ss:$72 sps:$4 sm:$0xff]  }
 0x1bb   :  { %5832 = vmatpush1.bf16.msra.mxu1 %v8304_v52  ;;  %v8375_v52 = vld [vmem:[%s11879_s1 + $0x53c] ss:$72 sps:$4 sm:$0xff]  }
 0x1bc   :  { %5918 = vmatpush1.bf16.msra.mxu0 %v8307_v53  ;;  %5833 = vmatprep.subr.bf16.mxu1 %v8312_v54  ;;  %v8370_v53 = vld [vmem:[%s11879_s1 + $0x1730] ss:$72 sps:$4 sm:$0xff]  }
 0x1bd   :  { %5919 = vmatprep.subr.bf16.mxu0 %v8315_v55  ;;  %v8373_v54 = vld [vmem:[%s11879_s1 + $0x538] ss:$72 sps:$4 sm:$0xff]   ;;  %v8378_v55 = vld [vmem:[%s11879_s1 + $0x17c4] ss:$72 sps:$4 sm:$0xff]  }
 0x1bf   :  { %5834 = vmatpush1.bf16.msra.mxu1 %v8310_v56  ;;  %v8381_v56 = vld [vmem:[%s11879_s1 + $0x5cc] ss:$72 sps:$4 sm:$0xff]  }
 0x1c0   :  { %5920 = vmatpush1.bf16.msra.mxu0 %v8313_v57  ;;  %5975 = vmatprep.subr.bf16.mxu1 %v8321_v60  ;;  %v8376_v57 = vld [vmem:[%s11879_s1 + $0x17c0] ss:$72 sps:$4 sm:$0xff]   ;;  %v8384_v60 = vld [vmem:[%s11879_s1 + $0x1854] ss:$72 sps:$4 sm:$0xff]  }
 0x1c1   :  { %5932 = vmatprep.subr.bf16.mxu0 %v8318_v59  ;;  %v8379_v59 = vld [vmem:[%s11879_s1 + $0x5c8] ss:$72 sps:$4 sm:$0xff]  }
 0x1c2   :  { %5836 = vmatmul.mubr.bf16.vlgmr.msra.gmra.mrb[8].mxu1 %v10469_v42 }
 0x1c3   :  { %5922 = vmatmul.mubr.bf16.vlgmr.msra.gmra.mrb[8].mxu0 %v10258_v58  ;;  %5976 = vmatpush1.bf16.msra.mxu1 %v8319_v27  ;;  %v8333_v58 = vld [vmem:[%s11879_s1 + $0x14c] ss:$72 sps:$4 sm:$0xff]   ;;  %v8382_v27 = vld [vmem:[%s11879_s1 + $0x1850] ss:$72 sps:$4 sm:$0xff]  }
 0x1c4   :  { %5933 = vmatpush1.bf16.msra.mxu0 %v8316_v61  ;;  %5977 = vmatprep.subr.bf16.mxu1 %v8327_v41  ;;  %v8387_v61 = vld [vmem:[%s11879_s1 + $0x65c] ss:$72 sps:$4 sm:$0xff]  }
 0x1c5   :  { %5934 = vmatprep.subr.bf16.mxu0 %v8324_v0  ;;  %5964 = vmatprep.mubr.bf16.mxu0 %v10277_v62  ;;  %v8336_v62 = vld [vmem:[%s11879_s1 + $0x13d4] ss:$72 sps:$4 sm:$0xff]   ;;  %v8385_v0 = vld [vmem:[%s11879_s1 + $0x658] ss:$72 sps:$4 sm:$0xff]   ;;  %v8390_v41 = vld [vmem:[%s11879_s1 + $0x18e4] ss:$72 sps:$4 sm:$0xff]  }
 0x1c6   :  { %6007 = vmatprep.mubr.bf16.mxu1 %v10489_v3 }
 0x1c7   :  { %5978 = vmatpush1.bf16.msra.mxu1 %v8325_v1  ;;  %v8388_v1 = vld [vmem:[%s11879_s1 + $0x18e0] ss:$72 sps:$4 sm:$0xff]  }
 0x1c8   :  { %5935 = vmatpush1.bf16.msra.mxu0 %v8322_v45  ;;  %5979 = vmatprep.subr.bf16.mxu1 %v8333_v58  ;;  %v8393_v45 = vld [vmem:[%s11879_s1 + $0x6ec] ss:$72 sps:$4 sm:$0xff]  }
 0x1c9   :  { %5936 = vmatprep.subr.bf16.mxu0 %v8330_v2  ;;  %v8391_v2 = vld [vmem:[%s11879_s1 + $0x6e8] ss:$72 sps:$4 sm:$0xff]   ;;  %v8396_v58 = vld [vmem:[%s11879_s1 + $0x1974] ss:$72 sps:$4 sm:$0xff]  }
 0x1cb   :  { %5980 = vmatpush1.bf16.msra.mxu1 %v8331_v5  ;;  %v8394_v5 = vld [vmem:[%s11879_s1 + $0x1970] ss:$72 sps:$4 sm:$0xff]  }
 0x1cc   :  { %5937 = vmatpush1.bf16.msra.mxu0 %v8328_v4  ;;  %5981 = vmatprep.subr.bf16.mxu1 %v8339_v50  ;;  %v8399_v4 = vld [vmem:[%s11879_s1 + $0x77c] ss:$72 sps:$4 sm:$0xff]  }
 0x1cd   :  { %5938 = vmatprep.subr.bf16.mxu0 %v8336_v62  ;;  %v8397_v62 = vld [vmem:[%s11879_s1 + $0x778] ss:$72 sps:$4 sm:$0xff]   ;;  %v8402_v50 = vld [vmem:[%s11879_s1 + $0x1a04] ss:$72 sps:$4 sm:$0xff]  }
 0x1cf   :  { %5982 = vmatpush1.bf16.msra.mxu1 %v8337_v9  ;;  %v8400_v9 = vld [vmem:[%s11879_s1 + $0x1a00] ss:$72 sps:$4 sm:$0xff]  }
 0x1d0   :  { %5939 = vmatpush1.bf16.msra.mxu0 %v8334_v8  ;;  %5983 = vmatprep.subr.bf16.mxu1 %v8345_v12  ;;  %v8405_v8 = vld [vmem:[%s11879_s1 + $0x80c] ss:$72 sps:$4 sm:$0xff]  }
 0x1d1   :  { %5940 = vmatprep.subr.bf16.mxu0 %v8342_v10  ;;  %v8403_v10 = vld [vmem:[%s11879_s1 + $0x808] ss:$72 sps:$4 sm:$0xff]   ;;  %v8408_v12 = vld [vmem:[%s11879_s1 + $0x1a94] ss:$72 sps:$4 sm:$0xff]  }
 0x1d3   :  { %5984 = vmatpush1.bf16.msra.mxu1 %v8343_v15  ;;  %v8406_v15 = vld [vmem:[%s11879_s1 + $0x1a90] ss:$72 sps:$4 sm:$0xff]  }
 0x1d4   :  { %5941 = vmatpush1.bf16.msra.mxu0 %v8340_v14  ;;  %5985 = vmatprep.subr.bf16.mxu1 %v8351_v18  ;;  %v8411_v14 = vld [vmem:[%s11879_s1 + $0x89c] ss:$72 sps:$4 sm:$0xff]   ;;  %v8414_v18 = vld [vmem:[%s11879_s1 + $0x92c] ss:$72 sps:$4 sm:$0xff]  }
 0x1d5   :  { %5942 = vmatprep.subr.bf16.mxu0 %v8348_v17  ;;  %v5579_v49 = vpop.f32.mrb[4].mxu1  ;;  %v8409_v17 = vld [vmem:[%s11879_s1 + $0x898] ss:$72 sps:$4 sm:$0xff]  }
 0x1d6   :  { %v7535_v33 = vadd.f32 %v5579_v49, %v901_v20  ;;  %v5581_v24 = vpop.f32.mrb[5].mxu1  ;;  %v8418_v49 = vld [vmem:[%s11879_s1 + $0x9b8] ss:$72 sps:$4 sm:$0xff]  }
 0x1d7   :  { %v7536_v25 = vadd.f32 %v5581_v24, %v905_v21  ;;  %v5583_v26 = vpop.f32.mrb[6].mxu1  ;;  %5986 = vmatpush1.bf16.msra.mxu1 %v8349_v6  ;;  %v8420_v6 = vld [vmem:[%s11879_s1 + $0x9bc] ss:$72 sps:$4 sm:$0xff]  }
 0x1d8   :  { %5943 = vmatpush1.bf16.msra.mxu0 %v8346_v22  ;;  %v7537_v30 = vadd.f32 %v5583_v26, %v901_v20  ;;  %v5585_v31 = vpop.f32.mrb[7].mxu1  ;;  %5987 = vmatprep.subr.bf16.mxu1 %v8357_v11  ;;  %v8417_v20 = vld [vmem:[%s11879_s1 + $0x34] ss:$72 sps:$4 sm:$0xff]   ;;  %v8415_v22 = vld [vmem:[%s11879_s1 + $0x30] ss:$72 sps:$4 sm:$0xff]  }
 0x1d9   :  { %5944 = vmatprep.subr.bf16.mxu0 %v8354_v48  ;;  %v7510_v36 = vpack.c.bf16 %v7536_v25, %v7535_v33  ;;  %v7538_v7 = vadd.f32 %v5585_v31, %v905_v21  ;;  %v8412_v21 = vld [vmem:[%s11879_s1 + $0x928] ss:$72 sps:$4 sm:$0xff]   ;;  %v8423_v48 = vld [vmem:[%s11879_s1 + $0xc4] ss:$72 sps:$4 sm:$0xff]   ;;  %v10695_v11 = vld [vmem:[%s11880_s0] ss:$24 sps:$4 sm:$0xff]  }
 0x1da   :  { %v8421_v33 = vld [vmem:[%s11879_s1 + $0xc0] ss:$72 sps:$4 sm:$0xff]   ;;  %v8429_v24 = vld [vmem:[%s11879_s1 + $0x154] ss:$72 sps:$4 sm:$0xff]   ;;  %v8427_v26 = vld [vmem:[%s11879_s1 + $0x150] ss:$72 sps:$4 sm:$0xff]  }
 0x1db   :  { %6600 = vst [vmem:[%s11882_s3 + $0x8] sm:$0xff] %v7510_v36  ;;  %v7519_v23 = vpack.c.bf16 %v7538_v7, %v7537_v30  ;;  %5988 = vmatpush1.bf16.msra.mxu1 %v8355_v29  ;;  %v8424_v25 = vld [vmem:[%s11879_s1 + $0xa48] ss:$72 sps:$4 sm:$0xff]   ;;  %v8438_v30 = vld [vmem:[%s11879_s1 + $0xb6c] ss:$72 sps:$4 sm:$0xff]   ;;  %v912_v7 = vsub.s32 5, %v10052_v34 }
 0x1dc   :  { %5945 = vmatpush1.bf16.msra.mxu0 %v8352_v28  ;;  %5989 = vmatprep.subr.bf16.mxu1 %v8363_v35  ;;  %v8432_v28 = vld [vmem:[%s11879_s1 + $0xadc] ss:$72 sps:$4 sm:$0xff]   ;;  %v8433_v29 = vld [vmem:[%s11879_s1 + $0x1e0] ss:$72 sps:$4 sm:$0xff]   ;;  %v8439_v36 = vld [vmem:[%s11879_s1 + $0x270] ss:$72 sps:$4 sm:$0xff]  }
 0x1dd   :  { %5946 = vmatprep.subr.bf16.mxu0 %v8360_v32  ;;  %6609 = vst [vmem:[%s11882_s3 + $0x50] sm:$0xff] %v7519_v23  ;;  %v8441_v31 = vld [vmem:[%s11879_s1 + $0x274] ss:$72 sps:$4 sm:$0xff]   ;;  %v908_v32 = vsub.s32 4, %v10052_v34  ;;  %v8436_v35 = vld [vmem:[%s11879_s1 + $0xb68] ss:$72 sps:$4 sm:$0xff]  }
 0x1de   :  { %v8444_v23 = vld [vmem:[%s11879_s1 + $0xbfc] ss:$72 sps:$4 sm:$0xff]  }
 0x1df   :  { %5990 = vmatpush1.bf16.msra.mxu1 %v8361_v39  ;;  %v909_v39 = vrot.slane %v10533_v19, %v908_v32 }
 0x1e0   :  { %5947 = vmatpush1.bf16.msra.mxu0 %v8358_v37  ;;  %5991 = vmatprep.subr.bf16.mxu1 %v8369_v44  ;;  %v8447_v37 = vld [vmem:[%s11879_s1 + $0x304] ss:$72 sps:$4 sm:$0xff]   ;;  %v8442_v44 = vld [vmem:[%s11879_s1 + $0xbf8] ss:$72 sps:$4 sm:$0xff]  }
 0x1e1   :  { %5948 = vmatprep.subr.bf16.mxu0 %v8366_v40  ;;  %v913_v40 = vrot.slane %v10533_v19, %v912_v7 }
 0x1e3   :  { %5992 = vmatpush1.bf16.msra.mxu1 %v8367_v47  ;;  %v8450_v47 = vld [vmem:[%s11879_s1 + $0xc8c] ss:$72 sps:$4 sm:$0xff]  }
 0x1e4   :  { %5949 = vmatpush1.bf16.msra.mxu0 %v8364_v46  ;;  %5993 = vmatprep.subr.bf16.mxu1 %v8375_v52  ;;  %v8445_v46 = vld [vmem:[%s11879_s1 + $0x300] ss:$72 sps:$4 sm:$0xff]  }
 0x1e5   :  { %5950 = vmatprep.subr.bf16.mxu0 %v8372_v51  ;;  %v8453_v51 = vld [vmem:[%s11879_s1 + $0x394] ss:$72 sps:$4 sm:$0xff]  }
 0x1e7   :  { %5994 = vmatpush1.bf16.msra.mxu1 %v8373_v54 }
 0x1e8   :  { %5951 = vmatpush1.bf16.msra.mxu0 %v8370_v53  ;;  %5995 = vmatprep.subr.bf16.mxu1 %v8381_v56 }
 0x1e9   :  { %5952 = vmatprep.subr.bf16.mxu0 %v8378_v55 }
 0x1eb   :  { %5996 = vmatpush1.bf16.msra.mxu1 %v8379_v59  ;;  %v8451_v59 = vld [vmem:[%s11879_s1 + $0x390] ss:$72 sps:$4 sm:$0xff]  }
 0x1ec   :  { %5953 = vmatpush1.bf16.msra.mxu0 %v8376_v57  ;;  %5997 = vmatprep.subr.bf16.mxu1 %v8387_v61  ;;  %v8448_v57 = vld [vmem:[%s11879_s1 + $0xc88] ss:$72 sps:$4 sm:$0xff]  }
 0x1ed   :  { %5954 = vmatprep.subr.bf16.mxu0 %v8384_v60 }
 0x1ef   :  { %5998 = vmatpush1.bf16.msra.mxu1 %v8385_v0  ;;  %v8459_v0 = vld [vmem:[%s11879_s1 + $0x424] ss:$72 sps:$4 sm:$0xff]  }
 0x1f0   :  { %5955 = vmatpush1.bf16.msra.mxu0 %v8382_v27  ;;  %5999 = vmatprep.subr.bf16.mxu1 %v8393_v45  ;;  %v8456_v27 = vld [vmem:[%s11879_s1 + $0xd1c] ss:$72 sps:$4 sm:$0xff]  }
 0x1f1   :  { %5956 = vmatprep.subr.bf16.mxu0 %v8390_v41 }
 0x1f3   :  { %6000 = vmatpush1.bf16.msra.mxu1 %v8391_v2  ;;  %v8454_v2 = vld [vmem:[%s11879_s1 + $0xd18] ss:$72 sps:$4 sm:$0xff]  }
 0x1f4   :  { %5957 = vmatpush1.bf16.msra.mxu0 %v8388_v1  ;;  %6001 = vmatprep.subr.bf16.mxu1 %v8399_v4  ;;  %v8462_v4 = vld [vmem:[%s11879_s1 + $0xdac] ss:$72 sps:$4 sm:$0xff]  }
 0x1f5   :  { %5958 = vmatprep.subr.bf16.mxu0 %v8396_v58  ;;  %v8457_v58 = vld [vmem:[%s11879_s1 + $0x420] ss:$72 sps:$4 sm:$0xff]  }
 0x1f7   :  { %6002 = vmatpush1.bf16.msra.mxu1 %v8397_v62  ;;  %v8460_v62 = vld [vmem:[%s11879_s1 + $0xda8] ss:$72 sps:$4 sm:$0xff]  }
 0x1f8   :  { %5959 = vmatpush1.bf16.msra.mxu0 %v8394_v5  ;;  %6003 = vmatprep.subr.bf16.mxu1 %v8405_v8  ;;  %v8465_v5 = vld [vmem:[%s11879_s1 + $0x4b4] ss:$72 sps:$4 sm:$0xff]  }
 0x1f9   :  { %5960 = vmatprep.subr.bf16.mxu0 %v8402_v50  ;;  %v8463_v50 = vld [vmem:[%s11879_s1 + $0x4b0] ss:$72 sps:$4 sm:$0xff]   ;;  %v8468_v8 = vld [vmem:[%s11879_s1 + $0xe3c] ss:$72 sps:$4 sm:$0xff]  }
 0x1fb   :  { %6004 = vmatpush1.bf16.msra.mxu1 %v8403_v10  ;;  %v8466_v10 = vld [vmem:[%s11879_s1 + $0xe38] ss:$72 sps:$4 sm:$0xff]  }
 0x1fc   :  { %5961 = vmatpush1.bf16.msra.mxu0 %v8400_v9  ;;  %6005 = vmatprep.subr.bf16.mxu1 %v8411_v14  ;;  %v8471_v9 = vld [vmem:[%s11879_s1 + $0x544] ss:$72 sps:$4 sm:$0xff]  }
 0x1fd   :  { %5962 = vmatprep.subr.bf16.mxu0 %v8408_v12  ;;  %v8469_v12 = vld [vmem:[%s11879_s1 + $0x540] ss:$72 sps:$4 sm:$0xff]   ;;  %v8474_v14 = vld [vmem:[%s11879_s1 + $0xecc] ss:$72 sps:$4 sm:$0xff]  }
 0x1ff   :  { %6006 = vmatpush1.bf16.msra.mxu1 %v8409_v17  ;;  %v8472_v17 = vld [vmem:[%s11879_s1 + $0xec8] ss:$72 sps:$4 sm:$0xff]  }
 0x200   :  { %5963 = vmatpush1.bf16.msra.mxu0 %v8406_v15  ;;  %6018 = vmatprep.subr.bf16.mxu1 %v8414_v18  ;;  %v8477_v15 = vld [vmem:[%s11879_s1 + $0x5d4] ss:$72 sps:$4 sm:$0xff]   ;;  %v8475_v18 = vld [vmem:[%s11879_s1 + $0x5d0] ss:$72 sps:$4 sm:$0xff]  }
 0x201   :  { %6104 = vmatprep.subr.bf16.mxu0 %v8417_v20  ;;  %v8480_v20 = vld [vmem:[%s11879_s1 + $0xf5c] ss:$72 sps:$4 sm:$0xff]  }
 0x202   :  { %6008 = vmatmul.mubr.bf16.vlgmr.msra.gmra.mrb[12].mxu1 %v10695_v11 }
 0x203   :  { %5965 = vmatmul.mubr.bf16.vlgmr.msra.gmra.mrb[8].mxu0 %v10469_v42  ;;  %6019 = vmatpush1.bf16.msra.mxu1 %v8412_v21  ;;  %v8426_v42 = vld [vmem:[%s11879_s1 + $0xa4c] ss:$72 sps:$4 sm:$0xff]  }
 0x204   :  { %6105 = vmatpush1.bf16.msra.mxu0 %v8415_v22  ;;  %6020 = vmatprep.subr.bf16.mxu1 %v8420_v6  ;;  %v8483_v21 = vld [vmem:[%s11879_s1 + $0x664] ss:$72 sps:$4 sm:$0xff]   ;;  %v8478_v22 = vld [vmem:[%s11879_s1 + $0xf58] ss:$72 sps:$4 sm:$0xff]  }
 0x205   :  { %6106 = vmatprep.subr.bf16.mxu0 %v8423_v48  ;;  %6050 = vmatprep.mubr.bf16.mxu1 %v10283_v63  ;;  %v8435_v63 = vld [vmem:[%s11879_s1 + $0x1e4] ss:$72 sps:$4 sm:$0xff]   ;;  %v8481_v6 = vld [vmem:[%s11879_s1 + $0x660] ss:$72 sps:$4 sm:$0xff]  }
 0x206   :  { %6136 = vmatprep.mubr.bf16.mxu0 %v10489_v3  ;;  %v8430_v3 = vld [vmem:[%s11879_s1 + $0xad8] ss:$72 sps:$4 sm:$0xff]   ;;  %v8486_v48 = vld [vmem:[%s11879_s1 + $0xfec] ss:$72 sps:$4 sm:$0xff]  }
 0x207   :  { %6021 = vmatpush1.bf16.msra.mxu1 %v8418_v49  ;;  %v8489_v49 = vld [vmem:[%s11879_s1 + $0x6f4] ss:$72 sps:$4 sm:$0xff]  }
 0x208   :  { %6107 = vmatpush1.bf16.msra.mxu0 %v8421_v33  ;;  %6022 = vmatprep.subr.bf16.mxu1 %v8426_v42  ;;  %v8484_v33 = vld [vmem:[%s11879_s1 + $0xfe8] ss:$72 sps:$4 sm:$0xff]  }
 0x209   :  { %6108 = vmatprep.subr.bf16.mxu0 %v8429_v24  ;;  %v8487_v42 = vld [vmem:[%s11879_s1 + $0x6f0] ss:$72 sps:$4 sm:$0xff]   ;;  %v8492_v24 = vld [vmem:[%s11879_s1 + $0x107c] ss:$72 sps:$4 sm:$0xff]  }
 0x20b   :  { %6023 = vmatpush1.bf16.msra.mxu1 %v8424_v25  ;;  %v8495_v25 = vld [vmem:[%s11879_s1 + $0x784] ss:$72 sps:$4 sm:$0xff]  }
 0x20c   :  { %6109 = vmatpush1.bf16.msra.mxu0 %v8427_v26  ;;  %6024 = vmatprep.subr.bf16.mxu1 %v8432_v28  ;;  %v8490_v26 = vld [vmem:[%s11879_s1 + $0x1078] ss:$72 sps:$4 sm:$0xff]  }
 0x20d   :  { %6110 = vmatprep.subr.bf16.mxu0 %v8435_v63  ;;  %v8493_v28 = vld [vmem:[%s11879_s1 + $0x780] ss:$72 sps:$4 sm:$0xff]   ;;  %v8498_v63 = vld [vmem:[%s11879_s1 + $0x110c] ss:$72 sps:$4 sm:$0xff]  }
 0x20f   :  { %6025 = vmatpush1.bf16.msra.mxu1 %v8430_v3  ;;  %v8501_v3 = vld [vmem:[%s11879_s1 + $0x814] ss:$72 sps:$4 sm:$0xff]  }
 0x210   :  { %6111 = vmatpush1.bf16.msra.mxu0 %v8433_v29  ;;  %6026 = vmatprep.subr.bf16.mxu1 %v8438_v30  ;;  %v8496_v29 = vld [vmem:[%s11879_s1 + $0x1108] ss:$72 sps:$4 sm:$0xff]  }
 0x211   :  { %6112 = vmatprep.subr.bf16.mxu0 %v8441_v31  ;;  %v8499_v30 = vld [vmem:[%s11879_s1 + $0x810] ss:$72 sps:$4 sm:$0xff]   ;;  %v8504_v31 = vld [vmem:[%s11879_s1 + $0x119c] ss:$72 sps:$4 sm:$0xff]  }
 0x213   :  { %6027 = vmatpush1.bf16.msra.mxu1 %v8436_v35  ;;  %v8507_v35 = vld [vmem:[%s11879_s1 + $0x8a4] ss:$72 sps:$4 sm:$0xff]  }
 0x214   :  { %6113 = vmatpush1.bf16.msra.mxu0 %v8439_v36  ;;  %6028 = vmatprep.subr.bf16.mxu1 %v8444_v23  ;;  %v8502_v36 = vld [vmem:[%s11879_s1 + $0x1198] ss:$72 sps:$4 sm:$0xff]  }
 0x215   :  { %6114 = vmatprep.subr.bf16.mxu0 %v8447_v37  ;;  %v8505_v23 = vld [vmem:[%s11879_s1 + $0x8a0] ss:$72 sps:$4 sm:$0xff]   ;;  %v8510_v37 = vld [vmem:[%s11879_s1 + $0x122c] ss:$72 sps:$4 sm:$0xff]  }
 0x216   :  { %v5708_v52 = vpop.f32.mrb[4].mxu0 }
 0x217   :  { %v7539_v53 = vadd.f32 %v5708_v52, %v909_v39  ;;  %v5710_v54 = vpop.f32.mrb[5].mxu0  ;;  %6029 = vmatpush1.bf16.msra.mxu1 %v8442_v44  ;;  %v8511_v44 = vld [vmem:[%s11879_s1 + $0x930] ss:$72 sps:$4 sm:$0xff]  }
 0x218   :  { %v7540_v55 = vadd.f32 %v5710_v54, %v913_v40  ;;  %v5712_v56 = vpop.f32.mrb[6].mxu0  ;;  %6115 = vmatpush1.bf16.msra.mxu0 %v8445_v46  ;;  %6030 = vmatprep.subr.bf16.mxu1 %v8450_v47  ;;  %v8516_v46 = vld [vmem:[%s11879_s1 + $0x12bc] ss:$72 sps:$4 sm:$0xff]   ;;  %v8514_v52 = vld [vmem:[%s11879_s1 + $0x12b8] ss:$72 sps:$4 sm:$0xff]  }
 0x219   :  { %v7541_v60 = vadd.f32 %v5712_v56, %v909_v39  ;;  %v5714_v61 = vpop.f32.mrb[7].mxu0  ;;  %6116 = vmatprep.subr.bf16.mxu0 %v8453_v51  ;;  %v8513_v39 = vld [vmem:[%s11879_s1 + $0x934] ss:$72 sps:$4 sm:$0xff]   ;;  %v8519_v47 = vld [vmem:[%s11879_s1 + $0x9c4] ss:$72 sps:$4 sm:$0xff]  }
 0x21a   :  { %v7511_v41 = vpack.c.bf16 %v7540_v55, %v7539_v53  ;;  %v7542_v45 = vadd.f32 %v5714_v61, %v913_v40  ;;  %v8508_v40 = vld [vmem:[%s11879_s1 + $0x1228] ss:$72 sps:$4 sm:$0xff]   ;;  %v8522_v54 = vld [vmem:[%s11879_s1 + $0x134c] ss:$72 sps:$4 sm:$0xff]   ;;  %v8528_v61 = vld [vmem:[%s11879_s1 + $0x13dc] ss:$72 sps:$4 sm:$0xff]  }
 0x21b   :  { %6031 = vmatpush1.bf16.msra.mxu1 %v8448_v57  ;;  %v10909_v51 = vld [vmem:[%s11880_s0 + $0x8] ss:$24 sps:$4 sm:$0xff]   ;;  %v8525_v55 = vld [vmem:[%s11879_s1 + $0xa54] ss:$72 sps:$4 sm:$0xff]   ;;  %v10934_v57 = vld [vmem:[%s11880_s0 + $0xc] ss:$24 sps:$4 sm:$0xff]  }
 0x21c   :  { %6601 = vst [vmem:[%s11882_s3 + $0x10] sm:$0xff] %v7511_v41  ;;  %v7520_v1 = vpack.c.bf16 %v7542_v45, %v7541_v60  ;;  %6117 = vmatpush1.bf16.msra.mxu0 %v8451_v59  ;;  %6032 = vmatprep.subr.bf16.mxu1 %v8456_v27  ;;  %v8517_v53 = vld [vmem:[%s11879_s1 + $0x9c0] ss:$72 sps:$4 sm:$0xff]   ;;  %v10928_v56 = vld [vmem:[%s11880_s0 + $0x14] ss:$24 sps:$4 sm:$0xff]  }
 0x21d   :  { %6118 = vmatprep.subr.bf16.mxu0 %v8459_v0  ;;  %v8520_v59 = vld [vmem:[%s11879_s1 + $0x1348] ss:$72 sps:$4 sm:$0xff]   ;;  %v8531_v27 = vld [vmem:[%s11879_s1 + $0xae4] ss:$72 sps:$4 sm:$0xff]   ;;  %v8526_v0 = vld [vmem:[%s11879_s1 + $0x13d8] ss:$72 sps:$4 sm:$0xff]  }
 0x21e   :  { %6610 = vst [vmem:[%s11882_s3 + $0x58] sm:$0xff] %v7520_v1  ;;  %v8523_v60 = vld [vmem:[%s11879_s1 + $0xa50] ss:$72 sps:$4 sm:$0xff]   ;;  %v8529_v41 = vld [vmem:[%s11879_s1 + $0xae0] ss:$72 sps:$4 sm:$0xff]  }
 0x21f   :  { %6033 = vmatpush1.bf16.msra.mxu1 %v8454_v2  ;;  %v8534_v45 = vld [vmem:[%s11879_s1 + $0x146c] ss:$72 sps:$4 sm:$0xff]   ;;  %v8532_v2 = vld [vmem:[%s11879_s1 + $0x1468] ss:$72 sps:$4 sm:$0xff]  }
 0x220   :  { %6119 = vmatpush1.bf16.msra.mxu0 %v8457_v58  ;;  %6034 = vmatprep.subr.bf16.mxu1 %v8462_v4  ;;  %v8537_v1 = vld [vmem:[%s11879_s1 + $0xb74] ss:$72 sps:$4 sm:$0xff]   ;;  %v8535_v58 = vld [vmem:[%s11879_s1 + $0xb70] ss:$72 sps:$4 sm:$0xff]  }
 0x221   :  { %6120 = vmatprep.subr.bf16.mxu0 %v8465_v5  ;;  %v8540_v4 = vld [vmem:[%s11879_s1 + $0x14fc] ss:$72 sps:$4 sm:$0xff]  }
 0x222   :  { %v8543_v5 = vld [vmem:[%s11879_s1 + $0xc04] ss:$72 sps:$4 sm:$0xff]  }
 0x223   :  { %6035 = vmatpush1.bf16.msra.mxu1 %v8460_v62  ;;  %v8538_v62 = vld [vmem:[%s11879_s1 + $0x14f8] ss:$72 sps:$4 sm:$0xff]  }
 0x224   :  { %6121 = vmatpush1.bf16.msra.mxu0 %v8463_v50  ;;  %6036 = vmatprep.subr.bf16.mxu1 %v8468_v8  ;;  %v8541_v50 = vld [vmem:[%s11879_s1 + $0xc00] ss:$72 sps:$4 sm:$0xff]   ;;  %v8546_v8 = vld [vmem:[%s11879_s1 + $0x158c] ss:$72 sps:$4 sm:$0xff]  }
 0x225   :  { %6122 = vmatprep.subr.bf16.mxu0 %v8471_v9  ;;  %v8549_v9 = vld [vmem:[%s11879_s1 + $0xc94] ss:$72 sps:$4 sm:$0xff]  }
 0x227   :  { %6037 = vmatpush1.bf16.msra.mxu1 %v8466_v10  ;;  %v8544_v10 = vld [vmem:[%s11879_s1 + $0x1588] ss:$72 sps:$4 sm:$0xff]  }
 0x228   :  { %6123 = vmatpush1.bf16.msra.mxu0 %v8469_v12  ;;  %6038 = vmatprep.subr.bf16.mxu1 %v8474_v14  ;;  %v8547_v12 = vld [vmem:[%s11879_s1 + $0xc90] ss:$72 sps:$4 sm:$0xff]   ;;  %v8552_v14 = vld [vmem:[%s11879_s1 + $0x161c] ss:$72 sps:$4 sm:$0xff]  }
 0x229   :  { %6124 = vmatprep.subr.bf16.mxu0 %v8477_v15  ;;  %v8555_v15 = vld [vmem:[%s11879_s1 + $0xd24] ss:$72 sps:$4 sm:$0xff]  }
 0x22b   :  { %6039 = vmatpush1.bf16.msra.mxu1 %v8472_v17  ;;  %v8550_v17 = vld [vmem:[%s11879_s1 + $0x1618] ss:$72 sps:$4 sm:$0xff]  }
 0x22c   :  { %6125 = vmatpush1.bf16.msra.mxu0 %v8475_v18  ;;  %6040 = vmatprep.subr.bf16.mxu1 %v8480_v20  ;;  %v8553_v18 = vld [vmem:[%s11879_s1 + $0xd20] ss:$72 sps:$4 sm:$0xff]   ;;  %v8558_v20 = vld [vmem:[%s11879_s1 + $0x16ac] ss:$72 sps:$4 sm:$0xff]  }
 0x22d   :  { %6126 = vmatprep.subr.bf16.mxu0 %v8483_v21  ;;  %v8561_v21 = vld [vmem:[%s11879_s1 + $0xdb4] ss:$72 sps:$4 sm:$0xff]  }
 0x22f   :  { %6041 = vmatpush1.bf16.msra.mxu1 %v8478_v22  ;;  %v8556_v22 = vld [vmem:[%s11879_s1 + $0x16a8] ss:$72 sps:$4 sm:$0xff]  }
 0x230   :  { %6127 = vmatpush1.bf16.msra.mxu0 %v8481_v6  ;;  %6042 = vmatprep.subr.bf16.mxu1 %v8486_v48  ;;  %v8559_v6 = vld [vmem:[%s11879_s1 + $0xdb0] ss:$72 sps:$4 sm:$0xff]   ;;  %v8564_v48 = vld [vmem:[%s11879_s1 + $0x173c] ss:$72 sps:$4 sm:$0xff]  }
 0x231   :  { %6128 = vmatprep.subr.bf16.mxu0 %v8489_v49  ;;  %v8567_v49 = vld [vmem:[%s11879_s1 + $0xe44] ss:$72 sps:$4 sm:$0xff]  }
 0x233   :  { %6043 = vmatpush1.bf16.msra.mxu1 %v8484_v33  ;;  %v8562_v33 = vld [vmem:[%s11879_s1 + $0x1738] ss:$72 sps:$4 sm:$0xff]  }
 0x234   :  { %6129 = vmatpush1.bf16.msra.mxu0 %v8487_v42  ;;  %6044 = vmatprep.subr.bf16.mxu1 %v8492_v24  ;;  %v8565_v42 = vld [vmem:[%s11879_s1 + $0xe40] ss:$72 sps:$4 sm:$0xff]   ;;  %v8570_v24 = vld [vmem:[%s11879_s1 + $0x17cc] ss:$72 sps:$4 sm:$0xff]  }
 0x235   :  { %6130 = vmatprep.subr.bf16.mxu0 %v8495_v25  ;;  %v8573_v25 = vld [vmem:[%s11879_s1 + $0xed4] ss:$72 sps:$4 sm:$0xff]  }
 0x237   :  { %6045 = vmatpush1.bf16.msra.mxu1 %v8490_v26  ;;  %v8568_v26 = vld [vmem:[%s11879_s1 + $0x17c8] ss:$72 sps:$4 sm:$0xff]  }
 0x238   :  { %6131 = vmatpush1.bf16.msra.mxu0 %v8493_v28  ;;  %6046 = vmatprep.subr.bf16.mxu1 %v8498_v63  ;;  %v8571_v28 = vld [vmem:[%s11879_s1 + $0xed0] ss:$72 sps:$4 sm:$0xff]   ;;  %v8576_v63 = vld [vmem:[%s11879_s1 + $0x185c] ss:$72 sps:$4 sm:$0xff]  }
 0x239   :  { %6132 = vmatprep.subr.bf16.mxu0 %v8501_v3  ;;  %v8579_v3 = vld [vmem:[%s11879_s1 + $0xf64] ss:$72 sps:$4 sm:$0xff]  }
 0x23b   :  { %6047 = vmatpush1.bf16.msra.mxu1 %v8496_v29  ;;  %v8574_v29 = vld [vmem:[%s11879_s1 + $0x1858] ss:$72 sps:$4 sm:$0xff]  }
 0x23c   :  { %6133 = vmatpush1.bf16.msra.mxu0 %v8499_v30  ;;  %6048 = vmatprep.subr.bf16.mxu1 %v8504_v31  ;;  %v8577_v30 = vld [vmem:[%s11879_s1 + $0xf60] ss:$72 sps:$4 sm:$0xff]   ;;  %v8582_v31 = vld [vmem:[%s11879_s1 + $0x18ec] ss:$72 sps:$4 sm:$0xff]  }
 0x23d   :  { %6134 = vmatprep.subr.bf16.mxu0 %v8507_v35  ;;  %v8585_v35 = vld [vmem:[%s11879_s1 + $0xff4] ss:$72 sps:$4 sm:$0xff]  }
 0x23f   :  { %6049 = vmatpush1.bf16.msra.mxu1 %v8502_v36  ;;  %v8580_v36 = vld [vmem:[%s11879_s1 + $0x18e8] ss:$72 sps:$4 sm:$0xff]  }
 0x240   :  { %6135 = vmatpush1.bf16.msra.mxu0 %v8505_v23  ;;  %6061 = vmatprep.subr.bf16.mxu1 %v8510_v37  ;;  %v8583_v23 = vld [vmem:[%s11879_s1 + $0xff0] ss:$72 sps:$4 sm:$0xff]   ;;  %v8588_v37 = vld [vmem:[%s11879_s1 + $0x197c] ss:$72 sps:$4 sm:$0xff]  }
 0x241   :  { %6147 = vmatprep.subr.bf16.mxu0 %v8513_v39  ;;  %v8591_v39 = vld [vmem:[%s11879_s1 + $0x1084] ss:$72 sps:$4 sm:$0xff]  }
 0x242   :  { %6051 = vmatmul.mubr.bf16.vlgmr.msra.gmra.mrb[12].mxu1 %v10909_v51 }
 0x243   :  { %6137 = vmatmul.mubr.bf16.vlgmr.msra.gmra.mrb[12].mxu0 %v10695_v11  ;;  %6062 = vmatpush1.bf16.msra.mxu1 %v8508_v40  ;;  %v8586_v40 = vld [vmem:[%s11879_s1 + $0x1978] ss:$72 sps:$4 sm:$0xff]  }
 0x244   :  { %6148 = vmatpush1.bf16.msra.mxu0 %v8511_v44  ;;  %6063 = vmatprep.subr.bf16.mxu1 %v8516_v46  ;;  %v8589_v44 = vld [vmem:[%s11879_s1 + $0x1080] ss:$72 sps:$4 sm:$0xff]   ;;  %v8594_v46 = vld [vmem:[%s11879_s1 + $0x1a0c] ss:$72 sps:$4 sm:$0xff]  }
 0x245   :  { %6149 = vmatprep.subr.bf16.mxu0 %v8519_v47  ;;  %6093 = vmatprep.mubr.bf16.mxu1 %v10928_v56  ;;  %v8597_v47 = vld [vmem:[%s11879_s1 + $0x1114] ss:$72 sps:$4 sm:$0xff]  }
 0x246   :  { %6179 = vmatprep.mubr.bf16.mxu0 %v10934_v57 }
 0x247   :  { %6064 = vmatpush1.bf16.msra.mxu1 %v8514_v52  ;;  %v8592_v52 = vld [vmem:[%s11879_s1 + $0x1a08] ss:$72 sps:$4 sm:$0xff]  }
 0x248   :  { %6150 = vmatpush1.bf16.msra.mxu0 %v8517_v53  ;;  %6065 = vmatprep.subr.bf16.mxu1 %v8522_v54  ;;  %v8595_v53 = vld [vmem:[%s11879_s1 + $0x1110] ss:$72 sps:$4 sm:$0xff]   ;;  %v8600_v54 = vld [vmem:[%s11879_s1 + $0x1a9c] ss:$72 sps:$4 sm:$0xff]  }
 0x249   :  { %6151 = vmatprep.subr.bf16.mxu0 %v8525_v55  ;;  %v8603_v55 = vld [vmem:[%s11879_s1 + $0x11a4] ss:$72 sps:$4 sm:$0xff]  }
 0x24b   :  { %6066 = vmatpush1.bf16.msra.mxu1 %v8520_v59  ;;  %v8598_v59 = vld [vmem:[%s11879_s1 + $0x1a98] ss:$72 sps:$4 sm:$0xff]  }
 0x24c   :  { %6152 = vmatpush1.bf16.msra.mxu0 %v8523_v60  ;;  %6067 = vmatprep.subr.bf16.mxu1 %v8528_v61  ;;  %v8601_v60 = vld [vmem:[%s11879_s1 + $0x11a0] ss:$72 sps:$4 sm:$0xff]   ;;  %v8606_v61 = vld [vmem:[%s11879_s1 + $0x1234] ss:$72 sps:$4 sm:$0xff]  }
 0x24d   :  { %6153 = vmatprep.subr.bf16.mxu0 %v8531_v27  ;;  %v8609_v27 = vld [vmem:[%s11879_s1 + $0x3c] ss:$72 sps:$4 sm:$0xff]  }
 0x24f   :  { %6068 = vmatpush1.bf16.msra.mxu1 %v8526_v0  ;;  %v8604_v0 = vld [vmem:[%s11879_s1 + $0x1230] ss:$72 sps:$4 sm:$0xff]  }
 0x250   :  { %6154 = vmatpush1.bf16.msra.mxu0 %v8529_v41  ;;  %6069 = vmatprep.subr.bf16.mxu1 %v8534_v45  ;;  %v8607_v41 = vld [vmem:[%s11879_s1 + $0x38] ss:$72 sps:$4 sm:$0xff]   ;;  %v8612_v45 = vld [vmem:[%s11879_s1 + $0x12c4] ss:$72 sps:$4 sm:$0xff]  }
 0x251   :  { %6155 = vmatprep.subr.bf16.mxu0 %v8537_v1  ;;  %v8615_v1 = vld [vmem:[%s11879_s1 + $0xcc] ss:$72 sps:$4 sm:$0xff]  }
 0x253   :  { %6070 = vmatpush1.bf16.msra.mxu1 %v8532_v2  ;;  %v11120_v2 = vld [vmem:[%s11880_s0 + $0x10] ss:$24 sps:$4 sm:$0xff]  }
 0x254   :  { %6156 = vmatpush1.bf16.msra.mxu0 %v8535_v58  ;;  %6071 = vmatprep.subr.bf16.mxu1 %v8540_v4  ;;  %v8610_v58 = vld [vmem:[%s11879_s1 + $0x12c0] ss:$72 sps:$4 sm:$0xff]  }
 0x255   :  { %6157 = vmatprep.subr.bf16.mxu0 %v8543_v5  ;;  %v8613_v4 = vld [vmem:[%s11879_s1 + $0xc8] ss:$72 sps:$4 sm:$0xff]   ;;  %v8618_v5 = vld [vmem:[%s11879_s1 + $0x1354] ss:$72 sps:$4 sm:$0xff]  }
 0x257   :  { %6072 = vmatpush1.bf16.msra.mxu1 %v8538_v62  ;;  %v8621_v62 = vld [vmem:[%s11879_s1 + $0x15c] ss:$72 sps:$4 sm:$0xff]  }
 0x258   :  { %6158 = vmatpush1.bf16.msra.mxu0 %v8541_v50  ;;  %6073 = vmatprep.subr.bf16.mxu1 %v8546_v8  ;;  %v11140_v50 = vld [vmem:[%s11880_s0 + $0x4] ss:$24 sps:$4 sm:$0xff]   ;;  %v8616_v8 = vld [vmem:[%s11879_s1 + $0x1350] ss:$72 sps:$4 sm:$0xff]  }
 0x259   :  { %6159 = vmatprep.subr.bf16.mxu0 %v8549_v9  ;;  %v8619_v9 = vld [vmem:[%s11879_s1 + $0x158] ss:$72 sps:$4 sm:$0xff]  }
 0x25b   :  { %6074 = vmatpush1.bf16.msra.mxu1 %v8544_v10  ;;  %v8624_v10 = vld [vmem:[%s11879_s1 + $0x13e4] ss:$72 sps:$4 sm:$0xff]  }
 0x25c   :  { %6160 = vmatpush1.bf16.msra.mxu0 %v8547_v12  ;;  %6075 = vmatprep.subr.bf16.mxu1 %v8552_v14  ;;  %v8627_v12 = vld [vmem:[%s11879_s1 + $0x1ec] ss:$72 sps:$4 sm:$0xff]   ;;  %v8622_v14 = vld [vmem:[%s11879_s1 + $0x13e0] ss:$72 sps:$4 sm:$0xff]  }
 0x25d   :  { %6161 = vmatprep.subr.bf16.mxu0 %v8555_v15  ;;  %v8625_v15 = vld [vmem:[%s11879_s1 + $0x1e8] ss:$72 sps:$4 sm:$0xff]  }
 0x25f   :  { %6076 = vmatpush1.bf16.msra.mxu1 %v8550_v17  ;;  %v8630_v17 = vld [vmem:[%s11879_s1 + $0x1474] ss:$72 sps:$4 sm:$0xff]  }
 0x260   :  { %6162 = vmatpush1.bf16.msra.mxu0 %v8553_v18  ;;  %6077 = vmatprep.subr.bf16.mxu1 %v8558_v20  ;;  %v8633_v18 = vld [vmem:[%s11879_s1 + $0x27c] ss:$72 sps:$4 sm:$0xff]   ;;  %v916_v20 = vsub.s32 6, %v10052_v34 }
 0x261   :  { %6163 = vmatprep.subr.bf16.mxu0 %v8561_v21  ;;  %v8628_v21 = vld [vmem:[%s11879_s1 + $0x1470] ss:$72 sps:$4 sm:$0xff]  }
 0x263   :  { %6078 = vmatpush1.bf16.msra.mxu1 %v8556_v22  ;;  %v8631_v22 = vld [vmem:[%s11879_s1 + $0x278] ss:$72 sps:$4 sm:$0xff]  }
 0x264   :  { %6164 = vmatpush1.bf16.msra.mxu0 %v8559_v6  ;;  %6079 = vmatprep.subr.bf16.mxu1 %v8564_v48  ;;  %v920_v6 = vsub.s32 7, %v10052_v34  ;;  %v8636_v48 = vld [vmem:[%s11879_s1 + $0x1504] ss:$72 sps:$4 sm:$0xff]   ;;  %v886_v34 = vld [vmem:[%s11881_s2 + $0x10] sm:$0x3] }
 0x265   :  { %6165 = vmatprep.subr.bf16.mxu0 %v8567_v49  ;;  %v8639_v49 = vld [vmem:[%s11879_s1 + $0x30c] ss:$72 sps:$4 sm:$0xff]  }
 0x267   :  { %6080 = vmatpush1.bf16.msra.mxu1 %v8562_v33  ;;  %v917_v33 = vrot.slane %v10533_v19, %v916_v20 }
 0x268   :  { %6166 = vmatpush1.bf16.msra.mxu0 %v8565_v42  ;;  %6081 = vmatprep.subr.bf16.mxu1 %v8570_v24  ;;  %v921_v42 = vrot.slane %v10533_v19, %v920_v6  ;;  %v8634_v24 = vld [vmem:[%s11879_s1 + $0x1500] ss:$72 sps:$4 sm:$0xff]  }
 0x269   :  { %6167 = vmatprep.subr.bf16.mxu0 %v8573_v25  ;;  %v8637_v25 = vld [vmem:[%s11879_s1 + $0x308] ss:$72 sps:$4 sm:$0xff]  }
 0x26b   :  { %6082 = vmatpush1.bf16.msra.mxu1 %v8568_v26  ;;  %v8642_v26 = vld [vmem:[%s11879_s1 + $0x1594] ss:$72 sps:$4 sm:$0xff]  }
 0x26c   :  { %6168 = vmatpush1.bf16.msra.mxu0 %v8571_v28  ;;  %6083 = vmatprep.subr.bf16.mxu1 %v8576_v63  ;;  %v8645_v28 = vld [vmem:[%s11879_s1 + $0x39c] ss:$72 sps:$4 sm:$0xff]  }
 0x26d   :  { %6169 = vmatprep.subr.bf16.mxu0 %v8579_v3 }
 0x26f   :  { %6084 = vmatpush1.bf16.msra.mxu1 %v8574_v29 }
 0x270   :  { %6170 = vmatpush1.bf16.msra.mxu0 %v8577_v30  ;;  %6085 = vmatprep.subr.bf16.mxu1 %v8582_v31  ;;  %v8640_v31 = vld [vmem:[%s11879_s1 + $0x1590] ss:$72 sps:$4 sm:$0xff]  }
 0x271   :  { %6171 = vmatprep.subr.bf16.mxu0 %v8585_v35  ;;  %v8643_v35 = vld [vmem:[%s11879_s1 + $0x398] ss:$72 sps:$4 sm:$0xff]  }
 0x273   :  { %6086 = vmatpush1.bf16.msra.mxu1 %v8580_v36 }
 0x274   :  { %6172 = vmatpush1.bf16.msra.mxu0 %v8583_v23  ;;  %6087 = vmatprep.subr.bf16.mxu1 %v8588_v37  ;;  %v8648_v37 = vld [vmem:[%s11879_s1 + $0x1624] ss:$72 sps:$4 sm:$0xff]  }
 0x275   :  { %6173 = vmatprep.subr.bf16.mxu0 %v8591_v39  ;;  %v8651_v39 = vld [vmem:[%s11879_s1 + $0x42c] ss:$72 sps:$4 sm:$0xff]  }
 0x277   :  { %6088 = vmatpush1.bf16.msra.mxu1 %v8586_v40 }
 0x278   :  { %6174 = vmatpush1.bf16.msra.mxu0 %v8589_v44  ;;  %6089 = vmatprep.subr.bf16.mxu1 %v8594_v46 }
 0x279   :  { %6175 = vmatprep.subr.bf16.mxu0 %v8597_v47  ;;  %v8646_v47 = vld [vmem:[%s11879_s1 + $0x1620] ss:$72 sps:$4 sm:$0xff]  }
 0x27b   :  { %6090 = vmatpush1.bf16.msra.mxu1 %v8592_v52  ;;  %v8649_v52 = vld [vmem:[%s11879_s1 + $0x428] ss:$72 sps:$4 sm:$0xff]  }
 0x27c   :  { %6176 = vmatpush1.bf16.msra.mxu0 %v8595_v53  ;;  %6091 = vmatprep.subr.bf16.mxu1 %v8600_v54  ;;  %v8654_v53 = vld [vmem:[%s11879_s1 + $0x16b4] ss:$72 sps:$4 sm:$0xff]  }
 0x27d   :  { %6177 = vmatprep.subr.bf16.mxu0 %v8603_v55  ;;  %v8657_v54 = vld [vmem:[%s11879_s1 + $0x4bc] ss:$72 sps:$4 sm:$0xff]   ;;  %v8652_v55 = vld [vmem:[%s11879_s1 + $0x16b0] ss:$72 sps:$4 sm:$0xff]  }
 0x27f   :  { %6092 = vmatpush1.bf16.msra.mxu1 %v8598_v59  ;;  %v8655_v59 = vld [vmem:[%s11879_s1 + $0x4b8] ss:$72 sps:$4 sm:$0xff]  }
 0x280   :  { %6178 = vmatpush1.bf16.msra.mxu0 %v8601_v60  ;;  %6233 = vmatprep.subr.bf16.mxu1 %v8609_v27  ;;  %v8660_v60 = vld [vmem:[%s11879_s1 + $0x1744] ss:$72 sps:$4 sm:$0xff]   ;;  %v8658_v27 = vld [vmem:[%s11879_s1 + $0x1740] ss:$72 sps:$4 sm:$0xff]  }
 0x281   :  { %6190 = vmatprep.subr.bf16.mxu0 %v8606_v61  ;;  %v8663_v61 = vld [vmem:[%s11879_s1 + $0x54c] ss:$72 sps:$4 sm:$0xff]  }
 0x282   :  { %6094 = vmatmul.mubr.bf16.vlgmr.msra.gmra.mrb[12].mxu1 %v11120_v2 }
 0x283   :  { %6180 = vmatmul.mubr.bf16.vlgmr.msra.gmra.mrb[12].mxu0 %v10909_v51  ;;  %6234 = vmatpush1.bf16.msra.mxu1 %v8607_v41  ;;  %v8666_v41 = vld [vmem:[%s11879_s1 + $0x17d4] ss:$72 sps:$4 sm:$0xff]  }
 0x284   :  { %6191 = vmatpush1.bf16.msra.mxu0 %v8604_v0  ;;  %6235 = vmatprep.subr.bf16.mxu1 %v8615_v1  ;;  %v8661_v0 = vld [vmem:[%s11879_s1 + $0x548] ss:$72 sps:$4 sm:$0xff]  }
 0x285   :  { %6192 = vmatprep.subr.bf16.mxu0 %v8612_v45  ;;  %6222 = vmatprep.mubr.bf16.mxu0 %v10928_v56  ;;  %v8669_v45 = vld [vmem:[%s11879_s1 + $0x5dc] ss:$72 sps:$4 sm:$0xff]   ;;  %v8664_v1 = vld [vmem:[%s11879_s1 + $0x17d0] ss:$72 sps:$4 sm:$0xff]  }
 0x286   :  { %6265 = vmatprep.mubr.bf16.mxu1 %v11140_v50 }
 0x287   :  { %6236 = vmatpush1.bf16.msra.mxu1 %v8613_v4  ;;  %v8672_v4 = vld [vmem:[%s11879_s1 + $0x1864] ss:$72 sps:$4 sm:$0xff]  }
 0x288   :  { %6193 = vmatpush1.bf16.msra.mxu0 %v8610_v58  ;;  %6237 = vmatprep.subr.bf16.mxu1 %v8621_v62  ;;  %v8667_v58 = vld [vmem:[%s11879_s1 + $0x5d8] ss:$72 sps:$4 sm:$0xff]  }
 0x289   :  { %6194 = vmatprep.subr.bf16.mxu0 %v8618_v5  ;;  %v8675_v5 = vld [vmem:[%s11879_s1 + $0x66c] ss:$72 sps:$4 sm:$0xff]   ;;  %v8670_v62 = vld [vmem:[%s11879_s1 + $0x1860] ss:$72 sps:$4 sm:$0xff]  }
 0x28b   :  { %6238 = vmatpush1.bf16.msra.mxu1 %v8619_v9  ;;  %v8678_v9 = vld [vmem:[%s11879_s1 + $0x18f4] ss:$72 sps:$4 sm:$0xff]  }
 0x28c   :  { %6195 = vmatpush1.bf16.msra.mxu0 %v8616_v8  ;;  %6239 = vmatprep.subr.bf16.mxu1 %v8627_v12  ;;  %v8673_v8 = vld [vmem:[%s11879_s1 + $0x668] ss:$72 sps:$4 sm:$0xff]  }
 0x28d   :  { %6196 = vmatprep.subr.bf16.mxu0 %v8624_v10  ;;  %v8681_v10 = vld [vmem:[%s11879_s1 + $0x6fc] ss:$72 sps:$4 sm:$0xff]   ;;  %v8676_v12 = vld [vmem:[%s11879_s1 + $0x18f0] ss:$72 sps:$4 sm:$0xff]  }
 0x28f   :  { %6240 = vmatpush1.bf16.msra.mxu1 %v8625_v15  ;;  %v8684_v15 = vld [vmem:[%s11879_s1 + $0x1984] ss:$72 sps:$4 sm:$0xff]  }
 0x290   :  { %6197 = vmatpush1.bf16.msra.mxu0 %v8622_v14  ;;  %6241 = vmatprep.subr.bf16.mxu1 %v8633_v18  ;;  %v8679_v14 = vld [vmem:[%s11879_s1 + $0x6f8] ss:$72 sps:$4 sm:$0xff]  }
 0x291   :  { %6198 = vmatprep.subr.bf16.mxu0 %v8630_v17  ;;  %v8687_v17 = vld [vmem:[%s11879_s1 + $0x78c] ss:$72 sps:$4 sm:$0xff]   ;;  %v8682_v18 = vld [vmem:[%s11879_s1 + $0x1980] ss:$72 sps:$4 sm:$0xff]  }
 0x293   :  { %6242 = vmatpush1.bf16.msra.mxu1 %v8631_v22  ;;  %v8690_v22 = vld [vmem:[%s11879_s1 + $0x1a14] ss:$72 sps:$4 sm:$0xff]  }
 0x294   :  { %6199 = vmatpush1.bf16.msra.mxu0 %v8628_v21  ;;  %6243 = vmatprep.subr.bf16.mxu1 %v8639_v49  ;;  %v8685_v21 = vld [vmem:[%s11879_s1 + $0x788] ss:$72 sps:$4 sm:$0xff]  }
 0x295   :  { %6200 = vmatprep.subr.bf16.mxu0 %v8636_v48  ;;  %v5837_v63 = vpop.f32.mrb[8].mxu1  ;;  %v8693_v48 = vld [vmem:[%s11879_s1 + $0x81c] ss:$72 sps:$4 sm:$0xff]   ;;  %v8688_v49 = vld [vmem:[%s11879_s1 + $0x1a10] ss:$72 sps:$4 sm:$0xff]  }
 0x296   :  { %v7543_v19 = vadd.f32 %v5837_v63, %v917_v33  ;;  %v5839_v3 = vpop.f32.mrb[9].mxu1  ;;  %v8705_v63 = vld [vmem:[%s11879_s1 + $0x44] ss:$72 sps:$4 sm:$0xff]  }
 0x297   :  { %v7544_v29 = vadd.f32 %v5839_v3, %v921_v42  ;;  %v5841_v30 = vpop.f32.mrb[10].mxu1  ;;  %6244 = vmatpush1.bf16.msra.mxu1 %v8637_v25  ;;  %v8694_v25 = vld [vmem:[%s11879_s1 + $0x1aa0] ss:$72 sps:$4 sm:$0xff]  }
 0x298   :  { %6201 = vmatpush1.bf16.msra.mxu0 %v8634_v24  ;;  %v7545_v36 = vadd.f32 %v5841_v30, %v917_v33  ;;  %v5843_v23 = vpop.f32.mrb[11].mxu1  ;;  %6245 = vmatprep.subr.bf16.mxu1 %v8645_v28  ;;  %v8691_v33 = vld [vmem:[%s11879_s1 + $0x818] ss:$72 sps:$4 sm:$0xff]   ;;  %v8699_v24 = vld [vmem:[%s11879_s1 + $0x8ac] ss:$72 sps:$4 sm:$0xff]  }
 0x299   :  { %6202 = vmatprep.subr.bf16.mxu0 %v8642_v26  ;;  %v7512_v40 = vpack.c.bf16 %v7544_v29, %v7543_v19  ;;  %v7546_v44 = vadd.f32 %v5843_v23, %v921_v42  ;;  %v8696_v42 = vld [vmem:[%s11879_s1 + $0x1aa4] ss:$72 sps:$4 sm:$0xff]   ;;  %v8697_v26 = vld [vmem:[%s11879_s1 + $0x8a8] ss:$72 sps:$4 sm:$0xff]   ;;  %v8700_v19 = vld [vmem:[%s11879_s1 + $0x938] ss:$72 sps:$4 sm:$0xff]  }
 0x29a   :  { %v8702_v28 = vld [vmem:[%s11879_s1 + $0x93c] ss:$72 sps:$4 sm:$0xff]   ;;  %v8703_v3 = vld [vmem:[%s11879_s1 + $0x40] ss:$72 sps:$4 sm:$0xff]   ;;  %v8708_v29 = vld [vmem:[%s11879_s1 + $0x9cc] ss:$72 sps:$4 sm:$0xff]  }
 0x29b   :  { %6602 = vst [vmem:[%s11882_s3 + $0x18] sm:$0xff] %v7512_v40  ;;  %v7521_v46 = vpack.c.bf16 %v7546_v44, %v7545_v36  ;;  %6246 = vmatpush1.bf16.msra.mxu1 %v8643_v35  ;;  %v8711_v30 = vld [vmem:[%s11879_s1 + $0xd4] ss:$72 sps:$4 sm:$0xff]   ;;  %v8709_v35 = vld [vmem:[%s11879_s1 + $0xd0] ss:$72 sps:$4 sm:$0xff]  }
 0x29c   :  { %6203 = vmatpush1.bf16.msra.mxu0 %v8640_v31  ;;  %6247 = vmatprep.subr.bf16.mxu1 %v8651_v39  ;;  %v8706_v31 = vld [vmem:[%s11879_s1 + $0x9c8] ss:$72 sps:$4 sm:$0xff]   ;;  %v8714_v36 = vld [vmem:[%s11879_s1 + $0xa5c] ss:$72 sps:$4 sm:$0xff]   ;;  %v8712_v23 = vld [vmem:[%s11879_s1 + $0xa58] ss:$72 sps:$4 sm:$0xff]  }
 0x29d   :  { %6204 = vmatprep.subr.bf16.mxu0 %v8648_v37  ;;  %6611 = vst [vmem:[%s11882_s3 + $0x60] sm:$0xff] %v7521_v46  ;;  %v8715_v37 = vld [vmem:[%s11879_s1 + $0x160] ss:$72 sps:$4 sm:$0xff]   ;;  %v8720_v39 = vld [vmem:[%s11879_s1 + $0xaec] ss:$72 sps:$4 sm:$0xff]  }
 0x29e   :  { %v8718_v40 = vld [vmem:[%s11879_s1 + $0xae8] ss:$72 sps:$4 sm:$0xff]   ;;  %v8726_v46 = vld [vmem:[%s11879_s1 + $0xb7c] ss:$72 sps:$4 sm:$0xff]  }
 0x29f   :  { %6248 = vmatpush1.bf16.msra.mxu1 %v8649_v52  ;;  %v8721_v44 = vld [vmem:[%s11879_s1 + $0x1f0] ss:$72 sps:$4 sm:$0xff]  }
 0x2a0   :  { %6205 = vmatpush1.bf16.msra.mxu0 %v8646_v47  ;;  %6249 = vmatprep.subr.bf16.mxu1 %v8657_v54  ;;  %v8729_v47 = vld [vmem:[%s11879_s1 + $0x284] ss:$72 sps:$4 sm:$0xff]   ;;  %v8724_v52 = vld [vmem:[%s11879_s1 + $0xb78] ss:$72 sps:$4 sm:$0xff]  }
 0x2a1   :  { %6206 = vmatprep.subr.bf16.mxu0 %v8654_v53  ;;  %v8727_v53 = vld [vmem:[%s11879_s1 + $0x280] ss:$72 sps:$4 sm:$0xff]  }
 0x2a2   :  { %v11386_v54 = vld [vmem:[%s11881_s2 + $0x8] sm:$0xff] }
 0x2a3   :  { %6250 = vmatpush1.bf16.msra.mxu1 %v8655_v59  ;;  %v8735_v59 = vld [vmem:[%s11879_s1 + $0x314] ss:$72 sps:$4 sm:$0xff]  }
 0x2a4   :  { %6207 = vmatpush1.bf16.msra.mxu0 %v8652_v55  ;;  %6251 = vmatprep.subr.bf16.mxu1 %v8663_v61  ;;  %v8732_v55 = vld [vmem:[%s11879_s1 + $0xc0c] ss:$72 sps:$4 sm:$0xff]   ;;  %v929_v61 = vrot.slane %v11386_v54, %v10079_v43 }
 0x2a5   :  { %6208 = vmatprep.subr.bf16.mxu0 %v8660_v60  ;;  %v925_v60 = vrot.slane %v11386_v54, %v10070_v38 }
 0x2a7   :  { %6252 = vmatpush1.bf16.msra.mxu1 %v8661_v0  ;;  %v8733_v0 = vld [vmem:[%s11879_s1 + $0x310] ss:$72 sps:$4 sm:$0xff]  }
 0x2a8   :  { %6209 = vmatpush1.bf16.msra.mxu0 %v8658_v27  ;;  %6253 = vmatprep.subr.bf16.mxu1 %v8669_v45  ;;  %v8730_v27 = vld [vmem:[%s11879_s1 + $0xc08] ss:$72 sps:$4 sm:$0xff]   ;;  %v8741_v45 = vld [vmem:[%s11879_s1 + $0x3a4] ss:$72 sps:$4 sm:$0xff]  }
 0x2a9   :  { %6210 = vmatprep.subr.bf16.mxu0 %v8666_v41  ;;  %v8738_v41 = vld [vmem:[%s11879_s1 + $0xc9c] ss:$72 sps:$4 sm:$0xff]  }
 0x2ab   :  { %6254 = vmatpush1.bf16.msra.mxu1 %v8667_v58 }
 0x2ac   :  { %6211 = vmatpush1.bf16.msra.mxu0 %v8664_v1  ;;  %6255 = vmatprep.subr.bf16.mxu1 %v8675_v5 }
 0x2ad   :  { %6212 = vmatprep.subr.bf16.mxu0 %v8672_v4 }
 0x2af   :  { %6256 = vmatpush1.bf16.msra.mxu1 %v8673_v8  ;;  %v8736_v8 = vld [vmem:[%s11879_s1 + $0xc98] ss:$72 sps:$4 sm:$0xff]  }
 0x2b0   :  { %6213 = vmatpush1.bf16.msra.mxu0 %v8670_v62  ;;  %6257 = vmatprep.subr.bf16.mxu1 %v8681_v10 }
 0x2b1   :  { %6214 = vmatprep.subr.bf16.mxu0 %v8678_v9  ;;  %v8739_v9 = vld [vmem:[%s11879_s1 + $0x3a0] ss:$72 sps:$4 sm:$0xff]  }
 0x2b3   :  { %6258 = vmatpush1.bf16.msra.mxu1 %v8679_v14  ;;  %v8744_v14 = vld [vmem:[%s11879_s1 + $0xd2c] ss:$72 sps:$4 sm:$0xff]  }
 0x2b4   :  { %6215 = vmatpush1.bf16.msra.mxu0 %v8676_v12  ;;  %6259 = vmatprep.subr.bf16.mxu1 %v8687_v17 }
 0x2b5   :  { %6216 = vmatprep.subr.bf16.mxu0 %v8684_v15  ;;  %v8747_v15 = vld [vmem:[%s11879_s1 + $0x434] ss:$72 sps:$4 sm:$0xff]  }
 0x2b7   :  { %6260 = vmatpush1.bf16.msra.mxu1 %v8685_v21 }
 0x2b8   :  { %6217 = vmatpush1.bf16.msra.mxu0 %v8682_v18  ;;  %6261 = vmatprep.subr.bf16.mxu1 %v8693_v48  ;;  %v8745_v48 = vld [vmem:[%s11879_s1 + $0x430] ss:$72 sps:$4 sm:$0xff]  }
 0x2b9   :  { %6218 = vmatprep.subr.bf16.mxu0 %v8690_v22  ;;  %v8742_v22 = vld [vmem:[%s11879_s1 + $0xd28] ss:$72 sps:$4 sm:$0xff]  }
 0x2bb   :  { %6262 = vmatpush1.bf16.msra.mxu1 %v8691_v33  ;;  %v8753_v33 = vld [vmem:[%s11879_s1 + $0x4c4] ss:$72 sps:$4 sm:$0xff]  }
 0x2bc   :  { %6219 = vmatpush1.bf16.msra.mxu0 %v8688_v49  ;;  %6263 = vmatprep.subr.bf16.mxu1 %v8699_v24  ;;  %v8750_v49 = vld [vmem:[%s11879_s1 + $0xdbc] ss:$72 sps:$4 sm:$0xff]   ;;  %v8751_v24 = vld [vmem:[%s11879_s1 + $0x4c0] ss:$72 sps:$4 sm:$0xff]  }
 0x2bd   :  { %6220 = vmatprep.subr.bf16.mxu0 %v8696_v42  ;;  %v8748_v42 = vld [vmem:[%s11879_s1 + $0xdb8] ss:$72 sps:$4 sm:$0xff]  }
 0x2bf   :  { %6264 = vmatpush1.bf16.msra.mxu1 %v8697_v26  ;;  %v8759_v26 = vld [vmem:[%s11879_s1 + $0x554] ss:$72 sps:$4 sm:$0xff]  }
 0x2c0   :  { %6221 = vmatpush1.bf16.msra.mxu0 %v8694_v25  ;;  %6276 = vmatprep.subr.bf16.mxu1 %v8702_v28  ;;  %v8756_v25 = vld [vmem:[%s11879_s1 + $0xe4c] ss:$72 sps:$4 sm:$0xff]   ;;  %v8754_v28 = vld [vmem:[%s11879_s1 + $0xe48] ss:$72 sps:$4 sm:$0xff]  }
 0x2c1   :  { %6362 = vmatprep.subr.bf16.mxu0 %v8705_v63  ;;  %v8757_v63 = vld [vmem:[%s11879_s1 + $0x550] ss:$72 sps:$4 sm:$0xff]  }
 0x2c2   :  { %6266 = vmatmul.mubr.bf16.vlgmr.msra.gmra.mrb[16].mxu1 %v10695_v11  ;;  %v8717_v11 = vld [vmem:[%s11879_s1 + $0x164] ss:$72 sps:$4 sm:$0xff]  }
 0x2c3   :  { %6223 = vmatmul.mubr.bf16.vlgmr.msra.gmra.mrb[12].mxu0 %v11120_v2  ;;  %6277 = vmatpush1.bf16.msra.mxu1 %v8700_v19  ;;  %v8762_v19 = vld [vmem:[%s11879_s1 + $0xedc] ss:$72 sps:$4 sm:$0xff]  }
 0x2c4   :  { %6363 = vmatpush1.bf16.msra.mxu0 %v8703_v3  ;;  %6278 = vmatprep.subr.bf16.mxu1 %v8708_v29  ;;  %v8765_v3 = vld [vmem:[%s11879_s1 + $0x5e4] ss:$72 sps:$4 sm:$0xff]   ;;  %v8760_v29 = vld [vmem:[%s11879_s1 + $0xed8] ss:$72 sps:$4 sm:$0xff]  }
 0x2c5   :  { %6364 = vmatprep.subr.bf16.mxu0 %v8711_v30  ;;  %6308 = vmatprep.mubr.bf16.mxu1 %v10934_v57  ;;  %v8763_v30 = vld [vmem:[%s11879_s1 + $0x5e0] ss:$72 sps:$4 sm:$0xff]  }
 0x2c6   :  { %6394 = vmatprep.mubr.bf16.mxu0 %v11140_v50  ;;  %v8723_v50 = vld [vmem:[%s11879_s1 + $0x1f4] ss:$72 sps:$4 sm:$0xff]  }
 0x2c7   :  { %6279 = vmatpush1.bf16.msra.mxu1 %v8706_v31  ;;  %v8768_v31 = vld [vmem:[%s11879_s1 + $0xf6c] ss:$72 sps:$4 sm:$0xff]  }
 0x2c8   :  { %6365 = vmatpush1.bf16.msra.mxu0 %v8709_v35  ;;  %6280 = vmatprep.subr.bf16.mxu1 %v8714_v36  ;;  %v8771_v35 = vld [vmem:[%s11879_s1 + $0x674] ss:$72 sps:$4 sm:$0xff]   ;;  %v8766_v36 = vld [vmem:[%s11879_s1 + $0xf68] ss:$72 sps:$4 sm:$0xff]  }
 0x2c9   :  { %6366 = vmatprep.subr.bf16.mxu0 %v8717_v11  ;;  %v8769_v11 = vld [vmem:[%s11879_s1 + $0x670] ss:$72 sps:$4 sm:$0xff]  }
 0x2cb   :  { %6281 = vmatpush1.bf16.msra.mxu1 %v8712_v23  ;;  %v8774_v23 = vld [vmem:[%s11879_s1 + $0xffc] ss:$72 sps:$4 sm:$0xff]  }
 0x2cc   :  { %6367 = vmatpush1.bf16.msra.mxu0 %v8715_v37  ;;  %6282 = vmatprep.subr.bf16.mxu1 %v8720_v39  ;;  %v8777_v37 = vld [vmem:[%s11879_s1 + $0x704] ss:$72 sps:$4 sm:$0xff]   ;;  %v8772_v39 = vld [vmem:[%s11879_s1 + $0xff8] ss:$72 sps:$4 sm:$0xff]  }
 0x2cd   :  { %6368 = vmatprep.subr.bf16.mxu0 %v8723_v50  ;;  %v8775_v50 = vld [vmem:[%s11879_s1 + $0x700] ss:$72 sps:$4 sm:$0xff]  }
 0x2cf   :  { %6283 = vmatpush1.bf16.msra.mxu1 %v8718_v40  ;;  %v8780_v40 = vld [vmem:[%s11879_s1 + $0x108c] ss:$72 sps:$4 sm:$0xff]  }
 0x2d0   :  { %6369 = vmatpush1.bf16.msra.mxu0 %v8721_v44  ;;  %6284 = vmatprep.subr.bf16.mxu1 %v8726_v46  ;;  %v8783_v44 = vld [vmem:[%s11879_s1 + $0x794] ss:$72 sps:$4 sm:$0xff]   ;;  %v8778_v46 = vld [vmem:[%s11879_s1 + $0x1088] ss:$72 sps:$4 sm:$0xff]  }
 0x2d1   :  { %6370 = vmatprep.subr.bf16.mxu0 %v8729_v47  ;;  %v8781_v47 = vld [vmem:[%s11879_s1 + $0x790] ss:$72 sps:$4 sm:$0xff]  }
 0x2d3   :  { %6285 = vmatpush1.bf16.msra.mxu1 %v8724_v52  ;;  %v8786_v52 = vld [vmem:[%s11879_s1 + $0x111c] ss:$72 sps:$4 sm:$0xff]  }
 0x2d4   :  { %6371 = vmatpush1.bf16.msra.mxu0 %v8727_v53  ;;  %6286 = vmatprep.subr.bf16.mxu1 %v8732_v55  ;;  %v8789_v53 = vld [vmem:[%s11879_s1 + $0x824] ss:$72 sps:$4 sm:$0xff]   ;;  %v8784_v55 = vld [vmem:[%s11879_s1 + $0x1118] ss:$72 sps:$4 sm:$0xff]  }
 0x2d5   :  { %6372 = vmatprep.subr.bf16.mxu0 %v8735_v59  ;;  %v8787_v59 = vld [vmem:[%s11879_s1 + $0x820] ss:$72 sps:$4 sm:$0xff]  }
 0x2d6   :  { %v5966_v1 = vpop.f32.mrb[8].mxu0 }
 0x2d7   :  { %v7547_v58 = vadd.f32 %v5966_v1, %v925_v60  ;;  %v5968_v4 = vpop.f32.mrb[9].mxu0  ;;  %6287 = vmatpush1.bf16.msra.mxu1 %v8730_v27  ;;  %v8790_v27 = vld [vmem:[%s11879_s1 + $0x11a8] ss:$72 sps:$4 sm:$0xff]   ;;  %v8796_v1 = vld [vmem:[%s11879_s1 + $0x1238] ss:$72 sps:$4 sm:$0xff]  }
 0x2d8   :  { %v7548_v5 = vadd.f32 %v5968_v4, %v929_v61  ;;  %v5970_v62 = vpop.f32.mrb[10].mxu0  ;;  %6373 = vmatpush1.bf16.msra.mxu0 %v8733_v0  ;;  %6288 = vmatprep.subr.bf16.mxu1 %v8738_v41  ;;  %v8793_v0 = vld [vmem:[%s11879_s1 + $0x8b0] ss:$72 sps:$4 sm:$0xff]   ;;  %v8798_v41 = vld [vmem:[%s11879_s1 + $0x123c] ss:$72 sps:$4 sm:$0xff]  }
 0x2d9   :  { %v7549_v10 = vadd.f32 %v5970_v62, %v925_v60  ;;  %v5972_v12 = vpop.f32.mrb[11].mxu0  ;;  %6374 = vmatprep.subr.bf16.mxu0 %v8741_v45  ;;  %v8792_v60 = vld [vmem:[%s11879_s1 + $0x11ac] ss:$72 sps:$4 sm:$0xff]   ;;  %v8958_v62 = vld [vmem:[%s11880_s0] ss:$24 sps:$4 sm:$0xff]  }
 0x2da   :  { %v7513_v17 = vpack.c.bf16 %v7548_v5, %v7547_v58  ;;  %v7550_v18 = vadd.f32 %v5972_v12, %v929_v61  ;;  %v8795_v61 = vld [vmem:[%s11879_s1 + $0x8b4] ss:$72 sps:$4 sm:$0xff]   ;;  %v8801_v45 = vld [vmem:[%s11879_s1 + $0x944] ss:$72 sps:$4 sm:$0xff]   ;;  %v8799_v58 = vld [vmem:[%s11879_s1 + $0x940] ss:$72 sps:$4 sm:$0xff]  }
 0x2db   :  { %6289 = vmatpush1.bf16.msra.mxu1 %v8736_v8  ;;  %v8804_v4 = vld [vmem:[%s11879_s1 + $0x12cc] ss:$72 sps:$4 sm:$0xff]   ;;  %v8802_v8 = vld [vmem:[%s11879_s1 + $0x12c8] ss:$72 sps:$4 sm:$0xff]   ;;  %v8808_v12 = vld [vmem:[%s11879_s1 + $0x1358] ss:$72 sps:$4 sm:$0xff]  }
 0x2dc   :  { %6603 = vst [vmem:[%s11882_s3 + $0x20] sm:$0xff] %v7513_v17  ;;  %v7522_v21 = vpack.c.bf16 %v7550_v18, %v7549_v10  ;;  %6375 = vmatpush1.bf16.msra.mxu0 %v8739_v9  ;;  %6290 = vmatprep.subr.bf16.mxu1 %v8744_v14  ;;  %v8807_v5 = vld [vmem:[%s11879_s1 + $0x9d4] ss:$72 sps:$4 sm:$0xff]   ;;  %v8805_v9 = vld [vmem:[%s11879_s1 + $0x9d0] ss:$72 sps:$4 sm:$0xff]  }
 0x2dd   :  { %6376 = vmatprep.subr.bf16.mxu0 %v8747_v15  ;;  %v8813_v10 = vld [vmem:[%s11879_s1 + $0xa64] ss:$72 sps:$4 sm:$0xff]   ;;  %v8811_v14 = vld [vmem:[%s11879_s1 + $0xa60] ss:$72 sps:$4 sm:$0xff]   ;;  %v8817_v17 = vld [vmem:[%s11879_s1 + $0xaf0] ss:$72 sps:$4 sm:$0xff]  }
 0x2de   :  { %6612 = vst [vmem:[%s11882_s3 + $0x68] sm:$0xff] %v7522_v21  ;;  %v8816_v15 = vld [vmem:[%s11879_s1 + $0x13ec] ss:$72 sps:$4 sm:$0xff]   ;;  %v8822_v18 = vld [vmem:[%s11879_s1 + $0x147c] ss:$72 sps:$4 sm:$0xff]  }
 0x2df   :  { %6291 = vmatpush1.bf16.msra.mxu1 %v8742_v22  ;;  %v8825_v21 = vld [vmem:[%s11879_s1 + $0xb84] ss:$72 sps:$4 sm:$0xff]   ;;  %v8820_v22 = vld [vmem:[%s11879_s1 + $0x1478] ss:$72 sps:$4 sm:$0xff]  }
 0x2e0   :  { %6377 = vmatpush1.bf16.msra.mxu0 %v8745_v48  ;;  %6292 = vmatprep.subr.bf16.mxu1 %v8750_v49  ;;  %v8823_v48 = vld [vmem:[%s11879_s1 + $0xb80] ss:$72 sps:$4 sm:$0xff]   ;;  %v8828_v49 = vld [vmem:[%s11879_s1 + $0x150c] ss:$72 sps:$4 sm:$0xff]  }
 0x2e1   :  { %6378 = vmatprep.subr.bf16.mxu0 %v8753_v33  ;;  %v8831_v33 = vld [vmem:[%s11879_s1 + $0xc14] ss:$72 sps:$4 sm:$0xff]  }
 0x2e3   :  { %6293 = vmatpush1.bf16.msra.mxu1 %v8748_v42  ;;  %v8826_v42 = vld [vmem:[%s11879_s1 + $0x1508] ss:$72 sps:$4 sm:$0xff]  }
 0x2e4   :  { %6379 = vmatpush1.bf16.msra.mxu0 %v8751_v24  ;;  %6294 = vmatprep.subr.bf16.mxu1 %v8756_v25  ;;  %v8829_v24 = vld [vmem:[%s11879_s1 + $0xc10] ss:$72 sps:$4 sm:$0xff]   ;;  %v8834_v25 = vld [vmem:[%s11879_s1 + $0x159c] ss:$72 sps:$4 sm:$0xff]  }
 0x2e5   :  { %6380 = vmatprep.subr.bf16.mxu0 %v8759_v26  ;;  %v8837_v26 = vld [vmem:[%s11879_s1 + $0xca4] ss:$72 sps:$4 sm:$0xff]  }
 0x2e7   :  { %6295 = vmatpush1.bf16.msra.mxu1 %v8754_v28  ;;  %v8832_v28 = vld [vmem:[%s11879_s1 + $0x1598] ss:$72 sps:$4 sm:$0xff]  }
 0x2e8   :  { %6381 = vmatpush1.bf16.msra.mxu0 %v8757_v63  ;;  %6296 = vmatprep.subr.bf16.mxu1 %v8762_v19  ;;  %v8835_v63 = vld [vmem:[%s11879_s1 + $0xca0] ss:$72 sps:$4 sm:$0xff]   ;;  %v8840_v19 = vld [vmem:[%s11879_s1 + $0x162c] ss:$72 sps:$4 sm:$0xff]  }
 0x2e9   :  { %6382 = vmatprep.subr.bf16.mxu0 %v8765_v3  ;;  %v8843_v3 = vld [vmem:[%s11879_s1 + $0xd34] ss:$72 sps:$4 sm:$0xff]  }
 0x2eb   :  { %6297 = vmatpush1.bf16.msra.mxu1 %v8760_v29  ;;  %v8838_v29 = vld [vmem:[%s11879_s1 + $0x1628] ss:$72 sps:$4 sm:$0xff]  }
 0x2ec   :  { %6383 = vmatpush1.bf16.msra.mxu0 %v8763_v30  ;;  %6298 = vmatprep.subr.bf16.mxu1 %v8768_v31  ;;  %v8841_v30 = vld [vmem:[%s11879_s1 + $0xd30] ss:$72 sps:$4 sm:$0xff]   ;;  %v8846_v31 = vld [vmem:[%s11879_s1 + $0x16bc] ss:$72 sps:$4 sm:$0xff]  }
 0x2ed   :  { %6384 = vmatprep.subr.bf16.mxu0 %v8771_v35  ;;  %v8849_v35 = vld [vmem:[%s11879_s1 + $0xdc4] ss:$72 sps:$4 sm:$0xff]  }
 0x2ef   :  { %6299 = vmatpush1.bf16.msra.mxu1 %v8766_v36  ;;  %v8844_v36 = vld [vmem:[%s11879_s1 + $0x16b8] ss:$72 sps:$4 sm:$0xff]  }
 0x2f0   :  { %6385 = vmatpush1.bf16.msra.mxu0 %v8769_v11  ;;  %6300 = vmatprep.subr.bf16.mxu1 %v8774_v23  ;;  %v8847_v11 = vld [vmem:[%s11879_s1 + $0xdc0] ss:$72 sps:$4 sm:$0xff]   ;;  %v8852_v23 = vld [vmem:[%s11879_s1 + $0x174c] ss:$72 sps:$4 sm:$0xff]  }
 0x2f1   :  { %6386 = vmatprep.subr.bf16.mxu0 %v8777_v37  ;;  %v8855_v37 = vld [vmem:[%s11879_s1 + $0xe54] ss:$72 sps:$4 sm:$0xff]  }
 0x2f3   :  { %6301 = vmatpush1.bf16.msra.mxu1 %v8772_v39  ;;  %v8850_v39 = vld [vmem:[%s11879_s1 + $0x1748] ss:$72 sps:$4 sm:$0xff]  }
 0x2f4   :  { %6387 = vmatpush1.bf16.msra.mxu0 %v8775_v50  ;;  %6302 = vmatprep.subr.bf16.mxu1 %v8780_v40  ;;  %v8853_v50 = vld [vmem:[%s11879_s1 + $0xe50] ss:$72 sps:$4 sm:$0xff]   ;;  %v8858_v40 = vld [vmem:[%s11879_s1 + $0x17dc] ss:$72 sps:$4 sm:$0xff]  }
 0x2f5   :  { %6388 = vmatprep.subr.bf16.mxu0 %v8783_v44  ;;  %v8861_v44 = vld [vmem:[%s11879_s1 + $0xee4] ss:$72 sps:$4 sm:$0xff]  }
 0x2f7   :  { %6303 = vmatpush1.bf16.msra.mxu1 %v8778_v46  ;;  %v8856_v46 = vld [vmem:[%s11879_s1 + $0x17d8] ss:$72 sps:$4 sm:$0xff]  }
 0x2f8   :  { %6389 = vmatpush1.bf16.msra.mxu0 %v8781_v47  ;;  %6304 = vmatprep.subr.bf16.mxu1 %v8786_v52  ;;  %v8859_v47 = vld [vmem:[%s11879_s1 + $0xee0] ss:$72 sps:$4 sm:$0xff]   ;;  %v8864_v52 = vld [vmem:[%s11879_s1 + $0x186c] ss:$72 sps:$4 sm:$0xff]  }
 0x2f9   :  { %6390 = vmatprep.subr.bf16.mxu0 %v8789_v53  ;;  %v8867_v53 = vld [vmem:[%s11879_s1 + $0xf74] ss:$72 sps:$4 sm:$0xff]  }
 0x2fb   :  { %6305 = vmatpush1.bf16.msra.mxu1 %v8784_v55  ;;  %v8862_v55 = vld [vmem:[%s11879_s1 + $0x1868] ss:$72 sps:$4 sm:$0xff]  }
 0x2fc   :  { %6391 = vmatpush1.bf16.msra.mxu0 %v8787_v59  ;;  %6306 = vmatprep.subr.bf16.mxu1 %v8792_v60  ;;  %v8865_v59 = vld [vmem:[%s11879_s1 + $0xf70] ss:$72 sps:$4 sm:$0xff]   ;;  %v8870_v60 = vld [vmem:[%s11879_s1 + $0x18fc] ss:$72 sps:$4 sm:$0xff]  }
 0x2fd   :  { %6392 = vmatprep.subr.bf16.mxu0 %v8795_v61  ;;  %v8873_v61 = vld [vmem:[%s11879_s1 + $0x1004] ss:$72 sps:$4 sm:$0xff]  }
 0x2ff   :  { %6307 = vmatpush1.bf16.msra.mxu1 %v8790_v27  ;;  %v8868_v27 = vld [vmem:[%s11879_s1 + $0x18f8] ss:$72 sps:$4 sm:$0xff]  }
 0x300   :  { %6393 = vmatpush1.bf16.msra.mxu0 %v8793_v0  ;;  %6319 = vmatprep.subr.bf16.mxu1 %v8798_v41  ;;  %v8871_v0 = vld [vmem:[%s11879_s1 + $0x1000] ss:$72 sps:$4 sm:$0xff]   ;;  %v8876_v41 = vld [vmem:[%s11879_s1 + $0x198c] ss:$72 sps:$4 sm:$0xff]  }
 0x301   :  { %6405 = vmatprep.subr.bf16.mxu0 %v8801_v45  ;;  %v8879_v45 = vld [vmem:[%s11879_s1 + $0x1094] ss:$72 sps:$4 sm:$0xff]  }
 0x302   :  { %6309 = vmatmul.mubr.bf16.vlgmr.msra.gmra.mrb[16].mxu1 %v10909_v51  ;;  %v8810_v51 = vld [vmem:[%s11879_s1 + $0x135c] ss:$72 sps:$4 sm:$0xff]  }
 0x303   :  { %6395 = vmatmul.mubr.bf16.vlgmr.msra.gmra.mrb[16].mxu0 %v8958_v62  ;;  %6320 = vmatpush1.bf16.msra.mxu1 %v8796_v1  ;;  %v8874_v1 = vld [vmem:[%s11879_s1 + $0x1988] ss:$72 sps:$4 sm:$0xff]   ;;  %v8880_v62 = vld [vmem:[%s11879_s1 + $0x1a18] ss:$72 sps:$4 sm:$0xff]  }
 0x304   :  { %6406 = vmatpush1.bf16.msra.mxu0 %v8799_v58  ;;  %6321 = vmatprep.subr.bf16.mxu1 %v8804_v4  ;;  %v8877_v58 = vld [vmem:[%s11879_s1 + $0x1090] ss:$72 sps:$4 sm:$0xff]   ;;  %v8882_v4 = vld [vmem:[%s11879_s1 + $0x1a1c] ss:$72 sps:$4 sm:$0xff]  }
 0x305   :  { %6407 = vmatprep.subr.bf16.mxu0 %v8807_v5  ;;  %6351 = vmatprep.mubr.bf16.mxu1 %v10928_v56  ;;  %v8819_v56 = vld [vmem:[%s11879_s1 + $0xaf4] ss:$72 sps:$4 sm:$0xff]   ;;  %v8885_v5 = vld [vmem:[%s11879_s1 + $0x1124] ss:$72 sps:$4 sm:$0xff]  }
 0x306   :  { %6437 = vmatprep.mubr.bf16.mxu0 %v10934_v57  ;;  %v8814_v57 = vld [vmem:[%s11879_s1 + $0x13e8] ss:$72 sps:$4 sm:$0xff]  }
 0x307   :  { %6322 = vmatpush1.bf16.msra.mxu1 %v8802_v8  ;;  %v8883_v8 = vld [vmem:[%s11879_s1 + $0x1120] ss:$72 sps:$4 sm:$0xff]  }
 0x308   :  { %6408 = vmatpush1.bf16.msra.mxu0 %v8805_v9  ;;  %6323 = vmatprep.subr.bf16.mxu1 %v8810_v51  ;;  %v8888_v9 = vld [vmem:[%s11879_s1 + $0x1aac] ss:$72 sps:$4 sm:$0xff]  }
 0x309   :  { %6409 = vmatprep.subr.bf16.mxu0 %v8813_v10  ;;  %v8891_v51 = vld [vmem:[%s11879_s1 + $0x11b4] ss:$72 sps:$4 sm:$0xff]   ;;  %v8886_v10 = vld [vmem:[%s11879_s1 + $0x1aa8] ss:$72 sps:$4 sm:$0xff]  }
 0x30b   :  { %6324 = vmatpush1.bf16.msra.mxu1 %v8808_v12  ;;  %v8889_v12 = vld [vmem:[%s11879_s1 + $0x11b0] ss:$72 sps:$4 sm:$0xff]  }
 0x30c   :  { %6410 = vmatpush1.bf16.msra.mxu0 %v8811_v14  ;;  %6325 = vmatprep.subr.bf16.mxu1 %v8816_v15  ;;  %v8894_v14 = vld [vmem:[%s11879_s1 + $0x1244] ss:$72 sps:$4 sm:$0xff]   ;;  %v8892_v15 = vld [vmem:[%s11879_s1 + $0x1240] ss:$72 sps:$4 sm:$0xff]  }
 0x30d   :  { %6411 = vmatprep.subr.bf16.mxu0 %v8819_v56  ;;  %v8897_v56 = vld [vmem:[%s11879_s1 + $0x12d4] ss:$72 sps:$4 sm:$0xff]  }
 0x30f   :  { %6326 = vmatpush1.bf16.msra.mxu1 %v8814_v57  ;;  %v8959_v57 = vld [vmem:[%s11880_s0 + $0x8] ss:$24 sps:$4 sm:$0xff]  }
 0x310   :  { %6412 = vmatpush1.bf16.msra.mxu0 %v8817_v17  ;;  %6327 = vmatprep.subr.bf16.mxu1 %v8822_v18  ;;  %v8895_v17 = vld [vmem:[%s11879_s1 + $0x12d0] ss:$72 sps:$4 sm:$0xff]   ;;  %v8960_v18 = vld [vmem:[%s11880_s0 + $0x14] ss:$24 sps:$4 sm:$0xff]  }
 0x311   :  { %6413 = vmatprep.subr.bf16.mxu0 %v8825_v21  ;;  %v8900_v21 = vld [vmem:[%s11879_s1 + $0x1364] ss:$72 sps:$4 sm:$0xff]  }
 0x313   :  { %6328 = vmatpush1.bf16.msra.mxu1 %v8820_v22  ;;  %v8898_v22 = vld [vmem:[%s11879_s1 + $0x1360] ss:$72 sps:$4 sm:$0xff]  }
 0x314   :  { %6414 = vmatpush1.bf16.msra.mxu0 %v8823_v48  ;;  %6329 = vmatprep.subr.bf16.mxu1 %v8828_v49  ;;  %v8903_v48 = vld [vmem:[%s11879_s1 + $0x13f4] ss:$72 sps:$4 sm:$0xff]   ;;  %v8901_v49 = vld [vmem:[%s11879_s1 + $0x13f0] ss:$72 sps:$4 sm:$0xff]  }
 0x315   :  { %6415 = vmatprep.subr.bf16.mxu0 %v8831_v33  ;;  %v8906_v33 = vld [vmem:[%s11879_s1 + $0x1484] ss:$72 sps:$4 sm:$0xff]  }
 0x317   :  { %6330 = vmatpush1.bf16.msra.mxu1 %v8826_v42  ;;  %v8904_v42 = vld [vmem:[%s11879_s1 + $0x1480] ss:$72 sps:$4 sm:$0xff]  }
 0x318   :  { %6416 = vmatpush1.bf16.msra.mxu0 %v8829_v24  ;;  %6331 = vmatprep.subr.bf16.mxu1 %v8834_v25  ;;  %v8909_v24 = vld [vmem:[%s11879_s1 + $0x1514] ss:$72 sps:$4 sm:$0xff]   ;;  %v933_v25 = vrot.slane %v11386_v54, %v900_v13  ;;  %v8910_v13 = vld [vmem:[%s11879_s1 + $0x15a0] ss:$72 sps:$4 sm:$0xff]  }
 0x319   :  { %6417 = vmatprep.subr.bf16.mxu0 %v8837_v26  ;;  %v937_v26 = vrot.slane %v11386_v54, %v904_v16 }
 0x31b   :  { %6332 = vmatpush1.bf16.msra.mxu1 %v8832_v28  ;;  %v8907_v28 = vld [vmem:[%s11879_s1 + $0x1510] ss:$72 sps:$4 sm:$0xff]  }
 0x31c   :  { %6418 = vmatpush1.bf16.msra.mxu0 %v8835_v63  ;;  %6333 = vmatprep.subr.bf16.mxu1 %v8840_v19  ;;  %v8912_v63 = vld [vmem:[%s11879_s1 + $0x15a4] ss:$72 sps:$4 sm:$0xff]  }
 0x31d   :  { %6419 = vmatprep.subr.bf16.mxu0 %v8843_v3 }
 0x31f   :  { %6334 = vmatpush1.bf16.msra.mxu1 %v8838_v29 }
 0x320   :  { %6420 = vmatpush1.bf16.msra.mxu0 %v8841_v30  ;;  %6335 = vmatprep.subr.bf16.mxu1 %v8846_v31 }
 0x321   :  { %6421 = vmatprep.subr.bf16.mxu0 %v8849_v35 }
 0x323   :  { %6336 = vmatpush1.bf16.msra.mxu1 %v8844_v36  ;;  %v8915_v36 = vld [vmem:[%s11879_s1 + $0x1634] ss:$72 sps:$4 sm:$0xff]  }
 0x324   :  { %6422 = vmatpush1.bf16.msra.mxu0 %v8847_v11  ;;  %6337 = vmatprep.subr.bf16.mxu1 %v8852_v23 }
 0x325   :  { %6423 = vmatprep.subr.bf16.mxu0 %v8855_v37 }
 0x327   :  { %6338 = vmatpush1.bf16.msra.mxu1 %v8850_v39  ;;  %v8913_v39 = vld [vmem:[%s11879_s1 + $0x1630] ss:$72 sps:$4 sm:$0xff]  }
 0x328   :  { %6424 = vmatpush1.bf16.msra.mxu0 %v8853_v50  ;;  %6339 = vmatprep.subr.bf16.mxu1 %v8858_v40  ;;  %v8918_v50 = vld [vmem:[%s11879_s1 + $0x16c4] ss:$72 sps:$4 sm:$0xff]   ;;  %v8916_v40 = vld [vmem:[%s11879_s1 + $0x16c0] ss:$72 sps:$4 sm:$0xff]  }
 0x329   :  { %6425 = vmatprep.subr.bf16.mxu0 %v8861_v44  ;;  %v8921_v44 = vld [vmem:[%s11879_s1 + $0x1754] ss:$72 sps:$4 sm:$0xff]  }
 0x32b   :  { %6340 = vmatpush1.bf16.msra.mxu1 %v8856_v46  ;;  %v8919_v46 = vld [vmem:[%s11879_s1 + $0x1750] ss:$72 sps:$4 sm:$0xff]  }
 0x32c   :  { %6426 = vmatpush1.bf16.msra.mxu0 %v8859_v47  ;;  %6341 = vmatprep.subr.bf16.mxu1 %v8864_v52  ;;  %v8924_v47 = vld [vmem:[%s11879_s1 + $0x17e4] ss:$72 sps:$4 sm:$0xff]   ;;  %v8922_v52 = vld [vmem:[%s11879_s1 + $0x17e0] ss:$72 sps:$4 sm:$0xff]  }
 0x32d   :  { %6427 = vmatprep.subr.bf16.mxu0 %v8867_v53  ;;  %v8927_v53 = vld [vmem:[%s11879_s1 + $0x1874] ss:$72 sps:$4 sm:$0xff]  }
 0x32f   :  { %6342 = vmatpush1.bf16.msra.mxu1 %v8862_v55  ;;  %v8925_v55 = vld [vmem:[%s11879_s1 + $0x1870] ss:$72 sps:$4 sm:$0xff]  }
 0x330   :  { %6428 = vmatpush1.bf16.msra.mxu0 %v8865_v59  ;;  %6343 = vmatprep.subr.bf16.mxu1 %v8870_v60  ;;  %v8930_v59 = vld [vmem:[%s11879_s1 + $0x1904] ss:$72 sps:$4 sm:$0xff]   ;;  %v8928_v60 = vld [vmem:[%s11879_s1 + $0x1900] ss:$72 sps:$4 sm:$0xff]  }
 0x331   :  { %6429 = vmatprep.subr.bf16.mxu0 %v8873_v61  ;;  %v8933_v61 = vld [vmem:[%s11879_s1 + $0x1994] ss:$72 sps:$4 sm:$0xff]  }
 0x333   :  { %6344 = vmatpush1.bf16.msra.mxu1 %v8868_v27  ;;  %v8931_v27 = vld [vmem:[%s11879_s1 + $0x1990] ss:$72 sps:$4 sm:$0xff]  }
 0x334   :  { %6430 = vmatpush1.bf16.msra.mxu0 %v8871_v0  ;;  %6345 = vmatprep.subr.bf16.mxu1 %v8876_v41  ;;  %v8936_v0 = vld [vmem:[%s11879_s1 + $0x1a24] ss:$72 sps:$4 sm:$0xff]   ;;  %v8934_v41 = vld [vmem:[%s11879_s1 + $0x1a20] ss:$72 sps:$4 sm:$0xff]  }
 0x335   :  { %6431 = vmatprep.subr.bf16.mxu0 %v8879_v45  ;;  %v8939_v45 = vld [vmem:[%s11879_s1 + $0x1ab4] ss:$72 sps:$4 sm:$0xff]  }
 0x337   :  { %6346 = vmatpush1.bf16.msra.mxu1 %v8874_v1  ;;  %v8937_v1 = vld [vmem:[%s11879_s1 + $0x1ab0] ss:$72 sps:$4 sm:$0xff]  }
 0x338   :  { %6432 = vmatpush1.bf16.msra.mxu0 %v8877_v58  ;;  %6347 = vmatprep.subr.bf16.mxu1 %v8882_v4  ;;  %v941_v58 = vrot.slane %v11386_v54, %v908_v32  ;;  %v945_v4 = vrot.slane %v11386_v54, %v912_v7  ;;  %v949_v32 = vrot.slane %v11386_v54, %v916_v20 }
 0x339   :  { %6433 = vmatprep.subr.bf16.mxu0 %v8885_v5  ;;  %v953_v7 = vrot.slane %v11386_v54, %v920_v6  ;;  %v957_v20 = vrot.slane %v886_v34, %v10070_v38  ;;  %v961_v6 = vrot.slane %v886_v34, %v10079_v43 }
 0x33b   :  { %6348 = vmatpush1.bf16.msra.mxu1 %v8880_v62 }
 0x33c   :  { %6434 = vmatpush1.bf16.msra.mxu0 %v8883_v8  ;;  %6349 = vmatprep.subr.bf16.mxu1 %v8888_v9 }
 0x33d   :  { %6435 = vmatprep.subr.bf16.mxu0 %v8891_v51 }
 0x33f   :  { %6350 = vmatpush1.bf16.msra.mxu1 %v8886_v10 }
 0x340   :  { %6436 = vmatpush1.bf16.msra.mxu0 %v8889_v12 }
 0x341   :  { %6448 = vmatprep.subr.bf16.mxu0 %v8894_v14 }
 0x342   :  { %6352 = vmatmul.mubr.bf16.vlgmr.msra.gmra.mrb[16].mxu1 %v11120_v2 }
 0x343   :  { %6438 = vmatmul.mubr.bf16.vlgmr.msra.gmra.mrb[16].mxu0 %v8959_v57 }
 0x344   :  { %6449 = vmatpush1.bf16.msra.mxu0 %v8892_v15  ;;  %6480 = vmatprep.mubr.bf16.mxu0 %v8960_v18 }
 0x345   :  { %6450 = vmatprep.subr.bf16.mxu0 %v8897_v56 }
 0x348   :  { %6451 = vmatpush1.bf16.msra.mxu0 %v8895_v17 }
 0x349   :  { %6452 = vmatprep.subr.bf16.mxu0 %v8900_v21 }
 0x34c   :  { %6453 = vmatpush1.bf16.msra.mxu0 %v8898_v22 }
 0x34d   :  { %6454 = vmatprep.subr.bf16.mxu0 %v8903_v48 }
 0x350   :  { %6455 = vmatpush1.bf16.msra.mxu0 %v8901_v49 }
 0x351   :  { %6456 = vmatprep.subr.bf16.mxu0 %v8906_v33 }
 0x354   :  { %6457 = vmatpush1.bf16.msra.mxu0 %v8904_v42 }
 0x355   :  { %6458 = vmatprep.subr.bf16.mxu0 %v8909_v24  ;;  %v6095_v19 = vpop.f32.mrb[12].mxu1 }
 0x356   :  { %v7551_v3 = vadd.f32 %v6095_v19, %v933_v25  ;;  %v6097_v29 = vpop.f32.mrb[13].mxu1 }
 0x357   :  { %v7552_v30 = vadd.f32 %v6097_v29, %v937_v26  ;;  %v6099_v31 = vpop.f32.mrb[14].mxu1 }
 0x358   :  { %6459 = vmatpush1.bf16.msra.mxu0 %v8907_v28  ;;  %v7553_v16 = vadd.f32 %v6099_v31, %v933_v25  ;;  %v6101_v35 = vpop.f32.mrb[15].mxu1 }
 0x359   :  { %6460 = vmatprep.subr.bf16.mxu0 %v8912_v63  ;;  %v7514_v11 = vpack.c.bf16 %v7552_v30, %v7551_v3  ;;  %v7554_v23 = vadd.f32 %v6101_v35, %v937_v26 }
 0x35b   :  { %6604 = vst [vmem:[%s11882_s3 + $0x28] sm:$0xff] %v7514_v11  ;;  %v7523_v37 = vpack.c.bf16 %v7554_v23, %v7553_v16 }
 0x35c   :  { %6461 = vmatpush1.bf16.msra.mxu0 %v8910_v13 }
 0x35d   :  { %6462 = vmatprep.subr.bf16.mxu0 %v8915_v36  ;;  %6613 = vst [vmem:[%s11882_s3 + $0x70] sm:$0xff] %v7523_v37 }
 0x360   :  { %6463 = vmatpush1.bf16.msra.mxu0 %v8913_v39 }
 0x361   :  { %6464 = vmatprep.subr.bf16.mxu0 %v8918_v50 }
 0x364   :  { %6465 = vmatpush1.bf16.msra.mxu0 %v8916_v40 }
 0x365   :  { %6466 = vmatprep.subr.bf16.mxu0 %v8921_v44 }
 0x368   :  { %6467 = vmatpush1.bf16.msra.mxu0 %v8919_v46 }
 0x369   :  { %6468 = vmatprep.subr.bf16.mxu0 %v8924_v47 }
 0x36c   :  { %6469 = vmatpush1.bf16.msra.mxu0 %v8922_v52 }
 0x36d   :  { %6470 = vmatprep.subr.bf16.mxu0 %v8927_v53 }
 0x370   :  { %6471 = vmatpush1.bf16.msra.mxu0 %v8925_v55 }
 0x371   :  { %6472 = vmatprep.subr.bf16.mxu0 %v8930_v59 }
 0x374   :  { %6473 = vmatpush1.bf16.msra.mxu0 %v8928_v60 }
 0x375   :  { %6474 = vmatprep.subr.bf16.mxu0 %v8933_v61 }
 0x378   :  { %6475 = vmatpush1.bf16.msra.mxu0 %v8931_v27 }
 0x379   :  { %6476 = vmatprep.subr.bf16.mxu0 %v8936_v0 }
 0x37c   :  { %6477 = vmatpush1.bf16.msra.mxu0 %v8934_v41 }
 0x37d   :  { %6478 = vmatprep.subr.bf16.mxu0 %v8939_v45 }
 0x380   :  { %6479 = vmatpush1.bf16.msra.mxu0 %v8937_v1 }
 0x383   :  { %6481 = vmatmul.mubr.bf16.vlgmr.msra.gmra.mrb[16].mxu0 %v11120_v2 }
 0x396   :  { %v6224_v5 = vpop.f32.mrb[12].mxu0 }
 0x397   :  { %v7555_v62 = vadd.f32 %v6224_v5, %v941_v58  ;;  %v6226_v8 = vpop.f32.mrb[13].mxu0 }
 0x398   :  { %v7556_v9 = vadd.f32 %v6226_v8, %v945_v4  ;;  %v6228_v51 = vpop.f32.mrb[14].mxu0 }
 0x399   :  { %v7557_v10 = vadd.f32 %v6228_v51, %v941_v58  ;;  %v6230_v12 = vpop.f32.mrb[15].mxu0 }
 0x39a   :  { %v7515_v14 = vpack.c.bf16 %v7556_v9, %v7555_v62  ;;  %v7558_v15 = vadd.f32 %v6230_v12, %v945_v4 }
 0x39c   :  { %6605 = vst [vmem:[%s11882_s3 + $0x30] sm:$0xff] %v7515_v14  ;;  %v7524_v2 = vpack.c.bf16 %v7558_v15, %v7557_v10 }
 0x39e   :  { %6614 = vst [vmem:[%s11882_s3 + $0x78] sm:$0xff] %v7524_v2 }
 0x415   :  { %v6353_v56 = vpop.f32.mrb[16].mxu1 }
 0x416   :  { %v7559_v57 = vadd.f32 %v6353_v56, %v949_v32  ;;  %v6355_v17 = vpop.f32.mrb[17].mxu1 }
 0x417   :  { %v7560_v18 = vadd.f32 %v6355_v17, %v953_v7  ;;  %v6357_v21 = vpop.f32.mrb[18].mxu1 }
 0x418   :  { %v7561_v22 = vadd.f32 %v6357_v21, %v949_v32  ;;  %v6359_v48 = vpop.f32.mrb[19].mxu1 }
 0x419   :  { %v7516_v49 = vpack.c.bf16 %v7560_v18, %v7559_v57  ;;  %v7562_v33 = vadd.f32 %v6359_v48, %v953_v7 }
 0x41b   :  { %6606 = vst [vmem:[%s11882_s3 + $0x38] sm:$0xff] %v7516_v49  ;;  %v7525_v42 = vpack.c.bf16 %v7562_v33, %v7561_v22 }
 0x41d   :  { %6615 = vst [vmem:[%s11882_s3 + $0x80] sm:$0xff] %v7525_v42 }
 0x456   :  { %v6482_v54 = vpop.f32.mrb[16].mxu0 }
 0x457   :  { %v7563_v24 = vadd.f32 %v6482_v54, %v957_v20  ;;  %v6484_v25 = vpop.f32.mrb[17].mxu0 }
 0x458   :  { %v7564_v26 = vadd.f32 %v6484_v25, %v961_v6  ;;  %v6486_v28 = vpop.f32.mrb[18].mxu0 }
 0x459   :  { %v7565_v63 = vadd.f32 %v6486_v28, %v957_v20  ;;  %v6488_v19 = vpop.f32.mrb[19].mxu0 }
 0x45a   :  { %v7517_v3 = vpack.c.bf16 %v7564_v26, %v7563_v24  ;;  %v7566_v29 = vadd.f32 %v6488_v19, %v961_v6 }
 0x45c   :  { %6607 = vst [vmem:[%s11882_s3 + $0x40] sm:$0xff] %v7517_v3  ;;  %v7526_v30 = vpack.c.bf16 %v7566_v29, %v7565_v63 }
 0x45e   :  { %6616 = vst [vmem:[%s11882_s3 + $0x88] sm:$0xff] %v7526_v30 }

// kernel: math_classifier_forward.3
= control target key start
LH: loop header
LB: loop body
LE: loop exit
PB: predicated region body
PF: predicated region fallthrough
CT: control target
= control target key end

     0   :  { %v313_v36 = vlaneseq  ;;  %v3694_v37 = vmov 1966171168   ;;  %s4814_s0 = inlined_call_operand.vmem [shape: bf16[2,768], index: 0, kind: input, shape index: {}]   ;;  %s4815_s1 = inlined_call_operand.vmem [shape: bf16[768,768], index: 1, kind: input, shape index: {}]   ;;  %s4816_s2 = inlined_call_operand.vmem [shape: f32[1,768], index: 2, kind: input, shape index: {}]   ;;  %s4817_s3 = inlined_call_operand.vmem [shape: bf16[768,128], index: 3, kind: input, shape index: {}]   ;;  %s4818_s4 = inlined_call_operand.vmem [shape: f32[1,128], index: 4, kind: input, shape index: {}]   ;;  %s4819_s5 = inlined_call_operand.hbm [shape: f32[2,128], index: 5, kind: output, shape index: {}]  }
   0x1   :  { %v3177_v0 = vld [vmem:[%s4815_s1 + $0x4] ss:$24 sps:$4 sm:$0xff]   ;;  %v3181_v2 = vld [vmem:[%s4815_s1] ss:$24 sps:$4 sm:$0xff]   ;;  %v3183_v4 = vld [vmem:[%s4815_s1 + $0x34] ss:$24 sps:$4 sm:$0xff]   ;;  %v346_v38 = vunpack.c.l.s4 %v3694_v37 }
   0x2   :  { %v3179_v1 = vld [vmem:[%s4815_s1 + $0x304] ss:$24 sps:$4 sm:$0xff]   ;;  %1837 = vmatprep.subr.bf16.mxu1 %v3177_v0  ;;  %v3182_v3 = vld [vmem:[%s4815_s1 + $0x300] ss:$24 sps:$4 sm:$0xff]   ;;  %v3185_v5 = vld [vmem:[%s4815_s1 + $0x334] ss:$24 sps:$4 sm:$0xff]  }
   0x3   :  { %1878 = vmatprep.subr.bf16.mxu0 %v3179_v1  ;;  %1838 = vmatpush1.bf16.msra.mxu1 %v3181_v2  ;;  %v3187_v6 = vld [vmem:[%s4815_s1 + $0x30] ss:$24 sps:$4 sm:$0xff]   ;;  %v3189_v8 = vld [vmem:[%s4815_s1 + $0x64] ss:$24 sps:$4 sm:$0xff]   ;;  %v3193_v10 = vld [vmem:[%s4815_s1 + $0x60] ss:$24 sps:$4 sm:$0xff]   ;;  %v347_v43 = vunpack.c.0.s8 %v346_v38 }
   0x4   :  { %1879 = vmatpush1.bf16.msra.mxu0 %v3182_v3  ;;  %1839 = vmatprep.subr.bf16.mxu1 %v3183_v4  ;;  %v3188_v7 = vld [vmem:[%s4815_s1 + $0x330] ss:$24 sps:$4 sm:$0xff]   ;;  %v3191_v9 = vld [vmem:[%s4815_s1 + $0x364] ss:$24 sps:$4 sm:$0xff]   ;;  %v3194_v11 = vld [vmem:[%s4815_s1 + $0x360] ss:$24 sps:$4 sm:$0xff]  }
   0x5   :  { %1880 = vmatprep.subr.bf16.mxu0 %v3185_v5  ;;  %v3195_v12 = vld [vmem:[%s4815_s1 + $0x94] ss:$24 sps:$4 sm:$0xff]   ;;  %v3199_v14 = vld [vmem:[%s4815_s1 + $0x90] ss:$24 sps:$4 sm:$0xff]   ;;  %v3201_v16 = vld [vmem:[%s4815_s1 + $0xc4] ss:$24 sps:$4 sm:$0xff]  }
   0x6   :  { %v3197_v13 = vld [vmem:[%s4815_s1 + $0x394] ss:$24 sps:$4 sm:$0xff]   ;;  %v3200_v15 = vld [vmem:[%s4815_s1 + $0x390] ss:$24 sps:$4 sm:$0xff]   ;;  %v3203_v17 = vld [vmem:[%s4815_s1 + $0x3c4] ss:$24 sps:$4 sm:$0xff]  }
   0x7   :  { %1840 = vmatpush1.bf16.msra.mxu1 %v3187_v6  ;;  %v3205_v18 = vld [vmem:[%s4815_s1 + $0xc0] ss:$24 sps:$4 sm:$0xff]   ;;  %v3207_v20 = vld [vmem:[%s4815_s1 + $0xf4] ss:$24 sps:$4 sm:$0xff]   ;;  %v3211_v22 = vld [vmem:[%s4815_s1 + $0xf0] ss:$24 sps:$4 sm:$0xff]  }
   0x8   :  { %1881 = vmatpush1.bf16.msra.mxu0 %v3188_v7  ;;  %1841 = vmatprep.subr.bf16.mxu1 %v3189_v8  ;;  %v3206_v19 = vld [vmem:[%s4815_s1 + $0x3c0] ss:$24 sps:$4 sm:$0xff]   ;;  %v3209_v21 = vld [vmem:[%s4815_s1 + $0x3f4] ss:$24 sps:$4 sm:$0xff]   ;;  %v3212_v23 = vld [vmem:[%s4815_s1 + $0x3f0] ss:$24 sps:$4 sm:$0xff]  }
   0x9   :  { %1882 = vmatprep.subr.bf16.mxu0 %v3191_v9  ;;  %v3213_v24 = vld [vmem:[%s4815_s1 + $0x124] ss:$24 sps:$4 sm:$0xff]   ;;  %v3217_v26 = vld [vmem:[%s4815_s1 + $0x120] ss:$24 sps:$4 sm:$0xff]   ;;  %v3219_v28 = vld [vmem:[%s4815_s1 + $0x154] ss:$24 sps:$4 sm:$0xff]  }
   0xa   :  { %v3215_v25 = vld [vmem:[%s4815_s1 + $0x424] ss:$24 sps:$4 sm:$0xff]   ;;  %v3218_v27 = vld [vmem:[%s4815_s1 + $0x420] ss:$24 sps:$4 sm:$0xff]   ;;  %v3221_v29 = vld [vmem:[%s4815_s1 + $0x454] ss:$24 sps:$4 sm:$0xff]  }
   0xb   :  { %1842 = vmatpush1.bf16.msra.mxu1 %v3193_v10  ;;  %v3223_v30 = vld [vmem:[%s4815_s1 + $0x150] ss:$24 sps:$4 sm:$0xff]   ;;  %v3225_v32 = vld [vmem:[%s4815_s1 + $0x184] ss:$24 sps:$4 sm:$0xff]   ;;  %v3229_v34 = vld [vmem:[%s4815_s1 + $0x180] ss:$24 sps:$4 sm:$0xff]  }
   0xc   :  { %1883 = vmatpush1.bf16.msra.mxu0 %v3194_v11  ;;  %1843 = vmatprep.subr.bf16.mxu1 %v3195_v12  ;;  %v3224_v31 = vld [vmem:[%s4815_s1 + $0x450] ss:$24 sps:$4 sm:$0xff]   ;;  %v3227_v33 = vld [vmem:[%s4815_s1 + $0x484] ss:$24 sps:$4 sm:$0xff]   ;;  %v3230_v35 = vld [vmem:[%s4815_s1 + $0x480] ss:$24 sps:$4 sm:$0xff]  }
   0xd   :  { %1884 = vmatprep.subr.bf16.mxu0 %v3197_v13  ;;  %v3231_v39 = vld [vmem:[%s4815_s1 + $0x1b4] ss:$24 sps:$4 sm:$0xff]   ;;  %v3235_v41 = vld [vmem:[%s4815_s1 + $0x1b0] ss:$24 sps:$4 sm:$0xff]   ;;  %v3843_v42 = vshrl.u32 %v313_v36, 7 }
   0xe   :  { %v3233_v40 = vld [vmem:[%s4815_s1 + $0x4b4] ss:$24 sps:$4 sm:$0xff]   ;;  %v3236_v44 = vld [vmem:[%s4815_s1 + $0x4b0] ss:$24 sps:$4 sm:$0xff]   ;;  %v3237_v45 = vld [vmem:[%s4815_s1 + $0x1e4] ss:$24 sps:$4 sm:$0xff]  }
   0xf   :  { %1844 = vmatpush1.bf16.msra.mxu1 %v3199_v14  ;;  %v3239_v46 = vld [vmem:[%s4815_s1 + $0x4e4] ss:$24 sps:$4 sm:$0xff]   ;;  %v3241_v47 = vld [vmem:[%s4815_s1 + $0x1e0] ss:$24 sps:$4 sm:$0xff]   ;;  %v3861_v49 = vsub.s32 %v347_v43, %v3843_v42  ;;  %v3243_v50 = vld [vmem:[%s4815_s1 + $0x214] ss:$24 sps:$4 sm:$0xff]  }
  0x10   :  { %1885 = vmatpush1.bf16.msra.mxu0 %v3200_v15  ;;  %1845 = vmatprep.subr.bf16.mxu1 %v3201_v16  ;;  %v3242_v48 = vld [vmem:[%s4815_s1 + $0x4e0] ss:$24 sps:$4 sm:$0xff]   ;;  %v3245_v51 = vld [vmem:[%s4815_s1 + $0x514] ss:$24 sps:$4 sm:$0xff]   ;;  %v3247_v53 = vld [vmem:[%s4815_s1 + $0x210] ss:$24 sps:$4 sm:$0xff]  }
  0x11   :  { %1886 = vmatprep.subr.bf16.mxu0 %v3203_v17  ;;  %v22_v52 = vld [vmem:[%s4814_s0] sm:$0x3f]  ;;  %v3248_v56 = vld [vmem:[%s4815_s1 + $0x510] ss:$24 sps:$4 sm:$0xff]   ;;  %v3255_v1 = vld [vmem:[%s4815_s1 + $0x274] ss:$24 sps:$4 sm:$0xff]  }
  0x12   :  { %v351_v54 = vrot.slane %v22_v52, %v3861_v49  ;;  %v344_v55 = vcombine.high %v22_v52, %v22_v52  ;;  %v3249_v57 = vld [vmem:[%s4815_s1 + $0x244] ss:$24 sps:$4 sm:$0xff]   ;;  %v3253_v61 = vld [vmem:[%s4815_s1 + $0x240] ss:$24 sps:$4 sm:$0xff]   ;;  %v3257_v2 = vld [vmem:[%s4815_s1 + $0x574] ss:$24 sps:$4 sm:$0xff]  }
  0x13   :  { %1846 = vmatpush1.bf16.msra.mxu1 %v3205_v18  ;;  %v3251_v58 = vld [vmem:[%s4815_s1 + $0x544] ss:$24 sps:$4 sm:$0xff]   ;;  %v3254_v0 = vld [vmem:[%s4815_s1 + $0x540] ss:$24 sps:$4 sm:$0xff]   ;;  %v3259_v4 = vld [vmem:[%s4815_s1 + $0x270] ss:$24 sps:$4 sm:$0xff]  }
  0x14   :  { %1887 = vmatpush1.bf16.msra.mxu0 %v3206_v19  ;;  %1847 = vmatprep.subr.bf16.mxu1 %v3207_v20  ;;  %v359_v59 = vcombine.high %v351_v54, %v351_v54  ;;  %v358_v60 = vrot.slane %v344_v55, %v3861_v49  ;;  %v3260_v5 = vld [vmem:[%s4815_s1 + $0x570] ss:$24 sps:$4 sm:$0xff]   ;;  %v3261_v6 = vld [vmem:[%s4815_s1 + $0x2a4] ss:$24 sps:$4 sm:$0xff]   ;;  %v3265_v8 = vld [vmem:[%s4815_s1 + $0x2a0] ss:$24 sps:$4 sm:$0xff]   ;;  %v3938_v13 = vrot.slane %v351_v54, %v3861_v49 }
  0x15   :  { %1888 = vmatprep.subr.bf16.mxu0 %v3209_v21  ;;  %v3263_v7 = vld [vmem:[%s4815_s1 + $0x5a4] ss:$24 sps:$4 sm:$0xff]   ;;  %v3266_v9 = vld [vmem:[%s4815_s1 + $0x5a0] ss:$24 sps:$4 sm:$0xff]   ;;  %v3267_v10 = vld [vmem:[%s4815_s1 + $0x2d4] ss:$24 sps:$4 sm:$0xff]  }
  0x16   :  { %v3890_v62 = vrot.slane %v359_v59, %v3861_v49  ;;  %v3893_v63 = vrot.slane %v358_v60, %v3861_v49  ;;  %v3269_v11 = vld [vmem:[%s4815_s1 + $0x5d4] ss:$24 sps:$4 sm:$0xff]   ;;  %v3271_v12 = vld [vmem:[%s4815_s1 + $0x2d0] ss:$24 sps:$4 sm:$0xff]   ;;  %v3275_v15 = vld [vmem:[%s4815_s1 + $0x604] ss:$24 sps:$4 sm:$0xff]   ;;  %v360_v17 = vcombine.high %v358_v60, %v358_v60  ;;  %v3954_v19 = vcombine.high %v3938_v13, %v3938_v13 }
  0x17   :  { %1848 = vmatpush1.bf16.msra.mxu1 %v3211_v22  ;;  %v3272_v14 = vld [vmem:[%s4815_s1 + $0x5d0] ss:$24 sps:$4 sm:$0xff]   ;;  %v3278_v16 = vld [vmem:[%s4815_s1 + $0xc] ss:$24 sps:$4 sm:$0xff]   ;;  %v3273_v18 = vld [vmem:[%s4815_s1 + $0x600] ss:$24 sps:$4 sm:$0xff]  }
  0x18   :  { %1889 = vmatpush1.bf16.msra.mxu0 %v3212_v23  ;;  %1849 = vmatprep.subr.bf16.mxu1 %v3213_v24  ;;  %v3906_v3 = vcombine.high %v3890_v62, %v3890_v62  ;;  %v3276_v20 = vld [vmem:[%s4815_s1 + $0x8] ss:$24 sps:$4 sm:$0xff]   ;;  %v3281_v21 = vld [vmem:[%s4815_s1 + $0x634] ss:$24 sps:$4 sm:$0xff]   ;;  %v3966_v23 = vrot.slane %v360_v17, %v3861_v49  ;;  %v3311_v43 = vld [vmem:[%s4815_s1 + $0x724] ss:$24 sps:$4 sm:$0xff]  }
  0x19   :  { %1890 = vmatprep.subr.bf16.mxu0 %v3215_v25  ;;  %1869 = vmatprep.mubr.bf16.mxu1 %v3890_v62  ;;  %v3284_v22 = vld [vmem:[%s4815_s1 + $0x3c] ss:$24 sps:$4 sm:$0xff]   ;;  %v3279_v24 = vld [vmem:[%s4815_s1 + $0x630] ss:$24 sps:$4 sm:$0xff]   ;;  %v3297_v36 = vld [vmem:[%s4815_s1 + $0x6c0] ss:$24 sps:$4 sm:$0xff]  }
  0x1a   :  { %1910 = vmatprep.mubr.bf16.mxu0 %v3906_v3  ;;  %v3282_v25 = vld [vmem:[%s4815_s1 + $0x38] ss:$24 sps:$4 sm:$0xff]   ;;  %v3300_v37 = vld [vmem:[%s4815_s1 + $0xc8] ss:$24 sps:$4 sm:$0xff]   ;;  %v3305_v38 = vld [vmem:[%s4815_s1 + $0x6f4] ss:$24 sps:$4 sm:$0xff]  }
  0x1b   :  { %1850 = vmatpush1.bf16.msra.mxu1 %v3217_v26  ;;  %v3287_v26 = vld [vmem:[%s4815_s1 + $0x664] ss:$24 sps:$4 sm:$0xff]   ;;  %v3315_v49 = vld [vmem:[%s4815_s1 + $0x750] ss:$24 sps:$4 sm:$0xff]   ;;  %v3329_v55 = vld [vmem:[%s4815_s1 + $0x7b4] ss:$24 sps:$4 sm:$0xff]  }
  0x1c   :  { %1891 = vmatpush1.bf16.msra.mxu0 %v3218_v27  ;;  %1851 = vmatprep.subr.bf16.mxu1 %v3219_v28  ;;  %v3290_v27 = vld [vmem:[%s4815_s1 + $0x6c] ss:$24 sps:$4 sm:$0xff]   ;;  %v3285_v28 = vld [vmem:[%s4815_s1 + $0x660] ss:$24 sps:$4 sm:$0xff]  }
  0x1d   :  { %1892 = vmatprep.subr.bf16.mxu0 %v3221_v29  ;;  %v3288_v29 = vld [vmem:[%s4815_s1 + $0x68] ss:$24 sps:$4 sm:$0xff]   ;;  %v3326_v52 = vld [vmem:[%s4815_s1 + $0x18c] ss:$24 sps:$4 sm:$0xff]  }
  0x1e   :  { %v3324_v54 = vld [vmem:[%s4815_s1 + $0x188] ss:$24 sps:$4 sm:$0xff]   ;;  %v3335_v59 = vld [vmem:[%s4815_s1 + $0x7e4] ss:$24 sps:$4 sm:$0xff]  }
  0x1f   :  { %1852 = vmatpush1.bf16.msra.mxu1 %v3223_v30  ;;  %v3293_v30 = vld [vmem:[%s4815_s1 + $0x694] ss:$24 sps:$4 sm:$0xff]   ;;  %v3357_v17 = vld [vmem:[%s4815_s1 + $0x8a0] ss:$24 sps:$4 sm:$0xff]  }
  0x20   :  { %1893 = vmatpush1.bf16.msra.mxu0 %v3224_v31  ;;  %1853 = vmatprep.subr.bf16.mxu1 %v3225_v32  ;;  %v3296_v31 = vld [vmem:[%s4815_s1 + $0x9c] ss:$24 sps:$4 sm:$0xff]   ;;  %v3291_v32 = vld [vmem:[%s4815_s1 + $0x690] ss:$24 sps:$4 sm:$0xff]   ;;  %v3338_v60 = vld [vmem:[%s4815_s1 + $0x1ec] ss:$24 sps:$4 sm:$0xff]  }
  0x21   :  { %1894 = vmatprep.subr.bf16.mxu0 %v3227_v33  ;;  %v3294_v33 = vld [vmem:[%s4815_s1 + $0x98] ss:$24 sps:$4 sm:$0xff]  }
  0x23   :  { %1854 = vmatpush1.bf16.msra.mxu1 %v3229_v34  ;;  %v3299_v34 = vld [vmem:[%s4815_s1 + $0x6c4] ss:$24 sps:$4 sm:$0xff]  }
  0x24   :  { %1895 = vmatpush1.bf16.msra.mxu0 %v3230_v35  ;;  %1855 = vmatprep.subr.bf16.mxu1 %v3231_v39  ;;  %v3302_v35 = vld [vmem:[%s4815_s1 + $0xcc] ss:$24 sps:$4 sm:$0xff]   ;;  %v3308_v39 = vld [vmem:[%s4815_s1 + $0xfc] ss:$24 sps:$4 sm:$0xff]  }
  0x25   :  { %1896 = vmatprep.subr.bf16.mxu0 %v3233_v40  ;;  %v3303_v40 = vld [vmem:[%s4815_s1 + $0x6f0] ss:$24 sps:$4 sm:$0xff]  }
  0x27   :  { %1856 = vmatpush1.bf16.msra.mxu1 %v3235_v41  ;;  %v3306_v41 = vld [vmem:[%s4815_s1 + $0xf8] ss:$24 sps:$4 sm:$0xff]  }
  0x28   :  { %1897 = vmatpush1.bf16.msra.mxu0 %v3236_v44  ;;  %1857 = vmatprep.subr.bf16.mxu1 %v3237_v45  ;;  %v3314_v44 = vld [vmem:[%s4815_s1 + $0x12c] ss:$24 sps:$4 sm:$0xff]   ;;  %v3309_v45 = vld [vmem:[%s4815_s1 + $0x720] ss:$24 sps:$4 sm:$0xff]  }
  0x29   :  { %1898 = vmatprep.subr.bf16.mxu0 %v3239_v46  ;;  %v3312_v46 = vld [vmem:[%s4815_s1 + $0x128] ss:$24 sps:$4 sm:$0xff]  }
  0x2b   :  { %1858 = vmatpush1.bf16.msra.mxu1 %v3241_v47  ;;  %v3317_v47 = vld [vmem:[%s4815_s1 + $0x754] ss:$24 sps:$4 sm:$0xff]  }
  0x2c   :  { %1899 = vmatpush1.bf16.msra.mxu0 %v3242_v48  ;;  %1859 = vmatprep.subr.bf16.mxu1 %v3243_v50  ;;  %v3320_v48 = vld [vmem:[%s4815_s1 + $0x15c] ss:$24 sps:$4 sm:$0xff]   ;;  %v3318_v50 = vld [vmem:[%s4815_s1 + $0x158] ss:$24 sps:$4 sm:$0xff]  }
  0x2d   :  { %1900 = vmatprep.subr.bf16.mxu0 %v3245_v51  ;;  %v3323_v51 = vld [vmem:[%s4815_s1 + $0x784] ss:$24 sps:$4 sm:$0xff]  }
  0x2f   :  { %1860 = vmatpush1.bf16.msra.mxu1 %v3247_v53  ;;  %v3321_v53 = vld [vmem:[%s4815_s1 + $0x780] ss:$24 sps:$4 sm:$0xff]  }
  0x30   :  { %1901 = vmatpush1.bf16.msra.mxu0 %v3248_v56  ;;  %1861 = vmatprep.subr.bf16.mxu1 %v3249_v57  ;;  %v3332_v56 = vld [vmem:[%s4815_s1 + $0x1bc] ss:$24 sps:$4 sm:$0xff]   ;;  %v3327_v57 = vld [vmem:[%s4815_s1 + $0x7b0] ss:$24 sps:$4 sm:$0xff]  }
  0x31   :  { %1902 = vmatprep.subr.bf16.mxu0 %v3251_v58  ;;  %v3330_v58 = vld [vmem:[%s4815_s1 + $0x1b8] ss:$24 sps:$4 sm:$0xff]  }
  0x33   :  { %1862 = vmatpush1.bf16.msra.mxu1 %v3253_v61  ;;  %v3333_v61 = vld [vmem:[%s4815_s1 + $0x7e0] ss:$24 sps:$4 sm:$0xff]  }
  0x34   :  { %1903 = vmatpush1.bf16.msra.mxu0 %v3254_v0  ;;  %1863 = vmatprep.subr.bf16.mxu1 %v3255_v1  ;;  %v3336_v0 = vld [vmem:[%s4815_s1 + $0x1e8] ss:$24 sps:$4 sm:$0xff]   ;;  %v3341_v1 = vld [vmem:[%s4815_s1 + $0x814] ss:$24 sps:$4 sm:$0xff]  }
  0x35   :  { %1904 = vmatprep.subr.bf16.mxu0 %v3257_v2  ;;  %v3344_v2 = vld [vmem:[%s4815_s1 + $0x21c] ss:$24 sps:$4 sm:$0xff]  }
  0x37   :  { %1864 = vmatpush1.bf16.msra.mxu1 %v3259_v4  ;;  %v3339_v4 = vld [vmem:[%s4815_s1 + $0x810] ss:$24 sps:$4 sm:$0xff]  }
  0x38   :  { %1905 = vmatpush1.bf16.msra.mxu0 %v3260_v5  ;;  %1865 = vmatprep.subr.bf16.mxu1 %v3261_v6  ;;  %v3342_v5 = vld [vmem:[%s4815_s1 + $0x218] ss:$24 sps:$4 sm:$0xff]   ;;  %v3347_v6 = vld [vmem:[%s4815_s1 + $0x844] ss:$24 sps:$4 sm:$0xff]  }
  0x39   :  { %1906 = vmatprep.subr.bf16.mxu0 %v3263_v7  ;;  %v3350_v7 = vld [vmem:[%s4815_s1 + $0x24c] ss:$24 sps:$4 sm:$0xff]  }
  0x3b   :  { %1866 = vmatpush1.bf16.msra.mxu1 %v3265_v8  ;;  %v3345_v8 = vld [vmem:[%s4815_s1 + $0x840] ss:$24 sps:$4 sm:$0xff]  }
  0x3c   :  { %1907 = vmatpush1.bf16.msra.mxu0 %v3266_v9  ;;  %1867 = vmatprep.subr.bf16.mxu1 %v3267_v10  ;;  %v3348_v9 = vld [vmem:[%s4815_s1 + $0x248] ss:$24 sps:$4 sm:$0xff]   ;;  %v3353_v10 = vld [vmem:[%s4815_s1 + $0x874] ss:$24 sps:$4 sm:$0xff]  }
  0x3d   :  { %1908 = vmatprep.subr.bf16.mxu0 %v3269_v11  ;;  %v3356_v11 = vld [vmem:[%s4815_s1 + $0x27c] ss:$24 sps:$4 sm:$0xff]  }
  0x3f   :  { %1868 = vmatpush1.bf16.msra.mxu1 %v3271_v12  ;;  %v3351_v12 = vld [vmem:[%s4815_s1 + $0x870] ss:$24 sps:$4 sm:$0xff]  }
  0x40   :  { %1909 = vmatpush1.bf16.msra.mxu0 %v3272_v14  ;;  %1960 = vmatprep.subr.bf16.mxu1 %v3278_v16  ;;  %v3354_v14 = vld [vmem:[%s4815_s1 + $0x278] ss:$24 sps:$4 sm:$0xff]   ;;  %v3362_v16 = vld [vmem:[%s4815_s1 + $0x2ac] ss:$24 sps:$4 sm:$0xff]  }
  0x41   :  { %1919 = vmatprep.subr.bf16.mxu0 %v3275_v15  ;;  %v3359_v15 = vld [vmem:[%s4815_s1 + $0x8a4] ss:$24 sps:$4 sm:$0xff]  }
  0x42   :  { %1870 = vmatmul.mubr.bf16.vlgmr.msra.gmra.mrb[0].mxu1 %v3938_v13 }
  0x43   :  { %1911 = vmatmul.mubr.bf16.vlgmr.msra.gmra.mrb[0].mxu0 %v3954_v19  ;;  %1961 = vmatpush1.bf16.msra.mxu1 %v3276_v20  ;;  %v3365_v20 = vld [vmem:[%s4815_s1 + $0x8d4] ss:$24 sps:$4 sm:$0xff]  }
  0x44   :  { %1920 = vmatpush1.bf16.msra.mxu0 %v3273_v18  ;;  %1962 = vmatprep.subr.bf16.mxu1 %v3284_v22  ;;  %v3360_v18 = vld [vmem:[%s4815_s1 + $0x2a8] ss:$24 sps:$4 sm:$0xff]  }
  0x45   :  { %1921 = vmatprep.subr.bf16.mxu0 %v3281_v21  ;;  %1951 = vmatprep.mubr.bf16.mxu0 %v3966_v23  ;;  %v3368_v21 = vld [vmem:[%s4815_s1 + $0x2dc] ss:$24 sps:$4 sm:$0xff]   ;;  %v3363_v22 = vld [vmem:[%s4815_s1 + $0x8d0] ss:$24 sps:$4 sm:$0xff]  }
  0x46   :  { %1992 = vmatprep.mubr.bf16.mxu1 %v3890_v62 }
  0x47   :  { %1963 = vmatpush1.bf16.msra.mxu1 %v3282_v25  ;;  %v3372_v25 = vld [vmem:[%s4815_s1 + $0x30c] ss:$24 sps:$4 sm:$0xff]  }
  0x48   :  { %1922 = vmatpush1.bf16.msra.mxu0 %v3279_v24  ;;  %1964 = vmatprep.subr.bf16.mxu1 %v3290_v27  ;;  %v3366_v24 = vld [vmem:[%s4815_s1 + $0x2d8] ss:$24 sps:$4 sm:$0xff]   ;;  %v3370_v27 = vld [vmem:[%s4815_s1 + $0x308] ss:$24 sps:$4 sm:$0xff]  }
  0x49   :  { %1923 = vmatprep.subr.bf16.mxu0 %v3287_v26  ;;  %v3375_v26 = vld [vmem:[%s4815_s1 + $0x14] ss:$24 sps:$4 sm:$0xff]  }
  0x4b   :  { %1965 = vmatpush1.bf16.msra.mxu1 %v3288_v29  ;;  %v3378_v29 = vld [vmem:[%s4815_s1 + $0x33c] ss:$24 sps:$4 sm:$0xff]  }
  0x4c   :  { %1924 = vmatpush1.bf16.msra.mxu0 %v3285_v28  ;;  %1966 = vmatprep.subr.bf16.mxu1 %v3296_v31  ;;  %v3373_v28 = vld [vmem:[%s4815_s1 + $0x10] ss:$24 sps:$4 sm:$0xff]  }
  0x4d   :  { %1925 = vmatprep.subr.bf16.mxu0 %v3293_v30  ;;  %v3381_v30 = vld [vmem:[%s4815_s1 + $0x44] ss:$24 sps:$4 sm:$0xff]   ;;  %v3376_v31 = vld [vmem:[%s4815_s1 + $0x338] ss:$24 sps:$4 sm:$0xff]  }
  0x4f   :  { %1967 = vmatpush1.bf16.msra.mxu1 %v3294_v33  ;;  %v3384_v33 = vld [vmem:[%s4815_s1 + $0x36c] ss:$24 sps:$4 sm:$0xff]  }
  0x50   :  { %1926 = vmatpush1.bf16.msra.mxu0 %v3291_v32  ;;  %1968 = vmatprep.subr.bf16.mxu1 %v3302_v35  ;;  %v3379_v32 = vld [vmem:[%s4815_s1 + $0x40] ss:$24 sps:$4 sm:$0xff]  }
  0x51   :  { %1927 = vmatprep.subr.bf16.mxu0 %v3299_v34  ;;  %v3387_v34 = vld [vmem:[%s4815_s1 + $0x74] ss:$24 sps:$4 sm:$0xff]   ;;  %v3382_v35 = vld [vmem:[%s4815_s1 + $0x368] ss:$24 sps:$4 sm:$0xff]  }
  0x53   :  { %1969 = vmatpush1.bf16.msra.mxu1 %v3300_v37  ;;  %v3390_v37 = vld [vmem:[%s4815_s1 + $0x39c] ss:$24 sps:$4 sm:$0xff]  }
  0x54   :  { %1928 = vmatpush1.bf16.msra.mxu0 %v3297_v36  ;;  %1970 = vmatprep.subr.bf16.mxu1 %v3308_v39  ;;  %v3385_v36 = vld [vmem:[%s4815_s1 + $0x70] ss:$24 sps:$4 sm:$0xff]   ;;  %v3391_v39 = vld [vmem:[%s4815_s1 + $0xa0] ss:$24 sps:$4 sm:$0xff]  }
  0x55   :  { %1929 = vmatprep.subr.bf16.mxu0 %v3305_v38  ;;  %v3388_v38 = vld [vmem:[%s4815_s1 + $0x398] ss:$24 sps:$4 sm:$0xff]  }
  0x57   :  { %1971 = vmatpush1.bf16.msra.mxu1 %v3306_v41  ;;  %v3399_v41 = vld [vmem:[%s4815_s1 + $0xd4] ss:$24 sps:$4 sm:$0xff]  }
  0x58   :  { %1930 = vmatpush1.bf16.msra.mxu0 %v3303_v40  ;;  %1972 = vmatprep.subr.bf16.mxu1 %v3314_v44  ;;  %v3396_v40 = vld [vmem:[%s4815_s1 + $0x3cc] ss:$24 sps:$4 sm:$0xff]   ;;  %v3397_v44 = vld [vmem:[%s4815_s1 + $0xd0] ss:$24 sps:$4 sm:$0xff]  }
  0x59   :  { %1931 = vmatprep.subr.bf16.mxu0 %v3311_v43  ;;  %v3394_v43 = vld [vmem:[%s4815_s1 + $0x3c8] ss:$24 sps:$4 sm:$0xff]  }
  0x5b   :  { %1973 = vmatpush1.bf16.msra.mxu1 %v3312_v46  ;;  %v3405_v46 = vld [vmem:[%s4815_s1 + $0x104] ss:$24 sps:$4 sm:$0xff]  }
  0x5c   :  { %1932 = vmatpush1.bf16.msra.mxu0 %v3309_v45  ;;  %1974 = vmatprep.subr.bf16.mxu1 %v3320_v48  ;;  %v3402_v45 = vld [vmem:[%s4815_s1 + $0x3fc] ss:$24 sps:$4 sm:$0xff]   ;;  %v3403_v48 = vld [vmem:[%s4815_s1 + $0x100] ss:$24 sps:$4 sm:$0xff]  }
  0x5d   :  { %1933 = vmatprep.subr.bf16.mxu0 %v3317_v47  ;;  %v3400_v47 = vld [vmem:[%s4815_s1 + $0x3f8] ss:$24 sps:$4 sm:$0xff]  }
  0x5f   :  { %1975 = vmatpush1.bf16.msra.mxu1 %v3318_v50  ;;  %v3411_v50 = vld [vmem:[%s4815_s1 + $0x134] ss:$24 sps:$4 sm:$0xff]  }
  0x60   :  { %1934 = vmatpush1.bf16.msra.mxu0 %v3315_v49  ;;  %1976 = vmatprep.subr.bf16.mxu1 %v3326_v52  ;;  %v3408_v49 = vld [vmem:[%s4815_s1 + $0x42c] ss:$24 sps:$4 sm:$0xff]   ;;  %v3409_v52 = vld [vmem:[%s4815_s1 + $0x130] ss:$24 sps:$4 sm:$0xff]  }
  0x61   :  { %1935 = vmatprep.subr.bf16.mxu0 %v3323_v51  ;;  %v3406_v51 = vld [vmem:[%s4815_s1 + $0x428] ss:$24 sps:$4 sm:$0xff]  }
  0x63   :  { %1977 = vmatpush1.bf16.msra.mxu1 %v3324_v54  ;;  %v3417_v54 = vld [vmem:[%s4815_s1 + $0x164] ss:$24 sps:$4 sm:$0xff]  }
  0x64   :  { %1936 = vmatpush1.bf16.msra.mxu0 %v3321_v53  ;;  %1978 = vmatprep.subr.bf16.mxu1 %v3332_v56  ;;  %v3414_v53 = vld [vmem:[%s4815_s1 + $0x45c] ss:$24 sps:$4 sm:$0xff]   ;;  %v3415_v56 = vld [vmem:[%s4815_s1 + $0x160] ss:$24 sps:$4 sm:$0xff]  }
  0x65   :  { %1937 = vmatprep.subr.bf16.mxu0 %v3329_v55  ;;  %v3412_v55 = vld [vmem:[%s4815_s1 + $0x458] ss:$24 sps:$4 sm:$0xff]  }
  0x67   :  { %1979 = vmatpush1.bf16.msra.mxu1 %v3330_v58  ;;  %v3423_v58 = vld [vmem:[%s4815_s1 + $0x194] ss:$24 sps:$4 sm:$0xff]  }
  0x68   :  { %1938 = vmatpush1.bf16.msra.mxu0 %v3327_v57  ;;  %1980 = vmatprep.subr.bf16.mxu1 %v3338_v60  ;;  %v3420_v57 = vld [vmem:[%s4815_s1 + $0x48c] ss:$24 sps:$4 sm:$0xff]   ;;  %v3421_v60 = vld [vmem:[%s4815_s1 + $0x190] ss:$24 sps:$4 sm:$0xff]  }
  0x69   :  { %1939 = vmatprep.subr.bf16.mxu0 %v3335_v59  ;;  %v3418_v59 = vld [vmem:[%s4815_s1 + $0x488] ss:$24 sps:$4 sm:$0xff]  }
  0x6b   :  { %1981 = vmatpush1.bf16.msra.mxu1 %v3336_v0  ;;  %v3429_v0 = vld [vmem:[%s4815_s1 + $0x1c4] ss:$24 sps:$4 sm:$0xff]  }
  0x6c   :  { %1940 = vmatpush1.bf16.msra.mxu0 %v3333_v61  ;;  %1982 = vmatprep.subr.bf16.mxu1 %v3344_v2  ;;  %v3426_v61 = vld [vmem:[%s4815_s1 + $0x4bc] ss:$24 sps:$4 sm:$0xff]   ;;  %v3427_v2 = vld [vmem:[%s4815_s1 + $0x1c0] ss:$24 sps:$4 sm:$0xff]  }
  0x6d   :  { %1941 = vmatprep.subr.bf16.mxu0 %v3341_v1  ;;  %v3424_v1 = vld [vmem:[%s4815_s1 + $0x4b8] ss:$24 sps:$4 sm:$0xff]  }
  0x6f   :  { %1983 = vmatpush1.bf16.msra.mxu1 %v3342_v5  ;;  %v3435_v5 = vld [vmem:[%s4815_s1 + $0x1f4] ss:$24 sps:$4 sm:$0xff]  }
  0x70   :  { %1942 = vmatpush1.bf16.msra.mxu0 %v3339_v4  ;;  %1984 = vmatprep.subr.bf16.mxu1 %v3350_v7  ;;  %v3432_v4 = vld [vmem:[%s4815_s1 + $0x4ec] ss:$24 sps:$4 sm:$0xff]   ;;  %v3433_v7 = vld [vmem:[%s4815_s1 + $0x1f0] ss:$24 sps:$4 sm:$0xff]  }
  0x71   :  { %1943 = vmatprep.subr.bf16.mxu0 %v3347_v6  ;;  %v3430_v6 = vld [vmem:[%s4815_s1 + $0x4e8] ss:$24 sps:$4 sm:$0xff]  }
  0x73   :  { %1985 = vmatpush1.bf16.msra.mxu1 %v3348_v9  ;;  %v3441_v9 = vld [vmem:[%s4815_s1 + $0x224] ss:$24 sps:$4 sm:$0xff]  }
  0x74   :  { %1944 = vmatpush1.bf16.msra.mxu0 %v3345_v8  ;;  %1986 = vmatprep.subr.bf16.mxu1 %v3356_v11  ;;  %v3438_v8 = vld [vmem:[%s4815_s1 + $0x51c] ss:$24 sps:$4 sm:$0xff]   ;;  %v3439_v11 = vld [vmem:[%s4815_s1 + $0x220] ss:$24 sps:$4 sm:$0xff]  }
  0x75   :  { %1945 = vmatprep.subr.bf16.mxu0 %v3353_v10  ;;  %v3436_v10 = vld [vmem:[%s4815_s1 + $0x518] ss:$24 sps:$4 sm:$0xff]  }
  0x77   :  { %1987 = vmatpush1.bf16.msra.mxu1 %v3354_v14  ;;  %v3447_v14 = vld [vmem:[%s4815_s1 + $0x254] ss:$24 sps:$4 sm:$0xff]  }
  0x78   :  { %1946 = vmatpush1.bf16.msra.mxu0 %v3351_v12  ;;  %1988 = vmatprep.subr.bf16.mxu1 %v3362_v16  ;;  %v3444_v12 = vld [vmem:[%s4815_s1 + $0x54c] ss:$24 sps:$4 sm:$0xff]   ;;  %v3445_v16 = vld [vmem:[%s4815_s1 + $0x250] ss:$24 sps:$4 sm:$0xff]  }
  0x79   :  { %1947 = vmatprep.subr.bf16.mxu0 %v3359_v15  ;;  %v3442_v15 = vld [vmem:[%s4815_s1 + $0x548] ss:$24 sps:$4 sm:$0xff]  }
  0x7b   :  { %1989 = vmatpush1.bf16.msra.mxu1 %v3360_v18  ;;  %v3453_v18 = vld [vmem:[%s4815_s1 + $0x284] ss:$24 sps:$4 sm:$0xff]  }
  0x7c   :  { %1948 = vmatpush1.bf16.msra.mxu0 %v3357_v17  ;;  %1990 = vmatprep.subr.bf16.mxu1 %v3368_v21  ;;  %v3450_v17 = vld [vmem:[%s4815_s1 + $0x57c] ss:$24 sps:$4 sm:$0xff]   ;;  %v3451_v21 = vld [vmem:[%s4815_s1 + $0x280] ss:$24 sps:$4 sm:$0xff]  }
  0x7d   :  { %1949 = vmatprep.subr.bf16.mxu0 %v3365_v20  ;;  %v3448_v20 = vld [vmem:[%s4815_s1 + $0x578] ss:$24 sps:$4 sm:$0xff]  }
  0x7f   :  { %1991 = vmatpush1.bf16.msra.mxu1 %v3366_v24  ;;  %v3459_v24 = vld [vmem:[%s4815_s1 + $0x2b4] ss:$24 sps:$4 sm:$0xff]  }
  0x80   :  { %1950 = vmatpush1.bf16.msra.mxu0 %v3363_v22  ;;  %2001 = vmatprep.subr.bf16.mxu1 %v3372_v25  ;;  %v3456_v22 = vld [vmem:[%s4815_s1 + $0x5ac] ss:$24 sps:$4 sm:$0xff]   ;;  %v3454_v25 = vld [vmem:[%s4815_s1 + $0x5a8] ss:$24 sps:$4 sm:$0xff]  }
  0x81   :  { %2083 = vmatprep.subr.bf16.mxu0 %v3375_v26  ;;  %v3457_v26 = vld [vmem:[%s4815_s1 + $0x2b0] ss:$24 sps:$4 sm:$0xff]  }
  0x82   :  { %1993 = vmatmul.mubr.bf16.vlgmr.msra.gmra.mrb[4].mxu1 %v3938_v13 }
  0x83   :  { %1952 = vmatmul.mubr.bf16.vlgmr.msra.gmra.mrb[0].mxu0 %v3893_v63  ;;  %2002 = vmatpush1.bf16.msra.mxu1 %v3370_v27  ;;  %v3462_v27 = vld [vmem:[%s4815_s1 + $0x5dc] ss:$24 sps:$4 sm:$0xff]  }
  0x84   :  { %2084 = vmatpush1.bf16.msra.mxu0 %v3373_v28  ;;  %2003 = vmatprep.subr.bf16.mxu1 %v3378_v29  ;;  %v3465_v28 = vld [vmem:[%s4815_s1 + $0x2e4] ss:$24 sps:$4 sm:$0xff]   ;;  %v3460_v29 = vld [vmem:[%s4815_s1 + $0x5d8] ss:$24 sps:$4 sm:$0xff]  }
  0x85   :  { %2085 = vmatprep.subr.bf16.mxu0 %v3381_v30  ;;  %2033 = vmatprep.mubr.bf16.mxu1 %v3906_v3  ;;  %v3463_v30 = vld [vmem:[%s4815_s1 + $0x2e0] ss:$24 sps:$4 sm:$0xff]  }
  0x86   :  { %2115 = vmatprep.mubr.bf16.mxu0 %v3890_v62  ;;  %v3393_v62 = vld [vmem:[%s4815_s1 + $0xa4] ss:$24 sps:$4 sm:$0xff]  }
  0x87   :  { %2004 = vmatpush1.bf16.msra.mxu1 %v3376_v31  ;;  %v3468_v31 = vld [vmem:[%s4815_s1 + $0x60c] ss:$24 sps:$4 sm:$0xff]  }
  0x88   :  { %2086 = vmatpush1.bf16.msra.mxu0 %v3379_v32  ;;  %2005 = vmatprep.subr.bf16.mxu1 %v3384_v33  ;;  %v3471_v32 = vld [vmem:[%s4815_s1 + $0x314] ss:$24 sps:$4 sm:$0xff]   ;;  %v3466_v33 = vld [vmem:[%s4815_s1 + $0x608] ss:$24 sps:$4 sm:$0xff]  }
  0x89   :  { %2087 = vmatprep.subr.bf16.mxu0 %v3387_v34  ;;  %v3469_v34 = vld [vmem:[%s4815_s1 + $0x310] ss:$24 sps:$4 sm:$0xff]  }
  0x8b   :  { %2006 = vmatpush1.bf16.msra.mxu1 %v3382_v35  ;;  %v3474_v35 = vld [vmem:[%s4815_s1 + $0x63c] ss:$24 sps:$4 sm:$0xff]  }
  0x8c   :  { %2088 = vmatpush1.bf16.msra.mxu0 %v3385_v36  ;;  %2007 = vmatprep.subr.bf16.mxu1 %v3390_v37  ;;  %v3477_v36 = vld [vmem:[%s4815_s1 + $0x344] ss:$24 sps:$4 sm:$0xff]   ;;  %v3472_v37 = vld [vmem:[%s4815_s1 + $0x638] ss:$24 sps:$4 sm:$0xff]  }
  0x8d   :  { %2089 = vmatprep.subr.bf16.mxu0 %v3393_v62  ;;  %v3475_v62 = vld [vmem:[%s4815_s1 + $0x340] ss:$24 sps:$4 sm:$0xff]  }
  0x8f   :  { %2008 = vmatpush1.bf16.msra.mxu1 %v3388_v38  ;;  %v3480_v38 = vld [vmem:[%s4815_s1 + $0x66c] ss:$24 sps:$4 sm:$0xff]  }
  0x90   :  { %2090 = vmatpush1.bf16.msra.mxu0 %v3391_v39  ;;  %2009 = vmatprep.subr.bf16.mxu1 %v3396_v40  ;;  %v3478_v39 = vld [vmem:[%s4815_s1 + $0x668] ss:$24 sps:$4 sm:$0xff]  }
  0x91   :  { %2091 = vmatprep.subr.bf16.mxu0 %v3399_v41  ;;  %v3481_v40 = vld [vmem:[%s4815_s1 + $0x370] ss:$24 sps:$4 sm:$0xff]   ;;  %v3486_v41 = vld [vmem:[%s4815_s1 + $0x69c] ss:$24 sps:$4 sm:$0xff]  }
  0x93   :  { %2010 = vmatpush1.bf16.msra.mxu1 %v3394_v43  ;;  %v3489_v43 = vld [vmem:[%s4815_s1 + $0x3a4] ss:$24 sps:$4 sm:$0xff]  }
  0x94   :  { %2092 = vmatpush1.bf16.msra.mxu0 %v3397_v44  ;;  %2011 = vmatprep.subr.bf16.mxu1 %v3402_v45  ;;  %v3484_v44 = vld [vmem:[%s4815_s1 + $0x698] ss:$24 sps:$4 sm:$0xff]   ;;  %v3492_v45 = vld [vmem:[%s4815_s1 + $0x6cc] ss:$24 sps:$4 sm:$0xff]  }
  0x95   :  { %2093 = vmatprep.subr.bf16.mxu0 %v3405_v46  ;;  %v3495_v46 = vld [vmem:[%s4815_s1 + $0x3d4] ss:$24 sps:$4 sm:$0xff]  }
  0x97   :  { %2012 = vmatpush1.bf16.msra.mxu1 %v3400_v47  ;;  %v3490_v47 = vld [vmem:[%s4815_s1 + $0x6c8] ss:$24 sps:$4 sm:$0xff]  }
  0x98   :  { %2094 = vmatpush1.bf16.msra.mxu0 %v3403_v48  ;;  %2013 = vmatprep.subr.bf16.mxu1 %v3408_v49  ;;  %v3493_v48 = vld [vmem:[%s4815_s1 + $0x3d0] ss:$24 sps:$4 sm:$0xff]   ;;  %v3498_v49 = vld [vmem:[%s4815_s1 + $0x6fc] ss:$24 sps:$4 sm:$0xff]  }
  0x99   :  { %2095 = vmatprep.subr.bf16.mxu0 %v3411_v50  ;;  %v3501_v50 = vld [vmem:[%s4815_s1 + $0x404] ss:$24 sps:$4 sm:$0xff]  }
  0x9b   :  { %2014 = vmatpush1.bf16.msra.mxu1 %v3406_v51  ;;  %v3496_v51 = vld [vmem:[%s4815_s1 + $0x6f8] ss:$24 sps:$4 sm:$0xff]  }
  0x9c   :  { %2096 = vmatpush1.bf16.msra.mxu0 %v3409_v52  ;;  %2015 = vmatprep.subr.bf16.mxu1 %v3414_v53  ;;  %v3499_v52 = vld [vmem:[%s4815_s1 + $0x400] ss:$24 sps:$4 sm:$0xff]   ;;  %v3504_v53 = vld [vmem:[%s4815_s1 + $0x72c] ss:$24 sps:$4 sm:$0xff]  }
  0x9d   :  { %2097 = vmatprep.subr.bf16.mxu0 %v3417_v54  ;;  %v3507_v54 = vld [vmem:[%s4815_s1 + $0x434] ss:$24 sps:$4 sm:$0xff]  }
  0x9f   :  { %2016 = vmatpush1.bf16.msra.mxu1 %v3412_v55  ;;  %v3502_v55 = vld [vmem:[%s4815_s1 + $0x728] ss:$24 sps:$4 sm:$0xff]  }
  0xa0   :  { %2098 = vmatpush1.bf16.msra.mxu0 %v3415_v56  ;;  %2017 = vmatprep.subr.bf16.mxu1 %v3420_v57  ;;  %v3505_v56 = vld [vmem:[%s4815_s1 + $0x430] ss:$24 sps:$4 sm:$0xff]   ;;  %v3510_v57 = vld [vmem:[%s4815_s1 + $0x75c] ss:$24 sps:$4 sm:$0xff]  }
  0xa1   :  { %2099 = vmatprep.subr.bf16.mxu0 %v3423_v58  ;;  %v3513_v58 = vld [vmem:[%s4815_s1 + $0x464] ss:$24 sps:$4 sm:$0xff]  }
  0xa3   :  { %2018 = vmatpush1.bf16.msra.mxu1 %v3418_v59  ;;  %v3508_v59 = vld [vmem:[%s4815_s1 + $0x758] ss:$24 sps:$4 sm:$0xff]  }
  0xa4   :  { %2100 = vmatpush1.bf16.msra.mxu0 %v3421_v60  ;;  %2019 = vmatprep.subr.bf16.mxu1 %v3426_v61  ;;  %v3511_v60 = vld [vmem:[%s4815_s1 + $0x460] ss:$24 sps:$4 sm:$0xff]   ;;  %v3516_v61 = vld [vmem:[%s4815_s1 + $0x78c] ss:$24 sps:$4 sm:$0xff]  }
  0xa5   :  { %2101 = vmatprep.subr.bf16.mxu0 %v3429_v0  ;;  %v3519_v0 = vld [vmem:[%s4815_s1 + $0x494] ss:$24 sps:$4 sm:$0xff]  }
  0xa7   :  { %2020 = vmatpush1.bf16.msra.mxu1 %v3424_v1  ;;  %v3514_v1 = vld [vmem:[%s4815_s1 + $0x788] ss:$24 sps:$4 sm:$0xff]  }
  0xa8   :  { %2102 = vmatpush1.bf16.msra.mxu0 %v3427_v2  ;;  %2021 = vmatprep.subr.bf16.mxu1 %v3432_v4  ;;  %v3517_v2 = vld [vmem:[%s4815_s1 + $0x490] ss:$24 sps:$4 sm:$0xff]   ;;  %v3522_v4 = vld [vmem:[%s4815_s1 + $0x7bc] ss:$24 sps:$4 sm:$0xff]  }
  0xa9   :  { %2103 = vmatprep.subr.bf16.mxu0 %v3435_v5  ;;  %v3525_v5 = vld [vmem:[%s4815_s1 + $0x4c4] ss:$24 sps:$4 sm:$0xff]  }
  0xab   :  { %2022 = vmatpush1.bf16.msra.mxu1 %v3430_v6  ;;  %v3520_v6 = vld [vmem:[%s4815_s1 + $0x7b8] ss:$24 sps:$4 sm:$0xff]  }
  0xac   :  { %2104 = vmatpush1.bf16.msra.mxu0 %v3433_v7  ;;  %2023 = vmatprep.subr.bf16.mxu1 %v3438_v8  ;;  %v3523_v7 = vld [vmem:[%s4815_s1 + $0x4c0] ss:$24 sps:$4 sm:$0xff]   ;;  %v3528_v8 = vld [vmem:[%s4815_s1 + $0x7ec] ss:$24 sps:$4 sm:$0xff]  }
  0xad   :  { %2105 = vmatprep.subr.bf16.mxu0 %v3441_v9  ;;  %v3531_v9 = vld [vmem:[%s4815_s1 + $0x4f4] ss:$24 sps:$4 sm:$0xff]  }
  0xaf   :  { %2024 = vmatpush1.bf16.msra.mxu1 %v3436_v10 }
  0xb0   :  { %2106 = vmatpush1.bf16.msra.mxu0 %v3439_v11  ;;  %2025 = vmatprep.subr.bf16.mxu1 %v3444_v12 }
  0xb1   :  { %2107 = vmatprep.subr.bf16.mxu0 %v3447_v14 }
  0xb3   :  { %2026 = vmatpush1.bf16.msra.mxu1 %v3442_v15 }
  0xb4   :  { %2108 = vmatpush1.bf16.msra.mxu0 %v3445_v16  ;;  %2027 = vmatprep.subr.bf16.mxu1 %v3450_v17 }
  0xb5   :  { %2109 = vmatprep.subr.bf16.mxu0 %v3453_v18 }
  0xb7   :  { %2028 = vmatpush1.bf16.msra.mxu1 %v3448_v20 }
  0xb8   :  { %2110 = vmatpush1.bf16.msra.mxu0 %v3451_v21  ;;  %2029 = vmatprep.subr.bf16.mxu1 %v3456_v22 }
  0xb9   :  { %2111 = vmatprep.subr.bf16.mxu0 %v3459_v24 }
  0xbb   :  { %2030 = vmatpush1.bf16.msra.mxu1 %v3454_v25 }
  0xbc   :  { %2112 = vmatpush1.bf16.msra.mxu0 %v3457_v26  ;;  %2031 = vmatprep.subr.bf16.mxu1 %v3462_v27 }
  0xbd   :  { %2113 = vmatprep.subr.bf16.mxu0 %v3465_v28 }
  0xbf   :  { %2032 = vmatpush1.bf16.msra.mxu1 %v3460_v29 }
  0xc0   :  { %2114 = vmatpush1.bf16.msra.mxu0 %v3463_v30  ;;  %2042 = vmatprep.subr.bf16.mxu1 %v3468_v31 }
  0xc1   :  { %2124 = vmatprep.subr.bf16.mxu0 %v3471_v32 }
  0xc2   :  { %2034 = vmatmul.mubr.bf16.vlgmr.msra.gmra.mrb[4].mxu1 %v3954_v19 }
  0xc3   :  { %2116 = vmatmul.mubr.bf16.vlgmr.msra.gmra.mrb[4].mxu0 %v3938_v13  ;;  %2043 = vmatpush1.bf16.msra.mxu1 %v3466_v33  ;;  %v3483_v13 = vld [vmem:[%s4815_s1 + $0x374] ss:$24 sps:$4 sm:$0xff]  }
  0xc4   :  { %2125 = vmatpush1.bf16.msra.mxu0 %v3469_v34  ;;  %2044 = vmatprep.subr.bf16.mxu1 %v3474_v35 }
  0xc5   :  { %2126 = vmatprep.subr.bf16.mxu0 %v3477_v36  ;;  %2074 = vmatprep.mubr.bf16.mxu1 %v3966_v23 }
  0xc6   :  { %2156 = vmatprep.mubr.bf16.mxu0 %v3906_v3  ;;  %v3487_v3 = vld [vmem:[%s4815_s1 + $0x3a0] ss:$24 sps:$4 sm:$0xff]  }
  0xc7   :  { %2045 = vmatpush1.bf16.msra.mxu1 %v3472_v37 }
  0xc8   :  { %2127 = vmatpush1.bf16.msra.mxu0 %v3475_v62  ;;  %2046 = vmatprep.subr.bf16.mxu1 %v3480_v38 }
  0xc9   :  { %2128 = vmatprep.subr.bf16.mxu0 %v3483_v13 }
  0xcb   :  { %2047 = vmatpush1.bf16.msra.mxu1 %v3478_v39 }
  0xcc   :  { %2129 = vmatpush1.bf16.msra.mxu0 %v3481_v40  ;;  %2048 = vmatprep.subr.bf16.mxu1 %v3486_v41 }
  0xcd   :  { %2130 = vmatprep.subr.bf16.mxu0 %v3489_v43 }
  0xcf   :  { %2049 = vmatpush1.bf16.msra.mxu1 %v3484_v44 }
  0xd0   :  { %2131 = vmatpush1.bf16.msra.mxu0 %v3487_v3  ;;  %2050 = vmatprep.subr.bf16.mxu1 %v3492_v45 }
  0xd1   :  { %2132 = vmatprep.subr.bf16.mxu0 %v3495_v46 }
  0xd3   :  { %2051 = vmatpush1.bf16.msra.mxu1 %v3490_v47 }
  0xd4   :  { %2133 = vmatpush1.bf16.msra.mxu0 %v3493_v48  ;;  %2052 = vmatprep.subr.bf16.mxu1 %v3498_v49 }
  0xd5   :  { %2134 = vmatprep.subr.bf16.mxu0 %v3501_v50 }
  0xd7   :  { %2053 = vmatpush1.bf16.msra.mxu1 %v3496_v51 }
  0xd8   :  { %2135 = vmatpush1.bf16.msra.mxu0 %v3499_v52  ;;  %2054 = vmatprep.subr.bf16.mxu1 %v3504_v53 }
  0xd9   :  { %2136 = vmatprep.subr.bf16.mxu0 %v3507_v54 }
  0xdb   :  { %2055 = vmatpush1.bf16.msra.mxu1 %v3502_v55 }
  0xdc   :  { %2137 = vmatpush1.bf16.msra.mxu0 %v3505_v56  ;;  %2056 = vmatprep.subr.bf16.mxu1 %v3510_v57 }
  0xdd   :  { %2138 = vmatprep.subr.bf16.mxu0 %v3513_v58 }
  0xdf   :  { %2057 = vmatpush1.bf16.msra.mxu1 %v3508_v59 }
  0xe0   :  { %2139 = vmatpush1.bf16.msra.mxu0 %v3511_v60  ;;  %2058 = vmatprep.subr.bf16.mxu1 %v3516_v61 }
  0xe1   :  { %2140 = vmatprep.subr.bf16.mxu0 %v3519_v0 }
  0xe3   :  { %2059 = vmatpush1.bf16.msra.mxu1 %v3514_v1 }
  0xe4   :  { %2141 = vmatpush1.bf16.msra.mxu0 %v3517_v2  ;;  %2060 = vmatprep.subr.bf16.mxu1 %v3522_v4 }
  0xe5   :  { %2142 = vmatprep.subr.bf16.mxu0 %v3525_v5 }
  0xe6   :  { %10 = vsyncpa [#allocation3], 0  ;;  %v3526_v10 = vld [vmem:[%s4815_s1 + $0x7e8] ss:$24 sps:$4 sm:$0xff]   ;;  %v3534_v12 = vld [vmem:[%s4815_s1 + $0x81c] ss:$24 sps:$4 sm:$0xff]  }
  0xe7   :  { %2061 = vmatpush1.bf16.msra.mxu1 %v3520_v6  ;;  %v3529_v11 = vld [vmem:[%s4815_s1 + $0x4f0] ss:$24 sps:$4 sm:$0xff]   ;;  %v3537_v14 = vld [vmem:[%s4815_s1 + $0x524] ss:$24 sps:$4 sm:$0xff]   ;;  %v3535_v16 = vld [vmem:[%s4815_s1 + $0x520] ss:$24 sps:$4 sm:$0xff]  }
  0xe8   :  { %2143 = vmatpush1.bf16.msra.mxu0 %v3523_v7  ;;  %2062 = vmatprep.subr.bf16.mxu1 %v3528_v8  ;;  %v3532_v15 = vld [vmem:[%s4815_s1 + $0x818] ss:$24 sps:$4 sm:$0xff]   ;;  %v3540_v17 = vld [vmem:[%s4815_s1 + $0x84c] ss:$24 sps:$4 sm:$0xff]   ;;  %v3538_v20 = vld [vmem:[%s4815_s1 + $0x848] ss:$24 sps:$4 sm:$0xff]  }
  0xe9   :  { %2144 = vmatprep.subr.bf16.mxu0 %v3531_v9  ;;  %v3543_v18 = vld [vmem:[%s4815_s1 + $0x554] ss:$24 sps:$4 sm:$0xff]   ;;  %v3541_v21 = vld [vmem:[%s4815_s1 + $0x550] ss:$24 sps:$4 sm:$0xff]   ;;  %v3549_v24 = vld [vmem:[%s4815_s1 + $0x584] ss:$24 sps:$4 sm:$0xff]  }
  0xea   :  { %v3546_v22 = vld [vmem:[%s4815_s1 + $0x87c] ss:$24 sps:$4 sm:$0xff]   ;;  %v3544_v25 = vld [vmem:[%s4815_s1 + $0x878] ss:$24 sps:$4 sm:$0xff]   ;;  %v3552_v27 = vld [vmem:[%s4815_s1 + $0x8ac] ss:$24 sps:$4 sm:$0xff]  }
  0xeb   :  { %2063 = vmatpush1.bf16.msra.mxu1 %v3526_v10  ;;  %v3547_v26 = vld [vmem:[%s4815_s1 + $0x580] ss:$24 sps:$4 sm:$0xff]   ;;  %v3555_v28 = vld [vmem:[%s4815_s1 + $0x5b4] ss:$24 sps:$4 sm:$0xff]   ;;  %v3553_v30 = vld [vmem:[%s4815_s1 + $0x5b0] ss:$24 sps:$4 sm:$0xff]  }
  0xec   :  { %2145 = vmatpush1.bf16.msra.mxu0 %v3529_v11  ;;  %2064 = vmatprep.subr.bf16.mxu1 %v3534_v12  ;;  %v3550_v29 = vld [vmem:[%s4815_s1 + $0x8a8] ss:$24 sps:$4 sm:$0xff]   ;;  %v3558_v31 = vld [vmem:[%s4815_s1 + $0x8dc] ss:$24 sps:$4 sm:$0xff]   ;;  %v3556_v33 = vld [vmem:[%s4815_s1 + $0x8d8] ss:$24 sps:$4 sm:$0xff]  }
  0xed   :  { %2146 = vmatprep.subr.bf16.mxu0 %v3537_v14  ;;  %v3561_v32 = vld [vmem:[%s4815_s1 + $0x5e4] ss:$24 sps:$4 sm:$0xff]   ;;  %v3559_v34 = vld [vmem:[%s4815_s1 + $0x5e0] ss:$24 sps:$4 sm:$0xff]   ;;  %v3564_v35 = vld [vmem:[%s4815_s1 + $0x614] ss:$24 sps:$4 sm:$0xff]  }
  0xee   :  { %v3610_v36 = vld [vmem:[%s4817_s3 + $0x40] sm:$0xff]   ;;  %v3562_v37 = vld [vmem:[%s4815_s1 + $0x610] ss:$24 sps:$4 sm:$0xff]   ;;  %v3570_v40 = vld [vmem:[%s4815_s1 + $0x674] ss:$24 sps:$4 sm:$0xff]   ;;  %s3695_s17 = smov [#allocation2]  }
  0xef   :  { %2065 = vmatpush1.bf16.msra.mxu1 %v3532_v15  ;;  %v3567_v62 = vld [vmem:[%s4815_s1 + $0x644] ss:$24 sps:$4 sm:$0xff]   ;;  %v3612_v13 = vld [vmem:[%s4817_s3 + $0x48] sm:$0xff]   ;;  %v3565_v39 = vld [vmem:[%s4815_s1 + $0x640] ss:$24 sps:$4 sm:$0xff]   ;;  %s2736_s0 = sshll.u32 %s3695_s17, 4  ;;  %s2737_s0 = int_to_ptr.vmem [resolvable:$true] %s2736_s0 }
  0xf0   :  { %2147 = vmatpush1.bf16.msra.mxu0 %v3535_v16  ;;  %2066 = vmatprep.subr.bf16.mxu1 %v3540_v17  ;;  %v3611_v38 = vld [vmem:[%s4817_s3] sm:$0xff]   ;;  %v3613_v41 = vld [vmem:[%s4817_s3 + $0x8] sm:$0xff]   ;;  %v3615_v44 = vld [vmem:[%s4817_s3 + $0x10] sm:$0xff]   ;;  %s3670_s18 = scalar_lea.vmem %s2737_s0, 32  ;;  %p3675_p1 = scmp.lt.s32.totalorder %s2737_s0, %s2737_s0 }
  0xf1   :  { %2148 = vmatprep.subr.bf16.mxu0 %v3543_v18  ;;  %v3573_v43 = vld [vmem:[%s4815_s1 + $0x6a4] ss:$24 sps:$4 sm:$0xff]   ;;  %v3571_v45 = vld [vmem:[%s4815_s1 + $0x6a0] ss:$24 sps:$4 sm:$0xff]   ;;  %v3576_v46 = vld [vmem:[%s4815_s1 + $0x6d4] ss:$24 sps:$4 sm:$0xff]   ;;  %p3671_p0 = scmp.ne.s32.totalorder %s2737_s0, %s3670_s18  ;;  %p3676_p2 = scmp.lt.s32.totalorder %s3670_s18, %s3670_s18 }
  0xf2   :  { %v3616_v3 = vld [vmem:[%s4817_s3 + $0x58] sm:$0xff]   ;;  %v3618_v48 = vld [vmem:[%s4817_s3 + $0x60] sm:$0xff]   ;;  %v3574_v49 = vld [vmem:[%s4815_s1 + $0x6d0] ss:$24 sps:$4 sm:$0xff]  }
  0xf3   :  { %2067 = vmatpush1.bf16.msra.mxu1 %v3538_v20  ;;  %v3617_v47 = vld [vmem:[%s4817_s3 + $0x18] sm:$0xff]   ;;  %v3619_v51 = vld [vmem:[%s4817_s3 + $0x20] sm:$0xff]   ;;  %v3620_v52 = vld [vmem:[%s4817_s3 + $0x68] sm:$0xff]   ;;  %p3677_p3 = por %p3676_p2, %p3675_p1 }
  0xf4   :  { %2149 = vmatpush1.bf16.msra.mxu0 %v3541_v21  ;;  %2068 = vmatprep.subr.bf16.mxu1 %v3546_v22  ;;  %v3579_v50 = vld [vmem:[%s4815_s1 + $0x704] ss:$24 sps:$4 sm:$0xff]   ;;  %v3577_v53 = vld [vmem:[%s4815_s1 + $0x700] ss:$24 sps:$4 sm:$0xff]   ;;  %v3582_v54 = vld [vmem:[%s4815_s1 + $0x734] ss:$24 sps:$4 sm:$0xff]  }
  0xf5   :  { %2150 = vmatprep.subr.bf16.mxu0 %v3549_v24  ;;  %v3621_v55 = vld [vmem:[%s4817_s3 + $0x28] sm:$0xff]   ;;  %v3622_v57 = vld [vmem:[%s4817_s3 + $0x70] sm:$0xff]   ;;  %v3585_v61 = vld [vmem:[%s4815_s1 + $0x764] ss:$24 sps:$4 sm:$0xff]   ;;  %p3678_p4 = pnand %p3677_p3, %p3671_p0 }
  0xf6   :  { %v3580_v59 = vld [vmem:[%s4815_s1 + $0x730] ss:$24 sps:$4 sm:$0xff]   ;;  %v3624_v2 = vld [vmem:[%s4817_s3 + $0x78] sm:$0xff]   ;;  %v3588_v5 = vld [vmem:[%s4815_s1 + $0x794] ss:$24 sps:$4 sm:$0xff]  }
  0xf7   :  { %2069 = vmatpush1.bf16.msra.mxu1 %v3544_v25  ;;  %v3623_v1 = vld [vmem:[%s4817_s3 + $0x30] sm:$0xff]   ;;  %v3583_v4 = vld [vmem:[%s4815_s1 + $0x760] ss:$24 sps:$4 sm:$0xff]   ;;  %v3591_v9 = vld [vmem:[%s4815_s1 + $0x7c4] ss:$24 sps:$4 sm:$0xff]  }
  0xf8   :  { %2151 = vmatpush1.bf16.msra.mxu0 %v3547_v26  ;;  %2070 = vmatprep.subr.bf16.mxu1 %v3552_v27  ;;  %v3625_v6 = vld [vmem:[%s4817_s3 + $0x38] sm:$0xff]   ;;  %v3626_v7 = vld [vmem:[%s4817_s3 + $0xc0] sm:$0xff]   ;;  %v3586_v8 = vld [vmem:[%s4815_s1 + $0x790] ss:$24 sps:$4 sm:$0xff]   ;;  %v315_v26 = vsub.s32 0, %v3843_v42 }
  0xf9   :  { %2152 = vmatprep.subr.bf16.mxu0 %v3555_v28  ;;  %v3589_v10 = vld [vmem:[%s4815_s1 + $0x7c0] ss:$24 sps:$4 sm:$0xff]   ;;  %v3594_v11 = vld [vmem:[%s4815_s1 + $0x7f4] ss:$24 sps:$4 sm:$0xff]   ;;  %v3592_v12 = vld [vmem:[%s4815_s1 + $0x7f0] ss:$24 sps:$4 sm:$0xff]  }
  0xfa   :  { %v3597_v14 = vld [vmem:[%s4815_s1 + $0x824] ss:$24 sps:$4 sm:$0xff]   ;;  %v3595_v15 = vld [vmem:[%s4815_s1 + $0x820] ss:$24 sps:$4 sm:$0xff]   ;;  %v3600_v16 = vld [vmem:[%s4815_s1 + $0x854] ss:$24 sps:$4 sm:$0xff]  }
  0xfb   :  { %2071 = vmatpush1.bf16.msra.mxu1 %v3550_v29  ;;  %v3598_v17 = vld [vmem:[%s4815_s1 + $0x850] ss:$24 sps:$4 sm:$0xff]   ;;  %v3603_v18 = vld [vmem:[%s4815_s1 + $0x884] ss:$24 sps:$4 sm:$0xff]   ;;  %v3601_v20 = vld [vmem:[%s4815_s1 + $0x880] ss:$24 sps:$4 sm:$0xff]  }
  0xfc   :  { %2153 = vmatpush1.bf16.msra.mxu0 %v3553_v30  ;;  %2072 = vmatprep.subr.bf16.mxu1 %v3558_v31  ;;  %v3606_v21 = vld [vmem:[%s4815_s1 + $0x8b4] ss:$24 sps:$4 sm:$0xff]   ;;  %v3604_v22 = vld [vmem:[%s4815_s1 + $0x8b0] ss:$24 sps:$4 sm:$0xff]   ;;  %v3609_v24 = vld [vmem:[%s4815_s1 + $0x8e4] ss:$24 sps:$4 sm:$0xff]  }
  0xfd   :  { %2154 = vmatprep.subr.bf16.mxu0 %v3561_v32  ;;  %v3607_v25 = vld [vmem:[%s4815_s1 + $0x8e0] ss:$24 sps:$4 sm:$0xff]   ;;  %v319_v28 = vsub.s32 1, %v3843_v42 }
  0xfe   :  { %v4693_v27 = vld [vmem:[%s4816_s2] sm:$0x3f] }
  0xff   :  { %2073 = vmatpush1.bf16.msra.mxu1 %v3556_v33  ;;  %v316_v29 = vrot.slane %v4693_v27, %v315_v26  ;;  %v320_v30 = vrot.slane %v4693_v27, %v319_v28  ;;  %v335_v26 = vsub.s32 5, %v3843_v42 }
 0x100   :  { %2155 = vmatpush1.bf16.msra.mxu0 %v3559_v34  ;;  %3081 = vmatprep.subr.bf16.mxu1 %v3610_v36 }
 0x101   :  { %2165 = vmatprep.subr.bf16.mxu0 %v3564_v35 }
 0x102   :  { %2075 = vmatmul.mubr.bf16.vlgmr.msra.gmra.mrb[4].mxu1 %v3893_v63 }
 0x103   :  { %2157 = vmatmul.mubr.bf16.vlgmr.msra.gmra.mrb[4].mxu0 %v3954_v19  ;;  %3082 = vmatpush3.bf16.msra.mxu1 %v3611_v38  ;;  %v3614_v19 = vld [vmem:[%s4817_s3 + $0x50] sm:$0xff]  }
 0x104   :  { %2166 = vmatpush1.bf16.msra.mxu0 %v3562_v37  ;;  %2197 = vmatprep.mubr.bf16.mxu0 %v3966_v23  ;;  %v3568_v23 = vld [vmem:[%s4815_s1 + $0x670] ss:$24 sps:$4 sm:$0xff]  }
 0x105   :  { %2167 = vmatprep.subr.bf16.mxu0 %v3567_v62  ;;  %3083 = vmatprep.subr.bf16.mxu1 %v3612_v13 }
 0x107   :  { %3084 = vmatpush3.bf16.msra.mxu1 %v3613_v41  ;;  %v3628_v41 = vld [vmem:[%s4817_s3 + $0xc8] sm:$0xff]  }
 0x108   :  { %2168 = vmatpush1.bf16.msra.mxu0 %v3565_v39  ;;  %3085 = vmatprep.subr.bf16.mxu1 %v3614_v19  ;;  %v3627_v39 = vld [vmem:[%s4817_s3 + $0x80] sm:$0xff]   ;;  %v3629_v19 = vld [vmem:[%s4817_s3 + $0x88] sm:$0xff]  }
 0x109   :  { %2169 = vmatprep.subr.bf16.mxu0 %v3570_v40 }
 0x10b   :  { %3086 = vmatpush3.bf16.msra.mxu1 %v3615_v44  ;;  %v3632_v44 = vld [vmem:[%s4817_s3 + $0xd8] sm:$0xff]  }
 0x10c   :  { %2170 = vmatpush1.bf16.msra.mxu0 %v3568_v23  ;;  %3087 = vmatprep.subr.bf16.mxu1 %v3616_v3  ;;  %v3630_v23 = vld [vmem:[%s4817_s3 + $0xd0] sm:$0xff]   ;;  %v3633_v3 = vld [vmem:[%s4817_s3 + $0x98] sm:$0xff]  }
 0x10d   :  { %2171 = vmatprep.subr.bf16.mxu0 %v3573_v43  ;;  %v3631_v43 = vld [vmem:[%s4817_s3 + $0x90] sm:$0xff]  }
 0x10f   :  { %3088 = vmatpush3.bf16.msra.mxu1 %v3617_v47  ;;  %v3636_v47 = vld [vmem:[%s4817_s3 + $0xe8] sm:$0xff]  }
 0x110   :  { %2172 = vmatpush1.bf16.msra.mxu0 %v3571_v45  ;;  %3089 = vmatprep.subr.bf16.mxu1 %v3618_v48  ;;  %v3634_v45 = vld [vmem:[%s4817_s3 + $0xe0] sm:$0xff]   ;;  %v3637_v48 = vld [vmem:[%s4817_s3 + $0xa8] sm:$0xff]  }
 0x111   :  { %2173 = vmatprep.subr.bf16.mxu0 %v3576_v46  ;;  %v3635_v46 = vld [vmem:[%s4817_s3 + $0xa0] sm:$0xff]  }
 0x113   :  { %3090 = vmatpush3.bf16.msra.mxu1 %v3619_v51  ;;  %v3640_v51 = vld [vmem:[%s4817_s3 + $0xf8] sm:$0xff]  }
 0x114   :  { %2174 = vmatpush1.bf16.msra.mxu0 %v3574_v49  ;;  %3091 = vmatprep.subr.bf16.mxu1 %v3620_v52  ;;  %v3638_v49 = vld [vmem:[%s4817_s3 + $0xf0] sm:$0xff]   ;;  %v3641_v52 = vld [vmem:[%s4817_s3 + $0xb8] sm:$0xff]  }
 0x115   :  { %2175 = vmatprep.subr.bf16.mxu0 %v3579_v50  ;;  %v1871_v56 = vpop.f32.mrb[0].mxu1  ;;  %v3639_v50 = vld [vmem:[%s4817_s3 + $0xb0] sm:$0xff]  }
 0x116   :  { %v1873_v58 = vpop.f32.mrb[1].mxu1  ;;  %v1872_v31 = vadd.f32 %v1871_v56, %v316_v29  ;;  %v336_v29 = vrot.slane %v4693_v27, %v335_v26 }
 0x117   :  { %v1875_v60 = vpop.f32.mrb[2].mxu1  ;;  %3092 = vmatpush3.bf16.msra.mxu1 %v3621_v55  ;;  %v1874_v32 = vadd.f32 %v1873_v58, %v320_v30  ;;  %v327_v55 = vsub.s32 3, %v3843_v42 }
 0x118   :  { %2176 = vmatpush1.bf16.msra.mxu0 %v3577_v53  ;;  %v1876_v0 = vpop.f32.mrb[3].mxu1  ;;  %3093 = vmatprep.subr.bf16.mxu1 %v3622_v57  ;;  %v3642_v53 = vld [vmem:[%s4817_s3 + $0x140] sm:$0xff]  }
 0x119   :  { %2177 = vmatprep.subr.bf16.mxu0 %v3582_v54  ;;  %v323_v54 = vsub.s32 2, %v3843_v42  ;;  %v328_v57 = vrot.slane %v4693_v27, %v327_v55 }
 0x11b   :  { %3094 = vmatpush3.bf16.msra.mxu1 %v3623_v1  ;;  %v324_v56 = vrot.slane %v4693_v27, %v323_v54 }
 0x11c   :  { %2178 = vmatpush1.bf16.msra.mxu0 %v3580_v59  ;;  %3095 = vmatprep.subr.bf16.mxu1 %v3624_v2 }
 0x11d   :  { %2179 = vmatprep.subr.bf16.mxu0 %v3585_v61 }
 0x11f   :  { %3096 = vmatpush3.bf16.msra.mxu1 %v3625_v6  ;;  %v3643_v6 = vld [vmem:[%s4817_s3 + $0x100] sm:$0xff]  }
 0x120   :  { %2180 = vmatpush1.bf16.msra.mxu0 %v3583_v4  ;;  %3103 = vmatprep.subr.bf16.mxu1 %v3626_v7 }
 0x121   :  { %2181 = vmatprep.subr.bf16.mxu0 %v3588_v5 }
 0x124   :  { %2182 = vmatpush1.bf16.msra.mxu0 %v3586_v8  ;;  %v3644_v8 = vld [vmem:[%s4817_s3 + $0x148] sm:$0xff]  }
 0x125   :  { %2183 = vmatprep.subr.bf16.mxu0 %v3591_v9  ;;  %v3645_v9 = vld [vmem:[%s4817_s3 + $0x108] sm:$0xff]  }
 0x128   :  { %2184 = vmatpush1.bf16.msra.mxu0 %v3589_v10  ;;  %v3646_v10 = vld [vmem:[%s4817_s3 + $0x150] sm:$0xff]  }
 0x129   :  { %2185 = vmatprep.subr.bf16.mxu0 %v3594_v11  ;;  %v3647_v11 = vld [vmem:[%s4817_s3 + $0x110] sm:$0xff]  }
 0x12c   :  { %2186 = vmatpush1.bf16.msra.mxu0 %v3592_v12  ;;  %v3648_v12 = vld [vmem:[%s4817_s3 + $0x158] sm:$0xff]  }
 0x12d   :  { %2187 = vmatprep.subr.bf16.mxu0 %v3597_v14  ;;  %v3649_v14 = vld [vmem:[%s4817_s3 + $0x118] sm:$0xff]  }
 0x130   :  { %2188 = vmatpush1.bf16.msra.mxu0 %v3595_v15  ;;  %v3650_v15 = vld [vmem:[%s4817_s3 + $0x160] sm:$0xff]  }
 0x131   :  { %2189 = vmatprep.subr.bf16.mxu0 %v3600_v16  ;;  %v3651_v16 = vld [vmem:[%s4817_s3 + $0x120] sm:$0xff]  }
 0x134   :  { %2190 = vmatpush1.bf16.msra.mxu0 %v3598_v17  ;;  %v3652_v17 = vld [vmem:[%s4817_s3 + $0x168] sm:$0xff]  }
 0x135   :  { %2191 = vmatprep.subr.bf16.mxu0 %v3603_v18  ;;  %v3653_v18 = vld [vmem:[%s4817_s3 + $0x128] sm:$0xff]  }
 0x138   :  { %2192 = vmatpush1.bf16.msra.mxu0 %v3601_v20  ;;  %v3654_v20 = vld [vmem:[%s4817_s3 + $0x170] sm:$0xff]  }
 0x139   :  { %2193 = vmatprep.subr.bf16.mxu0 %v3606_v21  ;;  %v3655_v21 = vld [vmem:[%s4817_s3 + $0x130] sm:$0xff]  }
 0x13c   :  { %2194 = vmatpush1.bf16.msra.mxu0 %v3604_v22  ;;  %v3656_v22 = vld [vmem:[%s4817_s3 + $0x178] sm:$0xff]  }
 0x13d   :  { %2195 = vmatprep.subr.bf16.mxu0 %v3609_v24  ;;  %v3657_v24 = vld [vmem:[%s4817_s3 + $0x138] sm:$0xff]  }
 0x140   :  { %2196 = vmatpush1.bf16.msra.mxu0 %v3607_v25  ;;  %v331_v25 = vsub.s32 4, %v3843_v42 }
 0x142   :  { %v332_v28 = vrot.slane %v4693_v27, %v331_v25  ;;  %v3032_v27 = vld [vmem:[%s4818_s4] ss:$0 sm:$0xff] }
 0x143   :  { %2198 = vmatmul.mubr.bf16.vlgmr.msra.gmra.mrb[4].mxu0 %v3893_v63 }
 0x156   :  { %v1953_v33 = vpop.f32.mrb[0].mxu0 }
 0x157   :  { %v3148_v34 = vadd.f32 %v1953_v33, %v1872_v31  ;;  %v1955_v35 = vpop.f32.mrb[1].mxu0 }
 0x158   :  { %v3150_v36 = vadd.f32 %v1955_v35, %v1874_v32  ;;  %v1957_v63 = vpop.f32.mrb[2].mxu0 }
 0x159   :  { %3658 = vtanh.f32 %v3148_v34  ;;  %v1958_v37 = vpop.f32.mrb[3].mxu0 }
 0x15a   :  { %3660 = vtanh.f32 %v3150_v36 }
 0x163   :  { %v3659_v62 = vpop.eup %3658 }
 0x164   :  { %v3661_v38 = vpop.eup %3660  ;;  %v2212_v40 = vpack.c.bf16 %v3659_v62, %v3659_v62 }
 0x165   :  { %v2213_v13 = vpack.c.bf16 %v3661_v38, %v3661_v38 }
 0x167   :  { %2641 = vmatprep.mubr.bf16.mxu1 %v2213_v13 }
 0x168   :  { %2642 = vmatmul.mubr.bf16.vlgmr.msra.gmra.mrb[8].mxu1 %v2212_v40 }
 0x169   :  { %3104 = vmatpush3.bf16.msra.mxu1 %v3627_v39 }
 0x16a   :  { %3105 = vmatprep.subr.bf16.mxu1 %v3628_v41 }
 0x16d   :  { %3106 = vmatpush3.bf16.msra.mxu1 %v3629_v19 }
 0x16e   :  { %3107 = vmatprep.subr.bf16.mxu1 %v3630_v23 }
 0x171   :  { %3108 = vmatpush3.bf16.msra.mxu1 %v3631_v43 }
 0x172   :  { %3109 = vmatprep.subr.bf16.mxu1 %v3632_v44 }
 0x175   :  { %3110 = vmatpush3.bf16.msra.mxu1 %v3633_v3 }
 0x176   :  { %3111 = vmatprep.subr.bf16.mxu1 %v3634_v45 }
 0x179   :  { %3112 = vmatpush3.bf16.msra.mxu1 %v3635_v46 }
 0x17a   :  { %3113 = vmatprep.subr.bf16.mxu1 %v3636_v47 }
 0x17d   :  { %3114 = vmatpush3.bf16.msra.mxu1 %v3637_v48 }
 0x17e   :  { %3115 = vmatprep.subr.bf16.mxu1 %v3638_v49 }
 0x181   :  { %3116 = vmatpush3.bf16.msra.mxu1 %v3639_v50 }
 0x182   :  { %3117 = vmatprep.subr.bf16.mxu1 %v3640_v51 }
 0x185   :  { %3118 = vmatpush3.bf16.msra.mxu1 %v3641_v52 }
 0x186   :  { %3125 = vmatprep.subr.bf16.mxu1 %v3642_v53 }
 0x1d5   :  { %v2076_v58 = vpop.f32.mrb[4].mxu1 }
 0x1d6   :  { %v3151_v59 = vadd.f32 %v2076_v58, %v324_v56  ;;  %v2078_v60 = vpop.f32.mrb[5].mxu1 }
 0x1d7   :  { %v3152_v61 = vadd.f32 %v2078_v60, %v328_v57  ;;  %v2080_v0 = vpop.f32.mrb[6].mxu1 }
 0x1d8   :  { %3662 = vtanh.f32 %v3151_v59  ;;  %v2081_v1 = vpop.f32.mrb[7].mxu1 }
 0x1d9   :  { %3664 = vtanh.f32 %v3152_v61 }
 0x1e2   :  { %v3663_v2 = vpop.eup %3662 }
 0x1e3   :  { %v3665_v4 = vpop.eup %3664  ;;  %v2214_v7 = vpack.c.bf16 %v3663_v2, %v3663_v2 }
 0x1e4   :  { %v2215_v5 = vpack.c.bf16 %v3665_v4, %v3665_v4 }
 0x1e6   :  { %2681 = vmatprep.mubr.bf16.mxu1 %v2215_v5 }
 0x1e7   :  { %2682 = vmatmul.mubr.bf16.vlgmr.msra.gmra.mrb[12].mxu1 %v2214_v7 }
 0x1e8   :  { %3126 = vmatpush3.bf16.msra.mxu1 %v3643_v6 }
 0x1e9   :  { %3127 = vmatprep.subr.bf16.mxu1 %v3644_v8 }
 0x1ec   :  { %3128 = vmatpush3.bf16.msra.mxu1 %v3645_v9 }
 0x1ed   :  { %3129 = vmatprep.subr.bf16.mxu1 %v3646_v10 }
 0x1f0   :  { %3130 = vmatpush3.bf16.msra.mxu1 %v3647_v11 }
 0x1f1   :  { %3131 = vmatprep.subr.bf16.mxu1 %v3648_v12 }
 0x1f4   :  { %3132 = vmatpush3.bf16.msra.mxu1 %v3649_v14 }
 0x1f5   :  { %3133 = vmatprep.subr.bf16.mxu1 %v3650_v15 }
 0x1f8   :  { %3134 = vmatpush3.bf16.msra.mxu1 %v3651_v16 }
 0x1f9   :  { %3135 = vmatprep.subr.bf16.mxu1 %v3652_v17 }
 0x1fc   :  { %3136 = vmatpush3.bf16.msra.mxu1 %v3653_v18 }
 0x1fd   :  { %3137 = vmatprep.subr.bf16.mxu1 %v3654_v20 }
 0x200   :  { %3138 = vmatpush3.bf16.msra.mxu1 %v3655_v21 }
 0x201   :  { %3139 = vmatprep.subr.bf16.mxu1 %v3656_v22 }
 0x204   :  { %3140 = vmatpush3.bf16.msra.mxu1 %v3657_v24 }
 0x216   :  { %v2199_v30 = vpop.f32.mrb[4].mxu0 }
 0x217   :  { %v3153_v31 = vadd.f32 %v2199_v30, %v332_v28  ;;  %v2201_v32 = vpop.f32.mrb[5].mxu0 }
 0x218   :  { %v3154_v33 = vadd.f32 %v2201_v32, %v336_v29  ;;  %v2203_v34 = vpop.f32.mrb[6].mxu0 }
 0x219   :  { %3666 = vtanh.f32 %v3153_v31  ;;  %v2204_v35 = vpop.f32.mrb[7].mxu0 }
 0x21a   :  { %3668 = vtanh.f32 %v3154_v33 }
 0x223   :  { %v3667_v36 = vpop.eup %3666 }
 0x224   :  { %v3669_v63 = vpop.eup %3668  ;;  %v2216_v62 = vpack.c.bf16 %v3667_v36, %v3667_v36 }
 0x225   :  { %v2217_v37 = vpack.c.bf16 %v3669_v63, %v3669_v63 }
 0x227   :  { %2721 = vmatprep.mubr.bf16.mxu1 %v2217_v37 }
 0x228   :  { %2722 = vmatmul.mubr.bf16.vlgmr.msra.gmra.mrb[16].mxu1 %v2216_v62 }
 0x23b   :  { %v3097_v38 = vpop.f32.mrb[8].mxu1 }
 0x23c   :  { %v3098_v42 = vpop.f32.mrb[9].mxu1 }
 0x23d   :  { %v3099_v13 = vadd.f32 %v3098_v42, %v3097_v38  ;;  %v3100_v39 = vpop.f32.mrb[10].mxu1 }
 0x23e   :  { %v3101_v40 = vpop.f32.mrb[11].mxu1 }
 0x23f   :  { %v2644_v23 = vadd.f32 %v3099_v13, %v3032_v27 }
 0x2ba   :  { %v3119_v41 = vpop.f32.mrb[12].mxu1 }
 0x2bb   :  { %v3120_v19 = vpop.f32.mrb[13].mxu1 }
 0x2bc   :  { %v3121_v43 = vadd.f32 %v3120_v19, %v3119_v41  ;;  %v3122_v44 = vpop.f32.mrb[14].mxu1 }
 0x2bd   :  { %v3123_v3 = vpop.f32.mrb[15].mxu1 }
 0x2be   :  { %v2684_v45 = vadd.f32 %v3121_v43, %v2644_v23 }
 0x2fb   :  { %v3141_v46 = vpop.f32.mrb[16].mxu1 }
 0x2fc   :  { %v3142_v47 = vpop.f32.mrb[17].mxu1 }
 0x2fd   :  { %v3143_v48 = vadd.f32 %v3142_v47, %v3141_v46  ;;  %v3144_v49 = vpop.f32.mrb[18].mxu1 }
 0x2fe   :  { %v3145_v50 = vpop.f32.mrb[19].mxu1 }
 0x2ff   :  { %v2724_v51 = vadd.f32 %v3143_v48, %v2684_v45 }
 0x301   :  { %2729 = vst [vmem:[#allocation2] sm:$0x3] %v2724_v51 }
 0x302   :  { %3681 = shalt.err (!%p3678_p4)
}
 0x303   :  { %s3682_s20 = scalar_lea.hbm %s4819_s5, 32 }
 0x304   :  { %p3683_p5 = scmp.ne.s32.totalorder %s4819_s5, %s3682_s20  ;;  %p3686_p6 = scmp.lt.u32.totalorder %s3682_s20, %s4819_s5 }
 0x306   :  { %p3688_p7 = pnand %p3686_p6, %p3683_p5 }
 0x308   :  { %3691 = shalt.err (!%p3688_p7)
}
 0x309   :  { %2739 = dma.vmem_to_hbm [thread:$0]  %s2737_s0, 32, %s4819_s5, [#allocation3]  }
 0x30a   :  { %3692 = dma.done.wait [#allocation3], 32  }
 0x30b   :  { %3693 = vsyncadd [#allocation3], 4294967264 }
 0x30c   :  { %2743 = vsyncpa [#allocation3], 1 }

// kernel: closed_call.12
= control target key start
LH: loop header
LB: loop body
LE: loop exit
PB: predicated region body
PF: predicated region fallthrough
CT: control target
= control target key end

     0   :  { %s7506_s24 = smov 0   ;;  %s7508_s25 = smov 0   ;;  %s9019_s0 = inlined_call_operand.vmem [shape: bf16[16,768], index: 0, kind: input, shape index: {}]   ;;  %s9020_s1 = inlined_call_operand.vmem [shape: bf16[768,3072], index: 1, kind: input, shape index: {}]   ;;  %s9021_s2 = inlined_call_operand.vmem [shape: f32[1,3072], index: 2, kind: input, shape index: {}]   ;;  %s9022_s3 = inlined_call_operand.vmem [shape: bf16[3072,768], index: 3, kind: input, shape index: {}]   ;;  %s9023_s4 = inlined_call_operand.vmem [shape: f32[1,768], index: 4, kind: input, shape index: {}]   ;;  %s9024_s5 = inlined_call_operand.vmem [shape: f32[1,768], index: 5, kind: input, shape index: {}]   ;;  %s9025_s6 = inlined_call_operand.vmem [shape: f32[1,768], index: 6, kind: input, shape index: {}]   ;;  %s9026_s7 = inlined_call_operand.vmem [shape: bf16[16,768], index: 7, kind: output, shape index: {}]  }
   0x1   :  { %s7510_s26 = smov 0   ;;  %s7512_s27 = smov 0  }
   0x2   :  { %s7514_s28 = smov 0  }
   0x3 LB: > { %s26_s29 = sadd.s32 1, %s7459_s27  ;;  %p69_p1 = scmp.ne.s32.totalorder %s7451_s25, %s7447_s24  ;;  %s7463_s28 = sphi %s7514_s28, %s17_s28   ;;  %s7459_s27 = sphi %s7512_s27, %s9030_s27   ;;  %s7455_s26 = sphi %s7510_s26, %s9029_s26   ;;  %s7451_s25 = sphi %s7508_s25, %s9028_s25   ;;  %s7447_s24 = sphi %s7506_s24, %s9027_s24  }
   0x4   : > { %p27_p0 = scmp.ge.s32.totalorder %s26_s29, 4  ;;  %p70_p2 = scmp.eq.s32.totalorder %s7463_s28, 0 }
   0x5   : > { %s62_s8 = sadd.s32 1, %s7451_s25  ;;  %p5818_p5 = scmp.ge.s32.totalorder %s7463_s28, 4 }
   0x6   : > { %s9032_s29 = smov (%p27_p0, %s26_s29), 0  ;;  %p71_p3 = por %p70_p2, %p69_p1 }
   0x7   : > { %s59_s30 = ssub.s32 %s7459_s27, %s9032_s29  ;;  %255 = sbr.rel (%p5818_p5) target bundleno = 163 (0xa3), region = 32 }
   0x8   : > { %p60_p4 = scmp.eq.s32.totalorder %s59_s30, 0 }
   0xa   : > { %s7541_s9 = scalar_select %p60_p4, %s7451_s25, %s62_s8  }
   0xe   : > { %258 = sbr.rel (!%p71_p3) target bundleno = 163 (0xa3), region = 36  ;;  %s260_s10 = sand.u32 (%p71_p3), 1, %s7451_s25  }
   0xf   : > { %s6416_s11 = smul.u32 (%p71_p3), 24, %s7459_s27 }
  0x10   : > { %s6483_s12 = smul.u32 (%p71_p3), 2304, %s260_s10 }
  0x11   : > { %s7549_s15 = scalar_lea.vmem (%p71_p3), %s9020_s1, %s6416_s11 }
  0x12   : > { %v278_v0 = vld [vmem:[%s7549_s15] sm:$0xff] (%p71_p3)  ;;  %v280_v1 = vld [vmem:[%s7549_s15 + $0x8] sm:$0xff] (%p71_p3)  ;;  %v282_v2 = vld [vmem:[%s7549_s15 + $0x10] sm:$0xff] (%p71_p3)  ;;  %s7554_s16 = scalar_lea.vmem (%p71_p3), [#allocation3], %s6483_s12 }
  0x13   : > { %279 = vst [vmem:[%s7554_s16] sm:$0xff] (%p71_p3), %v278_v0  ;;  %281 = vst [vmem:[%s7554_s16 + $0x8] sm:$0xff] (%p71_p3), %v280_v1  ;;  %v284_v3 = vld [vmem:[%s7549_s15 + $0x60] sm:$0xff] (%p71_p3)  ;;  %v286_v4 = vld [vmem:[%s7549_s15 + $0x68] sm:$0xff] (%p71_p3) }
  0x14   : > { %283 = vst [vmem:[%s7554_s16 + $0x10] sm:$0xff] (%p71_p3), %v282_v2  ;;  %v288_v5 = vld [vmem:[%s7549_s15 + $0x70] sm:$0xff] (%p71_p3)  ;;  %285 = vst [vmem:[%s7554_s16 + $0x18] sm:$0xff] (%p71_p3), %v284_v3  ;;  %v290_v6 = vld [vmem:[%s7549_s15 + $0xc0] sm:$0xff] (%p71_p3) }
  0x15   : > { %287 = vst [vmem:[%s7554_s16 + $0x20] sm:$0xff] %v286_v4  ;;  %289 = vst [vmem:[%s7554_s16 + $0x28] sm:$0xff] %v288_v5  ;;  %v292_v7 = vld [vmem:[%s7549_s15 + $0xc8] sm:$0xff]  ;;  %v294_v8 = vld [vmem:[%s7549_s15 + $0xd0] sm:$0xff] }
  0x16   : > { %291 = vst [vmem:[%s7554_s16 + $0x30] sm:$0xff] %v290_v6  ;;  %293 = vst [vmem:[%s7554_s16 + $0x38] sm:$0xff] %v292_v7  ;;  %v296_v9 = vld [vmem:[%s7549_s15 + $0x120] sm:$0xff]  ;;  %v298_v10 = vld [vmem:[%s7549_s15 + $0x128] sm:$0xff] }
  0x17   : > { %295 = vst [vmem:[%s7554_s16 + $0x40] sm:$0xff] %v294_v8  ;;  %v300_v11 = vld [vmem:[%s7549_s15 + $0x130] sm:$0xff]  ;;  %297 = vst [vmem:[%s7554_s16 + $0x48] sm:$0xff] %v296_v9  ;;  %v302_v12 = vld [vmem:[%s7549_s15 + $0x180] sm:$0xff] }
  0x18   : > { %299 = vst [vmem:[%s7554_s16 + $0x50] sm:$0xff] %v298_v10  ;;  %301 = vst [vmem:[%s7554_s16 + $0x58] sm:$0xff] %v300_v11  ;;  %v304_v13 = vld [vmem:[%s7549_s15 + $0x188] sm:$0xff]  ;;  %v306_v14 = vld [vmem:[%s7549_s15 + $0x190] sm:$0xff] }
  0x19   : > { %303 = vst [vmem:[%s7554_s16 + $0x60] sm:$0xff] %v302_v12  ;;  %305 = vst [vmem:[%s7554_s16 + $0x68] sm:$0xff] %v304_v13  ;;  %v308_v15 = vld [vmem:[%s7549_s15 + $0x1e0] sm:$0xff]  ;;  %v310_v16 = vld [vmem:[%s7549_s15 + $0x1e8] sm:$0xff] }
  0x1a   : > { %307 = vst [vmem:[%s7554_s16 + $0x70] sm:$0xff] %v306_v14  ;;  %v312_v17 = vld [vmem:[%s7549_s15 + $0x1f0] sm:$0xff]  ;;  %309 = vst [vmem:[%s7554_s16 + $0x78] sm:$0xff] %v308_v15  ;;  %v314_v18 = vld [vmem:[%s7549_s15 + $0x240] sm:$0xff] }
  0x1b   : > { %311 = vst [vmem:[%s7554_s16 + $0x80] sm:$0xff] %v310_v16  ;;  %313 = vst [vmem:[%s7554_s16 + $0x88] sm:$0xff] %v312_v17  ;;  %v316_v19 = vld [vmem:[%s7549_s15 + $0x248] sm:$0xff]  ;;  %v318_v20 = vld [vmem:[%s7549_s15 + $0x250] sm:$0xff] }
  0x1c   : > { %315 = vst [vmem:[%s7554_s16 + $0x90] sm:$0xff] %v314_v18  ;;  %317 = vst [vmem:[%s7554_s16 + $0x98] sm:$0xff] %v316_v19  ;;  %v320_v21 = vld [vmem:[%s7549_s15 + $0x2a0] sm:$0xff]  ;;  %v322_v22 = vld [vmem:[%s7549_s15 + $0x2a8] sm:$0xff] }
  0x1d   : > { %319 = vst [vmem:[%s7554_s16 + $0xa0] sm:$0xff] %v318_v20  ;;  %v324_v23 = vld [vmem:[%s7549_s15 + $0x2b0] sm:$0xff]  ;;  %321 = vst [vmem:[%s7554_s16 + $0xa8] sm:$0xff] %v320_v21  ;;  %v326_v24 = vld [vmem:[%s7549_s15 + $0x300] sm:$0xff] }
  0x1e   : > { %323 = vst [vmem:[%s7554_s16 + $0xb0] sm:$0xff] %v322_v22  ;;  %325 = vst [vmem:[%s7554_s16 + $0xb8] sm:$0xff] %v324_v23  ;;  %v328_v25 = vld [vmem:[%s7549_s15 + $0x308] sm:$0xff]  ;;  %v330_v26 = vld [vmem:[%s7549_s15 + $0x310] sm:$0xff] }
  0x1f   : > { %327 = vst [vmem:[%s7554_s16 + $0xc0] sm:$0xff] %v326_v24  ;;  %329 = vst [vmem:[%s7554_s16 + $0xc8] sm:$0xff] %v328_v25  ;;  %v332_v27 = vld [vmem:[%s7549_s15 + $0x360] sm:$0xff]  ;;  %v334_v28 = vld [vmem:[%s7549_s15 + $0x368] sm:$0xff] }
  0x20   : > { %331 = vst [vmem:[%s7554_s16 + $0xd0] sm:$0xff] %v330_v26  ;;  %v336_v29 = vld [vmem:[%s7549_s15 + $0x370] sm:$0xff]  ;;  %333 = vst [vmem:[%s7554_s16 + $0xd8] sm:$0xff] %v332_v27  ;;  %v338_v30 = vld [vmem:[%s7549_s15 + $0x3c0] sm:$0xff] }
  0x21   : > { %335 = vst [vmem:[%s7554_s16 + $0xe0] sm:$0xff] %v334_v28  ;;  %337 = vst [vmem:[%s7554_s16 + $0xe8] sm:$0xff] %v336_v29  ;;  %v340_v31 = vld [vmem:[%s7549_s15 + $0x3c8] sm:$0xff]  ;;  %v342_v32 = vld [vmem:[%s7549_s15 + $0x3d0] sm:$0xff] }
  0x22   : > { %339 = vst [vmem:[%s7554_s16 + $0xf0] sm:$0xff] %v338_v30  ;;  %341 = vst [vmem:[%s7554_s16 + $0xf8] sm:$0xff] %v340_v31  ;;  %v344_v33 = vld [vmem:[%s7549_s15 + $0x420] sm:$0xff]  ;;  %v346_v34 = vld [vmem:[%s7549_s15 + $0x428] sm:$0xff] }
  0x23   : > { %343 = vst [vmem:[%s7554_s16 + $0x100] sm:$0xff] %v342_v32  ;;  %v348_v35 = vld [vmem:[%s7549_s15 + $0x430] sm:$0xff]  ;;  %345 = vst [vmem:[%s7554_s16 + $0x108] sm:$0xff] %v344_v33  ;;  %v350_v36 = vld [vmem:[%s7549_s15 + $0x480] sm:$0xff] }
  0x24   : > { %347 = vst [vmem:[%s7554_s16 + $0x110] sm:$0xff] %v346_v34  ;;  %349 = vst [vmem:[%s7554_s16 + $0x118] sm:$0xff] %v348_v35  ;;  %v352_v37 = vld [vmem:[%s7549_s15 + $0x488] sm:$0xff]  ;;  %v354_v38 = vld [vmem:[%s7549_s15 + $0x490] sm:$0xff] }
  0x25   : > { %351 = vst [vmem:[%s7554_s16 + $0x120] sm:$0xff] %v350_v36  ;;  %353 = vst [vmem:[%s7554_s16 + $0x128] sm:$0xff] %v352_v37  ;;  %v356_v39 = vld [vmem:[%s7549_s15 + $0x4e0] sm:$0xff]  ;;  %v358_v40 = vld [vmem:[%s7549_s15 + $0x4e8] sm:$0xff] }
  0x26   : > { %355 = vst [vmem:[%s7554_s16 + $0x130] sm:$0xff] %v354_v38  ;;  %v360_v41 = vld [vmem:[%s7549_s15 + $0x4f0] sm:$0xff]  ;;  %357 = vst [vmem:[%s7554_s16 + $0x138] sm:$0xff] %v356_v39  ;;  %v362_v42 = vld [vmem:[%s7549_s15 + $0x540] sm:$0xff] }
  0x27   : > { %359 = vst [vmem:[%s7554_s16 + $0x140] sm:$0xff] %v358_v40  ;;  %361 = vst [vmem:[%s7554_s16 + $0x148] sm:$0xff] %v360_v41  ;;  %v364_v43 = vld [vmem:[%s7549_s15 + $0x548] sm:$0xff]  ;;  %v366_v44 = vld [vmem:[%s7549_s15 + $0x550] sm:$0xff] }
  0x28   : > { %363 = vst [vmem:[%s7554_s16 + $0x150] sm:$0xff] %v362_v42  ;;  %365 = vst [vmem:[%s7554_s16 + $0x158] sm:$0xff] %v364_v43  ;;  %v368_v45 = vld [vmem:[%s7549_s15 + $0x5a0] sm:$0xff]  ;;  %v370_v46 = vld [vmem:[%s7549_s15 + $0x5a8] sm:$0xff] }
  0x29   : > { %367 = vst [vmem:[%s7554_s16 + $0x160] sm:$0xff] %v366_v44  ;;  %v372_v47 = vld [vmem:[%s7549_s15 + $0x5b0] sm:$0xff]  ;;  %369 = vst [vmem:[%s7554_s16 + $0x168] sm:$0xff] %v368_v45  ;;  %v374_v48 = vld [vmem:[%s7549_s15 + $0x600] sm:$0xff] }
  0x2a   : > { %371 = vst [vmem:[%s7554_s16 + $0x170] sm:$0xff] %v370_v46  ;;  %373 = vst [vmem:[%s7554_s16 + $0x178] sm:$0xff] %v372_v47  ;;  %v376_v49 = vld [vmem:[%s7549_s15 + $0x608] sm:$0xff]  ;;  %v378_v50 = vld [vmem:[%s7549_s15 + $0x610] sm:$0xff] }
  0x2b   : > { %375 = vst [vmem:[%s7554_s16 + $0x180] sm:$0xff] %v374_v48  ;;  %377 = vst [vmem:[%s7554_s16 + $0x188] sm:$0xff] %v376_v49  ;;  %v380_v51 = vld [vmem:[%s7549_s15 + $0x660] sm:$0xff]  ;;  %v382_v52 = vld [vmem:[%s7549_s15 + $0x668] sm:$0xff] }
  0x2c   : > { %379 = vst [vmem:[%s7554_s16 + $0x190] sm:$0xff] %v378_v50  ;;  %v384_v53 = vld [vmem:[%s7549_s15 + $0x670] sm:$0xff]  ;;  %381 = vst [vmem:[%s7554_s16 + $0x198] sm:$0xff] %v380_v51  ;;  %v386_v54 = vld [vmem:[%s7549_s15 + $0x6c0] sm:$0xff] }
  0x2d   : > { %383 = vst [vmem:[%s7554_s16 + $0x1a0] sm:$0xff] %v382_v52  ;;  %385 = vst [vmem:[%s7554_s16 + $0x1a8] sm:$0xff] %v384_v53  ;;  %v388_v55 = vld [vmem:[%s7549_s15 + $0x6c8] sm:$0xff]  ;;  %v390_v56 = vld [vmem:[%s7549_s15 + $0x6d0] sm:$0xff] }
  0x2e   : > { %387 = vst [vmem:[%s7554_s16 + $0x1b0] sm:$0xff] %v386_v54  ;;  %389 = vst [vmem:[%s7554_s16 + $0x1b8] sm:$0xff] %v388_v55  ;;  %v392_v57 = vld [vmem:[%s7549_s15 + $0x720] sm:$0xff]  ;;  %v394_v58 = vld [vmem:[%s7549_s15 + $0x728] sm:$0xff] }
  0x2f   : > { %391 = vst [vmem:[%s7554_s16 + $0x1c0] sm:$0xff] %v390_v56  ;;  %v396_v59 = vld [vmem:[%s7549_s15 + $0x730] sm:$0xff]  ;;  %393 = vst [vmem:[%s7554_s16 + $0x1c8] sm:$0xff] %v392_v57  ;;  %v398_v60 = vld [vmem:[%s7549_s15 + $0x780] sm:$0xff] }
  0x30   : > { %395 = vst [vmem:[%s7554_s16 + $0x1d0] sm:$0xff] %v394_v58  ;;  %397 = vst [vmem:[%s7554_s16 + $0x1d8] sm:$0xff] %v396_v59  ;;  %v400_v61 = vld [vmem:[%s7549_s15 + $0x788] sm:$0xff]  ;;  %v402_v62 = vld [vmem:[%s7549_s15 + $0x790] sm:$0xff] }
  0x31   : > { %399 = vst [vmem:[%s7554_s16 + $0x1e0] sm:$0xff] %v398_v60  ;;  %401 = vst [vmem:[%s7554_s16 + $0x1e8] sm:$0xff] %v400_v61  ;;  %v404_v63 = vld [vmem:[%s7549_s15 + $0x7e0] sm:$0xff]  ;;  %v406_v0 = vld [vmem:[%s7549_s15 + $0x7e8] sm:$0xff] }
  0x32   : > { %403 = vst [vmem:[%s7554_s16 + $0x1f0] sm:$0xff] %v402_v62  ;;  %v408_v1 = vld [vmem:[%s7549_s15 + $0x7f0] sm:$0xff]  ;;  %405 = vst [vmem:[%s7554_s16 + $0x1f8] sm:$0xff] %v404_v63  ;;  %v410_v2 = vld [vmem:[%s7549_s15 + $0x840] sm:$0xff] }
  0x33   : > { %407 = vst [vmem:[%s7554_s16 + $0x200] sm:$0xff] %v406_v0  ;;  %409 = vst [vmem:[%s7554_s16 + $0x208] sm:$0xff] %v408_v1  ;;  %v412_v3 = vld [vmem:[%s7549_s15 + $0x848] sm:$0xff]  ;;  %v414_v4 = vld [vmem:[%s7549_s15 + $0x850] sm:$0xff] }
  0x34   : > { %411 = vst [vmem:[%s7554_s16 + $0x210] sm:$0xff] %v410_v2  ;;  %413 = vst [vmem:[%s7554_s16 + $0x218] sm:$0xff] %v412_v3  ;;  %v416_v5 = vld [vmem:[%s7549_s15 + $0x8a0] sm:$0xff]  ;;  %v418_v6 = vld [vmem:[%s7549_s15 + $0x8a8] sm:$0xff] }
  0x35   : > { %415 = vst [vmem:[%s7554_s16 + $0x220] sm:$0xff] %v414_v4  ;;  %v420_v7 = vld [vmem:[%s7549_s15 + $0x8b0] sm:$0xff]  ;;  %417 = vst [vmem:[%s7554_s16 + $0x228] sm:$0xff] %v416_v5  ;;  %v422_v8 = vld [vmem:[%s7549_s15 + $0x900] sm:$0xff] }
  0x36   : > { %419 = vst [vmem:[%s7554_s16 + $0x230] sm:$0xff] %v418_v6  ;;  %421 = vst [vmem:[%s7554_s16 + $0x238] sm:$0xff] %v420_v7  ;;  %v424_v9 = vld [vmem:[%s7549_s15 + $0x908] sm:$0xff]  ;;  %v426_v10 = vld [vmem:[%s7549_s15 + $0x910] sm:$0xff] }
  0x37   : > { %423 = vst [vmem:[%s7554_s16 + $0x240] sm:$0xff] %v422_v8  ;;  %425 = vst [vmem:[%s7554_s16 + $0x248] sm:$0xff] %v424_v9  ;;  %v428_v11 = vld [vmem:[%s7549_s15 + $0x960] sm:$0xff]  ;;  %v430_v12 = vld [vmem:[%s7549_s15 + $0x968] sm:$0xff] }
  0x38   : > { %427 = vst [vmem:[%s7554_s16 + $0x250] sm:$0xff] %v426_v10  ;;  %v432_v13 = vld [vmem:[%s7549_s15 + $0x970] sm:$0xff]  ;;  %429 = vst [vmem:[%s7554_s16 + $0x258] sm:$0xff] %v428_v11  ;;  %v434_v14 = vld [vmem:[%s7549_s15 + $0x9c0] sm:$0xff] }
  0x39   : > { %431 = vst [vmem:[%s7554_s16 + $0x260] sm:$0xff] %v430_v12  ;;  %433 = vst [vmem:[%s7554_s16 + $0x268] sm:$0xff] %v432_v13  ;;  %v436_v15 = vld [vmem:[%s7549_s15 + $0x9c8] sm:$0xff]  ;;  %v438_v16 = vld [vmem:[%s7549_s15 + $0x9d0] sm:$0xff] }
  0x3a   : > { %435 = vst [vmem:[%s7554_s16 + $0x270] sm:$0xff] %v434_v14  ;;  %437 = vst [vmem:[%s7554_s16 + $0x278] sm:$0xff] %v436_v15  ;;  %v440_v17 = vld [vmem:[%s7549_s15 + $0xa20] sm:$0xff]  ;;  %v442_v18 = vld [vmem:[%s7549_s15 + $0xa28] sm:$0xff] }
  0x3b   : > { %439 = vst [vmem:[%s7554_s16 + $0x280] sm:$0xff] %v438_v16  ;;  %v444_v19 = vld [vmem:[%s7549_s15 + $0xa30] sm:$0xff]  ;;  %441 = vst [vmem:[%s7554_s16 + $0x288] sm:$0xff] %v440_v17  ;;  %v446_v20 = vld [vmem:[%s7549_s15 + $0xa80] sm:$0xff] }
  0x3c   : > { %443 = vst [vmem:[%s7554_s16 + $0x290] sm:$0xff] %v442_v18  ;;  %445 = vst [vmem:[%s7554_s16 + $0x298] sm:$0xff] %v444_v19  ;;  %v448_v21 = vld [vmem:[%s7549_s15 + $0xa88] sm:$0xff]  ;;  %v450_v22 = vld [vmem:[%s7549_s15 + $0xa90] sm:$0xff] }
  0x3d   : > { %447 = vst [vmem:[%s7554_s16 + $0x2a0] sm:$0xff] %v446_v20  ;;  %449 = vst [vmem:[%s7554_s16 + $0x2a8] sm:$0xff] %v448_v21  ;;  %v452_v23 = vld [vmem:[%s7549_s15 + $0xae0] sm:$0xff]  ;;  %v454_v24 = vld [vmem:[%s7549_s15 + $0xae8] sm:$0xff] }
  0x3e   : > { %451 = vst [vmem:[%s7554_s16 + $0x2b0] sm:$0xff] %v450_v22  ;;  %v456_v25 = vld [vmem:[%s7549_s15 + $0xaf0] sm:$0xff]  ;;  %453 = vst [vmem:[%s7554_s16 + $0x2b8] sm:$0xff] %v452_v23  ;;  %v458_v26 = vld [vmem:[%s7549_s15 + $0xb40] sm:$0xff] }
  0x3f   : > { %455 = vst [vmem:[%s7554_s16 + $0x2c0] sm:$0xff] %v454_v24  ;;  %457 = vst [vmem:[%s7554_s16 + $0x2c8] sm:$0xff] %v456_v25  ;;  %v460_v27 = vld [vmem:[%s7549_s15 + $0xb48] sm:$0xff]  ;;  %v462_v28 = vld [vmem:[%s7549_s15 + $0xb50] sm:$0xff] }
  0x40   : > { %459 = vst [vmem:[%s7554_s16 + $0x2d0] sm:$0xff] %v458_v26  ;;  %461 = vst [vmem:[%s7554_s16 + $0x2d8] sm:$0xff] %v460_v27  ;;  %v464_v29 = vld [vmem:[%s7549_s15 + $0xba0] sm:$0xff]  ;;  %v466_v30 = vld [vmem:[%s7549_s15 + $0xba8] sm:$0xff] }
  0x41   : > { %463 = vst [vmem:[%s7554_s16 + $0x2e0] sm:$0xff] %v462_v28  ;;  %v468_v31 = vld [vmem:[%s7549_s15 + $0xbb0] sm:$0xff]  ;;  %465 = vst [vmem:[%s7554_s16 + $0x2e8] sm:$0xff] %v464_v29  ;;  %v470_v32 = vld [vmem:[%s7549_s15 + $0xc00] sm:$0xff] }
  0x42   : > { %467 = vst [vmem:[%s7554_s16 + $0x2f0] sm:$0xff] %v466_v30  ;;  %469 = vst [vmem:[%s7554_s16 + $0x2f8] sm:$0xff] %v468_v31  ;;  %v472_v33 = vld [vmem:[%s7549_s15 + $0xc08] sm:$0xff]  ;;  %v474_v34 = vld [vmem:[%s7549_s15 + $0xc10] sm:$0xff] }
  0x43   : > { %471 = vst [vmem:[%s7554_s16 + $0x300] sm:$0xff] %v470_v32  ;;  %473 = vst [vmem:[%s7554_s16 + $0x308] sm:$0xff] %v472_v33  ;;  %v476_v35 = vld [vmem:[%s7549_s15 + $0xc60] sm:$0xff]  ;;  %v478_v36 = vld [vmem:[%s7549_s15 + $0xc68] sm:$0xff] }
  0x44   : > { %475 = vst [vmem:[%s7554_s16 + $0x310] sm:$0xff] %v474_v34  ;;  %v480_v37 = vld [vmem:[%s7549_s15 + $0xc70] sm:$0xff]  ;;  %477 = vst [vmem:[%s7554_s16 + $0x318] sm:$0xff] %v476_v35  ;;  %v482_v38 = vld [vmem:[%s7549_s15 + $0xcc0] sm:$0xff] }
  0x45   : > { %479 = vst [vmem:[%s7554_s16 + $0x320] sm:$0xff] %v478_v36  ;;  %481 = vst [vmem:[%s7554_s16 + $0x328] sm:$0xff] %v480_v37  ;;  %v484_v39 = vld [vmem:[%s7549_s15 + $0xcc8] sm:$0xff]  ;;  %v486_v40 = vld [vmem:[%s7549_s15 + $0xcd0] sm:$0xff] }
  0x46   : > { %483 = vst [vmem:[%s7554_s16 + $0x330] sm:$0xff] %v482_v38  ;;  %485 = vst [vmem:[%s7554_s16 + $0x338] sm:$0xff] %v484_v39  ;;  %v488_v41 = vld [vmem:[%s7549_s15 + $0xd20] sm:$0xff]  ;;  %v490_v42 = vld [vmem:[%s7549_s15 + $0xd28] sm:$0xff] }
  0x47   : > { %487 = vst [vmem:[%s7554_s16 + $0x340] sm:$0xff] %v486_v40  ;;  %v492_v43 = vld [vmem:[%s7549_s15 + $0xd30] sm:$0xff]  ;;  %489 = vst [vmem:[%s7554_s16 + $0x348] sm:$0xff] %v488_v41  ;;  %v494_v44 = vld [vmem:[%s7549_s15 + $0xd80] sm:$0xff] }
  0x48   : > { %491 = vst [vmem:[%s7554_s16 + $0x350] sm:$0xff] %v490_v42  ;;  %493 = vst [vmem:[%s7554_s16 + $0x358] sm:$0xff] %v492_v43  ;;  %v496_v45 = vld [vmem:[%s7549_s15 + $0xd88] sm:$0xff]  ;;  %v498_v46 = vld [vmem:[%s7549_s15 + $0xd90] sm:$0xff] }
  0x49   : > { %495 = vst [vmem:[%s7554_s16 + $0x360] sm:$0xff] %v494_v44  ;;  %497 = vst [vmem:[%s7554_s16 + $0x368] sm:$0xff] %v496_v45  ;;  %v500_v47 = vld [vmem:[%s7549_s15 + $0xde0] sm:$0xff]  ;;  %v502_v48 = vld [vmem:[%s7549_s15 + $0xde8] sm:$0xff] }
  0x4a   : > { %499 = vst [vmem:[%s7554_s16 + $0x370] sm:$0xff] %v498_v46  ;;  %v504_v49 = vld [vmem:[%s7549_s15 + $0xdf0] sm:$0xff]  ;;  %501 = vst [vmem:[%s7554_s16 + $0x378] sm:$0xff] %v500_v47  ;;  %v506_v50 = vld [vmem:[%s7549_s15 + $0xe40] sm:$0xff] }
  0x4b   : > { %503 = vst [vmem:[%s7554_s16 + $0x380] sm:$0xff] %v502_v48  ;;  %505 = vst [vmem:[%s7554_s16 + $0x388] sm:$0xff] %v504_v49  ;;  %v508_v51 = vld [vmem:[%s7549_s15 + $0xe48] sm:$0xff]  ;;  %v510_v52 = vld [vmem:[%s7549_s15 + $0xe50] sm:$0xff] }
  0x4c   : > { %507 = vst [vmem:[%s7554_s16 + $0x390] sm:$0xff] %v506_v50  ;;  %509 = vst [vmem:[%s7554_s16 + $0x398] sm:$0xff] %v508_v51  ;;  %v512_v53 = vld [vmem:[%s7549_s15 + $0xea0] sm:$0xff]  ;;  %v514_v54 = vld [vmem:[%s7549_s15 + $0xea8] sm:$0xff] }
  0x4d   : > { %511 = vst [vmem:[%s7554_s16 + $0x3a0] sm:$0xff] %v510_v52  ;;  %v516_v55 = vld [vmem:[%s7549_s15 + $0xeb0] sm:$0xff]  ;;  %513 = vst [vmem:[%s7554_s16 + $0x3a8] sm:$0xff] %v512_v53  ;;  %v518_v56 = vld [vmem:[%s7549_s15 + $0xf00] sm:$0xff] }
  0x4e   : > { %515 = vst [vmem:[%s7554_s16 + $0x3b0] sm:$0xff] %v514_v54  ;;  %517 = vst [vmem:[%s7554_s16 + $0x3b8] sm:$0xff] %v516_v55  ;;  %v520_v57 = vld [vmem:[%s7549_s15 + $0xf08] sm:$0xff]  ;;  %v522_v58 = vld [vmem:[%s7549_s15 + $0xf10] sm:$0xff] }
  0x4f   : > { %519 = vst [vmem:[%s7554_s16 + $0x3c0] sm:$0xff] %v518_v56  ;;  %521 = vst [vmem:[%s7554_s16 + $0x3c8] sm:$0xff] %v520_v57  ;;  %v524_v59 = vld [vmem:[%s7549_s15 + $0xf60] sm:$0xff]  ;;  %v526_v60 = vld [vmem:[%s7549_s15 + $0xf68] sm:$0xff] }
  0x50   : > { %523 = vst [vmem:[%s7554_s16 + $0x3d0] sm:$0xff] %v522_v58  ;;  %v528_v61 = vld [vmem:[%s7549_s15 + $0xf70] sm:$0xff]  ;;  %525 = vst [vmem:[%s7554_s16 + $0x3d8] sm:$0xff] %v524_v59  ;;  %v530_v62 = vld [vmem:[%s7549_s15 + $0xfc0] sm:$0xff] }
  0x51   : > { %527 = vst [vmem:[%s7554_s16 + $0x3e0] sm:$0xff] %v526_v60  ;;  %529 = vst [vmem:[%s7554_s16 + $0x3e8] sm:$0xff] %v528_v61  ;;  %v532_v63 = vld [vmem:[%s7549_s15 + $0xfc8] sm:$0xff]  ;;  %v534_v0 = vld [vmem:[%s7549_s15 + $0xfd0] sm:$0xff] }
  0x52   : > { %531 = vst [vmem:[%s7554_s16 + $0x3f0] sm:$0xff] %v530_v62  ;;  %533 = vst [vmem:[%s7554_s16 + $0x3f8] sm:$0xff] %v532_v63  ;;  %v536_v1 = vld [vmem:[%s7549_s15 + $0x1020] sm:$0xff]  ;;  %v538_v2 = vld [vmem:[%s7549_s15 + $0x1028] sm:$0xff] }
  0x53   : > { %535 = vst [vmem:[%s7554_s16 + $0x400] sm:$0xff] %v534_v0  ;;  %v540_v3 = vld [vmem:[%s7549_s15 + $0x1030] sm:$0xff]  ;;  %537 = vst [vmem:[%s7554_s16 + $0x408] sm:$0xff] %v536_v1  ;;  %v542_v4 = vld [vmem:[%s7549_s15 + $0x1080] sm:$0xff] }
  0x54   : > { %539 = vst [vmem:[%s7554_s16 + $0x410] sm:$0xff] %v538_v2  ;;  %541 = vst [vmem:[%s7554_s16 + $0x418] sm:$0xff] %v540_v3  ;;  %v544_v5 = vld [vmem:[%s7549_s15 + $0x1088] sm:$0xff]  ;;  %v546_v6 = vld [vmem:[%s7549_s15 + $0x1090] sm:$0xff] }
  0x55   : > { %543 = vst [vmem:[%s7554_s16 + $0x420] sm:$0xff] %v542_v4  ;;  %545 = vst [vmem:[%s7554_s16 + $0x428] sm:$0xff] %v544_v5  ;;  %v548_v7 = vld [vmem:[%s7549_s15 + $0x10e0] sm:$0xff]  ;;  %v550_v8 = vld [vmem:[%s7549_s15 + $0x10e8] sm:$0xff] }
  0x56   : > { %547 = vst [vmem:[%s7554_s16 + $0x430] sm:$0xff] %v546_v6  ;;  %v552_v9 = vld [vmem:[%s7549_s15 + $0x10f0] sm:$0xff]  ;;  %549 = vst [vmem:[%s7554_s16 + $0x438] sm:$0xff] %v548_v7  ;;  %v554_v10 = vld [vmem:[%s7549_s15 + $0x1140] sm:$0xff] }
  0x57   : > { %551 = vst [vmem:[%s7554_s16 + $0x440] sm:$0xff] %v550_v8  ;;  %553 = vst [vmem:[%s7554_s16 + $0x448] sm:$0xff] %v552_v9  ;;  %v556_v11 = vld [vmem:[%s7549_s15 + $0x1148] sm:$0xff]  ;;  %v558_v12 = vld [vmem:[%s7549_s15 + $0x1150] sm:$0xff] }
  0x58   : > { %555 = vst [vmem:[%s7554_s16 + $0x450] sm:$0xff] %v554_v10  ;;  %557 = vst [vmem:[%s7554_s16 + $0x458] sm:$0xff] %v556_v11  ;;  %v560_v13 = vld [vmem:[%s7549_s15 + $0x11a0] sm:$0xff]  ;;  %v562_v14 = vld [vmem:[%s7549_s15 + $0x11a8] sm:$0xff] }
  0x59   : > { %559 = vst [vmem:[%s7554_s16 + $0x460] sm:$0xff] %v558_v12  ;;  %v564_v15 = vld [vmem:[%s7549_s15 + $0x11b0] sm:$0xff]  ;;  %561 = vst [vmem:[%s7554_s16 + $0x468] sm:$0xff] %v560_v13  ;;  %v566_v16 = vld [vmem:[%s7549_s15 + $0x1200] sm:$0xff] }
  0x5a   : > { %563 = vst [vmem:[%s7554_s16 + $0x470] sm:$0xff] %v562_v14  ;;  %565 = vst [vmem:[%s7554_s16 + $0x478] sm:$0xff] %v564_v15  ;;  %v568_v17 = vld [vmem:[%s7549_s15 + $0x1208] sm:$0xff]  ;;  %v570_v18 = vld [vmem:[%s7549_s15 + $0x1210] sm:$0xff] }
  0x5b   : > { %567 = vst [vmem:[%s7554_s16 + $0x480] sm:$0xff] %v566_v16  ;;  %569 = vst [vmem:[%s7554_s16 + $0x488] sm:$0xff] %v568_v17  ;;  %v572_v19 = vld [vmem:[%s7549_s15 + $0x1260] sm:$0xff]  ;;  %v574_v20 = vld [vmem:[%s7549_s15 + $0x1268] sm:$0xff] }
  0x5c   : > { %571 = vst [vmem:[%s7554_s16 + $0x490] sm:$0xff] %v570_v18  ;;  %v576_v21 = vld [vmem:[%s7549_s15 + $0x1270] sm:$0xff]  ;;  %573 = vst [vmem:[%s7554_s16 + $0x498] sm:$0xff] %v572_v19  ;;  %v578_v22 = vld [vmem:[%s7549_s15 + $0x12c0] sm:$0xff] }
  0x5d   : > { %575 = vst [vmem:[%s7554_s16 + $0x4a0] sm:$0xff] %v574_v20  ;;  %577 = vst [vmem:[%s7554_s16 + $0x4a8] sm:$0xff] %v576_v21  ;;  %v580_v23 = vld [vmem:[%s7549_s15 + $0x12c8] sm:$0xff]  ;;  %v582_v24 = vld [vmem:[%s7549_s15 + $0x12d0] sm:$0xff] }
  0x5e   : > { %579 = vst [vmem:[%s7554_s16 + $0x4b0] sm:$0xff] %v578_v22  ;;  %581 = vst [vmem:[%s7554_s16 + $0x4b8] sm:$0xff] %v580_v23  ;;  %v584_v25 = vld [vmem:[%s7549_s15 + $0x1320] sm:$0xff]  ;;  %v586_v26 = vld [vmem:[%s7549_s15 + $0x1328] sm:$0xff] }
  0x5f   : > { %583 = vst [vmem:[%s7554_s16 + $0x4c0] sm:$0xff] %v582_v24  ;;  %v588_v27 = vld [vmem:[%s7549_s15 + $0x1330] sm:$0xff]  ;;  %585 = vst [vmem:[%s7554_s16 + $0x4c8] sm:$0xff] %v584_v25  ;;  %v590_v28 = vld [vmem:[%s7549_s15 + $0x1380] sm:$0xff] }
  0x60   : > { %587 = vst [vmem:[%s7554_s16 + $0x4d0] sm:$0xff] %v586_v26  ;;  %589 = vst [vmem:[%s7554_s16 + $0x4d8] sm:$0xff] %v588_v27  ;;  %v592_v29 = vld [vmem:[%s7549_s15 + $0x1388] sm:$0xff]  ;;  %v594_v30 = vld [vmem:[%s7549_s15 + $0x1390] sm:$0xff] }
  0x61   : > { %591 = vst [vmem:[%s7554_s16 + $0x4e0] sm:$0xff] %v590_v28  ;;  %593 = vst [vmem:[%s7554_s16 + $0x4e8] sm:$0xff] %v592_v29  ;;  %v596_v31 = vld [vmem:[%s7549_s15 + $0x13e0] sm:$0xff]  ;;  %v598_v32 = vld [vmem:[%s7549_s15 + $0x13e8] sm:$0xff] }
  0x62   : > { %595 = vst [vmem:[%s7554_s16 + $0x4f0] sm:$0xff] %v594_v30  ;;  %v600_v33 = vld [vmem:[%s7549_s15 + $0x13f0] sm:$0xff]  ;;  %597 = vst [vmem:[%s7554_s16 + $0x4f8] sm:$0xff] %v596_v31  ;;  %v602_v34 = vld [vmem:[%s7549_s15 + $0x1440] sm:$0xff] }
  0x63   : > { %599 = vst [vmem:[%s7554_s16 + $0x500] sm:$0xff] %v598_v32  ;;  %601 = vst [vmem:[%s7554_s16 + $0x508] sm:$0xff] %v600_v33  ;;  %v604_v35 = vld [vmem:[%s7549_s15 + $0x1448] sm:$0xff]  ;;  %v606_v36 = vld [vmem:[%s7549_s15 + $0x1450] sm:$0xff] }
  0x64   : > { %603 = vst [vmem:[%s7554_s16 + $0x510] sm:$0xff] %v602_v34  ;;  %605 = vst [vmem:[%s7554_s16 + $0x518] sm:$0xff] %v604_v35  ;;  %v608_v37 = vld [vmem:[%s7549_s15 + $0x14a0] sm:$0xff]  ;;  %v610_v38 = vld [vmem:[%s7549_s15 + $0x14a8] sm:$0xff] }
  0x65   : > { %607 = vst [vmem:[%s7554_s16 + $0x520] sm:$0xff] %v606_v36  ;;  %v612_v39 = vld [vmem:[%s7549_s15 + $0x14b0] sm:$0xff]  ;;  %609 = vst [vmem:[%s7554_s16 + $0x528] sm:$0xff] %v608_v37  ;;  %v614_v40 = vld [vmem:[%s7549_s15 + $0x1500] sm:$0xff] }
  0x66   : > { %611 = vst [vmem:[%s7554_s16 + $0x530] sm:$0xff] %v610_v38  ;;  %613 = vst [vmem:[%s7554_s16 + $0x538] sm:$0xff] %v612_v39  ;;  %v616_v41 = vld [vmem:[%s7549_s15 + $0x1508] sm:$0xff]  ;;  %v618_v42 = vld [vmem:[%s7549_s15 + $0x1510] sm:$0xff] }
  0x67   : > { %615 = vst [vmem:[%s7554_s16 + $0x540] sm:$0xff] %v614_v40  ;;  %617 = vst [vmem:[%s7554_s16 + $0x548] sm:$0xff] %v616_v41  ;;  %v620_v43 = vld [vmem:[%s7549_s15 + $0x1560] sm:$0xff]  ;;  %v622_v44 = vld [vmem:[%s7549_s15 + $0x1568] sm:$0xff] }
  0x68   : > { %619 = vst [vmem:[%s7554_s16 + $0x550] sm:$0xff] %v618_v42  ;;  %v624_v45 = vld [vmem:[%s7549_s15 + $0x1570] sm:$0xff]  ;;  %621 = vst [vmem:[%s7554_s16 + $0x558] sm:$0xff] %v620_v43  ;;  %v626_v46 = vld [vmem:[%s7549_s15 + $0x15c0] sm:$0xff] }
  0x69   : > { %623 = vst [vmem:[%s7554_s16 + $0x560] sm:$0xff] %v622_v44  ;;  %625 = vst [vmem:[%s7554_s16 + $0x568] sm:$0xff] %v624_v45  ;;  %v628_v47 = vld [vmem:[%s7549_s15 + $0x15c8] sm:$0xff]  ;;  %v630_v48 = vld [vmem:[%s7549_s15 + $0x15d0] sm:$0xff] }
  0x6a   : > { %627 = vst [vmem:[%s7554_s16 + $0x570] sm:$0xff] %v626_v46  ;;  %629 = vst [vmem:[%s7554_s16 + $0x578] sm:$0xff] %v628_v47  ;;  %v632_v49 = vld [vmem:[%s7549_s15 + $0x1620] sm:$0xff]  ;;  %v634_v50 = vld [vmem:[%s7549_s15 + $0x1628] sm:$0xff] }
  0x6b   : > { %631 = vst [vmem:[%s7554_s16 + $0x580] sm:$0xff] %v630_v48  ;;  %v636_v51 = vld [vmem:[%s7549_s15 + $0x1630] sm:$0xff]  ;;  %633 = vst [vmem:[%s7554_s16 + $0x588] sm:$0xff] %v632_v49  ;;  %v638_v52 = vld [vmem:[%s7549_s15 + $0x1680] sm:$0xff] }
  0x6c   : > { %635 = vst [vmem:[%s7554_s16 + $0x590] sm:$0xff] %v634_v50  ;;  %637 = vst [vmem:[%s7554_s16 + $0x598] sm:$0xff] %v636_v51  ;;  %v640_v53 = vld [vmem:[%s7549_s15 + $0x1688] sm:$0xff]  ;;  %v642_v54 = vld [vmem:[%s7549_s15 + $0x1690] sm:$0xff] }
  0x6d   : > { %639 = vst [vmem:[%s7554_s16 + $0x5a0] sm:$0xff] %v638_v52  ;;  %641 = vst [vmem:[%s7554_s16 + $0x5a8] sm:$0xff] %v640_v53  ;;  %v644_v55 = vld [vmem:[%s7549_s15 + $0x16e0] sm:$0xff]  ;;  %v646_v56 = vld [vmem:[%s7549_s15 + $0x16e8] sm:$0xff] }
  0x6e   : > { %643 = vst [vmem:[%s7554_s16 + $0x5b0] sm:$0xff] %v642_v54  ;;  %v648_v57 = vld [vmem:[%s7549_s15 + $0x16f0] sm:$0xff]  ;;  %645 = vst [vmem:[%s7554_s16 + $0x5b8] sm:$0xff] %v644_v55  ;;  %v650_v58 = vld [vmem:[%s7549_s15 + $0x1740] sm:$0xff] }
  0x6f   : > { %647 = vst [vmem:[%s7554_s16 + $0x5c0] sm:$0xff] %v646_v56  ;;  %649 = vst [vmem:[%s7554_s16 + $0x5c8] sm:$0xff] %v648_v57  ;;  %v652_v59 = vld [vmem:[%s7549_s15 + $0x1748] sm:$0xff]  ;;  %v654_v60 = vld [vmem:[%s7549_s15 + $0x1750] sm:$0xff] }
  0x70   : > { %651 = vst [vmem:[%s7554_s16 + $0x5d0] sm:$0xff] %v650_v58  ;;  %653 = vst [vmem:[%s7554_s16 + $0x5d8] sm:$0xff] %v652_v59  ;;  %v656_v61 = vld [vmem:[%s7549_s15 + $0x17a0] sm:$0xff]  ;;  %v658_v62 = vld [vmem:[%s7549_s15 + $0x17a8] sm:$0xff] }
  0x71   : > { %655 = vst [vmem:[%s7554_s16 + $0x5e0] sm:$0xff] %v654_v60  ;;  %v660_v63 = vld [vmem:[%s7549_s15 + $0x17b0] sm:$0xff]  ;;  %657 = vst [vmem:[%s7554_s16 + $0x5e8] sm:$0xff] %v656_v61  ;;  %v662_v0 = vld [vmem:[%s7549_s15 + $0x1800] sm:$0xff] }
  0x72   : > { %659 = vst [vmem:[%s7554_s16 + $0x5f0] sm:$0xff] %v658_v62  ;;  %661 = vst [vmem:[%s7554_s16 + $0x5f8] sm:$0xff] %v660_v63  ;;  %v664_v1 = vld [vmem:[%s7549_s15 + $0x1808] sm:$0xff]  ;;  %v666_v2 = vld [vmem:[%s7549_s15 + $0x1810] sm:$0xff] }
  0x73   : > { %663 = vst [vmem:[%s7554_s16 + $0x600] sm:$0xff] %v662_v0  ;;  %665 = vst [vmem:[%s7554_s16 + $0x608] sm:$0xff] %v664_v1  ;;  %v668_v3 = vld [vmem:[%s7549_s15 + $0x1860] sm:$0xff]  ;;  %v670_v4 = vld [vmem:[%s7549_s15 + $0x1868] sm:$0xff] }
  0x74   : > { %667 = vst [vmem:[%s7554_s16 + $0x610] sm:$0xff] %v666_v2  ;;  %v672_v5 = vld [vmem:[%s7549_s15 + $0x1870] sm:$0xff]  ;;  %669 = vst [vmem:[%s7554_s16 + $0x618] sm:$0xff] %v668_v3  ;;  %v674_v6 = vld [vmem:[%s7549_s15 + $0x18c0] sm:$0xff] }
  0x75   : > { %671 = vst [vmem:[%s7554_s16 + $0x620] sm:$0xff] %v670_v4  ;;  %673 = vst [vmem:[%s7554_s16 + $0x628] sm:$0xff] %v672_v5  ;;  %v676_v7 = vld [vmem:[%s7549_s15 + $0x18c8] sm:$0xff]  ;;  %v678_v8 = vld [vmem:[%s7549_s15 + $0x18d0] sm:$0xff] }
  0x76   : > { %675 = vst [vmem:[%s7554_s16 + $0x630] sm:$0xff] %v674_v6  ;;  %677 = vst [vmem:[%s7554_s16 + $0x638] sm:$0xff] %v676_v7  ;;  %v680_v9 = vld [vmem:[%s7549_s15 + $0x1920] sm:$0xff]  ;;  %v682_v10 = vld [vmem:[%s7549_s15 + $0x1928] sm:$0xff] }
  0x77   : > { %679 = vst [vmem:[%s7554_s16 + $0x640] sm:$0xff] %v678_v8  ;;  %v684_v11 = vld [vmem:[%s7549_s15 + $0x1930] sm:$0xff]  ;;  %681 = vst [vmem:[%s7554_s16 + $0x648] sm:$0xff] %v680_v9  ;;  %v686_v12 = vld [vmem:[%s7549_s15 + $0x1980] sm:$0xff] }
  0x78   : > { %683 = vst [vmem:[%s7554_s16 + $0x650] sm:$0xff] %v682_v10  ;;  %685 = vst [vmem:[%s7554_s16 + $0x658] sm:$0xff] %v684_v11  ;;  %v688_v13 = vld [vmem:[%s7549_s15 + $0x1988] sm:$0xff]  ;;  %v690_v14 = vld [vmem:[%s7549_s15 + $0x1990] sm:$0xff] }
  0x79   : > { %687 = vst [vmem:[%s7554_s16 + $0x660] sm:$0xff] %v686_v12  ;;  %689 = vst [vmem:[%s7554_s16 + $0x668] sm:$0xff] %v688_v13  ;;  %v692_v15 = vld [vmem:[%s7549_s15 + $0x19e0] sm:$0xff]  ;;  %v694_v16 = vld [vmem:[%s7549_s15 + $0x19e8] sm:$0xff] }
  0x7a   : > { %691 = vst [vmem:[%s7554_s16 + $0x670] sm:$0xff] %v690_v14  ;;  %v696_v17 = vld [vmem:[%s7549_s15 + $0x19f0] sm:$0xff]  ;;  %693 = vst [vmem:[%s7554_s16 + $0x678] sm:$0xff] %v692_v15  ;;  %v698_v18 = vld [vmem:[%s7549_s15 + $0x1a40] sm:$0xff] }
  0x7b   : > { %695 = vst [vmem:[%s7554_s16 + $0x680] sm:$0xff] %v694_v16  ;;  %697 = vst [vmem:[%s7554_s16 + $0x688] sm:$0xff] %v696_v17  ;;  %v700_v19 = vld [vmem:[%s7549_s15 + $0x1a48] sm:$0xff]  ;;  %v702_v20 = vld [vmem:[%s7549_s15 + $0x1a50] sm:$0xff] }
  0x7c   : > { %699 = vst [vmem:[%s7554_s16 + $0x690] sm:$0xff] %v698_v18  ;;  %701 = vst [vmem:[%s7554_s16 + $0x698] sm:$0xff] %v700_v19  ;;  %v704_v21 = vld [vmem:[%s7549_s15 + $0x1aa0] sm:$0xff]  ;;  %v706_v22 = vld [vmem:[%s7549_s15 + $0x1aa8] sm:$0xff] }
  0x7d   : > { %703 = vst [vmem:[%s7554_s16 + $0x6a0] sm:$0xff] %v702_v20  ;;  %v708_v23 = vld [vmem:[%s7549_s15 + $0x1ab0] sm:$0xff]  ;;  %705 = vst [vmem:[%s7554_s16 + $0x6a8] sm:$0xff] %v704_v21  ;;  %v710_v24 = vld [vmem:[%s7549_s15 + $0x1b00] sm:$0xff] }
  0x7e   : > { %707 = vst [vmem:[%s7554_s16 + $0x6b0] sm:$0xff] %v706_v22  ;;  %709 = vst [vmem:[%s7554_s16 + $0x6b8] sm:$0xff] %v708_v23  ;;  %v712_v25 = vld [vmem:[%s7549_s15 + $0x1b08] sm:$0xff]  ;;  %v714_v26 = vld [vmem:[%s7549_s15 + $0x1b10] sm:$0xff] }
  0x7f   : > { %711 = vst [vmem:[%s7554_s16 + $0x6c0] sm:$0xff] %v710_v24  ;;  %713 = vst [vmem:[%s7554_s16 + $0x6c8] sm:$0xff] %v712_v25  ;;  %v716_v27 = vld [vmem:[%s7549_s15 + $0x1b60] sm:$0xff]  ;;  %v718_v28 = vld [vmem:[%s7549_s15 + $0x1b68] sm:$0xff] }
  0x80   : > { %715 = vst [vmem:[%s7554_s16 + $0x6d0] sm:$0xff] %v714_v26  ;;  %v720_v29 = vld [vmem:[%s7549_s15 + $0x1b70] sm:$0xff]  ;;  %717 = vst [vmem:[%s7554_s16 + $0x6d8] sm:$0xff] %v716_v27  ;;  %v722_v30 = vld [vmem:[%s7549_s15 + $0x1bc0] sm:$0xff] }
  0x81   : > { %719 = vst [vmem:[%s7554_s16 + $0x6e0] sm:$0xff] %v718_v28  ;;  %721 = vst [vmem:[%s7554_s16 + $0x6e8] sm:$0xff] %v720_v29  ;;  %v724_v31 = vld [vmem:[%s7549_s15 + $0x1bc8] sm:$0xff]  ;;  %v726_v32 = vld [vmem:[%s7549_s15 + $0x1bd0] sm:$0xff] }
  0x82   : > { %723 = vst [vmem:[%s7554_s16 + $0x6f0] sm:$0xff] %v722_v30  ;;  %725 = vst [vmem:[%s7554_s16 + $0x6f8] sm:$0xff] %v724_v31  ;;  %v728_v33 = vld [vmem:[%s7549_s15 + $0x1c20] sm:$0xff]  ;;  %v730_v34 = vld [vmem:[%s7549_s15 + $0x1c28] sm:$0xff] }
  0x83   : > { %727 = vst [vmem:[%s7554_s16 + $0x700] sm:$0xff] %v726_v32  ;;  %v732_v35 = vld [vmem:[%s7549_s15 + $0x1c30] sm:$0xff]  ;;  %729 = vst [vmem:[%s7554_s16 + $0x708] sm:$0xff] %v728_v33  ;;  %v734_v36 = vld [vmem:[%s7549_s15 + $0x1c80] sm:$0xff] }
  0x84   : > { %731 = vst [vmem:[%s7554_s16 + $0x710] sm:$0xff] %v730_v34  ;;  %733 = vst [vmem:[%s7554_s16 + $0x718] sm:$0xff] %v732_v35  ;;  %v736_v37 = vld [vmem:[%s7549_s15 + $0x1c88] sm:$0xff]  ;;  %v738_v38 = vld [vmem:[%s7549_s15 + $0x1c90] sm:$0xff] }
  0x85   : > { %735 = vst [vmem:[%s7554_s16 + $0x720] sm:$0xff] %v734_v36  ;;  %737 = vst [vmem:[%s7554_s16 + $0x728] sm:$0xff] %v736_v37  ;;  %v740_v39 = vld [vmem:[%s7549_s15 + $0x1ce0] sm:$0xff]  ;;  %v742_v40 = vld [vmem:[%s7549_s15 + $0x1ce8] sm:$0xff] }
  0x86   : > { %739 = vst [vmem:[%s7554_s16 + $0x730] sm:$0xff] %v738_v38  ;;  %v744_v41 = vld [vmem:[%s7549_s15 + $0x1cf0] sm:$0xff]  ;;  %741 = vst [vmem:[%s7554_s16 + $0x738] sm:$0xff] %v740_v39  ;;  %v746_v42 = vld [vmem:[%s7549_s15 + $0x1d40] sm:$0xff] }
  0x87   : > { %743 = vst [vmem:[%s7554_s16 + $0x740] sm:$0xff] %v742_v40  ;;  %745 = vst [vmem:[%s7554_s16 + $0x748] sm:$0xff] %v744_v41  ;;  %v748_v43 = vld [vmem:[%s7549_s15 + $0x1d48] sm:$0xff]  ;;  %v750_v44 = vld [vmem:[%s7549_s15 + $0x1d50] sm:$0xff] }
  0x88   : > { %747 = vst [vmem:[%s7554_s16 + $0x750] sm:$0xff] %v746_v42  ;;  %749 = vst [vmem:[%s7554_s16 + $0x758] sm:$0xff] %v748_v43  ;;  %v752_v45 = vld [vmem:[%s7549_s15 + $0x1da0] sm:$0xff]  ;;  %v754_v46 = vld [vmem:[%s7549_s15 + $0x1da8] sm:$0xff] }
  0x89   : > { %751 = vst [vmem:[%s7554_s16 + $0x760] sm:$0xff] %v750_v44  ;;  %v756_v47 = vld [vmem:[%s7549_s15 + $0x1db0] sm:$0xff]  ;;  %753 = vst [vmem:[%s7554_s16 + $0x768] sm:$0xff] %v752_v45  ;;  %v758_v48 = vld [vmem:[%s7549_s15 + $0x1e00] sm:$0xff] }
  0x8a   : > { %755 = vst [vmem:[%s7554_s16 + $0x770] sm:$0xff] %v754_v46  ;;  %757 = vst [vmem:[%s7554_s16 + $0x778] sm:$0xff] %v756_v47  ;;  %v760_v49 = vld [vmem:[%s7549_s15 + $0x1e08] sm:$0xff]  ;;  %v762_v50 = vld [vmem:[%s7549_s15 + $0x1e10] sm:$0xff] }
  0x8b   : > { %759 = vst [vmem:[%s7554_s16 + $0x780] sm:$0xff] %v758_v48  ;;  %761 = vst [vmem:[%s7554_s16 + $0x788] sm:$0xff] %v760_v49  ;;  %v764_v51 = vld [vmem:[%s7549_s15 + $0x1e60] sm:$0xff]  ;;  %v766_v52 = vld [vmem:[%s7549_s15 + $0x1e68] sm:$0xff] }
  0x8c   : > { %763 = vst [vmem:[%s7554_s16 + $0x790] sm:$0xff] %v762_v50  ;;  %v768_v53 = vld [vmem:[%s7549_s15 + $0x1e70] sm:$0xff]  ;;  %765 = vst [vmem:[%s7554_s16 + $0x798] sm:$0xff] %v764_v51  ;;  %v770_v54 = vld [vmem:[%s7549_s15 + $0x1ec0] sm:$0xff] }
  0x8d   : > { %767 = vst [vmem:[%s7554_s16 + $0x7a0] sm:$0xff] %v766_v52  ;;  %769 = vst [vmem:[%s7554_s16 + $0x7a8] sm:$0xff] %v768_v53  ;;  %v772_v55 = vld [vmem:[%s7549_s15 + $0x1ec8] sm:$0xff]  ;;  %v774_v56 = vld [vmem:[%s7549_s15 + $0x1ed0] sm:$0xff] }
  0x8e   : > { %771 = vst [vmem:[%s7554_s16 + $0x7b0] sm:$0xff] %v770_v54  ;;  %773 = vst [vmem:[%s7554_s16 + $0x7b8] sm:$0xff] %v772_v55  ;;  %v776_v57 = vld [vmem:[%s7549_s15 + $0x1f20] sm:$0xff]  ;;  %v778_v58 = vld [vmem:[%s7549_s15 + $0x1f28] sm:$0xff] }
  0x8f   : > { %775 = vst [vmem:[%s7554_s16 + $0x7c0] sm:$0xff] %v774_v56  ;;  %v780_v59 = vld [vmem:[%s7549_s15 + $0x1f30] sm:$0xff]  ;;  %777 = vst [vmem:[%s7554_s16 + $0x7c8] sm:$0xff] %v776_v57  ;;  %v782_v60 = vld [vmem:[%s7549_s15 + $0x1f80] sm:$0xff] }
  0x90   : > { %779 = vst [vmem:[%s7554_s16 + $0x7d0] sm:$0xff] %v778_v58  ;;  %781 = vst [vmem:[%s7554_s16 + $0x7d8] sm:$0xff] %v780_v59  ;;  %v784_v61 = vld [vmem:[%s7549_s15 + $0x1f88] sm:$0xff]  ;;  %v786_v62 = vld [vmem:[%s7549_s15 + $0x1f90] sm:$0xff] }
  0x91   : > { %783 = vst [vmem:[%s7554_s16 + $0x7e0] sm:$0xff] %v782_v60  ;;  %785 = vst [vmem:[%s7554_s16 + $0x7e8] sm:$0xff] %v784_v61  ;;  %v788_v63 = vld [vmem:[%s7549_s15 + $0x1fe0] sm:$0xff]  ;;  %v790_v0 = vld [vmem:[%s7549_s15 + $0x1fe8] sm:$0xff] }
  0x92   : > { %787 = vst [vmem:[%s7554_s16 + $0x7f0] sm:$0xff] %v786_v62  ;;  %v792_v1 = vld [vmem:[%s7549_s15 + $0x1ff0] sm:$0xff]  ;;  %789 = vst [vmem:[%s7554_s16 + $0x7f8] sm:$0xff] %v788_v63  ;;  %v794_v2 = vld [vmem:[%s7549_s15 + $0x2040] sm:$0xff] }
  0x93   : > { %791 = vst [vmem:[%s7554_s16 + $0x800] sm:$0xff] %v790_v0  ;;  %793 = vst [vmem:[%s7554_s16 + $0x808] sm:$0xff] %v792_v1  ;;  %v796_v3 = vld [vmem:[%s7549_s15 + $0x2048] sm:$0xff]  ;;  %v798_v4 = vld [vmem:[%s7549_s15 + $0x2050] sm:$0xff] }
  0x94   : > { %795 = vst [vmem:[%s7554_s16 + $0x810] sm:$0xff] %v794_v2  ;;  %797 = vst [vmem:[%s7554_s16 + $0x818] sm:$0xff] %v796_v3  ;;  %v800_v5 = vld [vmem:[%s7549_s15 + $0x20a0] sm:$0xff]  ;;  %v802_v6 = vld [vmem:[%s7549_s15 + $0x20a8] sm:$0xff] }
  0x95   : > { %799 = vst [vmem:[%s7554_s16 + $0x820] sm:$0xff] %v798_v4  ;;  %v804_v7 = vld [vmem:[%s7549_s15 + $0x20b0] sm:$0xff]  ;;  %801 = vst [vmem:[%s7554_s16 + $0x828] sm:$0xff] %v800_v5  ;;  %v806_v8 = vld [vmem:[%s7549_s15 + $0x2100] sm:$0xff] }
  0x96   : > { %803 = vst [vmem:[%s7554_s16 + $0x830] sm:$0xff] %v802_v6  ;;  %805 = vst [vmem:[%s7554_s16 + $0x838] sm:$0xff] %v804_v7  ;;  %v808_v9 = vld [vmem:[%s7549_s15 + $0x2108] sm:$0xff]  ;;  %v810_v10 = vld [vmem:[%s7549_s15 + $0x2110] sm:$0xff] }
  0x97   : > { %807 = vst [vmem:[%s7554_s16 + $0x840] sm:$0xff] %v806_v8  ;;  %809 = vst [vmem:[%s7554_s16 + $0x848] sm:$0xff] %v808_v9  ;;  %v812_v11 = vld [vmem:[%s7549_s15 + $0x2160] sm:$0xff]  ;;  %v814_v12 = vld [vmem:[%s7549_s15 + $0x2168] sm:$0xff] }
  0x98   : > { %811 = vst [vmem:[%s7554_s16 + $0x850] sm:$0xff] %v810_v10  ;;  %v816_v13 = vld [vmem:[%s7549_s15 + $0x2170] sm:$0xff]  ;;  %813 = vst [vmem:[%s7554_s16 + $0x858] sm:$0xff] %v812_v11  ;;  %v818_v14 = vld [vmem:[%s7549_s15 + $0x21c0] sm:$0xff] }
  0x99   : > { %815 = vst [vmem:[%s7554_s16 + $0x860] sm:$0xff] %v814_v12  ;;  %817 = vst [vmem:[%s7554_s16 + $0x868] sm:$0xff] %v816_v13  ;;  %v820_v15 = vld [vmem:[%s7549_s15 + $0x21c8] sm:$0xff]  ;;  %v822_v16 = vld [vmem:[%s7549_s15 + $0x21d0] sm:$0xff] }
  0x9a   : > { %819 = vst [vmem:[%s7554_s16 + $0x870] sm:$0xff] %v818_v14  ;;  %821 = vst [vmem:[%s7554_s16 + $0x878] sm:$0xff] %v820_v15  ;;  %v824_v17 = vld [vmem:[%s7549_s15 + $0x2220] sm:$0xff]  ;;  %v826_v18 = vld [vmem:[%s7549_s15 + $0x2228] sm:$0xff] }
  0x9b   : > { %823 = vst [vmem:[%s7554_s16 + $0x880] sm:$0xff] %v822_v16  ;;  %v828_v19 = vld [vmem:[%s7549_s15 + $0x2230] sm:$0xff]  ;;  %825 = vst [vmem:[%s7554_s16 + $0x888] sm:$0xff] %v824_v17  ;;  %v830_v20 = vld [vmem:[%s7549_s15 + $0x2280] sm:$0xff] }
  0x9c   : > { %827 = vst [vmem:[%s7554_s16 + $0x890] sm:$0xff] %v826_v18  ;;  %829 = vst [vmem:[%s7554_s16 + $0x898] sm:$0xff] %v828_v19  ;;  %v832_v21 = vld [vmem:[%s7549_s15 + $0x2288] sm:$0xff]  ;;  %v834_v22 = vld [vmem:[%s7549_s15 + $0x2290] sm:$0xff] }
  0x9d   : > { %831 = vst [vmem:[%s7554_s16 + $0x8a0] sm:$0xff] %v830_v20  ;;  %833 = vst [vmem:[%s7554_s16 + $0x8a8] sm:$0xff] %v832_v21  ;;  %v836_v23 = vld [vmem:[%s7549_s15 + $0x22e0] sm:$0xff]  ;;  %v838_v24 = vld [vmem:[%s7549_s15 + $0x22e8] sm:$0xff] }
  0x9e   : > { %835 = vst [vmem:[%s7554_s16 + $0x8b0] sm:$0xff] %v834_v22  ;;  %v840_v25 = vld [vmem:[%s7549_s15 + $0x22f0] sm:$0xff]  ;;  %837 = vst [vmem:[%s7554_s16 + $0x8b8] sm:$0xff] %v836_v23  ;;  %v842_v26 = vld [vmem:[%s7549_s15 + $0x2340] sm:$0xff] }
  0x9f   : > { %839 = vst [vmem:[%s7554_s16 + $0x8c0] sm:$0xff] %v838_v24  ;;  %841 = vst [vmem:[%s7554_s16 + $0x8c8] sm:$0xff] %v840_v25  ;;  %v844_v27 = vld [vmem:[%s7549_s15 + $0x2348] sm:$0xff]  ;;  %v846_v28 = vld [vmem:[%s7549_s15 + $0x2350] sm:$0xff] }
  0xa0   : > { %843 = vst [vmem:[%s7554_s16 + $0x8d0] sm:$0xff] %v842_v26  ;;  %845 = vst [vmem:[%s7554_s16 + $0x8d8] sm:$0xff] %v844_v27  ;;  %v848_v29 = vld [vmem:[%s7549_s15 + $0x23a0] sm:$0xff]  ;;  %v850_v30 = vld [vmem:[%s7549_s15 + $0x23a8] sm:$0xff] }
  0xa1   : > { %847 = vst [vmem:[%s7554_s16 + $0x8e0] sm:$0xff] %v846_v28  ;;  %v852_v31 = vld [vmem:[%s7549_s15 + $0x23b0] sm:$0xff]  ;;  %849 = vst [vmem:[%s7554_s16 + $0x8e8] sm:$0xff] %v848_v29 }
  0xa2   : > { %851 = vst [vmem:[%s7554_s16 + $0x8f0] sm:$0xff] %v850_v30  ;;  %853 = vst [vmem:[%s7554_s16 + $0x8f8] sm:$0xff] %v852_v31 }
  0xa3 PF: > { %p5820_p6 = scmp.ge.s32.totalorder %s7463_s28, 1  ;;  %p876_p7 = scmp.lt.s32.totalorder %s7463_s28, 5 }
  0xa5   : > { %p877_p8 = pnand %p5820_p6, %p876_p7 }
  0xa6   : > { %s883_s17 = sand.u32 (!%p877_p8), 1, %s7447_s24   ;;  %s939_s18 = smul.u32 (!%p877_p8), 6, %s7455_s26 }
  0xa7   : > { %880 = sbr.rel (%p877_p8) target bundleno = 1566 (0x61e), region = 67  ;;  %p5822_p11 = scmp.ne.s32.totalorder (!%p877_p8), %s7455_s26, 0 }
  0xa8   : > { %s6484_s19 = smul.u32 (!%p877_p8), 2304, %s883_s17  ;;  %p940_p9 = scmp.lt.s32.totalorder (!%p877_p8), %s939_s18, 23 }
  0xa9   : > { %s944_s20 = smul.u32 (!%p877_p8), 96, %s7455_s26 }
  0xaa   : > { %s8145_s24 = scalar_lea.vmem (!%p877_p8), [#allocation3], %s6484_s19 }
  0xab   : > { %p945_p10 = scmp.lt.s32.totalorder (!%p877_p8), %s944_s20, 383 }
  0xae   : > { %s9034_s18 = smov (!%p940_p9, %s939_s18), 23  ;;  %s9036_s20 = smov (!%p945_p10, %s944_s20), 383 }
  0xaf   : > { %s942_s23 = scalar_lea.vmem %s9021_s2, %s9034_s18  ;;  %s6485_s30 = smul.u32 24, %s9036_s20  ;;  %v7465_v32 = vmov (!%p5822_p11), 0.0  }
  0xb0   : > { %961 = sbr.rel (%p5822_p11) target bundleno = 183 (0xb7), region = 75  ;;  %962 = vst [vmem:[#allocation2] sm:$0xff] (!%p5822_p11), %v7465_v32  ;;  %963 = vst [vmem:[#allocation2 + $0x8] sm:$0xff] (!%p5822_p11), %v7465_v32 }
  0xb1   : > { %s8143_s11 = scalar_lea.vmem %s9022_s3, %s6485_s30  ;;  %964 = vst [vmem:[#allocation2 + $0x10] sm:$0xff] (!%p5822_p11), %v7465_v32  ;;  %965 = vst [vmem:[#allocation2 + $0x18] sm:$0xff] (!%p5822_p11), %v7465_v32 }
  0xb2   : > { %966 = vst [vmem:[#allocation2 + $0x20] sm:$0xff] (!%p5822_p11), %v7465_v32  ;;  %967 = vst [vmem:[#allocation2 + $0x28] sm:$0xff] (!%p5822_p11), %v7465_v32 }
  0xb3   : > { %968 = vst [vmem:[#allocation2 + $0x30] sm:$0xff] (!%p5822_p11), %v7465_v32  ;;  %969 = vst [vmem:[#allocation2 + $0x38] sm:$0xff] (!%p5822_p11), %v7465_v32 }
  0xb4   : > { %970 = vst [vmem:[#allocation2 + $0x40] sm:$0xff] (!%p5822_p11), %v7465_v32  ;;  %971 = vst [vmem:[#allocation2 + $0x48] sm:$0xff] (!%p5822_p11), %v7465_v32 }
  0xb5   : > { %972 = vst [vmem:[#allocation2 + $0x50] sm:$0xff] (!%p5822_p11), %v7465_v32  ;;  %973 = vst [vmem:[#allocation2 + $0x58] sm:$0xff] (!%p5822_p11), %v7465_v32 }
  0xb7 PF: > { %v6527_v33 = vld [vmem:[%s8145_s24 + $0x4] ss:$24 sps:$4 sm:$0xff]   ;;  %v6531_v35 = vld [vmem:[%s8145_s24] ss:$24 sps:$4 sm:$0xff]   ;;  %v6533_v37 = vld [vmem:[%s8145_s24 + $0x34] ss:$24 sps:$4 sm:$0xff]  }
  0xb8   : > { %v6529_v34 = vld [vmem:[%s8145_s24 + $0xc] ss:$24 sps:$4 sm:$0xff]   ;;  %2770 = vmatprep.subr.bf16.mxu0 %v6527_v33  ;;  %v6532_v36 = vld [vmem:[%s8145_s24 + $0x8] ss:$24 sps:$4 sm:$0xff]   ;;  %v6535_v38 = vld [vmem:[%s8145_s24 + $0x3c] ss:$24 sps:$4 sm:$0xff]  }
  0xb9   : > { %2899 = vmatprep.subr.bf16.mxu1 %v6529_v34  ;;  %2771 = vmatpush1.bf16.msra.mxu0 %v6531_v35  ;;  %v6537_v39 = vld [vmem:[%s8145_s24 + $0x30] ss:$24 sps:$4 sm:$0xff]   ;;  %v6539_v41 = vld [vmem:[%s8145_s24 + $0x64] ss:$24 sps:$4 sm:$0xff]   ;;  %v6543_v43 = vld [vmem:[%s8145_s24 + $0x60] ss:$24 sps:$4 sm:$0xff]  }
  0xba   : > { %2900 = vmatpush1.bf16.msra.mxu1 %v6532_v36  ;;  %2772 = vmatprep.subr.bf16.mxu0 %v6533_v37  ;;  %v6538_v40 = vld [vmem:[%s8145_s24 + $0x38] ss:$24 sps:$4 sm:$0xff]   ;;  %v6541_v42 = vld [vmem:[%s8145_s24 + $0x6c] ss:$24 sps:$4 sm:$0xff]   ;;  %v6544_v44 = vld [vmem:[%s8145_s24 + $0x68] ss:$24 sps:$4 sm:$0xff]  }
  0xbb   : > { %2901 = vmatprep.subr.bf16.mxu1 %v6535_v38  ;;  %v6545_v45 = vld [vmem:[%s8145_s24 + $0x94] ss:$24 sps:$4 sm:$0xff]   ;;  %v6549_v47 = vld [vmem:[%s8145_s24 + $0x90] ss:$24 sps:$4 sm:$0xff]   ;;  %v6551_v49 = vld [vmem:[%s8145_s24 + $0xc4] ss:$24 sps:$4 sm:$0xff]  }
  0xbc   : > { %v6547_v46 = vld [vmem:[%s8145_s24 + $0x9c] ss:$24 sps:$4 sm:$0xff]   ;;  %v6550_v48 = vld [vmem:[%s8145_s24 + $0x98] ss:$24 sps:$4 sm:$0xff]   ;;  %v6553_v50 = vld [vmem:[%s8145_s24 + $0xcc] ss:$24 sps:$4 sm:$0xff]  }
  0xbd   : > { %2773 = vmatpush1.bf16.msra.mxu0 %v6537_v39  ;;  %v6555_v51 = vld [vmem:[%s8145_s24 + $0xc0] ss:$24 sps:$4 sm:$0xff]   ;;  %v6557_v53 = vld [vmem:[%s8145_s24 + $0xf4] ss:$24 sps:$4 sm:$0xff]   ;;  %v6561_v55 = vld [vmem:[%s8145_s24 + $0xf0] ss:$24 sps:$4 sm:$0xff]  }
  0xbe   : > { %2902 = vmatpush1.bf16.msra.mxu1 %v6538_v40  ;;  %2774 = vmatprep.subr.bf16.mxu0 %v6539_v41  ;;  %v6556_v52 = vld [vmem:[%s8145_s24 + $0xc8] ss:$24 sps:$4 sm:$0xff]   ;;  %v6559_v54 = vld [vmem:[%s8145_s24 + $0xfc] ss:$24 sps:$4 sm:$0xff]   ;;  %v6562_v56 = vld [vmem:[%s8145_s24 + $0xf8] ss:$24 sps:$4 sm:$0xff]  }
  0xbf   : > { %2903 = vmatprep.subr.bf16.mxu1 %v6541_v42  ;;  %v6563_v57 = vld [vmem:[%s8145_s24 + $0x124] ss:$24 sps:$4 sm:$0xff]   ;;  %v6567_v59 = vld [vmem:[%s8145_s24 + $0x120] ss:$24 sps:$4 sm:$0xff]   ;;  %v6569_v61 = vld [vmem:[%s8145_s24 + $0x154] ss:$24 sps:$4 sm:$0xff]  }
  0xc0   : > { %v6565_v58 = vld [vmem:[%s8145_s24 + $0x12c] ss:$24 sps:$4 sm:$0xff]   ;;  %v6568_v60 = vld [vmem:[%s8145_s24 + $0x128] ss:$24 sps:$4 sm:$0xff]   ;;  %v6571_v62 = vld [vmem:[%s8145_s24 + $0x15c] ss:$24 sps:$4 sm:$0xff]  }
  0xc1   : > { %2775 = vmatpush1.bf16.msra.mxu0 %v6543_v43  ;;  %v6573_v63 = vld [vmem:[%s8145_s24 + $0x150] ss:$24 sps:$4 sm:$0xff]   ;;  %v6575_v1 = vld [vmem:[%s8145_s24 + $0x184] ss:$24 sps:$4 sm:$0xff]   ;;  %v6579_v3 = vld [vmem:[%s8145_s24 + $0x180] ss:$24 sps:$4 sm:$0xff]  }
  0xc2   : > { %2904 = vmatpush1.bf16.msra.mxu1 %v6544_v44  ;;  %2776 = vmatprep.subr.bf16.mxu0 %v6545_v45  ;;  %v6574_v0 = vld [vmem:[%s8145_s24 + $0x158] ss:$24 sps:$4 sm:$0xff]   ;;  %v6577_v2 = vld [vmem:[%s8145_s24 + $0x18c] ss:$24 sps:$4 sm:$0xff]   ;;  %v6580_v4 = vld [vmem:[%s8145_s24 + $0x188] ss:$24 sps:$4 sm:$0xff]  }
  0xc3   : > { %2905 = vmatprep.subr.bf16.mxu1 %v6547_v46  ;;  %v6581_v5 = vld [vmem:[%s8145_s24 + $0x1b4] ss:$24 sps:$4 sm:$0xff]   ;;  %v6585_v7 = vld [vmem:[%s8145_s24 + $0x1b0] ss:$24 sps:$4 sm:$0xff]   ;;  %v6587_v9 = vld [vmem:[%s8145_s24 + $0x1e4] ss:$24 sps:$4 sm:$0xff]  }
  0xc4   : > { %v6583_v6 = vld [vmem:[%s8145_s24 + $0x1bc] ss:$24 sps:$4 sm:$0xff]   ;;  %v6586_v8 = vld [vmem:[%s8145_s24 + $0x1b8] ss:$24 sps:$4 sm:$0xff]   ;;  %v6589_v10 = vld [vmem:[%s8145_s24 + $0x1ec] ss:$24 sps:$4 sm:$0xff]  }
  0xc5   : > { %2777 = vmatpush1.bf16.msra.mxu0 %v6549_v47  ;;  %v6591_v11 = vld [vmem:[%s8145_s24 + $0x1e0] ss:$24 sps:$4 sm:$0xff]   ;;  %v6593_v13 = vld [vmem:[%s8145_s24 + $0x214] ss:$24 sps:$4 sm:$0xff]   ;;  %v6597_v17 = vld [vmem:[%s8145_s24 + $0x210] ss:$24 sps:$4 sm:$0xff]  }
  0xc6   : > { %2906 = vmatpush1.bf16.msra.mxu1 %v6550_v48  ;;  %2778 = vmatprep.subr.bf16.mxu0 %v6551_v49  ;;  %v6592_v12 = vld [vmem:[%s8145_s24 + $0x1e8] ss:$24 sps:$4 sm:$0xff]   ;;  %v6595_v14 = vld [vmem:[%s8145_s24 + $0x21c] ss:$24 sps:$4 sm:$0xff]   ;;  %v6598_v18 = vld [vmem:[%s8145_s24 + $0x218] ss:$24 sps:$4 sm:$0xff]  }
  0xc7   : > { %2907 = vmatprep.subr.bf16.mxu1 %v6553_v50  ;;  %v8197_v15 = vld [vmem:[%s9019_s0] sm:$0xff]  ;;  %v8202_v16 = vld [vmem:[%s9019_s0 + $0x18] sm:$0xff]  ;;  %v6605_v24 = vld [vmem:[%s8145_s24 + $0x274] ss:$24 sps:$4 sm:$0xff]   ;;  %p6405_p12 = scmp.ne.s32.totalorder %s7455_s26, 3 }
  0xc8   : > { %v8208_v19 = vcombine.high %v8197_v15, %v8202_v16  ;;  %v6599_v20 = vld [vmem:[%s8145_s24 + $0x244] ss:$24 sps:$4 sm:$0xff]   ;;  %v6603_v22 = vld [vmem:[%s8145_s24 + $0x240] ss:$24 sps:$4 sm:$0xff]   ;;  %v6609_v26 = vld [vmem:[%s8145_s24 + $0x270] ss:$24 sps:$4 sm:$0xff]   ;;  %v8232_v38 = vcombine.low %v8197_v15, %v8202_v16 }
  0xc9   : > { %2779 = vmatpush1.bf16.msra.mxu0 %v6555_v51  ;;  %v6601_v21 = vld [vmem:[%s8145_s24 + $0x24c] ss:$24 sps:$4 sm:$0xff]   ;;  %v6604_v23 = vld [vmem:[%s8145_s24 + $0x248] ss:$24 sps:$4 sm:$0xff]   ;;  %v6607_v25 = vld [vmem:[%s8145_s24 + $0x27c] ss:$24 sps:$4 sm:$0xff]  }
  0xca   : > { %2908 = vmatpush1.bf16.msra.mxu1 %v6556_v52  ;;  %2780 = vmatprep.subr.bf16.mxu0 %v6557_v53  ;;  %v6610_v27 = vld [vmem:[%s8145_s24 + $0x278] ss:$24 sps:$4 sm:$0xff]   ;;  %v6611_v28 = vld [vmem:[%s8145_s24 + $0x2a4] ss:$24 sps:$4 sm:$0xff]   ;;  %v6616_v31 = vld [vmem:[%s8145_s24 + $0x2a8] ss:$24 sps:$4 sm:$0xff]  }
  0xcb   : > { %2909 = vmatprep.subr.bf16.mxu1 %v6559_v54  ;;  %2802 = vmatprep.mubr.bf16.mxu0 %v8208_v19  ;;  %v6613_v29 = vld [vmem:[%s8145_s24 + $0x2ac] ss:$24 sps:$4 sm:$0xff]   ;;  %v6615_v30 = vld [vmem:[%s8145_s24 + $0x2a0] ss:$24 sps:$4 sm:$0xff]   ;;  %v6619_v33 = vld [vmem:[%s8145_s24 + $0x2dc] ss:$24 sps:$4 sm:$0xff]  }
  0xcc   : > { %2931 = vmatprep.mubr.bf16.mxu1 %v8208_v19  ;;  %v6617_v32 = vld [vmem:[%s8145_s24 + $0x2d4] ss:$24 sps:$4 sm:$0xff]   ;;  %v6621_v34 = vld [vmem:[%s8145_s24 + $0x2d0] ss:$24 sps:$4 sm:$0xff]   ;;  %v6626_v36 = vld [vmem:[%s8145_s24 + $0x304] ss:$24 sps:$4 sm:$0xff]  }
  0xcd   : > { %2781 = vmatpush1.bf16.msra.mxu0 %v6561_v55  ;;  %v6622_v35 = vld [vmem:[%s8145_s24 + $0x2d8] ss:$24 sps:$4 sm:$0xff]   ;;  %v6629_v37 = vld [vmem:[%s8145_s24 + $0x30c] ss:$24 sps:$4 sm:$0xff]   ;;  %v6627_v40 = vld [vmem:[%s8145_s24 + $0x308] ss:$24 sps:$4 sm:$0xff]  }
  0xce   : > { %2910 = vmatpush1.bf16.msra.mxu1 %v6562_v56  ;;  %2782 = vmatprep.subr.bf16.mxu0 %v6563_v57  ;;  %v6624_v39 = vld [vmem:[%s8145_s24 + $0x300] ss:$24 sps:$4 sm:$0xff]   ;;  %v6633_v41 = vld [vmem:[%s8145_s24 + $0x334] ss:$24 sps:$4 sm:$0xff]   ;;  %v6631_v43 = vld [vmem:[%s8145_s24 + $0x330] ss:$24 sps:$4 sm:$0xff]  }
  0xcf   : > { %2911 = vmatprep.subr.bf16.mxu1 %v6565_v58  ;;  %v6636_v42 = vld [vmem:[%s8145_s24 + $0x33c] ss:$24 sps:$4 sm:$0xff]   ;;  %v6634_v44 = vld [vmem:[%s8145_s24 + $0x338] ss:$24 sps:$4 sm:$0xff]   ;;  %v6642_v46 = vld [vmem:[%s8145_s24 + $0x36c] ss:$24 sps:$4 sm:$0xff]  }
  0xd0   : > { %v6639_v45 = vld [vmem:[%s8145_s24 + $0x364] ss:$24 sps:$4 sm:$0xff]   ;;  %v6637_v47 = vld [vmem:[%s8145_s24 + $0x360] ss:$24 sps:$4 sm:$0xff]   ;;  %v6645_v49 = vld [vmem:[%s8145_s24 + $0x394] ss:$24 sps:$4 sm:$0xff]  }
  0xd1   : > { %2783 = vmatpush1.bf16.msra.mxu0 %v6567_v59  ;;  %v6640_v48 = vld [vmem:[%s8145_s24 + $0x368] ss:$24 sps:$4 sm:$0xff]   ;;  %v6648_v50 = vld [vmem:[%s8145_s24 + $0x39c] ss:$24 sps:$4 sm:$0xff]   ;;  %v6646_v52 = vld [vmem:[%s8145_s24 + $0x398] ss:$24 sps:$4 sm:$0xff]  }
  0xd2   : > { %2912 = vmatpush1.bf16.msra.mxu1 %v6568_v60  ;;  %2784 = vmatprep.subr.bf16.mxu0 %v6569_v61  ;;  %v6643_v51 = vld [vmem:[%s8145_s24 + $0x390] ss:$24 sps:$4 sm:$0xff]   ;;  %v6651_v53 = vld [vmem:[%s8145_s24 + $0x3c4] ss:$24 sps:$4 sm:$0xff]   ;;  %v6649_v55 = vld [vmem:[%s8145_s24 + $0x3c0] ss:$24 sps:$4 sm:$0xff]  }
  0xd3   : > { %2913 = vmatprep.subr.bf16.mxu1 %v6571_v62  ;;  %v6654_v54 = vld [vmem:[%s8145_s24 + $0x3cc] ss:$24 sps:$4 sm:$0xff]   ;;  %v6652_v56 = vld [vmem:[%s8145_s24 + $0x3c8] ss:$24 sps:$4 sm:$0xff]   ;;  %v6660_v58 = vld [vmem:[%s8145_s24 + $0x3fc] ss:$24 sps:$4 sm:$0xff]  }
  0xd4   : > { %v6657_v57 = vld [vmem:[%s8145_s24 + $0x3f4] ss:$24 sps:$4 sm:$0xff]   ;;  %v6655_v59 = vld [vmem:[%s8145_s24 + $0x3f0] ss:$24 sps:$4 sm:$0xff]   ;;  %v6663_v61 = vld [vmem:[%s8145_s24 + $0x424] ss:$24 sps:$4 sm:$0xff]  }
  0xd5   : > { %2785 = vmatpush1.bf16.msra.mxu0 %v6573_v63  ;;  %v6658_v60 = vld [vmem:[%s8145_s24 + $0x3f8] ss:$24 sps:$4 sm:$0xff]   ;;  %v6666_v62 = vld [vmem:[%s8145_s24 + $0x42c] ss:$24 sps:$4 sm:$0xff]  }
  0xd6   : > { %2914 = vmatpush1.bf16.msra.mxu1 %v6574_v0  ;;  %2786 = vmatprep.subr.bf16.mxu0 %v6575_v1  ;;  %v8263_v63 = vld [vmem:[%s9019_s0 + $0x8] sm:$0xff]  ;;  %v8268_v0 = vld [vmem:[%s9019_s0 + $0x20] sm:$0xff] }
  0xd7   : > { %2915 = vmatprep.subr.bf16.mxu1 %v6577_v2  ;;  %v6661_v1 = vld [vmem:[%s8145_s24 + $0x420] ss:$24 sps:$4 sm:$0xff]  }
  0xd8   : > { %v6664_v2 = vld [vmem:[%s8145_s24 + $0x428] ss:$24 sps:$4 sm:$0xff]  }
  0xd9   : > { %2787 = vmatpush1.bf16.msra.mxu0 %v6579_v3  ;;  %v8274_v3 = vcombine.high %v8263_v63, %v8268_v0 }
  0xda   : > { %2916 = vmatpush1.bf16.msra.mxu1 %v6580_v4  ;;  %2788 = vmatprep.subr.bf16.mxu0 %v6581_v5  ;;  %v6669_v4 = vld [vmem:[%s8145_s24 + $0x454] ss:$24 sps:$4 sm:$0xff]  }
  0xdb   : > { %2917 = vmatprep.subr.bf16.mxu1 %v6583_v6  ;;  %v6672_v5 = vld [vmem:[%s8145_s24 + $0x45c] ss:$24 sps:$4 sm:$0xff]   ;;  %v6667_v6 = vld [vmem:[%s8145_s24 + $0x450] ss:$24 sps:$4 sm:$0xff]  }
  0xdd   : > { %2789 = vmatpush1.bf16.msra.mxu0 %v6585_v7  ;;  %v6670_v7 = vld [vmem:[%s8145_s24 + $0x458] ss:$24 sps:$4 sm:$0xff]  }
  0xde   : > { %2918 = vmatpush1.bf16.msra.mxu1 %v6586_v8  ;;  %2790 = vmatprep.subr.bf16.mxu0 %v6587_v9  ;;  %v6675_v8 = vld [vmem:[%s8145_s24 + $0x484] ss:$24 sps:$4 sm:$0xff]  }
  0xdf   : > { %2919 = vmatprep.subr.bf16.mxu1 %v6589_v10  ;;  %v6678_v9 = vld [vmem:[%s8145_s24 + $0x48c] ss:$24 sps:$4 sm:$0xff]   ;;  %v6673_v10 = vld [vmem:[%s8145_s24 + $0x480] ss:$24 sps:$4 sm:$0xff]  }
  0xe1   : > { %2791 = vmatpush1.bf16.msra.mxu0 %v6591_v11  ;;  %v6676_v11 = vld [vmem:[%s8145_s24 + $0x488] ss:$24 sps:$4 sm:$0xff]  }
  0xe2   : > { %2920 = vmatpush1.bf16.msra.mxu1 %v6592_v12  ;;  %2792 = vmatprep.subr.bf16.mxu0 %v6593_v13  ;;  %v6681_v12 = vld [vmem:[%s8145_s24 + $0x4b4] ss:$24 sps:$4 sm:$0xff]  }
  0xe3   : > { %2921 = vmatprep.subr.bf16.mxu1 %v6595_v14  ;;  %v6684_v13 = vld [vmem:[%s8145_s24 + $0x4bc] ss:$24 sps:$4 sm:$0xff]   ;;  %v6679_v14 = vld [vmem:[%s8145_s24 + $0x4b0] ss:$24 sps:$4 sm:$0xff]  }
  0xe5   : > { %2793 = vmatpush1.bf16.msra.mxu0 %v6597_v17  ;;  %v6682_v17 = vld [vmem:[%s8145_s24 + $0x4b8] ss:$24 sps:$4 sm:$0xff]  }
  0xe6   : > { %2922 = vmatpush1.bf16.msra.mxu1 %v6598_v18  ;;  %2794 = vmatprep.subr.bf16.mxu0 %v6599_v20  ;;  %v6687_v18 = vld [vmem:[%s8145_s24 + $0x4e4] ss:$24 sps:$4 sm:$0xff]  }
  0xe7   : > { %2923 = vmatprep.subr.bf16.mxu1 %v6601_v21  ;;  %v6690_v20 = vld [vmem:[%s8145_s24 + $0x4ec] ss:$24 sps:$4 sm:$0xff]   ;;  %v6685_v21 = vld [vmem:[%s8145_s24 + $0x4e0] ss:$24 sps:$4 sm:$0xff]  }
  0xe9   : > { %2795 = vmatpush1.bf16.msra.mxu0 %v6603_v22  ;;  %v6688_v22 = vld [vmem:[%s8145_s24 + $0x4e8] ss:$24 sps:$4 sm:$0xff]  }
  0xea   : > { %2924 = vmatpush1.bf16.msra.mxu1 %v6604_v23  ;;  %2796 = vmatprep.subr.bf16.mxu0 %v6605_v24  ;;  %v6693_v23 = vld [vmem:[%s8145_s24 + $0x514] ss:$24 sps:$4 sm:$0xff]  }
  0xeb   : > { %2925 = vmatprep.subr.bf16.mxu1 %v6607_v25  ;;  %v6696_v24 = vld [vmem:[%s8145_s24 + $0x51c] ss:$24 sps:$4 sm:$0xff]   ;;  %v6691_v25 = vld [vmem:[%s8145_s24 + $0x510] ss:$24 sps:$4 sm:$0xff]  }
  0xed   : > { %2797 = vmatpush1.bf16.msra.mxu0 %v6609_v26  ;;  %v6694_v26 = vld [vmem:[%s8145_s24 + $0x518] ss:$24 sps:$4 sm:$0xff]  }
  0xee   : > { %2926 = vmatpush1.bf16.msra.mxu1 %v6610_v27  ;;  %2798 = vmatprep.subr.bf16.mxu0 %v6611_v28  ;;  %v6699_v27 = vld [vmem:[%s8145_s24 + $0x544] ss:$24 sps:$4 sm:$0xff]  }
  0xef   : > { %2927 = vmatprep.subr.bf16.mxu1 %v6613_v29  ;;  %v6702_v28 = vld [vmem:[%s8145_s24 + $0x54c] ss:$24 sps:$4 sm:$0xff]   ;;  %v6697_v29 = vld [vmem:[%s8145_s24 + $0x540] ss:$24 sps:$4 sm:$0xff]  }
  0xf1   : > { %2799 = vmatpush1.bf16.msra.mxu0 %v6615_v30  ;;  %v6700_v30 = vld [vmem:[%s8145_s24 + $0x548] ss:$24 sps:$4 sm:$0xff]  }
  0xf2   : > { %2928 = vmatpush1.bf16.msra.mxu1 %v6616_v31  ;;  %2800 = vmatprep.subr.bf16.mxu0 %v6617_v32  ;;  %v6705_v31 = vld [vmem:[%s8145_s24 + $0x574] ss:$24 sps:$4 sm:$0xff]  }
  0xf3   : > { %2929 = vmatprep.subr.bf16.mxu1 %v6619_v33  ;;  %v6708_v32 = vld [vmem:[%s8145_s24 + $0x57c] ss:$24 sps:$4 sm:$0xff]   ;;  %v6703_v33 = vld [vmem:[%s8145_s24 + $0x570] ss:$24 sps:$4 sm:$0xff]  }
  0xf5   : > { %2801 = vmatpush1.bf16.msra.mxu0 %v6621_v34  ;;  %v6706_v34 = vld [vmem:[%s8145_s24 + $0x578] ss:$24 sps:$4 sm:$0xff]  }
  0xf6   : > { %2930 = vmatpush1.bf16.msra.mxu1 %v6622_v35  ;;  %2813 = vmatprep.subr.bf16.mxu0 %v6626_v36  ;;  %v6711_v35 = vld [vmem:[%s8145_s24 + $0x5a4] ss:$24 sps:$4 sm:$0xff]  }
  0xf7   : > { %2942 = vmatprep.subr.bf16.mxu1 %v6629_v37  ;;  %v6714_v36 = vld [vmem:[%s8145_s24 + $0x5ac] ss:$24 sps:$4 sm:$0xff]   ;;  %v6709_v37 = vld [vmem:[%s8145_s24 + $0x5a0] ss:$24 sps:$4 sm:$0xff]  }
  0xf8   : > { %2803 = vmatmul.mubr.bf16.vlgmr.msra.gmra.mrb[0].mxu0 %v8232_v38 }
  0xf9   : > { %2932 = vmatmul.mubr.bf16.vlgmr.msra.gmra.mrb[0].mxu1 %v8232_v38  ;;  %2814 = vmatpush1.bf16.msra.mxu0 %v6624_v39  ;;  %v6712_v39 = vld [vmem:[%s8145_s24 + $0x5a8] ss:$24 sps:$4 sm:$0xff]  }
  0xfa   : > { %2943 = vmatpush1.bf16.msra.mxu1 %v6627_v40  ;;  %2815 = vmatprep.subr.bf16.mxu0 %v6633_v41  ;;  %v6717_v40 = vld [vmem:[%s8145_s24 + $0x5d4] ss:$24 sps:$4 sm:$0xff]  }
  0xfb   : > { %2944 = vmatprep.subr.bf16.mxu1 %v6636_v42  ;;  %2845 = vmatprep.mubr.bf16.mxu0 %v8274_v3  ;;  %v6720_v41 = vld [vmem:[%s8145_s24 + $0x5dc] ss:$24 sps:$4 sm:$0xff]   ;;  %v6715_v42 = vld [vmem:[%s8145_s24 + $0x5d0] ss:$24 sps:$4 sm:$0xff]  }
  0xfc   : > { %2974 = vmatprep.mubr.bf16.mxu1 %v8274_v3 }
  0xfd   : > { %2816 = vmatpush1.bf16.msra.mxu0 %v6631_v43  ;;  %v6718_v43 = vld [vmem:[%s8145_s24 + $0x5d8] ss:$24 sps:$4 sm:$0xff]  }
  0xfe   : > { %2945 = vmatpush1.bf16.msra.mxu1 %v6634_v44  ;;  %2817 = vmatprep.subr.bf16.mxu0 %v6639_v45  ;;  %v6725_v44 = vld [vmem:[%s8145_s24 + $0x604] ss:$24 sps:$4 sm:$0xff]  }
  0xff   : > { %2946 = vmatprep.subr.bf16.mxu1 %v6642_v46  ;;  %v6728_v45 = vld [vmem:[%s8145_s24 + $0x60c] ss:$24 sps:$4 sm:$0xff]   ;;  %v8318_v46 = vcombine.low %v8263_v63, %v8268_v0 }
 0x101   : > { %2818 = vmatpush1.bf16.msra.mxu0 %v6637_v47  ;;  %v6723_v47 = vld [vmem:[%s8145_s24 + $0x600] ss:$24 sps:$4 sm:$0xff]  }
 0x102   : > { %2947 = vmatpush1.bf16.msra.mxu1 %v6640_v48  ;;  %2819 = vmatprep.subr.bf16.mxu0 %v6645_v49  ;;  %v6726_v48 = vld [vmem:[%s8145_s24 + $0x608] ss:$24 sps:$4 sm:$0xff]   ;;  %v6731_v49 = vld [vmem:[%s8145_s24 + $0x634] ss:$24 sps:$4 sm:$0xff]  }
 0x103   : > { %2948 = vmatprep.subr.bf16.mxu1 %v6648_v50  ;;  %v6734_v50 = vld [vmem:[%s8145_s24 + $0x63c] ss:$24 sps:$4 sm:$0xff]  }
 0x105   : > { %2820 = vmatpush1.bf16.msra.mxu0 %v6643_v51  ;;  %v8327_v51 = vld [vmem:[%s9019_s0 + $0x10] sm:$0xff] }
 0x106   : > { %2949 = vmatpush1.bf16.msra.mxu1 %v6646_v52  ;;  %2821 = vmatprep.subr.bf16.mxu0 %v6651_v53  ;;  %v8332_v52 = vld [vmem:[%s9019_s0 + $0x28] sm:$0xff] }
 0x107   : > { %2950 = vmatprep.subr.bf16.mxu1 %v6654_v54  ;;  %v8336_v53 = vcombine.high %v8327_v51, %v8332_v52  ;;  %v6729_v54 = vld [vmem:[%s8145_s24 + $0x630] ss:$24 sps:$4 sm:$0xff]  }
 0x109   : > { %2822 = vmatpush1.bf16.msra.mxu0 %v6649_v55  ;;  %v6732_v55 = vld [vmem:[%s8145_s24 + $0x638] ss:$24 sps:$4 sm:$0xff]  }
 0x10a   : > { %2951 = vmatpush1.bf16.msra.mxu1 %v6652_v56  ;;  %2823 = vmatprep.subr.bf16.mxu0 %v6657_v57  ;;  %v6737_v56 = vld [vmem:[%s8145_s24 + $0x664] ss:$24 sps:$4 sm:$0xff]  }
 0x10b   : > { %2952 = vmatprep.subr.bf16.mxu1 %v6660_v58  ;;  %v6740_v57 = vld [vmem:[%s8145_s24 + $0x66c] ss:$24 sps:$4 sm:$0xff]   ;;  %v6735_v58 = vld [vmem:[%s8145_s24 + $0x660] ss:$24 sps:$4 sm:$0xff]  }
 0x10d   : > { %2824 = vmatpush1.bf16.msra.mxu0 %v6655_v59  ;;  %v6738_v59 = vld [vmem:[%s8145_s24 + $0x668] ss:$24 sps:$4 sm:$0xff]  }
 0x10e   : > { %2953 = vmatpush1.bf16.msra.mxu1 %v6658_v60  ;;  %2825 = vmatprep.subr.bf16.mxu0 %v6663_v61  ;;  %v6743_v60 = vld [vmem:[%s8145_s24 + $0x694] ss:$24 sps:$4 sm:$0xff]  }
 0x10f   : > { %2954 = vmatprep.subr.bf16.mxu1 %v6666_v62  ;;  %v6746_v61 = vld [vmem:[%s8145_s24 + $0x69c] ss:$24 sps:$4 sm:$0xff]   ;;  %v6741_v62 = vld [vmem:[%s8145_s24 + $0x690] ss:$24 sps:$4 sm:$0xff]  }
 0x111   : > { %2826 = vmatpush1.bf16.msra.mxu0 %v6661_v1  ;;  %v6744_v1 = vld [vmem:[%s8145_s24 + $0x698] ss:$24 sps:$4 sm:$0xff]  }
 0x112   : > { %2955 = vmatpush1.bf16.msra.mxu1 %v6664_v2  ;;  %2827 = vmatprep.subr.bf16.mxu0 %v6669_v4  ;;  %v6749_v2 = vld [vmem:[%s8145_s24 + $0x6c4] ss:$24 sps:$4 sm:$0xff]  }
 0x113   : > { %2956 = vmatprep.subr.bf16.mxu1 %v6672_v5  ;;  %v6752_v4 = vld [vmem:[%s8145_s24 + $0x6cc] ss:$24 sps:$4 sm:$0xff]   ;;  %v6747_v5 = vld [vmem:[%s8145_s24 + $0x6c0] ss:$24 sps:$4 sm:$0xff]  }
 0x115   : > { %2828 = vmatpush1.bf16.msra.mxu0 %v6667_v6  ;;  %v6750_v6 = vld [vmem:[%s8145_s24 + $0x6c8] ss:$24 sps:$4 sm:$0xff]  }
 0x116   : > { %2957 = vmatpush1.bf16.msra.mxu1 %v6670_v7  ;;  %2829 = vmatprep.subr.bf16.mxu0 %v6675_v8  ;;  %v6755_v7 = vld [vmem:[%s8145_s24 + $0x6f4] ss:$24 sps:$4 sm:$0xff]  }
 0x117   : > { %2958 = vmatprep.subr.bf16.mxu1 %v6678_v9  ;;  %v6758_v8 = vld [vmem:[%s8145_s24 + $0x6fc] ss:$24 sps:$4 sm:$0xff]   ;;  %v6753_v9 = vld [vmem:[%s8145_s24 + $0x6f0] ss:$24 sps:$4 sm:$0xff]  }
 0x119   : > { %2830 = vmatpush1.bf16.msra.mxu0 %v6673_v10  ;;  %v6756_v10 = vld [vmem:[%s8145_s24 + $0x6f8] ss:$24 sps:$4 sm:$0xff]  }
 0x11a   : > { %2959 = vmatpush1.bf16.msra.mxu1 %v6676_v11  ;;  %2831 = vmatprep.subr.bf16.mxu0 %v6681_v12  ;;  %v6761_v11 = vld [vmem:[%s8145_s24 + $0x724] ss:$24 sps:$4 sm:$0xff]  }
 0x11b   : > { %2960 = vmatprep.subr.bf16.mxu1 %v6684_v13  ;;  %v6764_v12 = vld [vmem:[%s8145_s24 + $0x72c] ss:$24 sps:$4 sm:$0xff]   ;;  %v6759_v13 = vld [vmem:[%s8145_s24 + $0x720] ss:$24 sps:$4 sm:$0xff]  }
 0x11d   : > { %2832 = vmatpush1.bf16.msra.mxu0 %v6679_v14  ;;  %v6762_v14 = vld [vmem:[%s8145_s24 + $0x728] ss:$24 sps:$4 sm:$0xff]  }
 0x11e   : > { %2961 = vmatpush1.bf16.msra.mxu1 %v6682_v17  ;;  %2833 = vmatprep.subr.bf16.mxu0 %v6687_v18  ;;  %v6767_v17 = vld [vmem:[%s8145_s24 + $0x754] ss:$24 sps:$4 sm:$0xff]  }
 0x11f   : > { %2962 = vmatprep.subr.bf16.mxu1 %v6690_v20  ;;  %v6770_v18 = vld [vmem:[%s8145_s24 + $0x75c] ss:$24 sps:$4 sm:$0xff]   ;;  %v6765_v20 = vld [vmem:[%s8145_s24 + $0x750] ss:$24 sps:$4 sm:$0xff]  }
 0x121   : > { %2834 = vmatpush1.bf16.msra.mxu0 %v6685_v21  ;;  %v6768_v21 = vld [vmem:[%s8145_s24 + $0x758] ss:$24 sps:$4 sm:$0xff]  }
 0x122   : > { %2963 = vmatpush1.bf16.msra.mxu1 %v6688_v22  ;;  %2835 = vmatprep.subr.bf16.mxu0 %v6693_v23  ;;  %v6773_v22 = vld [vmem:[%s8145_s24 + $0x784] ss:$24 sps:$4 sm:$0xff]  }
 0x123   : > { %2964 = vmatprep.subr.bf16.mxu1 %v6696_v24  ;;  %v6776_v23 = vld [vmem:[%s8145_s24 + $0x78c] ss:$24 sps:$4 sm:$0xff]   ;;  %v6771_v24 = vld [vmem:[%s8145_s24 + $0x780] ss:$24 sps:$4 sm:$0xff]  }
 0x125   : > { %2836 = vmatpush1.bf16.msra.mxu0 %v6691_v25  ;;  %v6774_v25 = vld [vmem:[%s8145_s24 + $0x788] ss:$24 sps:$4 sm:$0xff]  }
 0x126   : > { %2965 = vmatpush1.bf16.msra.mxu1 %v6694_v26  ;;  %2837 = vmatprep.subr.bf16.mxu0 %v6699_v27  ;;  %v6779_v26 = vld [vmem:[%s8145_s24 + $0x7b4] ss:$24 sps:$4 sm:$0xff]  }
 0x127   : > { %2966 = vmatprep.subr.bf16.mxu1 %v6702_v28  ;;  %v6782_v27 = vld [vmem:[%s8145_s24 + $0x7bc] ss:$24 sps:$4 sm:$0xff]   ;;  %v6777_v28 = vld [vmem:[%s8145_s24 + $0x7b0] ss:$24 sps:$4 sm:$0xff]  }
 0x129   : > { %2838 = vmatpush1.bf16.msra.mxu0 %v6697_v29  ;;  %v6780_v29 = vld [vmem:[%s8145_s24 + $0x7b8] ss:$24 sps:$4 sm:$0xff]  }
 0x12a   : > { %2967 = vmatpush1.bf16.msra.mxu1 %v6700_v30  ;;  %2839 = vmatprep.subr.bf16.mxu0 %v6705_v31  ;;  %v6785_v30 = vld [vmem:[%s8145_s24 + $0x7e4] ss:$24 sps:$4 sm:$0xff]  }
 0x12b   : > { %2968 = vmatprep.subr.bf16.mxu1 %v6708_v32  ;;  %v6788_v31 = vld [vmem:[%s8145_s24 + $0x7ec] ss:$24 sps:$4 sm:$0xff]   ;;  %v6783_v32 = vld [vmem:[%s8145_s24 + $0x7e0] ss:$24 sps:$4 sm:$0xff]  }
 0x12d   : > { %2840 = vmatpush1.bf16.msra.mxu0 %v6703_v33  ;;  %v6786_v33 = vld [vmem:[%s8145_s24 + $0x7e8] ss:$24 sps:$4 sm:$0xff]  }
 0x12e   : > { %2969 = vmatpush1.bf16.msra.mxu1 %v6706_v34  ;;  %2841 = vmatprep.subr.bf16.mxu0 %v6711_v35  ;;  %v6791_v34 = vld [vmem:[%s8145_s24 + $0x814] ss:$24 sps:$4 sm:$0xff]  }
 0x12f   : > { %2970 = vmatprep.subr.bf16.mxu1 %v6714_v36  ;;  %v6794_v35 = vld [vmem:[%s8145_s24 + $0x81c] ss:$24 sps:$4 sm:$0xff]   ;;  %v6789_v36 = vld [vmem:[%s8145_s24 + $0x810] ss:$24 sps:$4 sm:$0xff]  }
 0x131   : > { %2842 = vmatpush1.bf16.msra.mxu0 %v6709_v37  ;;  %v6792_v37 = vld [vmem:[%s8145_s24 + $0x818] ss:$24 sps:$4 sm:$0xff]  }
 0x132   : > { %2971 = vmatpush1.bf16.msra.mxu1 %v6712_v39  ;;  %2843 = vmatprep.subr.bf16.mxu0 %v6717_v40  ;;  %v6797_v39 = vld [vmem:[%s8145_s24 + $0x844] ss:$24 sps:$4 sm:$0xff]  }
 0x133   : > { %2972 = vmatprep.subr.bf16.mxu1 %v6720_v41  ;;  %v6800_v40 = vld [vmem:[%s8145_s24 + $0x84c] ss:$24 sps:$4 sm:$0xff]   ;;  %v6795_v41 = vld [vmem:[%s8145_s24 + $0x840] ss:$24 sps:$4 sm:$0xff]  }
 0x135   : > { %2844 = vmatpush1.bf16.msra.mxu0 %v6715_v42  ;;  %v6798_v42 = vld [vmem:[%s8145_s24 + $0x848] ss:$24 sps:$4 sm:$0xff]  }
 0x136   : > { %2973 = vmatpush1.bf16.msra.mxu1 %v6718_v43  ;;  %2856 = vmatprep.subr.bf16.mxu0 %v6725_v44  ;;  %v6803_v43 = vld [vmem:[%s8145_s24 + $0x874] ss:$24 sps:$4 sm:$0xff]  }
 0x137   : > { %2985 = vmatprep.subr.bf16.mxu1 %v6728_v45  ;;  %v6806_v44 = vld [vmem:[%s8145_s24 + $0x87c] ss:$24 sps:$4 sm:$0xff]   ;;  %v6801_v45 = vld [vmem:[%s8145_s24 + $0x870] ss:$24 sps:$4 sm:$0xff]  }
 0x138   : > { %2846 = vmatmul.mubr.bf16.vlgmr.msra.gmra.mrb[0].mxu0 %v8318_v46 }
 0x139   : > { %2975 = vmatmul.mubr.bf16.vlgmr.msra.gmra.mrb[0].mxu1 %v8318_v46  ;;  %2857 = vmatpush1.bf16.msra.mxu0 %v6723_v47  ;;  %v6804_v47 = vld [vmem:[%s8145_s24 + $0x878] ss:$24 sps:$4 sm:$0xff]  }
 0x13a   : > { %2986 = vmatpush1.bf16.msra.mxu1 %v6726_v48  ;;  %2858 = vmatprep.subr.bf16.mxu0 %v6731_v49  ;;  %v6809_v48 = vld [vmem:[%s8145_s24 + $0x8a4] ss:$24 sps:$4 sm:$0xff]  }
 0x13b   : > { %2987 = vmatprep.subr.bf16.mxu1 %v6734_v50  ;;  %2888 = vmatprep.mubr.bf16.mxu0 %v8336_v53  ;;  %v6812_v49 = vld [vmem:[%s8145_s24 + $0x8ac] ss:$24 sps:$4 sm:$0xff]   ;;  %v6807_v50 = vld [vmem:[%s8145_s24 + $0x8a0] ss:$24 sps:$4 sm:$0xff]  }
 0x13c   : > { %3017 = vmatprep.mubr.bf16.mxu1 %v8336_v53 }
 0x13d   : > { %2859 = vmatpush1.bf16.msra.mxu0 %v6729_v54  ;;  %v6810_v54 = vld [vmem:[%s8145_s24 + $0x8a8] ss:$24 sps:$4 sm:$0xff]  }
 0x13e   : > { %2988 = vmatpush1.bf16.msra.mxu1 %v6732_v55  ;;  %2860 = vmatprep.subr.bf16.mxu0 %v6737_v56  ;;  %v6815_v55 = vld [vmem:[%s8145_s24 + $0x8d4] ss:$24 sps:$4 sm:$0xff]  }
 0x13f   : > { %2989 = vmatprep.subr.bf16.mxu1 %v6740_v57  ;;  %v6818_v56 = vld [vmem:[%s8145_s24 + $0x8dc] ss:$24 sps:$4 sm:$0xff]   ;;  %v6813_v57 = vld [vmem:[%s8145_s24 + $0x8d0] ss:$24 sps:$4 sm:$0xff]  }
 0x141   : > { %2861 = vmatpush1.bf16.msra.mxu0 %v6735_v58  ;;  %v6816_v58 = vld [vmem:[%s8145_s24 + $0x8d8] ss:$24 sps:$4 sm:$0xff]  }
 0x142   : > { %2990 = vmatpush1.bf16.msra.mxu1 %v6738_v59  ;;  %2862 = vmatprep.subr.bf16.mxu0 %v6743_v60  ;;  %v6823_v59 = vld [vmem:[%s8145_s24 + $0x14] ss:$24 sps:$4 sm:$0xff]   ;;  %v8403_v60 = vcombine.low %v8327_v51, %v8332_v52 }
 0x143   : > { %2991 = vmatprep.subr.bf16.mxu1 %v6746_v61  ;;  %v6821_v61 = vld [vmem:[%s8145_s24 + $0x10] ss:$24 sps:$4 sm:$0xff]  }
 0x145   : > { %2863 = vmatpush1.bf16.msra.mxu0 %v6741_v62  ;;  %v6826_v62 = vld [vmem:[%s8145_s24 + $0x44] ss:$24 sps:$4 sm:$0xff]  }
 0x146   : > { %2992 = vmatpush1.bf16.msra.mxu1 %v6744_v1  ;;  %2864 = vmatprep.subr.bf16.mxu0 %v6749_v2  ;;  %v6824_v1 = vld [vmem:[%s8145_s24 + $0x40] ss:$24 sps:$4 sm:$0xff]   ;;  %v6829_v2 = vld [vmem:[%s8145_s24 + $0x74] ss:$24 sps:$4 sm:$0xff]  }
 0x147   : > { %2993 = vmatprep.subr.bf16.mxu1 %v6752_v4  ;;  %v6827_v4 = vld [vmem:[%s8145_s24 + $0x70] ss:$24 sps:$4 sm:$0xff]  }
 0x149   : > { %2865 = vmatpush1.bf16.msra.mxu0 %v6747_v5  ;;  %v6832_v5 = vld [vmem:[%s8145_s24 + $0xa4] ss:$24 sps:$4 sm:$0xff]  }
 0x14a   : > { %2994 = vmatpush1.bf16.msra.mxu1 %v6750_v6  ;;  %2866 = vmatprep.subr.bf16.mxu0 %v6755_v7  ;;  %v6830_v6 = vld [vmem:[%s8145_s24 + $0xa0] ss:$24 sps:$4 sm:$0xff]   ;;  %v6835_v7 = vld [vmem:[%s8145_s24 + $0xd4] ss:$24 sps:$4 sm:$0xff]  }
 0x14b   : > { %2995 = vmatprep.subr.bf16.mxu1 %v6758_v8  ;;  %v6833_v8 = vld [vmem:[%s8145_s24 + $0xd0] ss:$24 sps:$4 sm:$0xff]  }
 0x14d   : > { %2867 = vmatpush1.bf16.msra.mxu0 %v6753_v9  ;;  %v6838_v9 = vld [vmem:[%s8145_s24 + $0x104] ss:$24 sps:$4 sm:$0xff]  }
 0x14e   : > { %2996 = vmatpush1.bf16.msra.mxu1 %v6756_v10  ;;  %2868 = vmatprep.subr.bf16.mxu0 %v6761_v11  ;;  %v6841_v10 = vld [vmem:[%s8145_s24 + $0x134] ss:$24 sps:$4 sm:$0xff]   ;;  %v6839_v11 = vld [vmem:[%s8145_s24 + $0x130] ss:$24 sps:$4 sm:$0xff]  }
 0x14f   : > { %2997 = vmatprep.subr.bf16.mxu1 %v6764_v12  ;;  %v6844_v12 = vld [vmem:[%s8145_s24 + $0x164] ss:$24 sps:$4 sm:$0xff]  }
 0x151   : > { %2869 = vmatpush1.bf16.msra.mxu0 %v6759_v13  ;;  %v6842_v13 = vld [vmem:[%s8145_s24 + $0x160] ss:$24 sps:$4 sm:$0xff]  }
 0x152   : > { %2998 = vmatpush1.bf16.msra.mxu1 %v6762_v14  ;;  %2870 = vmatprep.subr.bf16.mxu0 %v6767_v17  ;;  %v6847_v14 = vld [vmem:[%s8145_s24 + $0x194] ss:$24 sps:$4 sm:$0xff]   ;;  %v6845_v17 = vld [vmem:[%s8145_s24 + $0x190] ss:$24 sps:$4 sm:$0xff]  }
 0x153   : > { %2999 = vmatprep.subr.bf16.mxu1 %v6770_v18  ;;  %v6850_v18 = vld [vmem:[%s8145_s24 + $0x1c4] ss:$24 sps:$4 sm:$0xff]  }
 0x155   : > { %2871 = vmatpush1.bf16.msra.mxu0 %v6765_v20  ;;  %v6848_v20 = vld [vmem:[%s8145_s24 + $0x1c0] ss:$24 sps:$4 sm:$0xff]  }
 0x156   : > { %3000 = vmatpush1.bf16.msra.mxu1 %v6768_v21  ;;  %2872 = vmatprep.subr.bf16.mxu0 %v6773_v22  ;;  %v6853_v21 = vld [vmem:[%s8145_s24 + $0x1f4] ss:$24 sps:$4 sm:$0xff]   ;;  %v6851_v22 = vld [vmem:[%s8145_s24 + $0x1f0] ss:$24 sps:$4 sm:$0xff]  }
 0x157   : > { %3001 = vmatprep.subr.bf16.mxu1 %v6776_v23  ;;  %v6856_v23 = vld [vmem:[%s8145_s24 + $0x224] ss:$24 sps:$4 sm:$0xff]  }
 0x159   : > { %2873 = vmatpush1.bf16.msra.mxu0 %v6771_v24  ;;  %v6854_v24 = vld [vmem:[%s8145_s24 + $0x220] ss:$24 sps:$4 sm:$0xff]  }
 0x15a   : > { %3002 = vmatpush1.bf16.msra.mxu1 %v6774_v25  ;;  %2874 = vmatprep.subr.bf16.mxu0 %v6779_v26  ;;  %v6859_v25 = vld [vmem:[%s8145_s24 + $0x254] ss:$24 sps:$4 sm:$0xff]   ;;  %v6857_v26 = vld [vmem:[%s8145_s24 + $0x250] ss:$24 sps:$4 sm:$0xff]  }
 0x15b   : > { %3003 = vmatprep.subr.bf16.mxu1 %v6782_v27  ;;  %v6862_v27 = vld [vmem:[%s8145_s24 + $0x284] ss:$24 sps:$4 sm:$0xff]  }
 0x15d   : > { %2875 = vmatpush1.bf16.msra.mxu0 %v6777_v28  ;;  %v6860_v28 = vld [vmem:[%s8145_s24 + $0x280] ss:$24 sps:$4 sm:$0xff]  }
 0x15e   : > { %3004 = vmatpush1.bf16.msra.mxu1 %v6780_v29  ;;  %2876 = vmatprep.subr.bf16.mxu0 %v6785_v30  ;;  %v6865_v29 = vld [vmem:[%s8145_s24 + $0x2b4] ss:$24 sps:$4 sm:$0xff]   ;;  %v6959_v30 = vld [vmem:[%s8143_s11] ss:$24 sps:$4 sm:$0xff]  }
 0x15f   : > { %3005 = vmatprep.subr.bf16.mxu1 %v6788_v31  ;;  %v6961_v31 = vld [vmem:[%s8143_s11 + $0x4] ss:$24 sps:$4 sm:$0xff]  }
 0x161   : > { %2877 = vmatpush1.bf16.msra.mxu0 %v6783_v32  ;;  %v6863_v32 = vld [vmem:[%s8145_s24 + $0x2b0] ss:$24 sps:$4 sm:$0xff]  }
 0x162   : > { %3006 = vmatpush1.bf16.msra.mxu1 %v6786_v33  ;;  %2878 = vmatprep.subr.bf16.mxu0 %v6791_v34  ;;  %v6868_v33 = vld [vmem:[%s8145_s24 + $0x2e4] ss:$24 sps:$4 sm:$0xff]   ;;  %v6965_v34 = vld [vmem:[%s8143_s11 + $0x30] ss:$24 sps:$4 sm:$0xff]  }
 0x163   : > { %3007 = vmatprep.subr.bf16.mxu1 %v6794_v35  ;;  %v6967_v35 = vld [vmem:[%s8143_s11 + $0x34] ss:$24 sps:$4 sm:$0xff]  }
 0x165   : > { %2879 = vmatpush1.bf16.msra.mxu0 %v6789_v36  ;;  %v6866_v36 = vld [vmem:[%s8145_s24 + $0x2e0] ss:$24 sps:$4 sm:$0xff]  }
 0x166   : > { %3008 = vmatpush1.bf16.msra.mxu1 %v6792_v37  ;;  %2880 = vmatprep.subr.bf16.mxu0 %v6797_v39  ;;  %v6871_v37 = vld [vmem:[%s8145_s24 + $0x314] ss:$24 sps:$4 sm:$0xff]   ;;  %v6971_v39 = vld [vmem:[%s8143_s11 + $0x60] ss:$24 sps:$4 sm:$0xff]  }
 0x167   : > { %3009 = vmatprep.subr.bf16.mxu1 %v6800_v40  ;;  %v6973_v40 = vld [vmem:[%s8143_s11 + $0x64] ss:$24 sps:$4 sm:$0xff]  }
 0x169   : > { %2881 = vmatpush1.bf16.msra.mxu0 %v6795_v41  ;;  %v6869_v41 = vld [vmem:[%s8145_s24 + $0x310] ss:$24 sps:$4 sm:$0xff]  }
 0x16a   : > { %3010 = vmatpush1.bf16.msra.mxu1 %v6798_v42  ;;  %2882 = vmatprep.subr.bf16.mxu0 %v6803_v43  ;;  %v6874_v42 = vld [vmem:[%s8145_s24 + $0x344] ss:$24 sps:$4 sm:$0xff]   ;;  %v6976_v43 = vld [vmem:[%s8143_s11 + $0x94] ss:$24 sps:$4 sm:$0xff]  }
 0x16b   : > { %3011 = vmatprep.subr.bf16.mxu1 %v6806_v44  ;;  %v6974_v44 = vld [vmem:[%s8143_s11 + $0x90] ss:$24 sps:$4 sm:$0xff]  }
 0x16d   : > { %2883 = vmatpush1.bf16.msra.mxu0 %v6801_v45  ;;  %v6872_v45 = vld [vmem:[%s8145_s24 + $0x340] ss:$24 sps:$4 sm:$0xff]  }
 0x16e   : > { %3012 = vmatpush1.bf16.msra.mxu1 %v6804_v47  ;;  %2884 = vmatprep.subr.bf16.mxu0 %v6809_v48  ;;  %v6877_v47 = vld [vmem:[%s8145_s24 + $0x374] ss:$24 sps:$4 sm:$0xff]   ;;  %v6982_v48 = vld [vmem:[%s8143_s11 + $0xc4] ss:$24 sps:$4 sm:$0xff]  }
 0x16f   : > { %3013 = vmatprep.subr.bf16.mxu1 %v6812_v49  ;;  %v6980_v49 = vld [vmem:[%s8143_s11 + $0xc0] ss:$24 sps:$4 sm:$0xff]  }
 0x171   : > { %2885 = vmatpush1.bf16.msra.mxu0 %v6807_v50  ;;  %v6875_v50 = vld [vmem:[%s8145_s24 + $0x370] ss:$24 sps:$4 sm:$0xff]  }
 0x172   : > { %3014 = vmatpush1.bf16.msra.mxu1 %v6810_v54  ;;  %2886 = vmatprep.subr.bf16.mxu0 %v6815_v55  ;;  %v6988_v54 = vld [vmem:[%s8143_s11 + $0xf4] ss:$24 sps:$4 sm:$0xff]   ;;  %v6986_v55 = vld [vmem:[%s8143_s11 + $0xf0] ss:$24 sps:$4 sm:$0xff]  }
 0x173   : > { %3015 = vmatprep.subr.bf16.mxu1 %v6818_v56  ;;  %v6883_v56 = vld [vmem:[%s8145_s24 + $0x3d4] ss:$24 sps:$4 sm:$0xff]  }
 0x175   : > { %2887 = vmatpush1.bf16.msra.mxu0 %v6813_v57  ;;  %v6994_v57 = vld [vmem:[%s8143_s11 + $0x124] ss:$24 sps:$4 sm:$0xff]  }
 0x176   : > { %3016 = vmatpush1.bf16.msra.mxu1 %v6816_v58  ;;  %3028 = vmatprep.subr.bf16.mxu0 %v6823_v59  ;;  %v6992_v58 = vld [vmem:[%s8143_s11 + $0x120] ss:$24 sps:$4 sm:$0xff]   ;;  %v6881_v59 = vld [vmem:[%s8145_s24 + $0x3d0] ss:$24 sps:$4 sm:$0xff]  }
 0x177   : > { %5011 = vmatprep.subr.bf16.mxu1 %v6961_v31  ;;  %v7042_v31 = vld [vmem:[%s8143_s11 + $0x2a4] ss:$24 sps:$4 sm:$0xff]  }
 0x178   : > { %2889 = vmatmul.mubr.bf16.vlgmr.msra.gmra.mrb[0].mxu0 %v8403_v60 }
 0x179   : > { %3018 = vmatmul.mubr.bf16.vlgmr.msra.gmra.mrb[0].mxu1 %v8403_v60  ;;  %3029 = vmatpush1.bf16.msra.mxu0 %v6821_v61  ;;  %v6886_v61 = vld [vmem:[%s8145_s24 + $0x404] ss:$24 sps:$4 sm:$0xff]  }
 0x17a   : > { %3060 = vmatprep.mubr.bf16.mxu0 %v8208_v19  ;;  %3030 = vmatprep.subr.bf16.mxu0 %v6826_v62  ;;  %v6836_v19 = vld [vmem:[%s8145_s24 + $0x100] ss:$24 sps:$4 sm:$0xff]   ;;  %v7000_v62 = vld [vmem:[%s8143_s11 + $0x154] ss:$24 sps:$4 sm:$0xff]  }
 0x17b   : > { %5012 = vmatpush1.bf16.msra.mxu1 %v6959_v30  ;;  %v6907_v30 = vld [vmem:[%s8145_s24 + $0x554] ss:$24 sps:$4 sm:$0xff]  }
 0x17c   : > { %5013 = vmatprep.subr.bf16.mxu1 %v6967_v35  ;;  %v7048_v35 = vld [vmem:[%s8143_s11 + $0x2d4] ss:$24 sps:$4 sm:$0xff]  }
 0x17d   : > { %3031 = vmatpush1.bf16.msra.mxu0 %v6824_v1  ;;  %v6998_v1 = vld [vmem:[%s8143_s11 + $0x150] ss:$24 sps:$4 sm:$0xff]  }
 0x17e   : > { %3032 = vmatprep.subr.bf16.mxu0 %v6829_v2  ;;  %v6884_v2 = vld [vmem:[%s8145_s24 + $0x400] ss:$24 sps:$4 sm:$0xff]  }
 0x17f   : > { %5014 = vmatpush1.bf16.msra.mxu1 %v6965_v34  ;;  %v6910_v34 = vld [vmem:[%s8145_s24 + $0x584] ss:$24 sps:$4 sm:$0xff]  }
 0x180   : > { %5015 = vmatprep.subr.bf16.mxu1 %v6973_v40  ;;  %v6911_v40 = vld [vmem:[%s8145_s24 + $0x5b0] ss:$24 sps:$4 sm:$0xff]  }
 0x181   : > { %3033 = vmatpush1.bf16.msra.mxu0 %v6827_v4  ;;  %v6889_v4 = vld [vmem:[%s8145_s24 + $0x434] ss:$24 sps:$4 sm:$0xff]  }
 0x182   : > { %3034 = vmatprep.subr.bf16.mxu0 %v6832_v5  ;;  %v6887_v5 = vld [vmem:[%s8145_s24 + $0x430] ss:$24 sps:$4 sm:$0xff]  }
 0x183   : > { %5016 = vmatpush1.bf16.msra.mxu1 %v6971_v39  ;;  %v6913_v39 = vld [vmem:[%s8145_s24 + $0x5b4] ss:$24 sps:$4 sm:$0xff]  }
 0x184   : > { %5017 = vmatprep.subr.bf16.mxu1 %v6976_v43  ;;  %v6914_v43 = vld [vmem:[%s8145_s24 + $0x5e0] ss:$24 sps:$4 sm:$0xff]  }
 0x185   : > { %3035 = vmatpush1.bf16.msra.mxu0 %v6830_v6  ;;  %v7006_v6 = vld [vmem:[%s8143_s11 + $0x184] ss:$24 sps:$4 sm:$0xff]  }
 0x186   : > { %3036 = vmatprep.subr.bf16.mxu0 %v6835_v7  ;;  %v6892_v7 = vld [vmem:[%s8145_s24 + $0x464] ss:$24 sps:$4 sm:$0xff]  }
 0x187   : > { %5018 = vmatpush1.bf16.msra.mxu1 %v6974_v44  ;;  %v6919_v44 = vld [vmem:[%s8145_s24 + $0x614] ss:$24 sps:$4 sm:$0xff]  }
 0x188   : > { %5019 = vmatprep.subr.bf16.mxu1 %v6982_v48  ;;  %v6920_v48 = vld [vmem:[%s8145_s24 + $0x640] ss:$24 sps:$4 sm:$0xff]  }
 0x189   : > { %3037 = vmatpush1.bf16.msra.mxu0 %v6833_v8  ;;  %v7004_v8 = vld [vmem:[%s8143_s11 + $0x180] ss:$24 sps:$4 sm:$0xff]  }
 0x18a   : > { %3038 = vmatprep.subr.bf16.mxu0 %v6838_v9  ;;  %v6890_v9 = vld [vmem:[%s8145_s24 + $0x460] ss:$24 sps:$4 sm:$0xff]  }
 0x18b   : > { %5020 = vmatpush1.bf16.msra.mxu1 %v6980_v49  ;;  %v6925_v49 = vld [vmem:[%s8145_s24 + $0x674] ss:$24 sps:$4 sm:$0xff]  }
 0x18c   : > { %5021 = vmatprep.subr.bf16.mxu1 %v6988_v54  ;;  %v6926_v54 = vld [vmem:[%s8145_s24 + $0x6a0] ss:$24 sps:$4 sm:$0xff]  }
 0x18d   : > { %3039 = vmatpush1.bf16.msra.mxu0 %v6836_v19  ;;  %v7012_v19 = vld [vmem:[%s8143_s11 + $0x1b4] ss:$24 sps:$4 sm:$0xff]  }
 0x18e   : > { %3040 = vmatprep.subr.bf16.mxu0 %v6841_v10  ;;  %v6895_v10 = vld [vmem:[%s8145_s24 + $0x494] ss:$24 sps:$4 sm:$0xff]  }
 0x18f   : > { %5022 = vmatpush1.bf16.msra.mxu1 %v6986_v55  ;;  %v6929_v55 = vld [vmem:[%s8145_s24 + $0x6d0] ss:$24 sps:$4 sm:$0xff]  }
 0x190   : > { %5023 = vmatprep.subr.bf16.mxu1 %v6994_v57  ;;  %v6935_v57 = vld [vmem:[%s8145_s24 + $0x730] ss:$24 sps:$4 sm:$0xff]  }
 0x191   : > { %3041 = vmatpush1.bf16.msra.mxu0 %v6839_v11  ;;  %v7010_v11 = vld [vmem:[%s8143_s11 + $0x1b0] ss:$24 sps:$4 sm:$0xff]  }
 0x192   : > { %3042 = vmatprep.subr.bf16.mxu0 %v6844_v12  ;;  %v6893_v12 = vld [vmem:[%s8145_s24 + $0x490] ss:$24 sps:$4 sm:$0xff]  }
 0x193   : > { %5024 = vmatpush1.bf16.msra.mxu1 %v6992_v58  ;;  %v6940_v58 = vld [vmem:[%s8145_s24 + $0x764] ss:$24 sps:$4 sm:$0xff]  }
 0x194   : > { %5025 = vmatprep.subr.bf16.mxu1 %v7000_v62  ;;  %v6941_v62 = vld [vmem:[%s8145_s24 + $0x790] ss:$24 sps:$4 sm:$0xff]  }
 0x195   : > { %3043 = vmatpush1.bf16.msra.mxu0 %v6842_v13  ;;  %v7018_v13 = vld [vmem:[%s8143_s11 + $0x1e4] ss:$24 sps:$4 sm:$0xff]  }
 0x196   : > { %3044 = vmatprep.subr.bf16.mxu0 %v6847_v14  ;;  %v6898_v14 = vld [vmem:[%s8145_s24 + $0x4c4] ss:$24 sps:$4 sm:$0xff]  }
 0x197   : > { %5026 = vmatpush1.bf16.msra.mxu1 %v6998_v1  ;;  %v6946_v1 = vld [vmem:[%s8145_s24 + $0x7c4] ss:$24 sps:$4 sm:$0xff]  }
 0x198   : > { %5027 = vmatprep.subr.bf16.mxu1 %v7006_v6  ;;  %v6952_v6 = vld [vmem:[%s8145_s24 + $0x824] ss:$24 sps:$4 sm:$0xff]  }
 0x199   : > { %3045 = vmatpush1.bf16.msra.mxu0 %v6845_v17  ;;  %v7016_v17 = vld [vmem:[%s8143_s11 + $0x1e0] ss:$24 sps:$4 sm:$0xff]  }
 0x19a   : > { %3046 = vmatprep.subr.bf16.mxu0 %v6850_v18  ;;  %v6896_v18 = vld [vmem:[%s8145_s24 + $0x4c0] ss:$24 sps:$4 sm:$0xff]  }
 0x19b   : > { %5028 = vmatpush1.bf16.msra.mxu1 %v7004_v8  ;;  %v6955_v8 = vld [vmem:[%s8145_s24 + $0x854] ss:$24 sps:$4 sm:$0xff]  }
 0x19c   : > { %5029 = vmatprep.subr.bf16.mxu1 %v7012_v19  ;;  %v6958_v19 = vld [vmem:[%s8145_s24 + $0x884] ss:$24 sps:$4 sm:$0xff]  }
 0x19d   : > { %3047 = vmatpush1.bf16.msra.mxu0 %v6848_v20  ;;  %v7024_v20 = vld [vmem:[%s8143_s11 + $0x214] ss:$24 sps:$4 sm:$0xff]  }
 0x19e   : > { %3048 = vmatprep.subr.bf16.mxu0 %v6853_v21  ;;  %v6901_v21 = vld [vmem:[%s8145_s24 + $0x4f4] ss:$24 sps:$4 sm:$0xff]  }
 0x19f   : > { %5030 = vmatpush1.bf16.msra.mxu1 %v7010_v11  ;;  %v6964_v11 = vld [vmem:[%s8145_s24 + $0x8b4] ss:$24 sps:$4 sm:$0xff]  }
 0x1a0   : > { %5031 = vmatprep.subr.bf16.mxu1 %v7018_v13  ;;  %v6970_v13 = vld [vmem:[%s8145_s24 + $0x8e4] ss:$24 sps:$4 sm:$0xff]  }
 0x1a1   : > { %3049 = vmatpush1.bf16.msra.mxu0 %v6851_v22  ;;  %v7022_v22 = vld [vmem:[%s8143_s11 + $0x210] ss:$24 sps:$4 sm:$0xff]  }
 0x1a2   : > { %3050 = vmatprep.subr.bf16.mxu0 %v6856_v23  ;;  %v7028_v23 = vld [vmem:[%s8143_s11 + $0x240] ss:$24 sps:$4 sm:$0xff]  }
 0x1a3   : > { %5032 = vmatpush1.bf16.msra.mxu1 %v7016_v17  ;;  %v6979_v17 = vld [vmem:[%s8143_s11 + $0xc] ss:$24 sps:$4 sm:$0xff]  }
 0x1a4   : > { %5033 = vmatprep.subr.bf16.mxu1 %v7024_v20  ;;  %v6985_v20 = vld [vmem:[%s8143_s11 + $0x3c] ss:$24 sps:$4 sm:$0xff]  }
 0x1a5   : > { %3051 = vmatpush1.bf16.msra.mxu0 %v6854_v24  ;;  %v7030_v24 = vld [vmem:[%s8143_s11 + $0x244] ss:$24 sps:$4 sm:$0xff]  }
 0x1a6   : > { %3052 = vmatprep.subr.bf16.mxu0 %v6859_v25  ;;  %v6899_v25 = vld [vmem:[%s8145_s24 + $0x4f0] ss:$24 sps:$4 sm:$0xff]  }
 0x1a7   : > { %5034 = vmatpush1.bf16.msra.mxu1 %v7022_v22  ;;  %v6991_v22 = vld [vmem:[%s8143_s11 + $0x6c] ss:$24 sps:$4 sm:$0xff]  }
 0x1a8   : > { %5035 = vmatprep.subr.bf16.mxu1 %v7030_v24  ;;  %v6989_v24 = vld [vmem:[%s8143_s11 + $0x68] ss:$24 sps:$4 sm:$0xff]  }
 0x1a9   : > { %3053 = vmatpush1.bf16.msra.mxu0 %v6857_v26  ;;  %v6904_v26 = vld [vmem:[%s8145_s24 + $0x524] ss:$24 sps:$4 sm:$0xff]  }
 0x1aa   : > { %3054 = vmatprep.subr.bf16.mxu0 %v6862_v27  ;;  %v7036_v27 = vld [vmem:[%s8143_s11 + $0x274] ss:$24 sps:$4 sm:$0xff]  }
 0x1ab   : > { %5036 = vmatpush1.bf16.msra.mxu1 %v7028_v23  ;;  %v1270_v23 = vlaneseq }
 0x1ac   : > { %5037 = vmatprep.subr.bf16.mxu1 %v7036_v27  ;;  %v6995_v27 = vld [vmem:[%s8143_s11 + $0x98] ss:$24 sps:$4 sm:$0xff]  }
 0x1ad   : > { %3055 = vmatpush1.bf16.msra.mxu0 %v6860_v28  ;;  %v7034_v28 = vld [vmem:[%s8143_s11 + $0x270] ss:$24 sps:$4 sm:$0xff]  }
 0x1ae   : > { %3056 = vmatprep.subr.bf16.mxu0 %v6865_v29  ;;  %v6902_v29 = vld [vmem:[%s8145_s24 + $0x520] ss:$24 sps:$4 sm:$0xff]  }
 0x1af   : > { %5038 = vmatpush1.bf16.msra.mxu1 %v7034_v28  ;;  %v7003_v28 = vld [vmem:[%s8143_s11 + $0xcc] ss:$24 sps:$4 sm:$0xff]  }
 0x1b0   : > { %5039 = vmatprep.subr.bf16.mxu1 %v7042_v31  ;;  %v8564_v31 = vld [vmem:[%s942_s23] sm:$0x3f] }
 0x1b1   : > { %3057 = vmatpush1.bf16.msra.mxu0 %v6863_v32  ;;  %v7040_v32 = vld [vmem:[%s8143_s11 + $0x2a0] ss:$24 sps:$4 sm:$0xff]  }
 0x1b2   : > { %3058 = vmatprep.subr.bf16.mxu0 %v6868_v33  ;;  %v6905_v33 = vld [vmem:[%s8145_s24 + $0x550] ss:$24 sps:$4 sm:$0xff]  }
 0x1b3   : > { %5040 = vmatpush1.bf16.msra.mxu1 %v7040_v32 }
 0x1b4   : > { %5041 = vmatprep.subr.bf16.mxu1 %v7048_v35 }
 0x1b5   : > { %3059 = vmatpush1.bf16.msra.mxu0 %v6866_v36  ;;  %v7046_v36 = vld [vmem:[%s8143_s11 + $0x2d0] ss:$24 sps:$4 sm:$0xff]  }
 0x1b6   : > { %3071 = vmatprep.subr.bf16.mxu0 %v6871_v37  ;;  %v6908_v37 = vld [vmem:[%s8145_s24 + $0x580] ss:$24 sps:$4 sm:$0xff]  }
 0x1b7   : > { %5042 = vmatpush1.bf16.msra.mxu1 %v7046_v36 }
 0x1b8   : > { %3061 = vmatmul.mubr.bf16.vlgmr.msra.gmra.mrb[4].mxu0 %v8232_v38  ;;  %v6880_v38 = vld [vmem:[%s8145_s24 + $0x3a4] ss:$24 sps:$4 sm:$0xff]  }
 0x1b9   : > { %3072 = vmatpush1.bf16.msra.mxu0 %v6869_v41  ;;  %3103 = vmatprep.mubr.bf16.mxu0 %v8274_v3  ;;  %v6878_v3 = vld [vmem:[%s8145_s24 + $0x3a0] ss:$24 sps:$4 sm:$0xff]   ;;  %v6916_v41 = vld [vmem:[%s8145_s24 + $0x5e4] ss:$24 sps:$4 sm:$0xff]  }
 0x1ba   : > { %3073 = vmatprep.subr.bf16.mxu0 %v6874_v42  ;;  %v7054_v42 = vld [vmem:[%s8143_s11 + $0x304] ss:$24 sps:$4 sm:$0xff]  }
 0x1bb   : > { %5054 = vmatprep.subr.bf16.mxu1 %v7054_v42 }
 0x1bd   : > { %3074 = vmatpush1.bf16.msra.mxu0 %v6872_v45  ;;  %v6917_v45 = vld [vmem:[%s8145_s24 + $0x610] ss:$24 sps:$4 sm:$0xff]  }
 0x1be   : > { %3075 = vmatprep.subr.bf16.mxu0 %v6877_v47  ;;  %v6922_v47 = vld [vmem:[%s8145_s24 + $0x644] ss:$24 sps:$4 sm:$0xff]  }
 0x1c1   : > { %3076 = vmatpush1.bf16.msra.mxu0 %v6875_v50  ;;  %v6923_v50 = vld [vmem:[%s8145_s24 + $0x670] ss:$24 sps:$4 sm:$0xff]  }
 0x1c2   : > { %3077 = vmatprep.subr.bf16.mxu0 %v6880_v38  ;;  %v6928_v38 = vld [vmem:[%s8145_s24 + $0x6a4] ss:$24 sps:$4 sm:$0xff]  }
 0x1c5   : > { %3078 = vmatpush1.bf16.msra.mxu0 %v6878_v3  ;;  %v6932_v3 = vld [vmem:[%s8145_s24 + $0x700] ss:$24 sps:$4 sm:$0xff]  }
 0x1c6   : > { %3079 = vmatprep.subr.bf16.mxu0 %v6883_v56  ;;  %v6937_v56 = vld [vmem:[%s8145_s24 + $0x734] ss:$24 sps:$4 sm:$0xff]  }
 0x1c9   : > { %3080 = vmatpush1.bf16.msra.mxu0 %v6881_v59  ;;  %v6938_v59 = vld [vmem:[%s8145_s24 + $0x760] ss:$24 sps:$4 sm:$0xff]  }
 0x1ca   : > { %3081 = vmatprep.subr.bf16.mxu0 %v6886_v61  ;;  %v6943_v61 = vld [vmem:[%s8145_s24 + $0x794] ss:$24 sps:$4 sm:$0xff]  }
 0x1cd   : > { %3082 = vmatpush1.bf16.msra.mxu0 %v6884_v2  ;;  %v6944_v2 = vld [vmem:[%s8145_s24 + $0x7c0] ss:$24 sps:$4 sm:$0xff]  }
 0x1ce   : > { %3083 = vmatprep.subr.bf16.mxu0 %v6889_v4  ;;  %v6949_v4 = vld [vmem:[%s8145_s24 + $0x7f4] ss:$24 sps:$4 sm:$0xff]  }
 0x1d1   : > { %3084 = vmatpush1.bf16.msra.mxu0 %v6887_v5  ;;  %v6947_v5 = vld [vmem:[%s8145_s24 + $0x7f0] ss:$24 sps:$4 sm:$0xff]  }
 0x1d2   : > { %3085 = vmatprep.subr.bf16.mxu0 %v6892_v7  ;;  %v6950_v7 = vld [vmem:[%s8145_s24 + $0x820] ss:$24 sps:$4 sm:$0xff]  }
 0x1d5   : > { %3086 = vmatpush1.bf16.msra.mxu0 %v6890_v9  ;;  %v6953_v9 = vld [vmem:[%s8145_s24 + $0x850] ss:$24 sps:$4 sm:$0xff]  }
 0x1d6   : > { %3087 = vmatprep.subr.bf16.mxu0 %v6895_v10  ;;  %v6956_v10 = vld [vmem:[%s8145_s24 + $0x880] ss:$24 sps:$4 sm:$0xff]  }
 0x1d9   : > { %3088 = vmatpush1.bf16.msra.mxu0 %v6893_v12  ;;  %v6962_v12 = vld [vmem:[%s8145_s24 + $0x8b0] ss:$24 sps:$4 sm:$0xff]  }
 0x1da   : > { %3089 = vmatprep.subr.bf16.mxu0 %v6898_v14  ;;  %v6968_v14 = vld [vmem:[%s8145_s24 + $0x8e0] ss:$24 sps:$4 sm:$0xff]  }
 0x1dd   : > { %3090 = vmatpush1.bf16.msra.mxu0 %v6896_v18  ;;  %v6977_v18 = vld [vmem:[%s8143_s11 + $0x8] ss:$24 sps:$4 sm:$0xff]  }
 0x1de   : > { %3091 = vmatprep.subr.bf16.mxu0 %v6901_v21  ;;  %v6983_v21 = vld [vmem:[%s8143_s11 + $0x38] ss:$24 sps:$4 sm:$0xff]  }
 0x1e1   : > { %3092 = vmatpush1.bf16.msra.mxu0 %v6899_v25  ;;  %v6997_v25 = vld [vmem:[%s8143_s11 + $0x9c] ss:$24 sps:$4 sm:$0xff]  }
 0x1e2   : > { %3093 = vmatprep.subr.bf16.mxu0 %v6904_v26  ;;  %v8548_v26 = vshrl.u32 %v1270_v23, 7 }
 0x1e4   : > { %v8567_v32 = vsub.s32 1, %v8548_v26 }
 0x1e5   : > { %3094 = vmatpush1.bf16.msra.mxu0 %v6902_v29  ;;  %v8556_v29 = vsub.s32 2, %v8548_v26 }
 0x1e6   : > { %3095 = vmatprep.subr.bf16.mxu0 %v6907_v30  ;;  %v7001_v30 = vld [vmem:[%s8143_s11 + $0xc8] ss:$24 sps:$4 sm:$0xff]  }
 0x1e7   : > { %v1281_v36 = vrot.slane %v8564_v31, %v8556_v29 }
 0x1e9   : > { %3096 = vmatpush1.bf16.msra.mxu0 %v6905_v33  ;;  %v8570_v33 = vsub.s32 3, %v8548_v26 }
 0x1ea   : > { %3097 = vmatprep.subr.bf16.mxu0 %v6910_v34  ;;  %v7009_v34 = vld [vmem:[%s8143_s11 + $0xfc] ss:$24 sps:$4 sm:$0xff]  }
 0x1ed   : > { %3098 = vmatpush1.bf16.msra.mxu0 %v6908_v37  ;;  %v1277_v37 = vrot.slane %v8564_v31, %v8567_v32 }
 0x1ee   : > { %3099 = vmatprep.subr.bf16.mxu0 %v6913_v39  ;;  %v1285_v39 = vrot.slane %v8564_v31, %v8570_v33 }
 0x1f1   : > { %3100 = vmatpush1.bf16.msra.mxu0 %v6911_v40  ;;  %v7007_v40 = vld [vmem:[%s8143_s11 + $0xf8] ss:$24 sps:$4 sm:$0xff]  }
 0x1f2   : > { %3101 = vmatprep.subr.bf16.mxu0 %v6916_v41  ;;  %v7015_v41 = vld [vmem:[%s8143_s11 + $0x12c] ss:$24 sps:$4 sm:$0xff]  }
 0x1f5   : > { %3102 = vmatpush1.bf16.msra.mxu0 %v6914_v43 }
 0x1f6   : > { %3114 = vmatprep.subr.bf16.mxu0 %v6919_v44 }
 0x1f8   : > { %3104 = vmatmul.mubr.bf16.vlgmr.msra.gmra.mrb[4].mxu0 %v8318_v46  ;;  %v6931_v46 = vld [vmem:[%s8145_s24 + $0x6d4] ss:$24 sps:$4 sm:$0xff]  }
 0x1f9   : > { %3115 = vmatpush1.bf16.msra.mxu0 %v6917_v45  ;;  %3146 = vmatprep.mubr.bf16.mxu0 %v8336_v53  ;;  %v6934_v53 = vld [vmem:[%s8145_s24 + $0x704] ss:$24 sps:$4 sm:$0xff]  }
 0x1fa   : > { %3116 = vmatprep.subr.bf16.mxu0 %v6922_v47 }
 0x1fd   : > { %3117 = vmatpush1.bf16.msra.mxu0 %v6920_v48 }
 0x1fe   : > { %3118 = vmatprep.subr.bf16.mxu0 %v6925_v49 }
 0x201   : > { %3119 = vmatpush1.bf16.msra.mxu0 %v6923_v50 }
 0x202   : > { %3120 = vmatprep.subr.bf16.mxu0 %v6928_v38 }
 0x205   : > { %3121 = vmatpush1.bf16.msra.mxu0 %v6926_v54 }
 0x206   : > { %3122 = vmatprep.subr.bf16.mxu0 %v6931_v46  ;;  %v7013_v46 = vld [vmem:[%s8143_s11 + $0x128] ss:$24 sps:$4 sm:$0xff]  }
 0x209   : > { %3123 = vmatpush1.bf16.msra.mxu0 %v6929_v55  ;;  %v7021_v55 = vld [vmem:[%s8143_s11 + $0x15c] ss:$24 sps:$4 sm:$0xff]  }
 0x20a   : > { %3124 = vmatprep.subr.bf16.mxu0 %v6934_v53 }
 0x20d   : > { %3125 = vmatpush1.bf16.msra.mxu0 %v6932_v3 }
 0x20e   : > { %3126 = vmatprep.subr.bf16.mxu0 %v6937_v56 }
 0x211   : > { %3127 = vmatpush1.bf16.msra.mxu0 %v6935_v57 }
 0x212   : > { %3128 = vmatprep.subr.bf16.mxu0 %v6940_v58 }
 0x215   : > { %3129 = vmatpush1.bf16.msra.mxu0 %v6938_v59 }
 0x216   : > { %3130 = vmatprep.subr.bf16.mxu0 %v6943_v61 }
 0x219   : > { %3131 = vmatpush1.bf16.msra.mxu0 %v6941_v62 }
 0x21a   : > { %3132 = vmatprep.subr.bf16.mxu0 %v6946_v1 }
 0x21d   : > { %3133 = vmatpush1.bf16.msra.mxu0 %v6944_v2 }
 0x21e   : > { %3134 = vmatprep.subr.bf16.mxu0 %v6949_v4 }
 0x221   : > { %3135 = vmatpush1.bf16.msra.mxu0 %v6947_v5 }
 0x222   : > { %3136 = vmatprep.subr.bf16.mxu0 %v6952_v6 }
 0x225   : > { %3137 = vmatpush1.bf16.msra.mxu0 %v6950_v7 }
 0x226   : > { %3138 = vmatprep.subr.bf16.mxu0 %v6955_v8 }
 0x229   : > { %3139 = vmatpush1.bf16.msra.mxu0 %v6953_v9 }
 0x22a   : > { %3140 = vmatprep.subr.bf16.mxu0 %v6958_v19 }
 0x22d   : > { %3141 = vmatpush1.bf16.msra.mxu0 %v6956_v10 }
 0x22e   : > { %3142 = vmatprep.subr.bf16.mxu0 %v6964_v11  ;;  %v7019_v11 = vld [vmem:[%s8143_s11 + $0x158] ss:$24 sps:$4 sm:$0xff]  }
 0x231   : > { %3143 = vmatpush1.bf16.msra.mxu0 %v6962_v12 }
 0x232   : > { %3144 = vmatprep.subr.bf16.mxu0 %v6970_v13 }
 0x235   : > { %3145 = vmatpush1.bf16.msra.mxu0 %v6968_v14 }
 0x236   : > { %5140 = vmatprep.subr.bf16.mxu0 %v6979_v17 }
 0x238   : > { %3147 = vmatmul.mubr.bf16.vlgmr.msra.gmra.mrb[4].mxu0 %v8403_v60  ;;  %v8553_v60 = vsub.s32 0, %v8548_v26 }
 0x239   : > { %5141 = vmatpush1.bf16.msra.mxu0 %v6977_v18  ;;  %v7027_v18 = vld [vmem:[%s8143_s11 + $0x18c] ss:$24 sps:$4 sm:$0xff]  }
 0x23a   : > { %5142 = vmatprep.subr.bf16.mxu0 %v6985_v20  ;;  %v1273_v35 = vrot.slane %v8564_v31, %v8553_v60 }
 0x23d   : > { %5143 = vmatpush1.bf16.msra.mxu0 %v6983_v21 }
 0x23e   : > { %5144 = vmatprep.subr.bf16.mxu0 %v6991_v22 }
 0x241   : > { %5145 = vmatpush1.bf16.msra.mxu0 %v6989_v24 }
 0x242   : > { %5146 = vmatprep.subr.bf16.mxu0 %v6997_v25 }
 0x245   : > { %5147 = vmatpush1.bf16.msra.mxu0 %v6995_v27 }
 0x246   : > { %5148 = vmatprep.subr.bf16.mxu0 %v7003_v28 }
 0x249   : > { %5149 = vmatpush1.bf16.msra.mxu0 %v7001_v30 }
 0x24a   : > { %5150 = vmatprep.subr.bf16.mxu0 %v7009_v34 }
 0x24b   : > { %v2890_v42 = vpop.f32.mrb[0].mxu0 }
 0x24c   : > { %v3019_v43 = vpop.f32.mrb[0].mxu1  ;;  %v8583_v44 = vadd.f32 %v2890_v42, %v1273_v35  ;;  %v2892_v47 = vpop.f32.mrb[1].mxu0 }
 0x24d   : > { %v8585_v45 = vadd.f32 %v3019_v43, %v1281_v36  ;;  %v3021_v48 = vpop.f32.mrb[1].mxu1  ;;  %v8587_v49 = vadd.f32 %v2892_v47, %v1277_v37  ;;  %v2894_v38 = vpop.f32.mrb[2].mxu0  ;;  %5151 = vmatpush1.bf16.msra.mxu0 %v7007_v40 }
 0x24e   : > { %v8589_v50 = vadd.f32 %v3021_v48, %v1285_v39  ;;  %v3023_v54 = vpop.f32.mrb[2].mxu1  ;;  %v3169_v53 = vmul.f32 0.044715, %v8583_v44  ;;  %v8595_v56 = vadd.f32 %v2894_v38, %v1273_v35  ;;  %v2896_v58 = vpop.f32.mrb[3].mxu0  ;;  %5152 = vmatprep.subr.bf16.mxu0 %v7015_v41  ;;  %v7025_v35 = vld [vmem:[%s8143_s11 + $0x188] ss:$24 sps:$4 sm:$0xff]  }
 0x24f   : > { %v3171_v3 = vmul.f32 0.044715, %v8585_v45  ;;  %v8597_v57 = vadd.f32 %v3023_v54, %v1281_v36  ;;  %v3025_v59 = vpop.f32.mrb[3].mxu1  ;;  %v3170_v61 = vmul.f32 0.044715, %v8587_v49  ;;  %v8601_v1 = vadd.f32 %v2896_v58, %v1277_v37 }
 0x250   : > { %v3172_v62 = vmul.f32 0.044715, %v8589_v50  ;;  %v8603_v2 = vadd.f32 %v3025_v59, %v1285_v39  ;;  %v3181_v4 = vmul.f32 %v8583_v44, %v3169_v53  ;;  %v3175_v6 = vmul.f32 0.044715, %v8595_v56  ;;  %v7033_v41 = vld [vmem:[%s8143_s11 + $0x1bc] ss:$24 sps:$4 sm:$0xff]  }
 0x251   : > { %v3183_v5 = vmul.f32 %v8585_v45, %v3171_v3  ;;  %v3177_v7 = vmul.f32 0.044715, %v8597_v57  ;;  %v3182_v8 = vmul.f32 %v8587_v49, %v3170_v61  ;;  %v3176_v19 = vmul.f32 0.044715, %v8601_v1  ;;  %5153 = vmatpush1.bf16.msra.mxu0 %v7013_v46  ;;  %v7031_v38 = vld [vmem:[%s8143_s11 + $0x1b8] ss:$24 sps:$4 sm:$0xff]  }
 0x252   : > { %v3184_v9 = vmul.f32 %v8589_v50, %v3172_v62  ;;  %v3178_v10 = vmul.f32 0.044715, %v8603_v2  ;;  %v3193_v12 = vmul.f32 %v8583_v44, %v3181_v4  ;;  %v3187_v14 = vmul.f32 %v8595_v56, %v3175_v6  ;;  %5154 = vmatprep.subr.bf16.mxu0 %v7021_v55  ;;  %v7039_v55 = vld [vmem:[%s8143_s11 + $0x1ec] ss:$24 sps:$4 sm:$0xff]   ;;  %v7037_v61 = vld [vmem:[%s8143_s11 + $0x1e8] ss:$24 sps:$4 sm:$0xff]  }
 0x253   : > { %v3195_v13 = vmul.f32 %v8585_v45, %v3183_v5  ;;  %v3189_v17 = vmul.f32 %v8597_v57, %v3177_v7  ;;  %v3194_v20 = vmul.f32 %v8587_v49, %v3182_v8  ;;  %v3188_v21 = vmul.f32 %v8601_v1, %v3176_v19  ;;  %v7045_v62 = vld [vmem:[%s8143_s11 + $0x21c] ss:$24 sps:$4 sm:$0xff]   ;;  %v7043_v4 = vld [vmem:[%s8143_s11 + $0x218] ss:$24 sps:$4 sm:$0xff]   ;;  %v7051_v6 = vld [vmem:[%s8143_s11 + $0x24c] ss:$24 sps:$4 sm:$0xff]  }
 0x254   : > { %v3190_v22 = vmul.f32 %v8603_v2, %v3178_v10  ;;  %v3205_v23 = vadd.f32 %v8583_v44, %v3193_v12  ;;  %v3199_v25 = vmul.f32 %v8595_v56, %v3187_v14  ;;  %v3196_v28 = vmul.f32 %v8589_v50, %v3184_v9 }
 0x255   : > { %v3207_v24 = vadd.f32 %v8585_v45, %v3195_v13  ;;  %v3201_v27 = vmul.f32 %v8597_v57, %v3189_v17  ;;  %v3200_v30 = vmul.f32 %v8601_v1, %v3188_v21  ;;  %5155 = vmatpush1.bf16.msra.mxu0 %v7019_v11  ;;  %v3206_v42 = vadd.f32 %v8587_v49, %v3194_v20  ;;  %v7049_v11 = vld [vmem:[%s8143_s11 + $0x248] ss:$24 sps:$4 sm:$0xff]  }
 0x256   : > { %v3202_v34 = vmul.f32 %v8603_v2, %v3190_v22  ;;  %v3217_v36 = vmul.f32 0.7978846, %v3205_v23  ;;  %v3211_v39 = vadd.f32 %v8595_v56, %v3199_v25  ;;  %5156 = vmatprep.subr.bf16.mxu0 %v7027_v18  ;;  %v3208_v53 = vadd.f32 %v8589_v50, %v3196_v28  ;;  %v7057_v18 = vld [vmem:[%s8143_s11 + $0x27c] ss:$24 sps:$4 sm:$0xff]  }
 0x257   : > { %v3219_v37 = vmul.f32 0.7978846, %v3207_v24  ;;  %v3213_v40 = vadd.f32 %v8597_v57, %v3201_v27  ;;  %v3212_v43 = vadd.f32 %v8601_v1, %v3200_v30  ;;  %v3218_v54 = vmul.f32 0.7978846, %v3206_v42 }
 0x258   : > { %7397 = vtanh.f32 %v3217_v36  ;;  %v3223_v47 = vmul.f32 0.7978846, %v3211_v39  ;;  %v3214_v3 = vadd.f32 %v8603_v2, %v3202_v34  ;;  %v3220_v58 = vmul.f32 0.7978846, %v3208_v53  ;;  %v7058_v53 = vld [vmem:[%s8143_s11 + $0x330] ss:$24 sps:$4 sm:$0xff]  }
 0x259   : > { %v3225_v48 = vmul.f32 0.7978846, %v3213_v40  ;;  %7399 = vtanh.f32 %v3219_v37  ;;  %5157 = vmatpush1.bf16.msra.mxu0 %v7025_v35  ;;  %v3224_v46 = vmul.f32 0.7978846, %v3212_v43  ;;  %v3157_v12 = vmul.f32 0.5, %v8583_v44 }
 0x25a   : > { %7401 = vtanh.f32 %v3223_v47  ;;  %5158 = vmatprep.subr.bf16.mxu0 %v7033_v41  ;;  %v3226_v59 = vmul.f32 0.7978846, %v3214_v3  ;;  %v3163_v13 = vmul.f32 0.5, %v8595_v56  ;;  %v3159_v20 = vmul.f32 0.5, %v8585_v45  ;;  %v7055_v45 = vld [vmem:[%s8143_s11 + $0x278] ss:$24 sps:$4 sm:$0xff]  }
 0x25b   : > { %7403 = vtanh.f32 %v3225_v48  ;;  %v3165_v21 = vmul.f32 0.5, %v8597_v57  ;;  %v3158_v24 = vmul.f32 0.5, %v8587_v49  ;;  %v3164_v44 = vmul.f32 0.5, %v8601_v1  ;;  %v7063_v43 = vld [vmem:[%s8143_s11 + $0x2ac] ss:$24 sps:$4 sm:$0xff]  }
 0x25c   : > { %7405 = vtanh.f32 %v3218_v54  ;;  %v3160_v49 = vmul.f32 0.5, %v8589_v50  ;;  %v3166_v37 = vmul.f32 0.5, %v8603_v2  ;;  %v7052_v48 = vld [vmem:[%s8143_s11 + $0x300] ss:$24 sps:$4 sm:$0xff]   ;;  %v7060_v50 = vld [vmem:[%s8143_s11 + $0x334] ss:$24 sps:$4 sm:$0xff]  }
 0x25d   : > { %5159 = vmatpush1.bf16.msra.mxu0 %v7031_v38  ;;  %7407 = vtanh.f32 %v3224_v46  ;;  %v7061_v2 = vld [vmem:[%s8143_s11 + $0x2a8] ss:$24 sps:$4 sm:$0xff]   ;;  %v7066_v3 = vld [vmem:[%s8143_s11 + $0x364] ss:$24 sps:$4 sm:$0xff]  }
 0x25e   : > { %5160 = vmatprep.subr.bf16.mxu0 %v7039_v55  ;;  %7409 = vtanh.f32 %v3220_v58  ;;  %v7069_v55 = vld [vmem:[%s8143_s11 + $0x2dc] ss:$24 sps:$4 sm:$0xff]   ;;  %v7067_v58 = vld [vmem:[%s8143_s11 + $0x2d8] ss:$24 sps:$4 sm:$0xff]  }
 0x25f   : > { %7411 = vtanh.f32 %v3226_v59  ;;  %v7075_v59 = vld [vmem:[%s8143_s11 + $0x30c] ss:$24 sps:$4 sm:$0xff]  }
 0x261   : > { %5161 = vmatpush1.bf16.msra.mxu0 %v7037_v61  ;;  %v7064_v61 = vld [vmem:[%s8143_s11 + $0x360] ss:$24 sps:$4 sm:$0xff]  }
 0x262   : > { %v7398_v5 = vpop.eup %7397  ;;  %5162 = vmatprep.subr.bf16.mxu0 %v7045_v62  ;;  %v7072_v62 = vld [vmem:[%s8143_s11 + $0x394] ss:$24 sps:$4 sm:$0xff]  }
 0x263   : > { %v7400_v7 = vpop.eup %7399  ;;  %v3241_v8 = vadd.f32 1.0, %v7398_v5  ;;  %v7081_v5 = vld [vmem:[%s8143_s11 + $0x33c] ss:$24 sps:$4 sm:$0xff]  }
 0x264   : > { %v7402_v9 = vpop.eup %7401  ;;  %v3243_v19 = vadd.f32 1.0, %v7400_v7  ;;  %v7078_v7 = vld [vmem:[%s8143_s11 + $0x3c4] ss:$24 sps:$4 sm:$0xff]  }
 0x265   : > { %v7404_v10 = vpop.eup %7403  ;;  %5163 = vmatpush1.bf16.msra.mxu0 %v7043_v4  ;;  %v3247_v14 = vadd.f32 1.0, %v7402_v9  ;;  %v3253_v27 = vmul.f32 %v3241_v8, %v3157_v12  ;;  %v7073_v4 = vld [vmem:[%s8143_s11 + $0x308] ss:$24 sps:$4 sm:$0xff]   ;;  %v7079_v8 = vld [vmem:[%s8143_s11 + $0x338] ss:$24 sps:$4 sm:$0xff]  }
 0x266   : > { %v7406_v17 = vpop.eup %7405  ;;  %5164 = vmatprep.subr.bf16.mxu0 %v7051_v6  ;;  %v3249_v22 = vadd.f32 1.0, %v7404_v10  ;;  %v3255_v34 = vmul.f32 %v3243_v19, %v3159_v20  ;;  %v7070_v6 = vld [vmem:[%s8143_s11 + $0x390] ss:$24 sps:$4 sm:$0xff]   ;;  %v7087_v9 = vld [vmem:[%s8143_s11 + $0x36c] ss:$24 sps:$4 sm:$0xff]  }
 0x267   : > { %v7408_v23 = vpop.eup %7407  ;;  %v3242_v25 = vadd.f32 1.0, %v7406_v17  ;;  %v3259_v28 = vmul.f32 %v3247_v14, %v3163_v13  ;;  %v7076_v19 = vld [vmem:[%s8143_s11 + $0x3c0] ss:$24 sps:$4 sm:$0xff]   ;;  %v7084_v10 = vld [vmem:[%s8143_s11 + $0x3f4] ss:$24 sps:$4 sm:$0xff]  }
 0x268   : > { %v7410_v30 = vpop.eup %7409  ;;  %v3248_v56 = vadd.f32 1.0, %v7408_v23  ;;  %v3261_v35 = vmul.f32 %v3249_v22, %v3165_v21  ;;  %v7093_v12 = vld [vmem:[%s8143_s11 + $0x39c] ss:$24 sps:$4 sm:$0xff]   ;;  %v7082_v13 = vld [vmem:[%s8143_s11 + $0x3f0] ss:$24 sps:$4 sm:$0xff]  }
 0x269   : > { %v7412_v36 = vpop.eup %7411  ;;  %5165 = vmatpush1.bf16.msra.mxu0 %v7049_v11  ;;  %v8652_v57 = vpack.c.bf16 %v3259_v28, %v3253_v27  ;;  %v3244_v39 = vadd.f32 1.0, %v7410_v30  ;;  %v3254_v40 = vmul.f32 %v3242_v25, %v3158_v24  ;;  %v7085_v11 = vld [vmem:[%s8143_s11 + $0x368] ss:$24 sps:$4 sm:$0xff]   ;;  %v7090_v14 = vld [vmem:[%s8143_s11 + $0x424] ss:$24 sps:$4 sm:$0xff]  }
 0x26a   : > { %v3260_v1 = vmul.f32 %v3248_v56, %v3164_v44  ;;  %5166 = vmatprep.subr.bf16.mxu0 %v7057_v18  ;;  %v3250_v41 = vadd.f32 1.0, %v7412_v36  ;;  %v8656_v42 = vpack.c.bf16 %v3261_v35, %v3255_v34  ;;  %v7091_v17 = vld [vmem:[%s8143_s11 + $0x398] ss:$24 sps:$4 sm:$0xff]   ;;  %v7099_v18 = vld [vmem:[%s8143_s11 + $0x3cc] ss:$24 sps:$4 sm:$0xff]  }
 0x26b   : > { %v3256_v38 = vmul.f32 %v3244_v39, %v3160_v49  ;;  %v7088_v20 = vld [vmem:[%s8143_s11 + $0x420] ss:$24 sps:$4 sm:$0xff]   ;;  %v7096_v21 = vld [vmem:[%s8143_s11 + $0x454] ss:$24 sps:$4 sm:$0xff]   ;;  %v7094_v24 = vld [vmem:[%s8143_s11 + $0x450] ss:$24 sps:$4 sm:$0xff]  }
 0x26c   : > { %v8659_v47 = vpack.c.bf16 %v3260_v1, %v3254_v40  ;;  %v3262_v54 = vmul.f32 %v3250_v41, %v3166_v37  ;;  %v7097_v22 = vld [vmem:[%s8143_s11 + $0x3c8] ss:$24 sps:$4 sm:$0xff]   ;;  %v7105_v23 = vld [vmem:[%s8143_s11 + $0x3fc] ss:$24 sps:$4 sm:$0xff]   ;;  %v7103_v27 = vld [vmem:[%s8143_s11 + $0x3f8] ss:$24 sps:$4 sm:$0xff]  }
 0x26d   : > { %5167 = vmatpush1.bf16.msra.mxu0 %v7055_v45  ;;  %v7102_v25 = vld [vmem:[%s8143_s11 + $0x484] ss:$24 sps:$4 sm:$0xff]   ;;  %v7100_v30 = vld [vmem:[%s8143_s11 + $0x480] ss:$24 sps:$4 sm:$0xff]   ;;  %v7108_v44 = vld [vmem:[%s8143_s11 + $0x4b4] ss:$24 sps:$4 sm:$0xff]  }
 0x26e   : > { %5043 = vmatprep.mubr.bf16.mxu1 %v8659_v47  ;;  %5172 = vmatprep.mubr.bf16.mxu0 %v8659_v47  ;;  %v8666_v46 = vpack.c.bf16 %v3262_v54, %v3256_v38  ;;  %v7111_v28 = vld [vmem:[%s8143_s11 + $0x42c] ss:$24 sps:$4 sm:$0xff]   ;;  %v7109_v56 = vld [vmem:[%s8143_s11 + $0x428] ss:$24 sps:$4 sm:$0xff]   ;;  %v7117_v34 = vld [vmem:[%s8143_s11 + $0x45c] ss:$24 sps:$4 sm:$0xff]  }
 0x26f   : > { %5044 = vmatmul.mubr.bf16.vlgmr.msra.gmra.mrb[4].mxu1 %v8652_v57  ;;  %5168 = vmatprep.subr.bf16.mxu0 %v7063_v43  ;;  %v7106_v35 = vld [vmem:[%s8143_s11 + $0x4b0] ss:$24 sps:$4 sm:$0xff]   ;;  %v7114_v36 = vld [vmem:[%s8143_s11 + $0x4e4] ss:$24 sps:$4 sm:$0xff]   ;;  %v7112_v37 = vld [vmem:[%s8143_s11 + $0x4e0] ss:$24 sps:$4 sm:$0xff]  }
 0x270   : > { %5055 = vmatpush1.bf16.msra.mxu1 %v7052_v48  ;;  %5086 = vmatprep.mubr.bf16.mxu1 %v8666_v46  ;;  %v7115_v45 = vld [vmem:[%s8143_s11 + $0x458] ss:$24 sps:$4 sm:$0xff]   ;;  %v7123_v49 = vld [vmem:[%s8143_s11 + $0x48c] ss:$24 sps:$4 sm:$0xff]   ;;  %v7121_v40 = vld [vmem:[%s8143_s11 + $0x488] ss:$24 sps:$4 sm:$0xff]  }
 0x271   : > { %5056 = vmatprep.subr.bf16.mxu1 %v7060_v50  ;;  %5169 = vmatpush1.bf16.msra.mxu0 %v7061_v2  ;;  %v7120_v39 = vld [vmem:[%s8143_s11 + $0x514] ss:$24 sps:$4 sm:$0xff]   ;;  %v7118_v41 = vld [vmem:[%s8143_s11 + $0x510] ss:$24 sps:$4 sm:$0xff]   ;;  %v7126_v43 = vld [vmem:[%s8143_s11 + $0x544] ss:$24 sps:$4 sm:$0xff]  }
 0x272   : > { %5170 = vmatprep.subr.bf16.mxu0 %v7069_v55  ;;  %v7129_v1 = vld [vmem:[%s8143_s11 + $0x4bc] ss:$24 sps:$4 sm:$0xff]   ;;  %v7127_v48 = vld [vmem:[%s8143_s11 + $0x4b8] ss:$24 sps:$4 sm:$0xff]   ;;  %v7135_v38 = vld [vmem:[%s8143_s11 + $0x4ec] ss:$24 sps:$4 sm:$0xff]  }
 0x273   : > { %v7124_v54 = vld [vmem:[%s8143_s11 + $0x540] ss:$24 sps:$4 sm:$0xff]   ;;  %v7132_v50 = vld [vmem:[%s8143_s11 + $0x574] ss:$24 sps:$4 sm:$0xff]  }
 0x274   : > { %5057 = vmatpush1.bf16.msra.mxu1 %v7058_v53  ;;  %v7133_v2 = vld [vmem:[%s8143_s11 + $0x4e8] ss:$24 sps:$4 sm:$0xff]   ;;  %v7141_v55 = vld [vmem:[%s8143_s11 + $0x51c] ss:$24 sps:$4 sm:$0xff]  }
 0x275   : > { %5058 = vmatprep.subr.bf16.mxu1 %v7066_v3  ;;  %5171 = vmatpush1.bf16.msra.mxu0 %v7067_v58  ;;  %v7130_v53 = vld [vmem:[%s8143_s11 + $0x570] ss:$24 sps:$4 sm:$0xff]   ;;  %v7138_v3 = vld [vmem:[%s8143_s11 + $0x5a4] ss:$24 sps:$4 sm:$0xff]  }
 0x276   : > { %5183 = vmatprep.subr.bf16.mxu0 %v7075_v59  ;;  %v7139_v58 = vld [vmem:[%s8143_s11 + $0x518] ss:$24 sps:$4 sm:$0xff]   ;;  %v7147_v59 = vld [vmem:[%s8143_s11 + $0x54c] ss:$24 sps:$4 sm:$0xff]  }
 0x278   : > { %5059 = vmatpush1.bf16.msra.mxu1 %v7064_v61  ;;  %5173 = vmatmul.mubr.bf16.vlgmr.msra.gmra.mrb[8].mxu0 %v8652_v57  ;;  %v7136_v61 = vld [vmem:[%s8143_s11 + $0x5a0] ss:$24 sps:$4 sm:$0xff]  }
 0x279   : > { %5060 = vmatprep.subr.bf16.mxu1 %v7072_v62  ;;  %5184 = vmatpush1.bf16.msra.mxu0 %v7073_v4  ;;  %v7144_v62 = vld [vmem:[%s8143_s11 + $0x5d4] ss:$24 sps:$4 sm:$0xff]   ;;  %v7145_v4 = vld [vmem:[%s8143_s11 + $0x548] ss:$24 sps:$4 sm:$0xff]  }
 0x27a   : > { %5215 = vmatprep.mubr.bf16.mxu0 %v8666_v46  ;;  %5185 = vmatprep.subr.bf16.mxu0 %v7081_v5  ;;  %v7150_v5 = vld [vmem:[%s8143_s11 + $0x57c] ss:$24 sps:$4 sm:$0xff]  }
 0x27c   : > { %5061 = vmatpush1.bf16.msra.mxu1 %v7070_v6  ;;  %v7142_v6 = vld [vmem:[%s8143_s11 + $0x5d0] ss:$24 sps:$4 sm:$0xff]  }
 0x27d   : > { %5062 = vmatprep.subr.bf16.mxu1 %v7078_v7  ;;  %5186 = vmatpush1.bf16.msra.mxu0 %v7079_v8  ;;  %v7148_v7 = vld [vmem:[%s8143_s11 + $0x578] ss:$24 sps:$4 sm:$0xff]   ;;  %v7159_v8 = vld [vmem:[%s8143_s11 + $0x604] ss:$24 sps:$4 sm:$0xff]  }
 0x27e   : > { %5187 = vmatprep.subr.bf16.mxu0 %v7087_v9  ;;  %v7153_v9 = vld [vmem:[%s8143_s11 + $0x5ac] ss:$24 sps:$4 sm:$0xff]  }
 0x280   : > { %5063 = vmatpush1.bf16.msra.mxu1 %v7076_v19  ;;  %v7157_v19 = vld [vmem:[%s8143_s11 + $0x600] ss:$24 sps:$4 sm:$0xff]  }
 0x281   : > { %5064 = vmatprep.subr.bf16.mxu1 %v7084_v10  ;;  %5188 = vmatpush1.bf16.msra.mxu0 %v7085_v11  ;;  %v7151_v10 = vld [vmem:[%s8143_s11 + $0x5a8] ss:$24 sps:$4 sm:$0xff]   ;;  %v7165_v11 = vld [vmem:[%s8143_s11 + $0x634] ss:$24 sps:$4 sm:$0xff]  }
 0x282   : > { %5189 = vmatprep.subr.bf16.mxu0 %v7093_v12  ;;  %v7156_v12 = vld [vmem:[%s8143_s11 + $0x5dc] ss:$24 sps:$4 sm:$0xff]  }
 0x284   : > { %5065 = vmatpush1.bf16.msra.mxu1 %v7082_v13  ;;  %v7163_v13 = vld [vmem:[%s8143_s11 + $0x630] ss:$24 sps:$4 sm:$0xff]  }
 0x285   : > { %5066 = vmatprep.subr.bf16.mxu1 %v7090_v14  ;;  %5190 = vmatpush1.bf16.msra.mxu0 %v7091_v17  ;;  %v7154_v14 = vld [vmem:[%s8143_s11 + $0x5d8] ss:$24 sps:$4 sm:$0xff]   ;;  %v7171_v17 = vld [vmem:[%s8143_s11 + $0x664] ss:$24 sps:$4 sm:$0xff]  }
 0x286   : > { %5191 = vmatprep.subr.bf16.mxu0 %v7099_v18  ;;  %v7162_v18 = vld [vmem:[%s8143_s11 + $0x60c] ss:$24 sps:$4 sm:$0xff]  }
 0x288   : > { %5067 = vmatpush1.bf16.msra.mxu1 %v7088_v20  ;;  %v7169_v20 = vld [vmem:[%s8143_s11 + $0x660] ss:$24 sps:$4 sm:$0xff]  }
 0x289   : > { %5068 = vmatprep.subr.bf16.mxu1 %v7096_v21  ;;  %5192 = vmatpush1.bf16.msra.mxu0 %v7097_v22  ;;  %v7160_v21 = vld [vmem:[%s8143_s11 + $0x608] ss:$24 sps:$4 sm:$0xff]   ;;  %v7177_v22 = vld [vmem:[%s8143_s11 + $0x694] ss:$24 sps:$4 sm:$0xff]  }
 0x28a   : > { %5193 = vmatprep.subr.bf16.mxu0 %v7105_v23  ;;  %v7168_v23 = vld [vmem:[%s8143_s11 + $0x63c] ss:$24 sps:$4 sm:$0xff]  }
 0x28c   : > { %5069 = vmatpush1.bf16.msra.mxu1 %v7094_v24  ;;  %v7175_v24 = vld [vmem:[%s8143_s11 + $0x690] ss:$24 sps:$4 sm:$0xff]  }
 0x28d   : > { %5070 = vmatprep.subr.bf16.mxu1 %v7102_v25  ;;  %5194 = vmatpush1.bf16.msra.mxu0 %v7103_v27  ;;  %v7166_v25 = vld [vmem:[%s8143_s11 + $0x638] ss:$24 sps:$4 sm:$0xff]   ;;  %v7183_v27 = vld [vmem:[%s8143_s11 + $0x6c4] ss:$24 sps:$4 sm:$0xff]  }
 0x28e   : > { %5195 = vmatprep.subr.bf16.mxu0 %v7111_v28  ;;  %v7174_v28 = vld [vmem:[%s8143_s11 + $0x66c] ss:$24 sps:$4 sm:$0xff]  }
 0x290   : > { %5071 = vmatpush1.bf16.msra.mxu1 %v7100_v30  ;;  %v7181_v30 = vld [vmem:[%s8143_s11 + $0x6c0] ss:$24 sps:$4 sm:$0xff]  }
 0x291   : > { %5072 = vmatprep.subr.bf16.mxu1 %v7108_v44  ;;  %5196 = vmatpush1.bf16.msra.mxu0 %v7109_v56  ;;  %v7172_v44 = vld [vmem:[%s8143_s11 + $0x668] ss:$24 sps:$4 sm:$0xff]   ;;  %v7189_v56 = vld [vmem:[%s8143_s11 + $0x6f4] ss:$24 sps:$4 sm:$0xff]  }
 0x292   : > { %5197 = vmatprep.subr.bf16.mxu0 %v7117_v34  ;;  %v7180_v34 = vld [vmem:[%s8143_s11 + $0x69c] ss:$24 sps:$4 sm:$0xff]  }
 0x294   : > { %5073 = vmatpush1.bf16.msra.mxu1 %v7106_v35  ;;  %v7187_v35 = vld [vmem:[%s8143_s11 + $0x6f0] ss:$24 sps:$4 sm:$0xff]  }
 0x295   : > { %5074 = vmatprep.subr.bf16.mxu1 %v7114_v36  ;;  %5198 = vmatpush1.bf16.msra.mxu0 %v7115_v45  ;;  %v7178_v36 = vld [vmem:[%s8143_s11 + $0x698] ss:$24 sps:$4 sm:$0xff]   ;;  %v7195_v45 = vld [vmem:[%s8143_s11 + $0x724] ss:$24 sps:$4 sm:$0xff]  }
 0x296   : > { %5199 = vmatprep.subr.bf16.mxu0 %v7123_v49  ;;  %v7186_v49 = vld [vmem:[%s8143_s11 + $0x6cc] ss:$24 sps:$4 sm:$0xff]  }
 0x298   : > { %5075 = vmatpush1.bf16.msra.mxu1 %v7112_v37  ;;  %v7193_v37 = vld [vmem:[%s8143_s11 + $0x720] ss:$24 sps:$4 sm:$0xff]  }
 0x299   : > { %5076 = vmatprep.subr.bf16.mxu1 %v7120_v39  ;;  %5200 = vmatpush1.bf16.msra.mxu0 %v7121_v40  ;;  %v7184_v39 = vld [vmem:[%s8143_s11 + $0x6c8] ss:$24 sps:$4 sm:$0xff]   ;;  %v7201_v40 = vld [vmem:[%s8143_s11 + $0x754] ss:$24 sps:$4 sm:$0xff]  }
 0x29a   : > { %5201 = vmatprep.subr.bf16.mxu0 %v7129_v1  ;;  %v7192_v1 = vld [vmem:[%s8143_s11 + $0x6fc] ss:$24 sps:$4 sm:$0xff]  }
 0x29c   : > { %5077 = vmatpush1.bf16.msra.mxu1 %v7118_v41  ;;  %v7199_v41 = vld [vmem:[%s8143_s11 + $0x750] ss:$24 sps:$4 sm:$0xff]  }
 0x29d   : > { %5078 = vmatprep.subr.bf16.mxu1 %v7126_v43  ;;  %5202 = vmatpush1.bf16.msra.mxu0 %v7127_v48  ;;  %v7190_v43 = vld [vmem:[%s8143_s11 + $0x6f8] ss:$24 sps:$4 sm:$0xff]   ;;  %v7207_v48 = vld [vmem:[%s8143_s11 + $0x784] ss:$24 sps:$4 sm:$0xff]  }
 0x29e   : > { %5203 = vmatprep.subr.bf16.mxu0 %v7135_v38  ;;  %v7198_v38 = vld [vmem:[%s8143_s11 + $0x72c] ss:$24 sps:$4 sm:$0xff]  }
 0x2a0   : > { %5079 = vmatpush1.bf16.msra.mxu1 %v7124_v54  ;;  %v7205_v54 = vld [vmem:[%s8143_s11 + $0x780] ss:$24 sps:$4 sm:$0xff]  }
 0x2a1   : > { %5080 = vmatprep.subr.bf16.mxu1 %v7132_v50  ;;  %5204 = vmatpush1.bf16.msra.mxu0 %v7133_v2  ;;  %v7196_v50 = vld [vmem:[%s8143_s11 + $0x728] ss:$24 sps:$4 sm:$0xff]   ;;  %v7213_v2 = vld [vmem:[%s8143_s11 + $0x7b4] ss:$24 sps:$4 sm:$0xff]  }
 0x2a2   : > { %5205 = vmatprep.subr.bf16.mxu0 %v7141_v55  ;;  %v7204_v55 = vld [vmem:[%s8143_s11 + $0x75c] ss:$24 sps:$4 sm:$0xff]  }
 0x2a4   : > { %5081 = vmatpush1.bf16.msra.mxu1 %v7130_v53  ;;  %v7211_v53 = vld [vmem:[%s8143_s11 + $0x7b0] ss:$24 sps:$4 sm:$0xff]  }
 0x2a5   : > { %5082 = vmatprep.subr.bf16.mxu1 %v7138_v3  ;;  %5206 = vmatpush1.bf16.msra.mxu0 %v7139_v58  ;;  %v7202_v3 = vld [vmem:[%s8143_s11 + $0x758] ss:$24 sps:$4 sm:$0xff]   ;;  %v7219_v58 = vld [vmem:[%s8143_s11 + $0x7e4] ss:$24 sps:$4 sm:$0xff]  }
 0x2a6   : > { %5207 = vmatprep.subr.bf16.mxu0 %v7147_v59  ;;  %v7210_v59 = vld [vmem:[%s8143_s11 + $0x78c] ss:$24 sps:$4 sm:$0xff]  }
 0x2a8   : > { %5083 = vmatpush1.bf16.msra.mxu1 %v7136_v61  ;;  %v7217_v61 = vld [vmem:[%s8143_s11 + $0x7e0] ss:$24 sps:$4 sm:$0xff]  }
 0x2a9   : > { %5084 = vmatprep.subr.bf16.mxu1 %v7144_v62  ;;  %5208 = vmatpush1.bf16.msra.mxu0 %v7145_v4  ;;  %v7208_v62 = vld [vmem:[%s8143_s11 + $0x788] ss:$24 sps:$4 sm:$0xff]   ;;  %v7225_v4 = vld [vmem:[%s8143_s11 + $0x814] ss:$24 sps:$4 sm:$0xff]  }
 0x2aa   : > { %5209 = vmatprep.subr.bf16.mxu0 %v7150_v5  ;;  %v7216_v5 = vld [vmem:[%s8143_s11 + $0x7bc] ss:$24 sps:$4 sm:$0xff]  }
 0x2ac   : > { %5085 = vmatpush1.bf16.msra.mxu1 %v7142_v6  ;;  %v7223_v6 = vld [vmem:[%s8143_s11 + $0x810] ss:$24 sps:$4 sm:$0xff]  }
 0x2ad   : > { %5210 = vmatpush1.bf16.msra.mxu0 %v7148_v7  ;;  %5097 = vmatprep.subr.bf16.mxu1 %v7159_v8  ;;  %v7214_v7 = vld [vmem:[%s8143_s11 + $0x7b8] ss:$24 sps:$4 sm:$0xff]   ;;  %v7231_v8 = vld [vmem:[%s8143_s11 + $0x844] ss:$24 sps:$4 sm:$0xff]  }
 0x2ae   : > { %5211 = vmatprep.subr.bf16.mxu0 %v7153_v9  ;;  %v7222_v9 = vld [vmem:[%s8143_s11 + $0x7ec] ss:$24 sps:$4 sm:$0xff]  }
 0x2af   : > { %5087 = vmatmul.mubr.bf16.vlgmr.msra.gmra.mrb[4].mxu1 %v8656_v42 }
 0x2b0   : > { %5098 = vmatpush1.bf16.msra.mxu1 %v7157_v19  ;;  %v7229_v19 = vld [vmem:[%s8143_s11 + $0x840] ss:$24 sps:$4 sm:$0xff]  }
 0x2b1   : > { %5212 = vmatpush1.bf16.msra.mxu0 %v7151_v10  ;;  %5099 = vmatprep.subr.bf16.mxu1 %v7165_v11  ;;  %v7220_v10 = vld [vmem:[%s8143_s11 + $0x7e8] ss:$24 sps:$4 sm:$0xff]   ;;  %v7237_v11 = vld [vmem:[%s8143_s11 + $0x874] ss:$24 sps:$4 sm:$0xff]  }
 0x2b2   : > { %5213 = vmatprep.subr.bf16.mxu0 %v7156_v12  ;;  %v7228_v12 = vld [vmem:[%s8143_s11 + $0x81c] ss:$24 sps:$4 sm:$0xff]  }
 0x2b4   : > { %5100 = vmatpush1.bf16.msra.mxu1 %v7163_v13  ;;  %v7235_v13 = vld [vmem:[%s8143_s11 + $0x870] ss:$24 sps:$4 sm:$0xff]  }
 0x2b5   : > { %5214 = vmatpush1.bf16.msra.mxu0 %v7154_v14  ;;  %5101 = vmatprep.subr.bf16.mxu1 %v7171_v17  ;;  %v7226_v14 = vld [vmem:[%s8143_s11 + $0x818] ss:$24 sps:$4 sm:$0xff]   ;;  %v7243_v17 = vld [vmem:[%s8143_s11 + $0x8a4] ss:$24 sps:$4 sm:$0xff]  }
 0x2b6   : > { %5226 = vmatprep.subr.bf16.mxu0 %v7162_v18  ;;  %v7234_v18 = vld [vmem:[%s8143_s11 + $0x84c] ss:$24 sps:$4 sm:$0xff]  }
 0x2b8   : > { %5216 = vmatmul.mubr.bf16.vlgmr.msra.gmra.mrb[8].mxu0 %v8656_v42  ;;  %5102 = vmatpush1.bf16.msra.mxu1 %v7169_v20  ;;  %v7241_v20 = vld [vmem:[%s8143_s11 + $0x8a0] ss:$24 sps:$4 sm:$0xff]  }
 0x2b9   : > { %5227 = vmatpush1.bf16.msra.mxu0 %v7160_v21  ;;  %5103 = vmatprep.subr.bf16.mxu1 %v7177_v22  ;;  %v7232_v21 = vld [vmem:[%s8143_s11 + $0x848] ss:$24 sps:$4 sm:$0xff]   ;;  %v7249_v22 = vld [vmem:[%s8143_s11 + $0x8d4] ss:$24 sps:$4 sm:$0xff]  }
 0x2ba   : > { %5228 = vmatprep.subr.bf16.mxu0 %v7168_v23  ;;  %v7240_v23 = vld [vmem:[%s8143_s11 + $0x87c] ss:$24 sps:$4 sm:$0xff]  }
 0x2bc   : > { %5104 = vmatpush1.bf16.msra.mxu1 %v7175_v24  ;;  %v7247_v24 = vld [vmem:[%s8143_s11 + $0x8d0] ss:$24 sps:$4 sm:$0xff]  }
 0x2bd   : > { %5229 = vmatpush1.bf16.msra.mxu0 %v7166_v25  ;;  %5105 = vmatprep.subr.bf16.mxu1 %v7183_v27  ;;  %v7238_v25 = vld [vmem:[%s8143_s11 + $0x878] ss:$24 sps:$4 sm:$0xff]   ;;  %v7255_v27 = vld [vmem:[%s8143_s11 + $0x14] ss:$24 sps:$4 sm:$0xff]  }
 0x2be   : > { %5230 = vmatprep.subr.bf16.mxu0 %v7174_v28  ;;  %v7246_v28 = vld [vmem:[%s8143_s11 + $0x8ac] ss:$24 sps:$4 sm:$0xff]  }
 0x2c0   : > { %5106 = vmatpush1.bf16.msra.mxu1 %v7181_v30  ;;  %v7244_v30 = vld [vmem:[%s8143_s11 + $0x8a8] ss:$24 sps:$4 sm:$0xff]  }
 0x2c1   : > { %5231 = vmatpush1.bf16.msra.mxu0 %v7172_v44  ;;  %5107 = vmatprep.subr.bf16.mxu1 %v7189_v56  ;;  %v7252_v44 = vld [vmem:[%s8143_s11 + $0x8dc] ss:$24 sps:$4 sm:$0xff]   ;;  %v7250_v56 = vld [vmem:[%s8143_s11 + $0x8d8] ss:$24 sps:$4 sm:$0xff]  }
 0x2c2   : > { %5232 = vmatprep.subr.bf16.mxu0 %v7180_v34  ;;  %v8803_v34 = vsub.s32 4, %v8548_v26 }
 0x2c4   : > { %5108 = vmatpush1.bf16.msra.mxu1 %v7187_v35  ;;  %v8806_v35 = vsub.s32 5, %v8548_v26 }
 0x2c5   : > { %5233 = vmatpush1.bf16.msra.mxu0 %v7178_v36  ;;  %5109 = vmatprep.subr.bf16.mxu1 %v7195_v45  ;;  %v1289_v36 = vrot.slane %v8564_v31, %v8803_v34 }
 0x2c6   : > { %5234 = vmatprep.subr.bf16.mxu0 %v7186_v49  ;;  %v1293_v45 = vrot.slane %v8564_v31, %v8806_v35 }
 0x2c8   : > { %5110 = vmatpush1.bf16.msra.mxu1 %v7193_v37 }
 0x2c9   : > { %5235 = vmatpush1.bf16.msra.mxu0 %v7184_v39  ;;  %5111 = vmatprep.subr.bf16.mxu1 %v7201_v40 }
 0x2ca   : > { %5236 = vmatprep.subr.bf16.mxu0 %v7192_v1 }
 0x2cc   : > { %5112 = vmatpush1.bf16.msra.mxu1 %v7199_v41 }
 0x2cd   : > { %5237 = vmatpush1.bf16.msra.mxu0 %v7190_v43  ;;  %5113 = vmatprep.subr.bf16.mxu1 %v7207_v48 }
 0x2ce   : > { %5238 = vmatprep.subr.bf16.mxu0 %v7198_v38 }
 0x2d0   : > { %5114 = vmatpush1.bf16.msra.mxu1 %v7205_v54 }
 0x2d1   : > { %5239 = vmatpush1.bf16.msra.mxu0 %v7196_v50  ;;  %5115 = vmatprep.subr.bf16.mxu1 %v7213_v2 }
 0x2d2   : > { %5240 = vmatprep.subr.bf16.mxu0 %v7204_v55 }
 0x2d4   : > { %5116 = vmatpush1.bf16.msra.mxu1 %v7211_v53 }
 0x2d5   : > { %5241 = vmatpush1.bf16.msra.mxu0 %v7202_v3  ;;  %5117 = vmatprep.subr.bf16.mxu1 %v7219_v58 }
 0x2d6   : > { %5242 = vmatprep.subr.bf16.mxu0 %v7210_v59 }
 0x2d8   : > { %5118 = vmatpush1.bf16.msra.mxu1 %v7217_v61 }
 0x2d9   : > { %5243 = vmatpush1.bf16.msra.mxu0 %v7208_v62  ;;  %5119 = vmatprep.subr.bf16.mxu1 %v7225_v4 }
 0x2da   : > { %5244 = vmatprep.subr.bf16.mxu0 %v7216_v5 }
 0x2dc   : > { %5120 = vmatpush1.bf16.msra.mxu1 %v7223_v6 }
 0x2dd   : > { %5245 = vmatpush1.bf16.msra.mxu0 %v7214_v7  ;;  %5121 = vmatprep.subr.bf16.mxu1 %v7231_v8 }
 0x2de   : > { %5246 = vmatprep.subr.bf16.mxu0 %v7222_v9 }
 0x2e0   : > { %5122 = vmatpush1.bf16.msra.mxu1 %v7229_v19 }
 0x2e1   : > { %5247 = vmatpush1.bf16.msra.mxu0 %v7220_v10  ;;  %5123 = vmatprep.subr.bf16.mxu1 %v7237_v11 }
 0x2e2   : > { %5248 = vmatprep.subr.bf16.mxu0 %v7228_v12 }
 0x2e4   : > { %5124 = vmatpush1.bf16.msra.mxu1 %v7235_v13 }
 0x2e5   : > { %5249 = vmatpush1.bf16.msra.mxu0 %v7226_v14  ;;  %5125 = vmatprep.subr.bf16.mxu1 %v7243_v17 }
 0x2e6   : > { %5250 = vmatprep.subr.bf16.mxu0 %v7234_v18 }
 0x2e8   : > { %5126 = vmatpush1.bf16.msra.mxu1 %v7241_v20 }
 0x2e9   : > { %5251 = vmatpush1.bf16.msra.mxu0 %v7232_v21  ;;  %5127 = vmatprep.subr.bf16.mxu1 %v7249_v22 }
 0x2ea   : > { %5252 = vmatprep.subr.bf16.mxu0 %v7240_v23 }
 0x2ec   : > { %5128 = vmatpush1.bf16.msra.mxu1 %v7247_v24 }
 0x2ed   : > { %5253 = vmatpush1.bf16.msra.mxu0 %v7238_v25  ;;  %5269 = vmatprep.subr.bf16.mxu1 %v7255_v27 }
 0x2ee   : > { %5254 = vmatprep.subr.bf16.mxu0 %v7246_v28 }
 0x2f1   : > { %5255 = vmatpush1.bf16.msra.mxu0 %v7244_v30 }
 0x2f2   : > { %5256 = vmatprep.subr.bf16.mxu0 %v7252_v44 }
 0x2f5   : > { %5257 = vmatpush1.bf16.msra.mxu0 %v7250_v56 }
 0x30b   : > { %v3148_v49 = vpop.f32.mrb[4].mxu0 }
 0x30c   : > { %v6431_v37 = vadd.f32 %v3148_v49, %v1289_v36  ;;  %v3150_v39 = vpop.f32.mrb[5].mxu0  ;;  %v7256_v49 = vld [vmem:[%s8143_s11 + $0x40] ss:$24 sps:$4 sm:$0xff]  }
 0x30d   : > { %v6432_v40 = vadd.f32 %v3150_v39, %v1293_v45  ;;  %v3152_v1 = vpop.f32.mrb[6].mxu0  ;;  %v7259_v39 = vld [vmem:[%s8143_s11 + $0x70] ss:$24 sps:$4 sm:$0xff]  }
 0x30e   : > { %v3173_v41 = vmul.f32 0.044715, %v6431_v37  ;;  %v6433_v43 = vadd.f32 %v3152_v1, %v1289_v36  ;;  %v3154_v48 = vpop.f32.mrb[7].mxu0  ;;  %v3161_v18 = vmul.f32 0.5, %v6431_v37  ;;  %v7253_v36 = vld [vmem:[%s8143_s11 + $0x10] ss:$24 sps:$4 sm:$0xff]  }
 0x30f   : > { %v3174_v38 = vmul.f32 0.044715, %v6432_v40  ;;  %v6434_v54 = vadd.f32 %v3154_v48, %v1293_v45  ;;  %v3162_v22 = vmul.f32 0.5, %v6432_v40  ;;  %v7258_v45 = vld [vmem:[%s8143_s11 + $0x44] ss:$24 sps:$4 sm:$0xff]  }
 0x310   : > { %v3185_v50 = vmul.f32 %v6431_v37, %v3173_v41  ;;  %v3179_v2 = vmul.f32 0.044715, %v6433_v43  ;;  %v3167_v20 = vmul.f32 0.5, %v6433_v43  ;;  %v7262_v1 = vld [vmem:[%s8143_s11 + $0xa0] ss:$24 sps:$4 sm:$0xff]  }
 0x311   : > { %v3186_v26 = vmul.f32 %v6432_v40, %v3174_v38  ;;  %v3180_v55 = vmul.f32 0.044715, %v6434_v54  ;;  %v3168_v23 = vmul.f32 0.5, %v6434_v54  ;;  %v7267_v41 = vld [vmem:[%s8143_s11 + $0xd4] ss:$24 sps:$4 sm:$0xff]  }
 0x312   : > { %v3197_v53 = vmul.f32 %v6431_v37, %v3185_v50  ;;  %v3191_v3 = vmul.f32 %v6433_v43, %v3179_v2  ;;  %v7268_v48 = vld [vmem:[%s8143_s11 + $0x100] ss:$24 sps:$4 sm:$0xff]   ;;  %v7273_v38 = vld [vmem:[%s8143_s11 + $0x134] ss:$24 sps:$4 sm:$0xff]   ;;  %v7276_v50 = vld [vmem:[%s8143_s11 + $0x164] ss:$24 sps:$4 sm:$0xff]  }
 0x313   : > { %v3198_v58 = vmul.f32 %v6432_v40, %v3186_v26  ;;  %v3192_v59 = vmul.f32 %v6434_v54, %v3180_v55  ;;  %v7274_v2 = vld [vmem:[%s8143_s11 + $0x160] ss:$24 sps:$4 sm:$0xff]   ;;  %v7279_v26 = vld [vmem:[%s8143_s11 + $0x194] ss:$24 sps:$4 sm:$0xff]   ;;  %v7277_v55 = vld [vmem:[%s8143_s11 + $0x190] ss:$24 sps:$4 sm:$0xff]  }
 0x314   : > { %v3209_v61 = vadd.f32 %v6431_v37, %v3197_v53  ;;  %v3203_v31 = vmul.f32 %v6433_v43, %v3191_v3  ;;  %v7261_v37 = vld [vmem:[%s8143_s11 + $0x74] ss:$24 sps:$4 sm:$0xff]   ;;  %v7282_v53 = vld [vmem:[%s8143_s11 + $0x1c4] ss:$24 sps:$4 sm:$0xff]   ;;  %v7280_v3 = vld [vmem:[%s8143_s11 + $0x1c0] ss:$24 sps:$4 sm:$0xff]  }
 0x315   : > { %v3204_v62 = vmul.f32 %v6434_v54, %v3192_v59  ;;  %v3210_v4 = vadd.f32 %v6432_v40, %v3198_v58  ;;  %v7264_v40 = vld [vmem:[%s8143_s11 + $0xa4] ss:$24 sps:$4 sm:$0xff]   ;;  %v7285_v58 = vld [vmem:[%s8143_s11 + $0x1f4] ss:$24 sps:$4 sm:$0xff]   ;;  %v7283_v59 = vld [vmem:[%s8143_s11 + $0x1f0] ss:$24 sps:$4 sm:$0xff]  }
 0x316   : > { %v3221_v5 = vmul.f32 0.7978846, %v3209_v61  ;;  %v3215_v6 = vadd.f32 %v6433_v43, %v3203_v31  ;;  %v7265_v43 = vld [vmem:[%s8143_s11 + $0xd0] ss:$24 sps:$4 sm:$0xff]   ;;  %v7288_v61 = vld [vmem:[%s8143_s11 + $0x224] ss:$24 sps:$4 sm:$0xff]  }
 0x317   : > { %v3216_v7 = vadd.f32 %v6434_v54, %v3204_v62  ;;  %v3222_v8 = vmul.f32 0.7978846, %v3210_v4  ;;  %v7271_v54 = vld [vmem:[%s8143_s11 + $0x130] ss:$24 sps:$4 sm:$0xff]   ;;  %v7286_v31 = vld [vmem:[%s8143_s11 + $0x220] ss:$24 sps:$4 sm:$0xff]  }
 0x318   : > { %7413 = vtanh.f32 %v3221_v5  ;;  %v3227_v9 = vmul.f32 0.7978846, %v3215_v6  ;;  %v7291_v62 = vld [vmem:[%s8143_s11 + $0x254] ss:$24 sps:$4 sm:$0xff]   ;;  %v7289_v4 = vld [vmem:[%s8143_s11 + $0x250] ss:$24 sps:$4 sm:$0xff]  }
 0x319   : > { %v3228_v19 = vmul.f32 0.7978846, %v3216_v7  ;;  %7415 = vtanh.f32 %v3222_v8  ;;  %v7294_v5 = vld [vmem:[%s8143_s11 + $0x284] ss:$24 sps:$4 sm:$0xff]   ;;  %v7292_v6 = vld [vmem:[%s8143_s11 + $0x280] ss:$24 sps:$4 sm:$0xff]  }
 0x31a   : > { %7417 = vtanh.f32 %v3227_v9  ;;  %v7297_v7 = vld [vmem:[%s8143_s11 + $0x2b4] ss:$24 sps:$4 sm:$0xff]   ;;  %v7295_v8 = vld [vmem:[%s8143_s11 + $0x2b0] ss:$24 sps:$4 sm:$0xff]   ;;  %v7300_v9 = vld [vmem:[%s8143_s11 + $0x2e4] ss:$24 sps:$4 sm:$0xff]  }
 0x31b   : > { %7419 = vtanh.f32 %v3228_v19  ;;  %v7298_v19 = vld [vmem:[%s8143_s11 + $0x2e0] ss:$24 sps:$4 sm:$0xff]  }
 0x322   : > { %v7414_v10 = vpop.eup %7413 }
 0x323   : > { %v7416_v11 = vpop.eup %7415  ;;  %v3245_v12 = vadd.f32 1.0, %v7414_v10  ;;  %v7303_v10 = vld [vmem:[%s8143_s11 + $0x314] ss:$24 sps:$4 sm:$0xff]  }
 0x324   : > { %v7418_v13 = vpop.eup %7417  ;;  %v3246_v14 = vadd.f32 1.0, %v7416_v11  ;;  %v7301_v11 = vld [vmem:[%s8143_s11 + $0x310] ss:$24 sps:$4 sm:$0xff]  }
 0x325   : > { %v7420_v17 = vpop.eup %7419  ;;  %v3251_v21 = vadd.f32 1.0, %v7418_v13  ;;  %v3257_v25 = vmul.f32 %v3245_v12, %v3161_v18  ;;  %v7306_v12 = vld [vmem:[%s8143_s11 + $0x344] ss:$24 sps:$4 sm:$0xff]   ;;  %v7304_v13 = vld [vmem:[%s8143_s11 + $0x340] ss:$24 sps:$4 sm:$0xff]  }
 0x326   : > { %v3252_v24 = vadd.f32 1.0, %v7420_v17  ;;  %v3258_v28 = vmul.f32 %v3246_v14, %v3162_v22  ;;  %v7309_v14 = vld [vmem:[%s8143_s11 + $0x374] ss:$24 sps:$4 sm:$0xff]   ;;  %v7307_v17 = vld [vmem:[%s8143_s11 + $0x370] ss:$24 sps:$4 sm:$0xff]  }
 0x327   : > { %v3263_v27 = vmul.f32 %v3251_v21, %v3167_v20  ;;  %v7312_v18 = vld [vmem:[%s8143_s11 + $0x3a4] ss:$24 sps:$4 sm:$0xff]   ;;  %v7310_v20 = vld [vmem:[%s8143_s11 + $0x3a0] ss:$24 sps:$4 sm:$0xff]   ;;  %v7313_v21 = vld [vmem:[%s8143_s11 + $0x3d0] ss:$24 sps:$4 sm:$0xff]  }
 0x328   : > { %v3264_v30 = vmul.f32 %v3252_v24, %v3168_v23  ;;  %v7316_v22 = vld [vmem:[%s8143_s11 + $0x400] ss:$24 sps:$4 sm:$0xff]   ;;  %v7321_v23 = vld [vmem:[%s8143_s11 + $0x434] ss:$24 sps:$4 sm:$0xff]   ;;  %v7319_v24 = vld [vmem:[%s8143_s11 + $0x430] ss:$24 sps:$4 sm:$0xff]  }
 0x329   : > { %v8812_v44 = vpack.c.bf16 %v3263_v27, %v3257_v25  ;;  %v7324_v25 = vld [vmem:[%s8143_s11 + $0x464] ss:$24 sps:$4 sm:$0xff]   ;;  %v7322_v27 = vld [vmem:[%s8143_s11 + $0x460] ss:$24 sps:$4 sm:$0xff]  }
 0x32a   : > { %v8814_v56 = vpack.c.bf16 %v3264_v30, %v3258_v28  ;;  %v7327_v28 = vld [vmem:[%s8143_s11 + $0x494] ss:$24 sps:$4 sm:$0xff]   ;;  %v7325_v30 = vld [vmem:[%s8143_s11 + $0x490] ss:$24 sps:$4 sm:$0xff]  }
 0x32c   : > { %5129 = vmatprep.mubr.bf16.mxu1 %v8814_v56  ;;  %5258 = vmatprep.mubr.bf16.mxu0 %v8814_v56 }
 0x32d   : > { %5130 = vmatmul.mubr.bf16.vlgmr.msra.gmra.mrb[4].mxu1 %v8812_v44  ;;  %5259 = vmatmul.mubr.bf16.vlgmr.msra.gmra.mrb[8].mxu0 %v8812_v44 }
 0x32e   : > { %5270 = vmatpush1.bf16.msra.mxu1 %v7253_v36  ;;  %5301 = vmatprep.mubr.bf16.mxu1 %v8659_v47  ;;  %v7270_v47 = vld [vmem:[%s8143_s11 + $0x104] ss:$24 sps:$4 sm:$0xff]  }
 0x32f   : > { %5271 = vmatprep.subr.bf16.mxu1 %v7258_v45  ;;  %v7330_v36 = vld [vmem:[%s8143_s11 + $0x4c4] ss:$24 sps:$4 sm:$0xff]   ;;  %v7328_v45 = vld [vmem:[%s8143_s11 + $0x4c0] ss:$24 sps:$4 sm:$0xff]  }
 0x332   : > { %5272 = vmatpush1.bf16.msra.mxu1 %v7256_v49  ;;  %v7333_v49 = vld [vmem:[%s8143_s11 + $0x4f4] ss:$24 sps:$4 sm:$0xff]  }
 0x333   : > { %5273 = vmatprep.subr.bf16.mxu1 %v7261_v37  ;;  %v7331_v37 = vld [vmem:[%s8143_s11 + $0x4f0] ss:$24 sps:$4 sm:$0xff]  }
 0x336   : > { %5274 = vmatpush1.bf16.msra.mxu1 %v7259_v39  ;;  %v7336_v39 = vld [vmem:[%s8143_s11 + $0x524] ss:$24 sps:$4 sm:$0xff]  }
 0x337   : > { %5275 = vmatprep.subr.bf16.mxu1 %v7264_v40  ;;  %v7334_v40 = vld [vmem:[%s8143_s11 + $0x520] ss:$24 sps:$4 sm:$0xff]  }
 0x33a   : > { %5276 = vmatpush1.bf16.msra.mxu1 %v7262_v1  ;;  %v7339_v1 = vld [vmem:[%s8143_s11 + $0x554] ss:$24 sps:$4 sm:$0xff]  }
 0x33b   : > { %5277 = vmatprep.subr.bf16.mxu1 %v7267_v41  ;;  %v7337_v41 = vld [vmem:[%s8143_s11 + $0x550] ss:$24 sps:$4 sm:$0xff]  }
 0x33e   : > { %5278 = vmatpush1.bf16.msra.mxu1 %v7265_v43  ;;  %v7342_v43 = vld [vmem:[%s8143_s11 + $0x584] ss:$24 sps:$4 sm:$0xff]  }
 0x33f   : > { %5279 = vmatprep.subr.bf16.mxu1 %v7270_v47  ;;  %v7340_v47 = vld [vmem:[%s8143_s11 + $0x580] ss:$24 sps:$4 sm:$0xff]  }
 0x342   : > { %5280 = vmatpush1.bf16.msra.mxu1 %v7268_v48  ;;  %v7345_v48 = vld [vmem:[%s8143_s11 + $0x5b4] ss:$24 sps:$4 sm:$0xff]  }
 0x343   : > { %5281 = vmatprep.subr.bf16.mxu1 %v7273_v38  ;;  %v7343_v38 = vld [vmem:[%s8143_s11 + $0x5b0] ss:$24 sps:$4 sm:$0xff]  }
 0x346   : > { %5282 = vmatpush1.bf16.msra.mxu1 %v7271_v54  ;;  %v7348_v54 = vld [vmem:[%s8143_s11 + $0x5e4] ss:$24 sps:$4 sm:$0xff]  }
 0x347   : > { %5283 = vmatprep.subr.bf16.mxu1 %v7276_v50  ;;  %v7346_v50 = vld [vmem:[%s8143_s11 + $0x5e0] ss:$24 sps:$4 sm:$0xff]  }
 0x34a   : > { %5284 = vmatpush1.bf16.msra.mxu1 %v7274_v2  ;;  %v7351_v2 = vld [vmem:[%s8143_s11 + $0x614] ss:$24 sps:$4 sm:$0xff]  }
 0x34b   : > { %5285 = vmatprep.subr.bf16.mxu1 %v7279_v26  ;;  %v7349_v26 = vld [vmem:[%s8143_s11 + $0x610] ss:$24 sps:$4 sm:$0xff]  }
 0x34e   : > { %5286 = vmatpush1.bf16.msra.mxu1 %v7277_v55  ;;  %v7354_v55 = vld [vmem:[%s8143_s11 + $0x644] ss:$24 sps:$4 sm:$0xff]  }
 0x34f   : > { %5287 = vmatprep.subr.bf16.mxu1 %v7282_v53  ;;  %v7352_v53 = vld [vmem:[%s8143_s11 + $0x640] ss:$24 sps:$4 sm:$0xff]  }
 0x352   : > { %5288 = vmatpush1.bf16.msra.mxu1 %v7280_v3  ;;  %v7357_v3 = vld [vmem:[%s8143_s11 + $0x674] ss:$24 sps:$4 sm:$0xff]  }
 0x353   : > { %5289 = vmatprep.subr.bf16.mxu1 %v7285_v58  ;;  %v7355_v58 = vld [vmem:[%s8143_s11 + $0x670] ss:$24 sps:$4 sm:$0xff]  }
 0x356   : > { %5290 = vmatpush1.bf16.msra.mxu1 %v7283_v59  ;;  %v7360_v59 = vld [vmem:[%s8143_s11 + $0x6a4] ss:$24 sps:$4 sm:$0xff]  }
 0x357   : > { %5291 = vmatprep.subr.bf16.mxu1 %v7288_v61  ;;  %v7358_v61 = vld [vmem:[%s8143_s11 + $0x6a0] ss:$24 sps:$4 sm:$0xff]  }
 0x35a   : > { %5292 = vmatpush1.bf16.msra.mxu1 %v7286_v31  ;;  %v7361_v31 = vld [vmem:[%s8143_s11 + $0x6d0] ss:$24 sps:$4 sm:$0xff]  }
 0x35b   : > { %5293 = vmatprep.subr.bf16.mxu1 %v7291_v62  ;;  %v7364_v62 = vld [vmem:[%s8143_s11 + $0x700] ss:$24 sps:$4 sm:$0xff]  }
 0x35e   : > { %5294 = vmatpush1.bf16.msra.mxu1 %v7289_v4  ;;  %v7369_v4 = vld [vmem:[%s8143_s11 + $0x734] ss:$24 sps:$4 sm:$0xff]  }
 0x35f   : > { %5295 = vmatprep.subr.bf16.mxu1 %v7294_v5  ;;  %v7367_v5 = vld [vmem:[%s8143_s11 + $0x730] ss:$24 sps:$4 sm:$0xff]  }
 0x362   : > { %5296 = vmatpush1.bf16.msra.mxu1 %v7292_v6  ;;  %v7372_v6 = vld [vmem:[%s8143_s11 + $0x764] ss:$24 sps:$4 sm:$0xff]  }
 0x363   : > { %5297 = vmatprep.subr.bf16.mxu1 %v7297_v7  ;;  %v7370_v7 = vld [vmem:[%s8143_s11 + $0x760] ss:$24 sps:$4 sm:$0xff]  }
 0x366   : > { %5298 = vmatpush1.bf16.msra.mxu1 %v7295_v8  ;;  %v7375_v8 = vld [vmem:[%s8143_s11 + $0x794] ss:$24 sps:$4 sm:$0xff]  }
 0x367   : > { %5299 = vmatprep.subr.bf16.mxu1 %v7300_v9  ;;  %v7373_v9 = vld [vmem:[%s8143_s11 + $0x790] ss:$24 sps:$4 sm:$0xff]  }
 0x36a   : > { %5300 = vmatpush1.bf16.msra.mxu1 %v7298_v19  ;;  %v7378_v19 = vld [vmem:[%s8143_s11 + $0x7c4] ss:$24 sps:$4 sm:$0xff]  }
 0x36b   : > { %5312 = vmatprep.subr.bf16.mxu1 %v7303_v10  ;;  %v7376_v10 = vld [vmem:[%s8143_s11 + $0x7c0] ss:$24 sps:$4 sm:$0xff]  }
 0x36d   : > { %5302 = vmatmul.mubr.bf16.vlgmr.msra.gmra.mrb[8].mxu1 %v8652_v57  ;;  %v7315_v57 = vld [vmem:[%s8143_s11 + $0x3d4] ss:$24 sps:$4 sm:$0xff]  }
 0x36e   : > { %5313 = vmatpush1.bf16.msra.mxu1 %v7301_v11  ;;  %5344 = vmatprep.mubr.bf16.mxu1 %v8666_v46  ;;  %v7318_v46 = vld [vmem:[%s8143_s11 + $0x404] ss:$24 sps:$4 sm:$0xff]   ;;  %v7381_v11 = vld [vmem:[%s8143_s11 + $0x7f4] ss:$24 sps:$4 sm:$0xff]  }
 0x36f   : > { %5314 = vmatprep.subr.bf16.mxu1 %v7306_v12  ;;  %v7379_v12 = vld [vmem:[%s8143_s11 + $0x7f0] ss:$24 sps:$4 sm:$0xff]  }
 0x372   : > { %5315 = vmatpush1.bf16.msra.mxu1 %v7304_v13  ;;  %v7384_v13 = vld [vmem:[%s8143_s11 + $0x824] ss:$24 sps:$4 sm:$0xff]  }
 0x373   : > { %5316 = vmatprep.subr.bf16.mxu1 %v7309_v14  ;;  %v7382_v14 = vld [vmem:[%s8143_s11 + $0x820] ss:$24 sps:$4 sm:$0xff]  }
 0x376   : > { %5317 = vmatpush1.bf16.msra.mxu1 %v7307_v17  ;;  %v7387_v17 = vld [vmem:[%s8143_s11 + $0x854] ss:$24 sps:$4 sm:$0xff]  }
 0x377   : > { %5318 = vmatprep.subr.bf16.mxu1 %v7312_v18  ;;  %v7385_v18 = vld [vmem:[%s8143_s11 + $0x850] ss:$24 sps:$4 sm:$0xff]  }
 0x37a   : > { %5319 = vmatpush1.bf16.msra.mxu1 %v7310_v20  ;;  %v7390_v20 = vld [vmem:[%s8143_s11 + $0x884] ss:$24 sps:$4 sm:$0xff]  }
 0x37b   : > { %5320 = vmatprep.subr.bf16.mxu1 %v7315_v57  ;;  %v7388_v57 = vld [vmem:[%s8143_s11 + $0x880] ss:$24 sps:$4 sm:$0xff]  }
 0x37e   : > { %5321 = vmatpush1.bf16.msra.mxu1 %v7313_v21  ;;  %v7393_v21 = vld [vmem:[%s8143_s11 + $0x8b4] ss:$24 sps:$4 sm:$0xff]  }
 0x37f   : > { %5322 = vmatprep.subr.bf16.mxu1 %v7318_v46  ;;  %v7391_v46 = vld [vmem:[%s8143_s11 + $0x8b0] ss:$24 sps:$4 sm:$0xff]  }
 0x382   : > { %5323 = vmatpush1.bf16.msra.mxu1 %v7316_v22  ;;  %v7396_v22 = vld [vmem:[%s8143_s11 + $0x8e4] ss:$24 sps:$4 sm:$0xff]  }
 0x383   : > { %5324 = vmatprep.subr.bf16.mxu1 %v7321_v23  ;;  %v7394_v23 = vld [vmem:[%s8143_s11 + $0x8e0] ss:$24 sps:$4 sm:$0xff]  }
 0x386   : > { %5325 = vmatpush1.bf16.msra.mxu1 %v7319_v24  ;;  %v3265_v24 = vld [vmem:[#allocation2] sm:$0xff] }
 0x387   : > { %5326 = vmatprep.subr.bf16.mxu1 %v7324_v25  ;;  %v3267_v25 = vld [vmem:[#allocation2 + $0x10] sm:$0xff] }
 0x38a   : > { %5327 = vmatpush1.bf16.msra.mxu1 %v7322_v27  ;;  %v3266_v27 = vld [vmem:[#allocation2 + $0x8] sm:$0xff] }
 0x38b   : > { %5328 = vmatprep.subr.bf16.mxu1 %v7327_v28  ;;  %v3268_v28 = vld [vmem:[#allocation2 + $0x18] sm:$0xff] }
 0x38e   : > { %5329 = vmatpush1.bf16.msra.mxu1 %v7325_v30 }
 0x38f   : > { %5330 = vmatprep.subr.bf16.mxu1 %v7330_v36 }
 0x392   : > { %5331 = vmatpush1.bf16.msra.mxu1 %v7328_v45  ;;  %v3271_v45 = vld [vmem:[#allocation2 + $0x30] sm:$0xff] }
 0x393   : > { %5332 = vmatprep.subr.bf16.mxu1 %v7333_v49  ;;  %v3273_v49 = vld [vmem:[#allocation2 + $0x40] sm:$0xff] }
 0x396   : > { %5333 = vmatpush1.bf16.msra.mxu1 %v7331_v37 }
 0x397   : > { %5334 = vmatprep.subr.bf16.mxu1 %v7336_v39 }
 0x39a   : > { %5335 = vmatpush1.bf16.msra.mxu1 %v7334_v40 }
 0x39b   : > { %5336 = vmatprep.subr.bf16.mxu1 %v7339_v1 }
 0x39e   : > { %5337 = vmatpush1.bf16.msra.mxu1 %v7337_v41  ;;  %v3272_v41 = vld [vmem:[#allocation2 + $0x38] sm:$0xff] }
 0x39f   : > { %5338 = vmatprep.subr.bf16.mxu1 %v7342_v43  ;;  %v3274_v43 = vld [vmem:[#allocation2 + $0x48] sm:$0xff] }
 0x3a2   : > { %5339 = vmatpush1.bf16.msra.mxu1 %v7340_v47 }
 0x3a3   : > { %5340 = vmatprep.subr.bf16.mxu1 %v7345_v48 }
 0x3a6   : > { %5341 = vmatpush1.bf16.msra.mxu1 %v7343_v38 }
 0x3a7   : > { %5342 = vmatprep.subr.bf16.mxu1 %v7348_v54 }
 0x3aa   : > { %5343 = vmatpush1.bf16.msra.mxu1 %v7346_v50 }
 0x3ab   : > { %5355 = vmatprep.subr.bf16.mxu1 %v7351_v2 }
 0x3ad   : > { %5345 = vmatmul.mubr.bf16.vlgmr.msra.gmra.mrb[8].mxu1 %v8656_v42  ;;  %v7363_v42 = vld [vmem:[%s8143_s11 + $0x6d4] ss:$24 sps:$4 sm:$0xff]  }
 0x3ae   : > { %5356 = vmatpush1.bf16.msra.mxu1 %v7349_v26  ;;  %5387 = vmatprep.mubr.bf16.mxu1 %v8814_v56  ;;  %v7366_v56 = vld [vmem:[%s8143_s11 + $0x704] ss:$24 sps:$4 sm:$0xff]  }
 0x3af   : > { %5357 = vmatprep.subr.bf16.mxu1 %v7354_v55 }
 0x3b2   : > { %5358 = vmatpush1.bf16.msra.mxu1 %v7352_v53 }
 0x3b3   : > { %5359 = vmatprep.subr.bf16.mxu1 %v7357_v3  ;;  %v3269_v3 = vld [vmem:[#allocation2 + $0x20] sm:$0xff] }
 0x3b6   : > { %5360 = vmatpush1.bf16.msra.mxu1 %v7355_v58  ;;  %v3270_v58 = vld [vmem:[#allocation2 + $0x28] sm:$0xff] }
 0x3b7   : > { %5361 = vmatprep.subr.bf16.mxu1 %v7360_v59 }
 0x3ba   : > { %5362 = vmatpush1.bf16.msra.mxu1 %v7358_v61  ;;  %v3275_v61 = vld [vmem:[#allocation2 + $0x50] sm:$0xff] }
 0x3bb   : > { %5363 = vmatprep.subr.bf16.mxu1 %v7363_v42 }
 0x3be   : > { %5364 = vmatpush1.bf16.msra.mxu1 %v7361_v31 }
 0x3bf   : > { %5365 = vmatprep.subr.bf16.mxu1 %v7366_v56  ;;  %v3276_v56 = vld [vmem:[#allocation2 + $0x58] sm:$0xff] }
 0x3c2   : > { %5366 = vmatpush1.bf16.msra.mxu1 %v7364_v62 }
 0x3c3   : > { %5367 = vmatprep.subr.bf16.mxu1 %v7369_v4 }
 0x3c6   : > { %5368 = vmatpush1.bf16.msra.mxu1 %v7367_v5 }
 0x3c7   : > { %5369 = vmatprep.subr.bf16.mxu1 %v7372_v6 }
 0x3ca   : > { %5370 = vmatpush1.bf16.msra.mxu1 %v7370_v7 }
 0x3cb   : > { %5371 = vmatprep.subr.bf16.mxu1 %v7375_v8 }
 0x3ce   : > { %5372 = vmatpush1.bf16.msra.mxu1 %v7373_v9 }
 0x3cf   : > { %5373 = vmatprep.subr.bf16.mxu1 %v7378_v19 }
 0x3d2   : > { %5374 = vmatpush1.bf16.msra.mxu1 %v7376_v10 }
 0x3d3   : > { %5375 = vmatprep.subr.bf16.mxu1 %v7381_v11  ;;  %v5438_v11 = vld [vmem:[%s9023_s4] sm:$0x3f] (!%p6405_p12) }
 0x3d6   : > { %5376 = vmatpush1.bf16.msra.mxu1 %v7379_v12  ;;  %v5482_v12 = vunpack.c.l.bf16 (!%p6405_p12), %v8197_v15 }
 0x3d7   : > { %5377 = vmatprep.subr.bf16.mxu1 %v7384_v13  ;;  %v5483_v13 = vunpack.c.h.bf16 (!%p6405_p12), %v8197_v15  ;;  %v5486_v15 = vunpack.c.l.bf16 (!%p6405_p12), %v8327_v51 }
 0x3da   : > { %5378 = vmatpush1.bf16.msra.mxu1 %v7382_v14  ;;  %v5484_v14 = vunpack.c.l.bf16 (!%p6405_p12), %v8263_v63 }
 0x3db   : > { %5379 = vmatprep.subr.bf16.mxu1 %v7387_v17  ;;  %v5485_v17 = vunpack.c.h.bf16 (!%p6405_p12), %v8263_v63 }
 0x3de   : > { %5380 = vmatpush1.bf16.msra.mxu1 %v7385_v18  ;;  %v5443_v18 = vrot.slane (!%p6405_p12), %v5438_v11, %v8553_v60 }
 0x3df   : > { %5381 = vmatprep.subr.bf16.mxu1 %v7390_v20  ;;  %v5447_v20 = vrot.slane (!%p6405_p12), %v5438_v11, %v8567_v32 }
 0x3e2   : > { %5382 = vmatpush1.bf16.msra.mxu1 %v7388_v57  ;;  %v5451_v57 = vrot.slane (!%p6405_p12), %v5438_v11, %v8556_v29 }
 0x3e3   : > { %5383 = vmatprep.subr.bf16.mxu1 %v7393_v21  ;;  %v5455_v21 = vrot.slane (!%p6405_p12), %v5438_v11, %v8570_v33 }
 0x3e6   : > { %5384 = vmatpush1.bf16.msra.mxu1 %v7391_v46 }
 0x3e7   : > { %5385 = vmatprep.subr.bf16.mxu1 %v7396_v22 }
 0x3ea   : > { %5386 = vmatpush1.bf16.msra.mxu1 %v7394_v23 }
 0x3ed   : > { %5388 = vmatmul.mubr.bf16.vlgmr.msra.gmra.mrb[8].mxu1 %v8812_v44 }
 0x400   : > { %v5131_v30 = vpop.f32.mrb[4].mxu1  ;;  %v5260_v36 = vpop.f32.mrb[8].mxu0 }
 0x401   : > { %v5398_v37 = vadd.f32 %v5131_v30, %v3265_v24  ;;  %v5400_v39 = vadd.f32 %v5260_v36, %v3267_v25  ;;  %v5133_v40 = vpop.f32.mrb[5].mxu1  ;;  %v5262_v1 = vpop.f32.mrb[9].mxu0  ;;  %v5459_v24 = vrot.slane (!%p6405_p12), %v5438_v11, %v8803_v34  ;;  %v5463_v25 = vrot.slane (!%p6405_p12), %v5438_v11, %v8806_v35 }
 0x402   : > { %v5399_v47 = vadd.f32 %v5133_v40, %v3266_v27  ;;  %v5401_v48 = vadd.f32 %v5262_v1, %v3268_v28  ;;  %v5135_v38 = vpop.f32.mrb[6].mxu1  ;;  %v5264_v54 = vpop.f32.mrb[10].mxu0  ;;  %v5488_v27 = vunpack.c.l.bf16 (!%p6405_p12), %v8202_v16  ;;  %v5489_v1 = vunpack.c.h.bf16 (!%p6405_p12), %v8202_v16 }
 0x403   : > { %5410 = vst [vmem:[#allocation2] sm:$0xff] %v5398_v37  ;;  %5412 = vst [vmem:[#allocation2 + $0x10] sm:$0xff] %v5400_v39  ;;  %v5404_v44 = vadd.f32 %v5135_v38, %v3271_v45  ;;  %v5406_v50 = vadd.f32 %v5264_v54, %v3273_v49  ;;  %v5137_v2 = vpop.f32.mrb[7].mxu1  ;;  %v5266_v26 = vpop.f32.mrb[11].mxu0  ;;  %v5492_v16 = vunpack.c.l.bf16 (!%p6405_p12), %v8332_v52 }
 0x404   : > { %5411 = vst [vmem:[#allocation2 + $0x8] sm:$0xff] %v5399_v47  ;;  %5413 = vst [vmem:[#allocation2 + $0x18] sm:$0xff] %v5401_v48  ;;  %v5405_v55 = vadd.f32 %v5137_v2, %v3272_v41  ;;  %v5407_v53 = vadd.f32 %v5266_v26, %v3274_v43  ;;  %v5490_v41 = vunpack.c.l.bf16 (!%p6405_p12), %v8268_v0  ;;  %v5491_v26 = vunpack.c.h.bf16 (!%p6405_p12), %v8268_v0 }
 0x405   : > { %5416 = vst [vmem:[#allocation2 + $0x30] sm:$0xff] %v5404_v44  ;;  %5418 = vst [vmem:[#allocation2 + $0x40] sm:$0xff] %v5406_v50  ;;  %v5487_v44 = vunpack.c.h.bf16 (!%p6405_p12), %v8327_v51 }
 0x406   : > { %5417 = vst [vmem:[#allocation2 + $0x38] sm:$0xff] %v5405_v55  ;;  %5419 = vst [vmem:[#allocation2 + $0x48] sm:$0xff] %v5407_v53 }
 0x40a   : > { %v5426_v8 = vld [vmem:[#allocation2] sm:$0xff] (!%p6405_p12)  ;;  %v5428_v19 = vld [vmem:[#allocation2 + $0x10] sm:$0xff] (!%p6405_p12) }
 0x40b   : > { %v5427_v9 = vld [vmem:[#allocation2 + $0x8] sm:$0xff] (!%p6405_p12)  ;;  %v5429_v10 = vld [vmem:[#allocation2 + $0x18] sm:$0xff] (!%p6405_p12)  ;;  %v5470_v63 = vadd.f32 (!%p6405_p12), %v5443_v18, %v5426_v8  ;;  %v5472_v30 = vadd.f32 (!%p6405_p12), %v5451_v57, %v5428_v19 }
 0x40c   : > { %v5432_v46 = vld [vmem:[#allocation2 + $0x30] sm:$0xff] (!%p6405_p12)  ;;  %v5471_v28 = vadd.f32 (!%p6405_p12), %v5447_v20, %v5427_v9  ;;  %v5473_v36 = vadd.f32 (!%p6405_p12), %v5455_v21, %v5429_v10  ;;  %v5434_v45 = vld [vmem:[#allocation2 + $0x40] sm:$0xff] (!%p6405_p12) }
 0x40d   : > { %v5433_v22 = vld [vmem:[#allocation2 + $0x38] sm:$0xff] (!%p6405_p12)  ;;  %v5435_v49 = vld [vmem:[#allocation2 + $0x48] sm:$0xff] (!%p6405_p12)  ;;  %v5476_v39 = vadd.f32 (!%p6405_p12), %v5443_v18, %v5432_v46  ;;  %v5494_v47 = vadd.f32 (!%p6405_p12), %v5482_v12, %v5470_v63  ;;  %v5496_v38 = vadd.f32 (!%p6405_p12), %v5484_v14, %v5472_v30  ;;  %v5478_v50 = vadd.f32 (!%p6405_p12), %v5451_v57, %v5434_v45 }
 0x40e   : > { %v5477_v40 = vadd.f32 (!%p6405_p12), %v5447_v20, %v5433_v22  ;;  %v5495_v48 = vadd.f32 (!%p6405_p12), %v5483_v13, %v5471_v28  ;;  %v5479_v2 = vadd.f32 (!%p6405_p12), %v5455_v21, %v5435_v49  ;;  %v5497_v53 = vadd.f32 (!%p6405_p12), %v5485_v17, %v5473_v36 }
 0x410   : > { %v5503_v51 = vadd.f32 (!%p6405_p12), %v5491_v26, %v5479_v2 }
 0x4c0   : > { %v5389_v59 = vpop.f32.mrb[8].mxu1  ;;  %5425 = sbr.rel (%p6405_p12) target bundleno = 1566 (0x61e), region = 79 }
 0x4c1   : > { %v5402_v42 = vadd.f32 %v5389_v59, %v3269_v3  ;;  %v5391_v31 = vpop.f32.mrb[9].mxu1  ;;  %v5508_v3 = vadd.f32 (!%p6405_p12), %v5495_v48, %v5494_v47  ;;  %v5500_v59 = vadd.f32 (!%p6405_p12), %v5488_v27, %v5476_v39 }
 0x4c2   : > { %v5403_v62 = vadd.f32 %v5391_v31, %v3270_v58  ;;  %v5393_v4 = vpop.f32.mrb[10].mxu1  ;;  %v5502_v31 = vadd.f32 (!%p6405_p12), %v5490_v41, %v5478_v50 }
 0x4c3   : > { %5414 = vst [vmem:[#allocation2 + $0x20] sm:$0xff] %v5402_v42  ;;  %v5408_v5 = vadd.f32 %v5393_v4, %v3275_v61  ;;  %v5395_v6 = vpop.f32.mrb[11].mxu1  ;;  %v5501_v42 = vadd.f32 (!%p6405_p12), %v5489_v1, %v5477_v40 }
 0x4c4   : > { %5415 = vst [vmem:[#allocation2 + $0x28] sm:$0xff] %v5403_v62  ;;  %v5409_v7 = vadd.f32 %v5395_v6, %v3276_v56  ;;  %v5509_v62 = vadd.f32 (!%p6405_p12), %v5508_v3, %v5496_v38 }
 0x4c5   : > { %5420 = vst [vmem:[#allocation2 + $0x50] sm:$0xff] %v5408_v5  ;;  %v5493_v5 = vunpack.c.h.bf16 (!%p6405_p12), %v8332_v52  ;;  %v5515_v6 = vadd.f32 (!%p6405_p12), %v5501_v42, %v5500_v59 }
 0x4c6   : > { %5421 = vst [vmem:[#allocation2 + $0x58] sm:$0xff] %v5409_v7  ;;  %v5510_v8 = vadd.f32 (!%p6405_p12), %v5509_v62, %v5497_v53 }
 0x4c7   : > { %v5516_v9 = vadd.f32 %v5515_v6, %v5502_v31 }
 0x4c9   : > { %v5517_v11 = vadd.f32 %v5516_v9, %v5503_v51 }
 0x4ca   : > { %v5430_v23 = vld [vmem:[#allocation2 + $0x20] sm:$0xff] }
 0x4cb   : > { %v5431_v37 = vld [vmem:[#allocation2 + $0x28] sm:$0xff]  ;;  %v5474_v43 = vadd.f32 %v5459_v24, %v5430_v23 }
 0x4cc   : > { %v5436_v54 = vld [vmem:[#allocation2 + $0x50] sm:$0xff]  ;;  %v5475_v55 = vadd.f32 %v5463_v25, %v5431_v37 }
 0x4cd   : > { %v5437_v58 = vld [vmem:[#allocation2 + $0x58] sm:$0xff]  ;;  %v5480_v61 = vadd.f32 %v5459_v24, %v5436_v54  ;;  %v5498_v56 = vadd.f32 %v5486_v15, %v5474_v43 }
 0x4ce   : > { %v5481_v4 = vadd.f32 %v5463_v25, %v5437_v58  ;;  %v5499_v7 = vadd.f32 %v5487_v44, %v5475_v55 }
 0x4cf   : > { %v5504_v0 = vadd.f32 %v5492_v16, %v5480_v61  ;;  %v5511_v19 = vadd.f32 %v5510_v8, %v5498_v56 }
 0x4d0   : > { %v5505_v10 = vadd.f32 %v5493_v5, %v5481_v4  ;;  %v5506_v4 = vld [vmem:[%s9024_s5] sm:$0x3f] }
 0x4d1   : > { %v5512_v12 = vadd.f32 %v5511_v19, %v5499_v7  ;;  %v5518_v13 = vadd.f32 %v5517_v11, %v5504_v0  ;;  %v5507_v5 = vld [vmem:[%s9025_s6] sm:$0x3f]  ;;  %v5589_v6 = vrot.slane %v5506_v4, %v8567_v32  ;;  %v5597_v8 = vrot.slane %v5506_v4, %v8570_v33 }
 0x4d2   : > { %v5605_v9 = vrot.slane %v5506_v4, %v8806_v35  ;;  %v5632_v11 = vrot.slane %v5507_v5, %v8567_v32 }
 0x4d3   : > { %5513 = vadd.xlane.f32.xlu0 %v5512_v12  ;;  %v5519_v14 = vadd.f32 %v5518_v13, %v5505_v10  ;;  %v5636_v12 = vrot.slane %v5507_v5, %v8556_v29  ;;  %v5640_v13 = vrot.slane %v5507_v5, %v8570_v33 }
 0x4d7   : > { %5520 = vadd.xlane.f32.xlu0 %v5519_v14 }
 0x560   : > { %v5514_v17 = vpop.xlane.xlu0 %5513 }
 0x561   : > { %v5523_v18 = vmul.f32 0.0013020834, %v5514_v17 }
 0x563   : > { %v5525_v20 = vsub.f32 %v5494_v47, %v5523_v18  ;;  %v5526_v57 = vsub.f32 %v5495_v48, %v5523_v18  ;;  %v5527_v21 = vsub.f32 %v5496_v38, %v5523_v18  ;;  %v5528_v46 = vsub.f32 %v5497_v53, %v5523_v18 }
 0x564   : > { %v5521_v52 = vpop.xlane.xlu0 %5520  ;;  %v5529_v25 = vsub.f32 %v5498_v56, %v5523_v18  ;;  %v5530_v36 = vsub.f32 %v5499_v7, %v5523_v18  ;;  %v5593_v7 = vrot.slane %v5506_v4, %v8556_v29 }
 0x565   : > { %v5524_v22 = vmul.f32 0.0013020834, %v5521_v52  ;;  %v5537_v23 = vmul.f32 %v5525_v20, %v5525_v20  ;;  %v5538_v24 = vmul.f32 %v5526_v57, %v5526_v57  ;;  %v5539_v15 = vmul.f32 %v5527_v21, %v5527_v21 }
 0x566   : > { %v5540_v45 = vmul.f32 %v5528_v46, %v5528_v46  ;;  %v5541_v1 = vmul.f32 %v5529_v25, %v5529_v25  ;;  %v5542_v38 = vmul.f32 %v5530_v36, %v5530_v36 }
 0x567   : > { %v5549_v27 = vadd.f32 %v5538_v24, %v5537_v23  ;;  %v8943_v63 = vsub.f32 %v5500_v59, %v5524_v22  ;;  %v8945_v28 = vsub.f32 %v5501_v42, %v5524_v22  ;;  %v8947_v30 = vsub.f32 %v5502_v31, %v5524_v22 }
 0x568   : > { %v8949_v37 = vsub.f32 %v5503_v51, %v5524_v22  ;;  %v8955_v43 = vsub.f32 %v5504_v0, %v5524_v22  ;;  %v5536_v44 = vsub.f32 %v5505_v10, %v5524_v22  ;;  %v5585_v51 = vrot.slane %v5506_v4, %v8553_v60 }
 0x569   : > { %v5550_v49 = vadd.f32 %v5549_v27, %v5539_v15  ;;  %v5543_v39 = vmul.f32 %v8943_v63, %v8943_v63  ;;  %v5544_v40 = vmul.f32 %v8945_v28, %v8945_v28  ;;  %v5545_v47 = vmul.f32 %v8947_v30, %v8947_v30 }
 0x56a   : > { %v5546_v50 = vmul.f32 %v8949_v37, %v8949_v37  ;;  %v5547_v55 = vmul.f32 %v8955_v43, %v8955_v43  ;;  %v5548_v3 = vmul.f32 %v5536_v44, %v5536_v44  ;;  %v5601_v0 = vrot.slane %v5506_v4, %v8803_v34 }
 0x56b   : > { %v5551_v41 = vadd.f32 %v5550_v49, %v5540_v45  ;;  %v5556_v48 = vadd.f32 %v5544_v40, %v5543_v39  ;;  %v5628_v10 = vrot.slane %v5507_v5, %v8553_v60  ;;  %v5644_v22 = vrot.slane %v5507_v5, %v8803_v34 }
 0x56c   : > { %v5648_v23 = vrot.slane %v5507_v5, %v8806_v35 }
 0x56d   : > { %v5552_v54 = vadd.f32 %v5551_v41, %v5541_v1  ;;  %v5557_v2 = vadd.f32 %v5556_v48, %v5545_v47 }
 0x56f   : > { %v5553_v26 = vadd.f32 %v5552_v54, %v5542_v38  ;;  %v5558_v53 = vadd.f32 %v5557_v2, %v5546_v50 }
 0x571   : > { %5554 = vadd.xlane.f32.xlu1 %v5553_v26  ;;  %v5559_v58 = vadd.f32 %v5558_v53, %v5547_v55 }
 0x573   : > { %v5560_v59 = vadd.f32 %v5559_v58, %v5548_v3 }
 0x575   : > { %5561 = vadd.xlane.f32.xlu1 %v5560_v59 }
 0x5fe   : > { %v5555_v61 = vpop.xlane.xlu1 %5554 }
 0x5ff   : > { %v5563_v16 = vmul.f32 0.0013020834, %v5555_v61 }
 0x601   : > { %v5565_v42 = vadd.f32 1e-12, %v5563_v16 }
 0x602   : > { %v5562_v31 = vpop.xlane.xlu1 %5561 }
 0x603   : > { %7421 = vrsqrt.f32 %v5565_v42  ;;  %v5564_v56 = vmul.f32 0.0013020834, %v5562_v31 }
 0x605   : > { %v5566_v62 = vadd.f32 1e-12, %v5564_v56 }
 0x607   : > { %7423 = vrsqrt.f32 %v5566_v62 }
 0x60d   : > { %v7422_v19 = vpop.eup %7421 }
 0x60e   : > { %v5569_v14 = vmul.f32 %v7422_v19, %v5525_v20  ;;  %v5570_v17 = vmul.f32 %v7422_v19, %v5526_v57  ;;  %v5571_v18 = vmul.f32 %v7422_v19, %v5527_v21  ;;  %v5572_v52 = vmul.f32 %v7422_v19, %v5528_v46 }
 0x60f   : > { %v5573_v24 = vmul.f32 %v7422_v19, %v5529_v25  ;;  %v5574_v15 = vmul.f32 %v7422_v19, %v5530_v36 }
 0x610   : > { %v5612_v27 = vmul.f32 %v5585_v51, %v5569_v14  ;;  %v5613_v45 = vmul.f32 %v5589_v6, %v5570_v17  ;;  %v5614_v49 = vmul.f32 %v5593_v7, %v5571_v18  ;;  %v5615_v60 = vmul.f32 %v5597_v8, %v5572_v52 }
 0x611   : > { %v7424_v39 = vpop.eup %7423  ;;  %v5616_v32 = vmul.f32 %v5601_v0, %v5573_v24  ;;  %v5617_v40 = vmul.f32 %v5605_v9, %v5574_v15 }
 0x612   : > { %v5655_v29 = vadd.f32 %v5628_v10, %v5612_v27  ;;  %v5656_v1 = vadd.f32 %v5632_v11, %v5613_v45  ;;  %v5657_v33 = vadd.f32 %v5636_v12, %v5614_v49  ;;  %v5658_v20 = vadd.f32 %v5640_v13, %v5615_v60 }
 0x613   : > { %v5659_v57 = vadd.f32 %v5644_v22, %v5616_v32  ;;  %v5660_v21 = vadd.f32 %v5648_v23, %v5617_v40  ;;  %v5575_v46 = vmul.f32 %v7424_v39, %v8943_v63  ;;  %v5576_v34 = vmul.f32 %v7424_v39, %v8945_v28 }
 0x614   : > { %v6417_v35 = vpack.c.bf16 %v5656_v1, %v5655_v29  ;;  %v6418_v25 = vpack.c.bf16 %v5658_v20, %v5657_v33  ;;  %v5577_v36 = vmul.f32 %v7424_v39, %v8947_v30  ;;  %v5578_v41 = vmul.f32 %v7424_v39, %v8949_v37 }
 0x615   : > { %v6419_v47 = vpack.c.bf16 %v5660_v21, %v5659_v57  ;;  %v5579_v48 = vmul.f32 %v7424_v39, %v8955_v43  ;;  %v5580_v38 = vmul.f32 %v7424_v39, %v5536_v44  ;;  %v5618_v54 = vmul.f32 %v5585_v51, %v5575_v46 }
 0x616   : > { %5703 = vst [vmem:[%s9026_s7] sm:$0xff] %v6417_v35  ;;  %5704 = vst [vmem:[%s9026_s7 + $0x8] sm:$0xff] %v6418_v25  ;;  %v5619_v63 = vmul.f32 %v5589_v6, %v5576_v34  ;;  %v5620_v28 = vmul.f32 %v5593_v7, %v5577_v36  ;;  %v5621_v50 = vmul.f32 %v5597_v8, %v5578_v41 }
 0x617   : > { %5705 = vst [vmem:[%s9026_s7 + $0x10] sm:$0xff] %v6419_v47  ;;  %v5622_v30 = vmul.f32 %v5601_v0, %v5579_v48  ;;  %v5623_v37 = vmul.f32 %v5605_v9, %v5580_v38  ;;  %v5661_v43 = vadd.f32 %v5628_v10, %v5618_v54 }
 0x618   : > { %v5662_v44 = vadd.f32 %v5632_v11, %v5619_v63  ;;  %v5663_v2 = vadd.f32 %v5636_v12, %v5620_v28  ;;  %v5664_v26 = vadd.f32 %v5640_v13, %v5621_v50 }
 0x619   : > { %v5665_v55 = vadd.f32 %v5644_v22, %v5622_v30  ;;  %v5666_v53 = vadd.f32 %v5648_v23, %v5623_v37 }
 0x61a   : > { %v6420_v3 = vpack.c.bf16 %v5662_v44, %v5661_v43  ;;  %v6421_v58 = vpack.c.bf16 %v5664_v26, %v5663_v2 }
 0x61b   : > { %v6422_v59 = vpack.c.bf16 %v5666_v53, %v5665_v55 }
 0x61c   : > { %5706 = vst [vmem:[%s9026_s7 + $0x18] sm:$0xff] %v6420_v3  ;;  %5707 = vst [vmem:[%s9026_s7 + $0x20] sm:$0xff] %v6421_v58 }
 0x61d   : > { %5708 = vst [vmem:[%s9026_s7 + $0x28] sm:$0xff] %v6422_v59 }
 0x61e PF: > { %s17_s28 = sadd.s32 1, %s7463_s28   ;;  %s9027_s24 = smov %s7451_s25 }
 0x61f   : > { %p14_p13 = scmp.ge.s32.totalorder %s17_s28, 6   ;;  %s9028_s25 = smov %s7541_s9 }
 0x620   : > { %s9029_s26 = smov %s7459_s27  ;;  %s9030_s27 = smov %s9032_s29 }
 0x621   :  { %16 = sbr.rel (!%p14_p13) target bundleno = 3 (0x3), region = 123 }

</bundles_post_ra>
